<compile_context>
chip_gen: v7x
topology: tpu7x:2x2x1
jax: 0.10.0
libtpu: 0.0.40
codegen_flags: <defaults>
</compile_context>

<pallas_src>
import functools

import jax
import jax.numpy as jnp
from jax.experimental import pallas as pl
from jax.experimental.pallas import tpu as pltpu


LEAKY_SLOPE = 0.2
BN_EPS = 1e-5
LAYER_OC = {1: 64, 2: 128, 3: 256, 4: 512, 5: 1}
_VMEM_SOFT_LIMIT = 24 * 1024 * 1024   # conservative vs the 32 MiB scoped default


def _round_up(x, m):
    return ((x + m - 1) // m) * m


# ------------------- fused conv (+BN) + LeakyReLU kernels -------------------
def _conv_lrelu_kernel(a_ref, b_ref, o_ref, *, slope):
    # a: [tm, Kp] bf16, b: [Kp, tn] bf16 -> o: [tm, tn] bf16
    y = jnp.dot(a_ref[...], b_ref[...], preferred_element_type=jnp.float32)
    y = jnp.where(y > 0, y, slope * y)
    o_ref[...] = y.astype(o_ref.dtype)


def _conv_bn_lrelu_kernel(a_ref, b_ref, g_ref, bt_ref, o_ref, *,
                          m_actual, m_padded, eps, slope):
    # Matmul + training-mode BatchNorm (biased batch stats over the m_actual
    # valid rows; padded rows of `a` are zero) + LeakyReLU, all in one epilogue.
    y = jnp.dot(a_ref[...], b_ref[...], preferred_element_type=jnp.float32)
    inv_m = 1.0 / float(m_actual)
    mean = jnp.sum(y, axis=0, keepdims=True) * inv_m            # [1, tn]
    d = y - mean                                                # two-pass variance
    if m_padded != m_actual:
        # mask the zero-padded rows so they do not perturb the variance
        rows = jax.lax.broadcasted_iota(jnp.int32, d.shape, 0)
        d = jnp.where(rows < m_actual, d, 0.0)
    var = jnp.sum(d * d, axis=0, keepdims=True) * inv_m         # [1, tn]
    scale = g_ref[...] * jax.lax.rsqrt(var + eps)
    shift = bt_ref[...] - mean * scale
    z = y * scale + shift
    z = jnp.where(z > 0, z, slope * z)
    o_ref[...] = z.astype(o_ref.dtype)


def _check_vmem_budget(tm, kp, tn):
    # double-buffered bf16 A / B / O blocks (BN vectors are negligible)
    est = 2 * 2 * (tm * kp + kp * tn + tm * tn)
    if est > _VMEM_SOFT_LIMIT:
        raise ValueError(
            f"fused conv block needs ~{est / 2**20:.1f} MiB of VMEM "
            f"(tm={tm}, Kp={kp}, tn={tn}); add an M tile axis (with a "
            "cross-block BN stats reduction) or raise vmem_limit_bytes before "
            "scaling the batch size (v7x has only 64 MiB VMEM).")


def _fused_conv_call(a, b, gamma, beta, m_actual):
    """a: [Mp, Kp] bf16 patches, pre-packed b: [Kp, Np] bf16 -> [Mp, Np] bf16."""
    Mp, Kp = a.shape
    _, Np = b.shape
    # One N block for Np<=256; two 256-wide blocks for Np=512 (both v7x TCs).
    tn = 256 if (Np > 256 and Np % 256 == 0) else Np
    if gamma is None and Mp > 256 and Mp % 256 == 0:
        tm = 256          # layer 1 (no BN): split M too -> parallel blocks
    else:
        tm = Mp           # BN stats need every valid row in one block
    _check_vmem_budget(tm, Kp, tn)
    grid = (Mp // tm, Np // tn)

    if gamma is None:
        kernel = functools.partial(_conv_lrelu_kernel, slope=LEAKY_SLOPE)
        in_specs = [
            pl.BlockSpec((tm, Kp), lambda i, j: (i, 0)),
            pl.BlockSpec((Kp, tn), lambda i, j: (0, j)),
        ]
        args = (a, b)
    else:
        kernel = functools.partial(
            _conv_bn_lrelu_kernel, m_actual=m_actual, m_padded=Mp,
            eps=BN_EPS, slope=LEAKY_SLOPE)
        in_specs = [
            pl.BlockSpec((tm, Kp), lambda i, j: (i, 0)),
            pl.BlockSpec((Kp, tn), lambda i, j: (0, j)),
            pl.BlockSpec((1, tn), lambda i, j: (0, j)),
            pl.BlockSpec((1, tn), lambda i, j: (0, j)),
        ]
        args = (a, b, gamma, beta)

    return pl.pallas_call(
        kernel,
        out_shape=jax.ShapeDtypeStruct((Mp, Np), jnp.bfloat16),
        grid=grid,
        in_specs=in_specs,
        out_specs=pl.BlockSpec((tm, tn), lambda i, j: (i, j)),
        compiler_params=pltpu.CompilerParams(
            dimension_semantics=("parallel", "parallel")),
    )(*args)


# ----------------- final conv (OC=1) + sigmoid: chunked VPU dot -----------------
def _dot_sigmoid_kernel(a_ref, w_ref, o_ref, *, chunk):
    # a: [Mp, Kp] bf16, w: [1, Kp] f32 -> o: [Mp, 1] f32.  Chunked K reduction
    # keeps the live product at <= (Mp x chunk) f32 instead of the full width.
    mp, kp = a_ref.shape
    acc = jnp.zeros((mp, 1), jnp.float32)
    for c in range(0, kp, chunk):
        cw = min(chunk, kp - c)
        av = a_ref[:, c:c + cw].astype(jnp.float32)
        wv = w_ref[:, c:c + cw]
        acc = acc + jnp.sum(av * wv, axis=-1, keepdims=True)
    o_ref[...] = 1.0 / (1.0 + jnp.exp(-acc))


# ------------------------------ im2col helpers ------------------------------
def _im2col_s2d(x_nhwc):
    """im2col for conv(k=4, s=2, p=1) via 2x2 space-to-depth + 4 shifted slices."""
    N, H, W, C = x_nhwc.shape
    assert H % 2 == 0 and W % 2 == 0 and H >= 2 and W >= 2
    OH, OW = H // 2, W // 2
    xp = jnp.pad(x_nhwc, ((0, 0), (1, 1), (1, 1), (0, 0)))
    Hp, Wp = H + 2, W + 2
    # xs[n, bh, bw, (r, c, ic)] = xp[n, 2*bh + r, 2*bw + c, ic]
    xs = xp.reshape(N, Hp // 2, 2, Wp // 2, 2, C)
    xs = jnp.transpose(xs, (0, 1, 3, 2, 4, 5)).reshape(N, Hp // 2, Wp // 2, 4 * C)
    parts = [xs[:, bi:bi + OH, bj:bj + OW, :] for bi in (0, 1) for bj in (0, 1)]
    patches = jnp.concatenate(parts, axis=-1)           # [N, OH, OW, 16*C]
    return patches.reshape(N * OH * OW, 16 * C), OH, OW
# TODO(synk): fuse the space-to-depth im2col into the conv kernel (would remove
# two HBM round-trips per layer); kept as XLA glue on the tiny bf16 activations
# because the required in-kernel N-D reshape/transpose does not lower robustly.


def _weight_to_mat(w_oihw):
    """[OC, IC, 4, 4] -> [16*IC, OC] matching _im2col_s2d's K ordering."""
    oc, ic = w_oihw.shape[0], w_oihw.shape[1]
    wr = jnp.transpose(w_oihw, (2, 3, 1, 0))             # [kh, kw, ic, oc]
    wr = wr.reshape(2, 2, 2, 2, ic, oc)                  # (bi, r, bj, c, ic, oc)
    wr = jnp.transpose(wr, (0, 2, 1, 3, 4, 5))           # (bi, bj, r, c, ic, oc)
    return wr.reshape(16 * ic, oc)


# ------------------------------ layer wrappers ------------------------------
def conv_block(x_nhwc, w_packed, gamma=None, beta=None, *, oc):
    """Conv2d(4,2,1,bias=False) [+ BatchNorm batch stats] + LeakyReLU(0.2)."""
    N = x_nhwc.shape[0]
    patches, OH, OW = _im2col_s2d(x_nhwc)                # [M, 16*C] bf16
    M, K = patches.shape
    Kp, _ = w_packed.shape
    Mp = _round_up(max(M, 16), 16)
    a = jnp.pad(patches, ((0, Mp - M), (0, Kp - K)))
    y = _fused_conv_call(a, w_packed, gamma, beta, M)    # [Mp, Np] bf16
    return y[:M, :oc].reshape(N, OH, OW, oc)


def conv_sigmoid(x_nhwc, w_row):
    """Final Conv2d(4,2,1,bias=False) with OC==1, fused with Sigmoid (VPU dot)."""
    N = x_nhwc.shape[0]
    patches, OH, OW = _im2col_s2d(x_nhwc)                # [M, 16*C] bf16
    M, K = patches.shape
    Kp = w_row.shape[1]
    Mp = _round_up(max(M, 16), 16)
    a = jnp.pad(patches, ((0, Mp - M), (0, Kp - K)))
    out = pl.pallas_call(
        functools.partial(_dot_sigmoid_kernel, chunk=1024),
        out_shape=jax.ShapeDtypeStruct((Mp, 1), jnp.float32),
        grid=(1,),
        in_specs=[pl.BlockSpec((Mp, Kp), lambda i: (0, 0)),
                  pl.BlockSpec((1, Kp), lambda i: (0, 0))],
        out_specs=pl.BlockSpec((Mp, 1), lambda i: (0, 0)),
    )(a, w_row)
    return out[:M, :].reshape(N, OH, OW, 1)


# --------------------------- Discriminator forward ---------------------------
def discriminator_forward(x_nchw, params):
    """`params` must come from pack_params() (weights pre-packed at init)."""
    x = jnp.transpose(x_nchw, (0, 2, 3, 1)).astype(jnp.bfloat16)  # NCHW -> NHWC bf16

    # layer 1: conv -> LeakyReLU(0.2)
    x = conv_block(x, params["w1"], oc=LAYER_OC[1])

    # layers 2-4: conv -> BatchNorm(training batch stats) -> LeakyReLU(0.2)
    for i in (2, 3, 4):
        x = conv_block(x, params[f"w{i}"], params[f"g{i}"], params[f"b{i}"],
                       oc=LAYER_OC[i])

    # layer 5: conv -> Sigmoid
    out = conv_sigmoid(x, params["w5"])                  # [N, OH, OW, 1] f32
    return jnp.transpose(out, (0, 3, 1, 2))              # NHWC -> NCHW


# ------------------------------- parameters -------------------------------
def init_raw_params(key, channels=3):
    """PyTorch-style raw weights: Conv OIHW N(0, 0.02), BN gamma N(1, 0.02), beta 0."""
    conv_shapes = [(64, channels, 4, 4), (128, 64, 4, 4), (256, 128, 4, 4),
                   (512, 256, 4, 4), (1, 512, 4, 4)]
    keys = jax.random.split(key, 8)
    raw = {}
    for i, s in enumerate(conv_shapes):
        raw[f"w{i + 1}"] = 0.02 * jax.random.normal(keys[i], s, jnp.float32)
    for j, oc in zip((2, 3, 4), (128, 256, 512)):
        raw[f"g{j}"] = 1.0 + 0.02 * jax.random.normal(keys[3 + j], (oc,), jnp.float32)
        raw[f"b{j}"] = jnp.zeros((oc,), jnp.float32)
    return raw


def pack_params(raw):
    """One-time packing: weights -> padded [Kp, Np] bf16; BN affine -> [1, Np] f32."""
    p = {}
    for i in range(1, 5):
        w = raw[f"w{i}"]
        oc, ic = w.shape[0], w.shape[1]
        wm = _weight_to_mat(w)                            # [16*ic, oc] f32
        K = 16 * ic
        Kp = _round_up(K, 128)
        Np = _round_up(oc, 128)
        p[f"w{i}"] = jnp.pad(wm, ((0, Kp - K), (0, Np - oc))).astype(jnp.bfloat16)
        if i >= 2:
            p[f"g{i}"] = jnp.pad(raw[f"g{i}"], (0, Np - oc)).reshape(1, Np).astype(jnp.float32)
            p[f"b{i}"] = jnp.pad(raw[f"b{i}"], (0, Np - oc)).reshape(1, Np).astype(jnp.float32)
    # final layer (OC == 1): keep as an f32 row vector for the VPU dot kernel
    w5 = raw["w5"]
    ic = w5.shape[1]
    wm = _weight_to_mat(w5)[:, 0]                         # [16*ic] f32
    K = 16 * ic
    Kp = _round_up(K, 128)
    p["w5"] = jnp.pad(wm, (0, Kp - K)).reshape(1, Kp).astype(jnp.float32)
    return p


if __name__ == "__main__":
    key = jax.random.PRNGKey(0)
    k_param, k_input = jax.random.split(key)

    raw = init_raw_params(k_param, channels=3)
    params = pack_params(raw)          # weight packing done once, outside the forward

    # smallest valid input for five stride-2 convs: spatial 32 -> output [2, 1, 1, 1]
    x = jax.random.normal(k_input, (2, 3, 32, 32), dtype=jnp.float32)

    fwd = jax.jit(discriminator_forward)
    out = fwd(x, params)
    jax.block_until_ready(out)
    assert out.shape == (2, 1, 1, 1), out.shape
    assert bool(jnp.all(jnp.isfinite(out) & (out >= 0.0) & (out <= 1.0)))
    print("KERNEL_OK")
</pallas_src>

<mosaic_0001>
module attributes {stable_mosaic.version = 11 : i64} {
  func.func @_conv_lrelu_kernel(%arg0: i32, %arg1: i32, %arg2: memref<256x128xbf16, #tpu.memory_space<vmem>>, %arg3: memref<128x128xbf16, #tpu.memory_space<vmem>>, %arg4: memref<256x128xbf16, #tpu.memory_space<vmem>>) attributes {dimension_semantics = [#tpu.dimension_semantics<parallel>, #tpu.dimension_semantics<parallel>], iteration_bounds = array<i64: 2, 1>, scalar_prefetch = 0 : i64, scratch_operands = 0 : i64, tpu.core_type = #tpu.core_type<tc>, window_params = [{transform_indices = @transform_0, window_bounds = array<i64: 256, 128>}, {transform_indices = @transform_1, window_bounds = array<i64: 128, 128>}, {transform_indices = @transform_2, window_bounds = array<i64: 256, 128>}]} {
    %c0 = arith.constant 0 : index
    %c0_0 = arith.constant 0 : index
    %0 = vector.load %arg2[%c0, %c0_0] : memref<256x128xbf16, #tpu.memory_space<vmem>>, vector<256x128xbf16>
    %c0_1 = arith.constant 0 : index
    %c0_2 = arith.constant 0 : index
    %1 = vector.load %arg3[%c0_1, %c0_2] : memref<128x128xbf16, #tpu.memory_space<vmem>>, vector<128x128xbf16>
    %cst = arith.constant dense<0.000000e+00> : vector<256x128xf32>
    %2 = tpu.matmul %0, %1, %cst {dimension_numbers = #tpu.dot_dimension_numbers<[1], [0], [0], [1], [0, 0, 1, 1], [], []>} : vector<256x128xbf16>, vector<128x128xbf16>, vector<256x128xf32> -> vector<256x128xf32>
    %cst_3 = arith.constant 0.000000e+00 : f32
    %3 = vector.broadcast %cst_3 : f32 to vector<256x128xf32>
    %4 = arith.cmpf ogt, %2, %3 : vector<256x128xf32>
    %cst_4 = arith.constant 2.000000e-01 : f32
    %5 = vector.broadcast %cst_4 : f32 to vector<256x128xf32>
    %6 = arith.mulf %5, %2 : vector<256x128xf32>
    %7 = arith.select %4, %2, %6 : vector<256x128xi1>, vector<256x128xf32>
    %8 = arith.truncf %7 : vector<256x128xf32> to vector<256x128xbf16>
    %c0_5 = arith.constant 0 : index
    %c0_6 = arith.constant 0 : index
    %9 = vector.load %arg4[%c0_5, %c0_6] : memref<256x128xbf16, #tpu.memory_space<vmem>>, vector<256x128xbf16>
    tpu.vector_store %arg4[%c0_5, %c0_6], %8 {strides = array<i32>} : memref<256x128xbf16, #tpu.memory_space<vmem>>, vector<256x128xbf16>,
    return
  }
  func.func @transform_0(%arg0: i32, %arg1: i32) -> (i32, i32) {
    %c0_i32 = arith.constant 0 : i32
    %c0_i32_0 = arith.constant 0 : i32
    return %arg0, %c0_i32 : i32, i32
  }
  func.func @transform_1(%arg0: i32, %arg1: i32) -> (i32, i32) {
    %c0_i32 = arith.constant 0 : i32
    %c0_i32_0 = arith.constant 0 : i32
    return %c0_i32, %arg1 : i32, i32
  }
  func.func @transform_2(%arg0: i32, %arg1: i32) -> (i32, i32) {
    %c0_i32 = arith.constant 0 : i32
    return %arg0, %arg1 : i32, i32
  }
}

module attributes {stable_mosaic.version = 11 : i64} {
  func.func @_conv_bn_lrelu_kernel(%arg0: i32, %arg1: i32, %arg2: memref<128x1024xbf16, #tpu.memory_space<vmem>>, %arg3: memref<1024x128xbf16, #tpu.memory_space<vmem>>, %arg4: memref<1x128xf32, #tpu.memory_space<vmem>>, %arg5: memref<1x128xf32, #tpu.memory_space<vmem>>, %arg6: memref<128x128xbf16, #tpu.memory_space<vmem>>) attributes {dimension_semantics = [#tpu.dimension_semantics<parallel>, #tpu.dimension_semantics<parallel>], iteration_bounds = array<i64: 1, 1>, scalar_prefetch = 0 : i64, scratch_operands = 0 : i64, tpu.core_type = #tpu.core_type<tc>, window_params = [{transform_indices = @transform_0, window_bounds = array<i64: 128, 1024>}, {transform_indices = @transform_1, window_bounds = array<i64: 1024, 128>}, {transform_indices = @transform_2, window_bounds = array<i64: 1, 128>}, {transform_indices = @transform_3, window_bounds = array<i64: 1, 128>}, {transform_indices = @transform_4, window_bounds = array<i64: 128, 128>}]} {
    %c0 = arith.constant 0 : index
    %c0_0 = arith.constant 0 : index
    %0 = vector.load %arg2[%c0, %c0_0] : memref<128x1024xbf16, #tpu.memory_space<vmem>>, vector<128x1024xbf16>
    %c0_1 = arith.constant 0 : index
    %c0_2 = arith.constant 0 : index
    %1 = vector.load %arg3[%c0_1, %c0_2] : memref<1024x128xbf16, #tpu.memory_space<vmem>>, vector<1024x128xbf16>
    %cst = arith.constant dense<0.000000e+00> : vector<128x128xf32>
    %2 = tpu.matmul %0, %1, %cst {dimension_numbers = #tpu.dot_dimension_numbers<[1], [0], [0], [1], [0, 0, 1, 1], [], []>} : vector<128x1024xbf16>, vector<1024x128xbf16>, vector<128x128xf32> -> vector<128x128xf32>
    %cst_3 = arith.constant dense<0.000000e+00> : vector<128xf32>
    %3 = vector.multi_reduction <add>, %2, %cst_3 [0] : vector<128x128xf32> to vector<128xf32>
    %4 = vector.shape_cast %3 : vector<128xf32> to vector<1x128xf32>
    %cst_4 = arith.constant 7.812500e-03 : f32
    %5 = vector.broadcast %cst_4 : f32 to vector<1x128xf32>
    %6 = arith.mulf %4, %5 : vector<1x128xf32>
    %7 = vector.broadcast %6 : vector<1x128xf32> to vector<128x128xf32>
    %8 = arith.subf %2, %7 : vector<128x128xf32>
    %9 = arith.mulf %8, %8 : vector<128x128xf32>
    %cst_5 = arith.constant dense<0.000000e+00> : vector<128xf32>
    %10 = vector.multi_reduction <add>, %9, %cst_5 [0] : vector<128x128xf32> to vector<128xf32>
    %11 = vector.shape_cast %10 : vector<128xf32> to vector<1x128xf32>
    %cst_6 = arith.constant 7.812500e-03 : f32
    %12 = vector.broadcast %cst_6 : f32 to vector<1x128xf32>
    %13 = arith.mulf %11, %12 : vector<1x128xf32>
    %c0_7 = arith.constant 0 : index
    %c0_8 = arith.constant 0 : index
    %14 = vector.load %arg4[%c0_7, %c0_8] : memref<1x128xf32, #tpu.memory_space<vmem>>, vector<1x128xf32>
    %cst_9 = arith.constant 9.99999974E-6 : f32
    %15 = vector.broadcast %cst_9 : f32 to vector<1x128xf32>
    %16 = arith.addf %13, %15 : vector<1x128xf32>
    %17 = math.rsqrt %16 : vector<1x128xf32>
    %18 = arith.mulf %14, %17 : vector<1x128xf32>
    %c0_10 = arith.constant 0 : index
    %c0_11 = arith.constant 0 : index
    %19 = vector.load %arg5[%c0_10, %c0_11] : memref<1x128xf32, #tpu.memory_space<vmem>>, vector<1x128xf32>
    %20 = arith.mulf %6, %18 : vector<1x128xf32>
    %21 = arith.subf %19, %20 : vector<1x128xf32>
    %22 = vector.broadcast %18 : vector<1x128xf32> to vector<128x128xf32>
    %23 = arith.mulf %2, %22 : vector<128x128xf32>
    %24 = vector.broadcast %21 : vector<1x128xf32> to vector<128x128xf32>
    %25 = arith.addf %23, %24 : vector<128x128xf32>
    %cst_12 = arith.constant 0.000000e+00 : f32
    %26 = vector.broadcast %cst_12 : f32 to vector<128x128xf32>
    %27 = arith.cmpf ogt, %25, %26 : vector<128x128xf32>
    %cst_13 = arith.constant 2.000000e-01 : f32
    %28 = vector.broadcast %cst_13 : f32 to vector<128x128xf32>
    %29 = arith.mulf %28, %25 : vector<128x128xf32>
    %30 = arith.select %27, %25, %29 : vector<128x128xi1>, vector<128x128xf32>
    %31 = arith.truncf %30 : vector<128x128xf32> to vector<128x128xbf16>
    %c0_14 = arith.constant 0 : index
    %c0_15 = arith.constant 0 : index
    %32 = vector.load %arg6[%c0_14, %c0_15] : memref<128x128xbf16, #tpu.memory_space<vmem>>, vector<128x128xbf16>
    tpu.vector_store %arg6[%c0_14, %c0_15], %31 {strides = array<i32>} : memref<128x128xbf16, #tpu.memory_space<vmem>>, vector<128x128xbf16>,
    return
  }
  func.func @transform_0(%arg0: i32, %arg1: i32) -> (i32, i32) {
    %c0_i32 = arith.constant 0 : i32
    %c0_i32_0 = arith.constant 0 : i32
    return %arg0, %c0_i32 : i32, i32
  }
  func.func @transform_1(%arg0: i32, %arg1: i32) -> (i32, i32) {
    %c0_i32 = arith.constant 0 : i32
    %c0_i32_0 = arith.constant 0 : i32
    return %c0_i32, %arg1 : i32, i32
  }
  func.func @transform_2(%arg0: i32, %arg1: i32) -> (i32, i32) {
    %c0_i32 = arith.constant 0 : i32
    %c0_i32_0 = arith.constant 0 : i32
    return %c0_i32, %arg1 : i32, i32
  }
  func.func @transform_3(%arg0: i32, %arg1: i32) -> (i32, i32) {
    %c0_i32 = arith.constant 0 : i32
    %c0_i32_0 = arith.constant 0 : i32
    return %c0_i32, %arg1 : i32, i32
  }
  func.func @transform_4(%arg0: i32, %arg1: i32) -> (i32, i32) {
    %c0_i32 = arith.constant 0 : i32
    return %arg0, %arg1 : i32, i32
  }
}

module attributes {stable_mosaic.version = 11 : i64} {
  func.func @_conv_bn_lrelu_kernel(%arg0: i32, %arg1: i32, %arg2: memref<32x2048xbf16, #tpu.memory_space<vmem>>, %arg3: memref<2048x256xbf16, #tpu.memory_space<vmem>>, %arg4: memref<1x256xf32, #tpu.memory_space<vmem>>, %arg5: memref<1x256xf32, #tpu.memory_space<vmem>>, %arg6: memref<32x256xbf16, #tpu.memory_space<vmem>>) attributes {dimension_semantics = [#tpu.dimension_semantics<parallel>, #tpu.dimension_semantics<parallel>], iteration_bounds = array<i64: 1, 1>, scalar_prefetch = 0 : i64, scratch_operands = 0 : i64, tpu.core_type = #tpu.core_type<tc>, window_params = [{transform_indices = @transform_0, window_bounds = array<i64: 32, 2048>}, {transform_indices = @transform_1, window_bounds = array<i64: 2048, 256>}, {transform_indices = @transform_2, window_bounds = array<i64: 1, 256>}, {transform_indices = @transform_3, window_bounds = array<i64: 1, 256>}, {transform_indices = @transform_4, window_bounds = array<i64: 32, 256>}]} {
    %c0 = arith.constant 0 : index
    %c0_0 = arith.constant 0 : index
    %0 = vector.load %arg2[%c0, %c0_0] : memref<32x2048xbf16, #tpu.memory_space<vmem>>, vector<32x2048xbf16>
    %c0_1 = arith.constant 0 : index
    %c0_2 = arith.constant 0 : index
    %1 = vector.load %arg3[%c0_1, %c0_2] : memref<2048x256xbf16, #tpu.memory_space<vmem>>, vector<2048x256xbf16>
    %cst = arith.constant dense<0.000000e+00> : vector<32x256xf32>
    %2 = tpu.matmul %0, %1, %cst {dimension_numbers = #tpu.dot_dimension_numbers<[1], [0], [0], [1], [0, 0, 1, 1], [], []>} : vector<32x2048xbf16>, vector<2048x256xbf16>, vector<32x256xf32> -> vector<32x256xf32>
    %cst_3 = arith.constant dense<0.000000e+00> : vector<256xf32>
    %3 = vector.multi_reduction <add>, %2, %cst_3 [0] : vector<32x256xf32> to vector<256xf32>
    %4 = vector.shape_cast %3 : vector<256xf32> to vector<1x256xf32>
    %cst_4 = arith.constant 3.125000e-02 : f32
    %5 = vector.broadcast %cst_4 : f32 to vector<1x256xf32>
    %6 = arith.mulf %4, %5 : vector<1x256xf32>
    %7 = vector.broadcast %6 : vector<1x256xf32> to vector<32x256xf32>
    %8 = arith.subf %2, %7 : vector<32x256xf32>
    %9 = arith.mulf %8, %8 : vector<32x256xf32>
    %cst_5 = arith.constant dense<0.000000e+00> : vector<256xf32>
    %10 = vector.multi_reduction <add>, %9, %cst_5 [0] : vector<32x256xf32> to vector<256xf32>
    %11 = vector.shape_cast %10 : vector<256xf32> to vector<1x256xf32>
    %cst_6 = arith.constant 3.125000e-02 : f32
    %12 = vector.broadcast %cst_6 : f32 to vector<1x256xf32>
    %13 = arith.mulf %11, %12 : vector<1x256xf32>
    %c0_7 = arith.constant 0 : index
    %c0_8 = arith.constant 0 : index
    %14 = vector.load %arg4[%c0_7, %c0_8] : memref<1x256xf32, #tpu.memory_space<vmem>>, vector<1x256xf32>
    %cst_9 = arith.constant 9.99999974E-6 : f32
    %15 = vector.broadcast %cst_9 : f32 to vector<1x256xf32>
    %16 = arith.addf %13, %15 : vector<1x256xf32>
    %17 = math.rsqrt %16 : vector<1x256xf32>
    %18 = arith.mulf %14, %17 : vector<1x256xf32>
    %c0_10 = arith.constant 0 : index
    %c0_11 = arith.constant 0 : index
    %19 = vector.load %arg5[%c0_10, %c0_11] : memref<1x256xf32, #tpu.memory_space<vmem>>, vector<1x256xf32>
    %20 = arith.mulf %6, %18 : vector<1x256xf32>
    %21 = arith.subf %19, %20 : vector<1x256xf32>
    %22 = vector.broadcast %18 : vector<1x256xf32> to vector<32x256xf32>
    %23 = arith.mulf %2, %22 : vector<32x256xf32>
    %24 = vector.broadcast %21 : vector<1x256xf32> to vector<32x256xf32>
    %25 = arith.addf %23, %24 : vector<32x256xf32>
    %cst_12 = arith.constant 0.000000e+00 : f32
    %26 = vector.broadcast %cst_12 : f32 to vector<32x256xf32>
    %27 = arith.cmpf ogt, %25, %26 : vector<32x256xf32>
    %cst_13 = arith.constant 2.000000e-01 : f32
    %28 = vector.broadcast %cst_13 : f32 to vector<32x256xf32>
    %29 = arith.mulf %28, %25 : vector<32x256xf32>
    %30 = arith.select %27, %25, %29 : vector<32x256xi1>, vector<32x256xf32>
    %31 = arith.truncf %30 : vector<32x256xf32> to vector<32x256xbf16>
    %c0_14 = arith.constant 0 : index
    %c0_15 = arith.constant 0 : index
    %32 = vector.load %arg6[%c0_14, %c0_15] : memref<32x256xbf16, #tpu.memory_space<vmem>>, vector<32x256xbf16>
    tpu.vector_store %arg6[%c0_14, %c0_15], %31 {strides = array<i32>} : memref<32x256xbf16, #tpu.memory_space<vmem>>, vector<32x256xbf16>,
    return
  }
  func.func @transform_0(%arg0: i32, %arg1: i32) -> (i32, i32) {
    %c0_i32 = arith.constant 0 : i32
    %c0_i32_0 = arith.constant 0 : i32
    return %arg0, %c0_i32 : i32, i32
  }
  func.func @transform_1(%arg0: i32, %arg1: i32) -> (i32, i32) {
    %c0_i32 = arith.constant 0 : i32
    %c0_i32_0 = arith.constant 0 : i32
    return %c0_i32, %arg1 : i32, i32
  }
  func.func @transform_2(%arg0: i32, %arg1: i32) -> (i32, i32) {
    %c0_i32 = arith.constant 0 : i32
    %c0_i32_0 = arith.constant 0 : i32
    return %c0_i32, %arg1 : i32, i32
  }
  func.func @transform_3(%arg0: i32, %arg1: i32) -> (i32, i32) {
    %c0_i32 = arith.constant 0 : i32
    %c0_i32_0 = arith.constant 0 : i32
    return %c0_i32, %arg1 : i32, i32
  }
  func.func @transform_4(%arg0: i32, %arg1: i32) -> (i32, i32) {
    %c0_i32 = arith.constant 0 : i32
    return %arg0, %arg1 : i32, i32
  }
}

module attributes {stable_mosaic.version = 11 : i64} {
  func.func @_conv_bn_lrelu_kernel(%arg0: i32, %arg1: i32, %arg2: memref<16x4096xbf16, #tpu.memory_space<vmem>>, %arg3: memref<4096x256xbf16, #tpu.memory_space<vmem>>, %arg4: memref<1x256xf32, #tpu.memory_space<vmem>>, %arg5: memref<1x256xf32, #tpu.memory_space<vmem>>, %arg6: memref<16x256xbf16, #tpu.memory_space<vmem>>) attributes {dimension_semantics = [#tpu.dimension_semantics<parallel>, #tpu.dimension_semantics<parallel>], iteration_bounds = array<i64: 1, 2>, scalar_prefetch = 0 : i64, scratch_operands = 0 : i64, tpu.core_type = #tpu.core_type<tc>, window_params = [{transform_indices = @transform_0, window_bounds = array<i64: 16, 4096>}, {transform_indices = @transform_1, window_bounds = array<i64: 4096, 256>}, {transform_indices = @transform_2, window_bounds = array<i64: 1, 256>}, {transform_indices = @transform_3, window_bounds = array<i64: 1, 256>}, {transform_indices = @transform_4, window_bounds = array<i64: 16, 256>}]} {
    %c0 = arith.constant 0 : index
    %c0_0 = arith.constant 0 : index
    %0 = vector.load %arg2[%c0, %c0_0] : memref<16x4096xbf16, #tpu.memory_space<vmem>>, vector<16x4096xbf16>
    %c0_1 = arith.constant 0 : index
    %c0_2 = arith.constant 0 : index
    %1 = vector.load %arg3[%c0_1, %c0_2] : memref<4096x256xbf16, #tpu.memory_space<vmem>>, vector<4096x256xbf16>
    %cst = arith.constant dense<0.000000e+00> : vector<16x256xf32>
    %2 = tpu.matmul %0, %1, %cst {dimension_numbers = #tpu.dot_dimension_numbers<[1], [0], [0], [1], [0, 0, 1, 1], [], []>} : vector<16x4096xbf16>, vector<4096x256xbf16>, vector<16x256xf32> -> vector<16x256xf32>
    %cst_3 = arith.constant dense<0.000000e+00> : vector<256xf32>
    %3 = vector.multi_reduction <add>, %2, %cst_3 [0] : vector<16x256xf32> to vector<256xf32>
    %4 = vector.shape_cast %3 : vector<256xf32> to vector<1x256xf32>
    %cst_4 = arith.constant 1.250000e-01 : f32
    %5 = vector.broadcast %cst_4 : f32 to vector<1x256xf32>
    %6 = arith.mulf %4, %5 : vector<1x256xf32>
    %7 = vector.broadcast %6 : vector<1x256xf32> to vector<16x256xf32>
    %8 = arith.subf %2, %7 : vector<16x256xf32>
    %9 = tpu.iota {dimensions = array<i32: 0>} : vector<16x256xi32>
    %c8_i32 = arith.constant 8 : i32
    %10 = vector.broadcast %c8_i32 : i32 to vector<16x256xi32>
    %11 = arith.cmpi slt, %9, %10 : vector<16x256xi32>
    %cst_5 = arith.constant 0.000000e+00 : f32
    %12 = vector.broadcast %cst_5 : f32 to vector<16x256xf32>
    %13 = arith.select %11, %8, %12 : vector<16x256xi1>, vector<16x256xf32>
    %14 = arith.mulf %13, %13 : vector<16x256xf32>
    %cst_6 = arith.constant dense<0.000000e+00> : vector<256xf32>
    %15 = vector.multi_reduction <add>, %14, %cst_6 [0] : vector<16x256xf32> to vector<256xf32>
    %16 = vector.shape_cast %15 : vector<256xf32> to vector<1x256xf32>
    %cst_7 = arith.constant 1.250000e-01 : f32
    %17 = vector.broadcast %cst_7 : f32 to vector<1x256xf32>
    %18 = arith.mulf %16, %17 : vector<1x256xf32>
    %c0_8 = arith.constant 0 : index
    %c0_9 = arith.constant 0 : index
    %19 = vector.load %arg4[%c0_8, %c0_9] : memref<1x256xf32, #tpu.memory_space<vmem>>, vector<1x256xf32>
    %cst_10 = arith.constant 9.99999974E-6 : f32
    %20 = vector.broadcast %cst_10 : f32 to vector<1x256xf32>
    %21 = arith.addf %18, %20 : vector<1x256xf32>
    %22 = math.rsqrt %21 : vector<1x256xf32>
    %23 = arith.mulf %19, %22 : vector<1x256xf32>
    %c0_11 = arith.constant 0 : index
    %c0_12 = arith.constant 0 : index
    %24 = vector.load %arg5[%c0_11, %c0_12] : memref<1x256xf32, #tpu.memory_space<vmem>>, vector<1x256xf32>
    %25 = arith.mulf %6, %23 : vector<1x256xf32>
    %26 = arith.subf %24, %25 : vector<1x256xf32>
    %27 = vector.broadcast %23 : vector<1x256xf32> to vector<16x256xf32>
    %28 = arith.mulf %2, %27 : vector<16x256xf32>
    %29 = vector.broadcast %26 : vector<1x256xf32> to vector<16x256xf32>
    %30 = arith.addf %28, %29 : vector<16x256xf32>
    %cst_13 = arith.constant 0.000000e+00 : f32
    %31 = vector.broadcast %cst_13 : f32 to vector<16x256xf32>
    %32 = arith.cmpf ogt, %30, %31 : vector<16x256xf32>
    %cst_14 = arith.constant 2.000000e-01 : f32
    %33 = vector.broadcast %cst_14 : f32 to vector<16x256xf32>
    %34 = arith.mulf %33, %30 : vector<16x256xf32>
    %35 = arith.select %32, %30, %34 : vector<16x256xi1>, vector<16x256xf32>
    %36 = arith.truncf %35 : vector<16x256xf32> to vector<16x256xbf16>
    %c0_15 = arith.constant 0 : index
    %c0_16 = arith.constant 0 : index
    %37 = vector.load %arg6[%c0_15, %c0_16] : memref<16x256xbf16, #tpu.memory_space<vmem>>, vector<16x256xbf16>
    tpu.vector_store %arg6[%c0_15, %c0_16], %36 {strides = array<i32>} : memref<16x256xbf16, #tpu.memory_space<vmem>>, vector<16x256xbf16>,
    return
  }
  func.func @transform_0(%arg0: i32, %arg1: i32) -> (i32, i32) {
    %c0_i32 = arith.constant 0 : i32
    %c0_i32_0 = arith.constant 0 : i32
    return %arg0, %c0_i32 : i32, i32
  }
  func.func @transform_1(%arg0: i32, %arg1: i32) -> (i32, i32) {
    %c0_i32 = arith.constant 0 : i32
    %c0_i32_0 = arith.constant 0 : i32
    return %c0_i32, %arg1 : i32, i32
  }
  func.func @transform_2(%arg0: i32, %arg1: i32) -> (i32, i32) {
    %c0_i32 = arith.constant 0 : i32
    %c0_i32_0 = arith.constant 0 : i32
    return %c0_i32, %arg1 : i32, i32
  }
  func.func @transform_3(%arg0: i32, %arg1: i32) -> (i32, i32) {
    %c0_i32 = arith.constant 0 : i32
    %c0_i32_0 = arith.constant 0 : i32
    return %c0_i32, %arg1 : i32, i32
  }
  func.func @transform_4(%arg0: i32, %arg1: i32) -> (i32, i32) {
    %c0_i32 = arith.constant 0 : i32
    return %arg0, %arg1 : i32, i32
  }
}

module attributes {stable_mosaic.version = 11 : i64} {
  func.func @_dot_sigmoid_kernel(%arg0: i32, %arg1: memref<16x8192xbf16, #tpu.memory_space<vmem>>, %arg2: memref<1x8192xf32, #tpu.memory_space<vmem>>, %arg3: memref<16x1xf32, #tpu.memory_space<vmem>>) attributes {dimension_semantics = [#tpu.dimension_semantics<arbitrary>], iteration_bounds = array<i64: 1>, scalar_prefetch = 0 : i64, scratch_operands = 0 : i64, tpu.core_type = #tpu.core_type<tc>, window_params = [{pipeline_mode = #tpu.pipeline_mode<synchronous>, transform_indices = @transform_0, window_bounds = array<i64: 16, 8192>}, {pipeline_mode = #tpu.pipeline_mode<synchronous>, transform_indices = @transform_1, window_bounds = array<i64: 1, 8192>}, {pipeline_mode = #tpu.pipeline_mode<synchronous>, transform_indices = @transform_2, window_bounds = array<i64: 16, 1>}]} {
    %cst = arith.constant 0.000000e+00 : f32
    %0 = vector.broadcast %cst : f32 to vector<16x1xf32>
    %c0 = arith.constant 0 : index
    %c0_0 = arith.constant 0 : index
    %1 = vector.load %arg1[%c0, %c0_0] : memref<16x8192xbf16, #tpu.memory_space<vmem>>, vector<16x1024xbf16>
    %2 = arith.extf %1 : vector<16x1024xbf16> to vector<16x1024xf32>
    %c0_1 = arith.constant 0 : index
    %c0_2 = arith.constant 0 : index
    %3 = vector.load %arg2[%c0_1, %c0_2] : memref<1x8192xf32, #tpu.memory_space<vmem>>, vector<1x1024xf32>
    %4 = vector.broadcast %3 : vector<1x1024xf32> to vector<16x1024xf32>
    %5 = arith.mulf %2, %4 : vector<16x1024xf32>
    %cst_3 = arith.constant dense<0.000000e+00> : vector<16xf32>
    %6 = vector.multi_reduction <add>, %5, %cst_3 [1] : vector<16x1024xf32> to vector<16xf32>
    %7 = vector.shape_cast %6 : vector<16xf32> to vector<16x1xf32>
    %8 = arith.addf %0, %7 : vector<16x1xf32>
    %c0_4 = arith.constant 0 : index
    %c1024 = arith.constant 1024 : index
    %9 = vector.load %arg1[%c0_4, %c1024] : memref<16x8192xbf16, #tpu.memory_space<vmem>>, vector<16x1024xbf16>
    %10 = arith.extf %9 : vector<16x1024xbf16> to vector<16x1024xf32>
    %c0_5 = arith.constant 0 : index
    %c1024_6 = arith.constant 1024 : index
    %11 = vector.load %arg2[%c0_5, %c1024_6] : memref<1x8192xf32, #tpu.memory_space<vmem>>, vector<1x1024xf32>
    %12 = vector.broadcast %11 : vector<1x1024xf32> to vector<16x1024xf32>
    %13 = arith.mulf %10, %12 : vector<16x1024xf32>
    %cst_7 = arith.constant dense<0.000000e+00> : vector<16xf32>
    %14 = vector.multi_reduction <add>, %13, %cst_7 [1] : vector<16x1024xf32> to vector<16xf32>
    %15 = vector.shape_cast %14 : vector<16xf32> to vector<16x1xf32>
    %16 = arith.addf %8, %15 : vector<16x1xf32>
    %c0_8 = arith.constant 0 : index
    %c2048 = arith.constant 2048 : index
    %17 = vector.load %arg1[%c0_8, %c2048] : memref<16x8192xbf16, #tpu.memory_space<vmem>>, vector<16x1024xbf16>
    %18 = arith.extf %17 : vector<16x1024xbf16> to vector<16x1024xf32>
    %c0_9 = arith.constant 0 : index
    %c2048_10 = arith.constant 2048 : index
    %19 = vector.load %arg2[%c0_9, %c2048_10] : memref<1x8192xf32, #tpu.memory_space<vmem>>, vector<1x1024xf32>
    %20 = vector.broadcast %19 : vector<1x1024xf32> to vector<16x1024xf32>
    %21 = arith.mulf %18, %20 : vector<16x1024xf32>
    %cst_11 = arith.constant dense<0.000000e+00> : vector<16xf32>
    %22 = vector.multi_reduction <add>, %21, %cst_11 [1] : vector<16x1024xf32> to vector<16xf32>
    %23 = vector.shape_cast %22 : vector<16xf32> to vector<16x1xf32>
    %24 = arith.addf %16, %23 : vector<16x1xf32>
    %c0_12 = arith.constant 0 : index
    %c3072 = arith.constant 3072 : index
    %25 = vector.load %arg1[%c0_12, %c3072] : memref<16x8192xbf16, #tpu.memory_space<vmem>>, vector<16x1024xbf16>
    %26 = arith.extf %25 : vector<16x1024xbf16> to vector<16x1024xf32>
    %c0_13 = arith.constant 0 : index
    %c3072_14 = arith.constant 3072 : index
    %27 = vector.load %arg2[%c0_13, %c3072_14] : memref<1x8192xf32, #tpu.memory_space<vmem>>, vector<1x1024xf32>
    %28 = vector.broadcast %27 : vector<1x1024xf32> to vector<16x1024xf32>
    %29 = arith.mulf %26, %28 : vector<16x1024xf32>
    %cst_15 = arith.constant dense<0.000000e+00> : vector<16xf32>
    %30 = vector.multi_reduction <add>, %29, %cst_15 [1] : vector<16x1024xf32> to vector<16xf32>
    %31 = vector.shape_cast %30 : vector<16xf32> to vector<16x1xf32>
    %32 = arith.addf %24, %31 : vector<16x1xf32>
    %c0_16 = arith.constant 0 : index
    %c4096 = arith.constant 4096 : index
    %33 = vector.load %arg1[%c0_16, %c4096] : memref<16x8192xbf16, #tpu.memory_space<vmem>>, vector<16x1024xbf16>
    %34 = arith.extf %33 : vector<16x1024xbf16> to vector<16x1024xf32>
    %c0_17 = arith.constant 0 : index
    %c4096_18 = arith.constant 4096 : index
    %35 = vector.load %arg2[%c0_17, %c4096_18] : memref<1x8192xf32, #tpu.memory_space<vmem>>, vector<1x1024xf32>
    %36 = vector.broadcast %35 : vector<1x1024xf32> to vector<16x1024xf32>
    %37 = arith.mulf %34, %36 : vector<16x1024xf32>
    %cst_19 = arith.constant dense<0.000000e+00> : vector<16xf32>
    %38 = vector.multi_reduction <add>, %37, %cst_19 [1] : vector<16x1024xf32> to vector<16xf32>
    %39 = vector.shape_cast %38 : vector<16xf32> to vector<16x1xf32>
    %40 = arith.addf %32, %39 : vector<16x1xf32>
    %c0_20 = arith.constant 0 : index
    %c5120 = arith.constant 5120 : index
    %41 = vector.load %arg1[%c0_20, %c5120] : memref<16x8192xbf16, #tpu.memory_space<vmem>>, vector<16x1024xbf16>
    %42 = arith.extf %41 : vector<16x1024xbf16> to vector<16x1024xf32>
    %c0_21 = arith.constant 0 : index
    %c5120_22 = arith.constant 5120 : index
    %43 = vector.load %arg2[%c0_21, %c5120_22] : memref<1x8192xf32, #tpu.memory_space<vmem>>, vector<1x1024xf32>
    %44 = vector.broadcast %43 : vector<1x1024xf32> to vector<16x1024xf32>
    %45 = arith.mulf %42, %44 : vector<16x1024xf32>
    %cst_23 = arith.constant dense<0.000000e+00> : vector<16xf32>
    %46 = vector.multi_reduction <add>, %45, %cst_23 [1] : vector<16x1024xf32> to vector<16xf32>
    %47 = vector.shape_cast %46 : vector<16xf32> to vector<16x1xf32>
    %48 = arith.addf %40, %47 : vector<16x1xf32>
    %c0_24 = arith.constant 0 : index
    %c6144 = arith.constant 6144 : index
    %49 = vector.load %arg1[%c0_24, %c6144] : memref<16x8192xbf16, #tpu.memory_space<vmem>>, vector<16x1024xbf16>
    %50 = arith.extf %49 : vector<16x1024xbf16> to vector<16x1024xf32>
    %c0_25 = arith.constant 0 : index
    %c6144_26 = arith.constant 6144 : index
    %51 = vector.load %arg2[%c0_25, %c6144_26] : memref<1x8192xf32, #tpu.memory_space<vmem>>, vector<1x1024xf32>
    %52 = vector.broadcast %51 : vector<1x1024xf32> to vector<16x1024xf32>
    %53 = arith.mulf %50, %52 : vector<16x1024xf32>
    %cst_27 = arith.constant dense<0.000000e+00> : vector<16xf32>
    %54 = vector.multi_reduction <add>, %53, %cst_27 [1] : vector<16x1024xf32> to vector<16xf32>
    %55 = vector.shape_cast %54 : vector<16xf32> to vector<16x1xf32>
    %56 = arith.addf %48, %55 : vector<16x1xf32>
    %c0_28 = arith.constant 0 : index
    %c7168 = arith.constant 7168 : index
    %57 = vector.load %arg1[%c0_28, %c7168] : memref<16x8192xbf16, #tpu.memory_space<vmem>>, vector<16x1024xbf16>
    %58 = arith.extf %57 : vector<16x1024xbf16> to vector<16x1024xf32>
    %c0_29 = arith.constant 0 : index
    %c7168_30 = arith.constant 7168 : index
    %59 = vector.load %arg2[%c0_29, %c7168_30] : memref<1x8192xf32, #tpu.memory_space<vmem>>, vector<1x1024xf32>
    %60 = vector.broadcast %59 : vector<1x1024xf32> to vector<16x1024xf32>
    %61 = arith.mulf %58, %60 : vector<16x1024xf32>
    %cst_31 = arith.constant dense<0.000000e+00> : vector<16xf32>
    %62 = vector.multi_reduction <add>, %61, %cst_31 [1] : vector<16x1024xf32> to vector<16xf32>
    %63 = vector.shape_cast %62 : vector<16xf32> to vector<16x1xf32>
    %64 = arith.addf %56, %63 : vector<16x1xf32>
    %cst_32 = arith.constant 0.000000e+00 : f32
    %65 = vector.broadcast %cst_32 : f32 to vector<16x1xf32>
    %66 = arith.subf %65, %64 : vector<16x1xf32>
    %67 = math.exp %66 : vector<16x1xf32>
    %cst_33 = arith.constant 1.000000e+00 : f32
    %68 = vector.broadcast %cst_33 : f32 to vector<16x1xf32>
    %69 = arith.addf %68, %67 : vector<16x1xf32>
    %cst_34 = arith.constant 1.000000e+00 : f32
    %70 = vector.broadcast %cst_34 : f32 to vector<16x1xf32>
    %71 = arith.divf %70, %69 : vector<16x1xf32>
    %c0_35 = arith.constant 0 : index
    %c0_36 = arith.constant 0 : index
    %72 = vector.load %arg3[%c0_35, %c0_36] : memref<16x1xf32, #tpu.memory_space<vmem>>, vector<16x1xf32>
    tpu.vector_store %arg3[%c0_35, %c0_36], %71 {strides = array<i32>} : memref<16x1xf32, #tpu.memory_space<vmem>>, vector<16x1xf32>,
    return
  }
  func.func @transform_0(%arg0: i32) -> (i32, i32) {
    %c0_i32 = arith.constant 0 : i32
    %c0_i32_0 = arith.constant 0 : i32
    %c0_i32_1 = arith.constant 0 : i32
    return %c0_i32, %c0_i32_0 : i32, i32
  }
  func.func @transform_1(%arg0: i32) -> (i32, i32) {
    %c0_i32 = arith.constant 0 : i32
    %c0_i32_0 = arith.constant 0 : i32
    %c0_i32_1 = arith.constant 0 : i32
    return %c0_i32, %c0_i32_0 : i32, i32
  }
  func.func @transform_2(%arg0: i32) -> (i32, i32) {
    %c0_i32 = arith.constant 0 : i32
    %c0_i32_0 = arith.constant 0 : i32
    %c0_i32_1 = arith.constant 0 : i32
    return %c0_i32, %c0_i32_0 : i32, i32
  }
}

</mosaic_0001>

<bundles_post_ra>
// kernel: discriminator_forward.5
= control target key start
LH: loop header
LB: loop body
LE: loop exit
PB: predicated region body
PF: predicated region fallthrough
CT: control target
= control target key end

     0   :  { %s1254_s9 = smov 0   ;;  %s1256_s10 = smov 0   ;;  %s1357_s0 = inlined_call_operand.vmem [shape: bf16[512,128], index: 0, kind: input, shape index: {}]   ;;  %s1358_s1 = inlined_call_operand.vmem [shape: bf16[128,128], index: 1, kind: input, shape index: {}]   ;;  %s1359_s2 = inlined_call_operand.vmem [shape: bf16[512,128], index: 2, kind: output, shape index: {}]  }
   0x1   :  { %s1258_s11 = smov 0  }
   0x2 LB: > { %s24_s12 = sadd.s32 1, %s1233_s10  ;;  %p889_p0 = scmp.ge.s32.totalorder %s1237_s11, 1  ;;  %s1237_s11 = sphi %s1258_s11, %s12_s11   ;;  %s1233_s10 = sphi %s1256_s10, %s1361_s10   ;;  %s1229_s9 = sphi %s1254_s9, %s1360_s9  }
   0x3   : > { %p26_p1 = scmp.ge.s32.totalorder %s24_s12, 2  ;;  %p136_p2 = scmp.lt.s32.totalorder %s1237_s11, 3 }
   0x5   : > { %s1363_s12 = smov (%p26_p1, %s24_s12), 0  ;;  %p137_p3 = pnand %p889_p0, %p136_p2 }
   0x6   : > { %v1191_v0 = vld [vmem:[%s1358_s1] sm:$0xff] (!%p137_p3)   ;;  %s890_s15 = sshll.u32 (!%p137_p3), %s1229_s9, 5  ;;  %v1192_v1 = vld [vmem:[%s1358_s1 + $0x8] sm:$0xff] (!%p137_p3)   ;;  %v1193_v2 = vld [vmem:[%s1358_s1 + $0x10] sm:$0xff] (!%p137_p3)  }
   0x7   : > { %140 = sbr.rel (%p137_p3) target bundleno = 286 (0x11e), region = 28  ;;  %p166_p4 = scmp.lt.s32.totalorder (!%p137_p3), %s890_s15, 63  ;;  %1103 = vmatprep.subr.bf16.mxu0 (!%p137_p3), %v1191_v0  ;;  %1151 = vmatprep.subr.bf16.mxu1 (!%p137_p3), %v1191_v0  ;;  %v1194_v3 = vld [vmem:[%s1358_s1 + $0x18] sm:$0xff] (!%p137_p3)   ;;  %v1195_v6 = vld [vmem:[%s1358_s1 + $0x20] sm:$0xff] (!%p137_p3)   ;;  %v1196_v7 = vld [vmem:[%s1358_s1 + $0x28] sm:$0xff] (!%p137_p3)  }
   0x8   : > { %1104 = vmatpush3.bf16.msra.mxu0 (!%p137_p3), %v1191_v0  ;;  %1159 = vmatpush3.bf16.msra.mxu1 (!%p137_p3), %v1191_v0  ;;  %v1197_v8 = vld [vmem:[%s1358_s1 + $0x30] sm:$0xff] (!%p137_p3)   ;;  %v1198_v9 = vld [vmem:[%s1358_s1 + $0x38] sm:$0xff] (!%p137_p3)  }
   0x9   : > { %1105 = vmatprep.subr.bf16.mxu0 (!%p137_p3), %v1192_v1  ;;  %1152 = vmatprep.subr.bf16.mxu1 (!%p137_p3), %v1192_v1 }
   0xc   : > { %1106 = vmatpush3.bf16.msra.mxu0 (!%p137_p3), %v1192_v1  ;;  %1160 = vmatpush3.bf16.msra.mxu1 (!%p137_p3), %v1192_v1 }
   0xd   : > { %1107 = vmatprep.subr.bf16.mxu0 (!%p137_p3), %v1193_v2  ;;  %1153 = vmatprep.subr.bf16.mxu1 (!%p137_p3), %v1193_v2 }
   0xe   : > { %s1365_s15 = smov (!%p166_p4, %s890_s15), 63 }
   0xf   : > { %s891_s20 = sshll.u32 %s1365_s15, 2 }
  0x10   : > { %s1289_s23 = scalar_lea.vmem %s1357_s0, %s891_s20  ;;  %1108 = vmatpush3.bf16.msra.mxu0 %v1193_v2  ;;  %1161 = vmatpush3.bf16.msra.mxu1 %v1193_v2  ;;  %s1327_s8 = scalar_lea.vmem %s1359_s2, %s891_s20 }
  0x11   : > { %v1199_v4 = vld [vmem:[%s1289_s23] sm:$0xff]   ;;  %1109 = vmatprep.subr.bf16.mxu0 %v1194_v3  ;;  %1154 = vmatprep.subr.bf16.mxu1 %v1194_v3  ;;  %v1201_v10 = vld [vmem:[%s1289_s23 + $0x8] sm:$0xff]   ;;  %v1203_v12 = vld [vmem:[%s1289_s23 + $0x10] sm:$0xff]  }
  0x12   : > { %v1200_v5 = vld [vmem:[%s1289_s23 + $0x40] sm:$0xff]   ;;  %1119 = vmatprep.mubr.bf16.mxu0 %v1199_v4  ;;  %v1202_v11 = vld [vmem:[%s1289_s23 + $0x48] sm:$0xff]   ;;  %v1204_v13 = vld [vmem:[%s1289_s23 + $0x50] sm:$0xff]  }
  0x13   : > { %1135 = vmatprep.mubr.bf16.mxu1 %v1200_v5  ;;  %v1205_v14 = vld [vmem:[%s1289_s23 + $0x18] sm:$0xff]   ;;  %v1207_v16 = vld [vmem:[%s1289_s23 + $0x20] sm:$0xff]   ;;  %v1209_v18 = vld [vmem:[%s1289_s23 + $0x28] sm:$0xff]  }
  0x14   : > { %1110 = vmatpush3.bf16.msra.mxu0 %v1194_v3  ;;  %1162 = vmatpush3.bf16.msra.mxu1 %v1194_v3  ;;  %v1206_v15 = vld [vmem:[%s1289_s23 + $0x58] sm:$0xff]   ;;  %v1208_v17 = vld [vmem:[%s1289_s23 + $0x60] sm:$0xff]   ;;  %v1210_v19 = vld [vmem:[%s1289_s23 + $0x68] sm:$0xff]  }
  0x15   : > { %1111 = vmatprep.subr.bf16.mxu0 %v1195_v6  ;;  %1155 = vmatprep.subr.bf16.mxu1 %v1195_v6  ;;  %v1211_v20 = vld [vmem:[%s1289_s23 + $0x30] sm:$0xff]   ;;  %v1213_v22 = vld [vmem:[%s1289_s23 + $0x38] sm:$0xff]  }
  0x16   : > { %v1212_v21 = vld [vmem:[%s1289_s23 + $0x70] sm:$0xff]   ;;  %v1214_v23 = vld [vmem:[%s1289_s23 + $0x78] sm:$0xff]  }
  0x18   : > { %1112 = vmatpush3.bf16.msra.mxu0 %v1195_v6  ;;  %1163 = vmatpush3.bf16.msra.mxu1 %v1195_v6 }
  0x19   : > { %1113 = vmatprep.subr.bf16.mxu0 %v1196_v7  ;;  %1156 = vmatprep.subr.bf16.mxu1 %v1196_v7 }
  0x1c   : > { %1114 = vmatpush3.bf16.msra.mxu0 %v1196_v7  ;;  %1164 = vmatpush3.bf16.msra.mxu1 %v1196_v7 }
  0x1d   : > { %1115 = vmatprep.subr.bf16.mxu0 %v1197_v8  ;;  %1157 = vmatprep.subr.bf16.mxu1 %v1197_v8 }
  0x20   : > { %1116 = vmatpush3.bf16.msra.mxu0 %v1197_v8  ;;  %1165 = vmatpush3.bf16.msra.mxu1 %v1197_v8 }
  0x21   : > { %1117 = vmatprep.subr.bf16.mxu0 %v1198_v9  ;;  %1158 = vmatprep.subr.bf16.mxu1 %v1198_v9 }
  0x24   : > { %1118 = vmatpush3.bf16.msra.mxu0 %v1198_v9  ;;  %1166 = vmatpush3.bf16.msra.mxu1 %v1198_v9 }
  0x27   : > { %1120 = vmatmul.mubr.bf16.vlgmr.msra.gmra.mrb[0].mxu0 %v1201_v10  ;;  %1136 = vmatmul.mubr.bf16.vlgmr.msra.gmra.mrb[0].mxu1 %v1202_v11 }
  0x28   : > { %1123 = vmatprep.mubr.bf16.mxu0 %v1203_v12  ;;  %1139 = vmatprep.mubr.bf16.mxu1 %v1204_v13 }
  0x2f   : > { %1124 = vmatmul.mubr.bf16.gmra.mrb[4].mxu0 %v1205_v14  ;;  %1140 = vmatmul.mubr.bf16.gmra.mrb[4].mxu1 %v1206_v15 }
  0x30   : > { %1127 = vmatprep.mubr.bf16.mxu0 %v1207_v16  ;;  %1143 = vmatprep.mubr.bf16.mxu1 %v1208_v17 }
  0x37   : > { %1128 = vmatmul.mubr.bf16.gmra.mrb[8].mxu0 %v1209_v18  ;;  %1144 = vmatmul.mubr.bf16.gmra.mrb[8].mxu1 %v1210_v19 }
  0x38   : > { %1131 = vmatprep.mubr.bf16.mxu0 %v1211_v20  ;;  %1147 = vmatprep.mubr.bf16.mxu1 %v1212_v21 }
  0x3f   : > { %1132 = vmatmul.mubr.bf16.gmra.mrb[12].mxu0 %v1213_v22  ;;  %1148 = vmatmul.mubr.bf16.gmra.mrb[12].mxu1 %v1214_v23 }
  0xfa   : > { %v1121_v24 = vpop.f32.mrb[0].mxu0  ;;  %v1137_v25 = vpop.f32.mrb[0].mxu1 }
  0xfb   : > { %vm540_vm0 = vcmp.gt.f32.partialorder %v1121_v24, 0.0  ;;  %v572_v26 = vmul.f32 0.2, %v1121_v24  ;;  %v588_v27 = vmul.f32 0.2, %v1137_v25  ;;  %vm556_vm1 = vcmp.gt.f32.partialorder %v1137_v25, 0.0 }
  0xfc   : > { %v411_v28 = vpop.f32.mrb[1].mxu0  ;;  %v475_v29 = vpop.f32.mrb[1].mxu1 }
  0xfd   : > { %v570_v30 = vmul.f32 0.2, %v411_v28  ;;  %v1122_v31 = vpop.f32.mrb[2].mxu0  ;;  %v1138_v32 = vpop.f32.mrb[2].mxu1  ;;  %v604_v33 = vsel %vm540_vm0, %v1121_v24, %v572_v26  ;;  %v586_v34 = vmul.f32 0.2, %v475_v29  ;;  %v620_v36 = vsel %vm556_vm1, %v1137_v25, %v588_v27 }
  0xfe   : > { %vm541_vm2 = vcmp.gt.f32.partialorder %v1122_v31, 0.0  ;;  %v573_v35 = vmul.f32 0.2, %v1122_v31  ;;  %vm538_vm3 = vcmp.gt.f32.partialorder %v411_v28, 0.0  ;;  %vm557_vm4 = vcmp.gt.f32.partialorder %v1138_v32, 0.0  ;;  %v414_v38 = vpop.f32.mrb[3].mxu0 }
  0xff   : > { %v589_v37 = vmul.f32 0.2, %v1138_v32  ;;  %v478_v39 = vpop.f32.mrb[3].mxu1  ;;  %vm554_vm5 = vcmp.gt.f32.partialorder %v475_v29, 0.0  ;;  %vm539_vm6 = vcmp.gt.f32.partialorder %v414_v38, 0.0  ;;  %v602_v45 = vsel %vm538_vm3, %v411_v28, %v570_v30 }
 0x100   : > { %v605_v40 = vsel %vm541_vm2, %v1122_v31, %v573_v35  ;;  %v571_v41 = vmul.f32 0.2, %v414_v38  ;;  %vm555_vm7 = vcmp.gt.f32.partialorder %v478_v39, 0.0  ;;  %v587_v44 = vmul.f32 0.2, %v478_v39 }
 0x101   : > { %v992_v42 = vpack.c.bf16 %v605_v40, %v604_v33  ;;  %v621_v43 = vsel %vm557_vm4, %v1138_v32, %v589_v37  ;;  %v618_v50 = vsel %vm554_vm5, %v475_v29, %v586_v34 }
 0x102   : > { %v1032_v46 = vpack.c.bf16 %v621_v43, %v620_v36  ;;  %v603_v47 = vsel %vm539_vm6, %v414_v38, %v571_v41  ;;  %v1125_v48 = vpop.f32.mrb[4].mxu0  ;;  %v1141_v49 = vpop.f32.mrb[4].mxu1  ;;  %v619_v52 = vsel %vm555_vm7, %v478_v39, %v587_v44 }
 0x103   : > { %1064 = vst [vmem:[%s1327_s8 + $0x8] sm:$0xff] %v992_v42   ;;  %v987_v51 = vpack.c.bf16 %v603_v47, %v602_v45  ;;  %v576_v53 = vmul.f32 0.2, %v1125_v48  ;;  %v427_v54 = vpop.f32.mrb[5].mxu0  ;;  %v491_v55 = vpop.f32.mrb[5].mxu1  ;;  %v1027_v56 = vpack.c.bf16 %v619_v52, %v618_v50  ;;  %vm544_vm8 = vcmp.gt.f32.partialorder %v1125_v48, 0.0 }
 0x104   : > { %1072 = vst [vmem:[%s1327_s8 + $0x48] sm:$0xff] %v1032_v46   ;;  %v592_v57 = vmul.f32 0.2, %v1141_v49  ;;  %v1126_v58 = vpop.f32.mrb[6].mxu0  ;;  %v1142_v59 = vpop.f32.mrb[6].mxu1  ;;  %vm560_vm9 = vcmp.gt.f32.partialorder %v1141_v49, 0.0 }
 0x105   : > { %988 = vst [vmem:[%s1327_s8] sm:$0xff] %v987_v51   ;;  %v574_v60 = vmul.f32 0.2, %v427_v54  ;;  %v590_v61 = vmul.f32 0.2, %v491_v55  ;;  %v430_v62 = vpop.f32.mrb[7].mxu0  ;;  %1071 = vst [vmem:[%s1327_s8 + $0x40] sm:$0xff] %v1027_v56   ;;  %v608_v1 = vsel %vm544_vm8, %v1125_v48, %v576_v53 }
 0x106   : > { %vm542_vm10 = vcmp.gt.f32.partialorder %v427_v54, 0.0  ;;  %vm545_vm11 = vcmp.gt.f32.partialorder %v1126_v58, 0.0  ;;  %v577_v63 = vmul.f32 0.2, %v1126_v58  ;;  %vm561_vm12 = vcmp.gt.f32.partialorder %v1142_v59, 0.0  ;;  %v494_v0 = vpop.f32.mrb[7].mxu1 }
 0x107   : > { %vm558_vm13 = vcmp.gt.f32.partialorder %v491_v55, 0.0  ;;  %v593_v2 = vmul.f32 0.2, %v1142_v59  ;;  %vm543_vm14 = vcmp.gt.f32.partialorder %v430_v62, 0.0  ;;  %v575_v4 = vmul.f32 0.2, %v430_v62 }
 0x108   : > { %v609_v3 = vsel %vm545_vm11, %v1126_v58, %v577_v63  ;;  %vm559_vm15 = vcmp.gt.f32.partialorder %v494_v0, 0.0  ;;  %v591_v5 = vmul.f32 0.2, %v494_v0  ;;  %v624_v6 = vsel %vm560_vm9, %v1141_v49, %v592_v57 }
 0x109   : > { %v606_v7 = vsel %vm542_vm10, %v427_v54, %v574_v60  ;;  %v1002_v8 = vpack.c.bf16 %v609_v3, %v608_v1  ;;  %v625_v9 = vsel %vm561_vm12, %v1142_v59, %v593_v2  ;;  %v622_v10 = vsel %vm558_vm13, %v491_v55, %v590_v61 }
 0x10a   : > { %v1042_v11 = vpack.c.bf16 %v625_v9, %v624_v6  ;;  %v607_v12 = vsel %vm543_vm14, %v430_v62, %v575_v4  ;;  %v623_v13 = vsel %vm559_vm15, %v494_v0, %v591_v5  ;;  %v1129_v14 = vpop.f32.mrb[8].mxu0  ;;  %v1145_v15 = vpop.f32.mrb[8].mxu1 }
 0x10b   : > { %1066 = vst [vmem:[%s1327_s8 + $0x18] sm:$0xff] %v1002_v8   ;;  %v997_v16 = vpack.c.bf16 %v607_v12, %v606_v7  ;;  %v1037_v17 = vpack.c.bf16 %v623_v13, %v622_v10  ;;  %vm548_vm0 = vcmp.gt.f32.partialorder %v1129_v14, 0.0  ;;  %v580_v18 = vmul.f32 0.2, %v1129_v14  ;;  %v443_v19 = vpop.f32.mrb[9].mxu0  ;;  %v507_v20 = vpop.f32.mrb[9].mxu1 }
 0x10c   : > { %1074 = vst [vmem:[%s1327_s8 + $0x58] sm:$0xff] %v1042_v11   ;;  %vm564_vm1 = vcmp.gt.f32.partialorder %v1145_v15, 0.0  ;;  %v596_v21 = vmul.f32 0.2, %v1145_v15  ;;  %v578_v22 = vmul.f32 0.2, %v443_v19 }
 0x10d   : > { %1065 = vst [vmem:[%s1327_s8 + $0x10] sm:$0xff] %v997_v16   ;;  %1073 = vst [vmem:[%s1327_s8 + $0x50] sm:$0xff] %v1037_v17   ;;  %v594_v23 = vmul.f32 0.2, %v507_v20  ;;  %v1130_v24 = vpop.f32.mrb[10].mxu0  ;;  %v1146_v25 = vpop.f32.mrb[10].mxu1  ;;  %v612_v26 = vsel %vm548_vm0, %v1129_v14, %v580_v18 }
 0x10e   : > { %vm546_vm2 = vcmp.gt.f32.partialorder %v443_v19, 0.0  ;;  %vm549_vm3 = vcmp.gt.f32.partialorder %v1130_v24, 0.0  ;;  %v581_v27 = vmul.f32 0.2, %v1130_v24  ;;  %v446_v28 = vpop.f32.mrb[11].mxu0  ;;  %v510_v29 = vpop.f32.mrb[11].mxu1  ;;  %v628_v34 = vsel %vm564_vm1, %v1145_v15, %v596_v21 }
 0x10f   : > { %vm562_vm4 = vcmp.gt.f32.partialorder %v507_v20, 0.0  ;;  %vm565_vm5 = vcmp.gt.f32.partialorder %v1146_v25, 0.0  ;;  %v597_v30 = vmul.f32 0.2, %v1146_v25  ;;  %vm547_vm6 = vcmp.gt.f32.partialorder %v446_v28, 0.0 }
 0x110   : > { %v613_v31 = vsel %vm549_vm3, %v1130_v24, %v581_v27  ;;  %v579_v32 = vmul.f32 0.2, %v446_v28  ;;  %vm563_vm7 = vcmp.gt.f32.partialorder %v510_v29, 0.0  ;;  %v595_v33 = vmul.f32 0.2, %v510_v29 }
 0x111   : > { %v610_v35 = vsel %vm546_vm2, %v443_v19, %v578_v22  ;;  %v1012_v36 = vpack.c.bf16 %v613_v31, %v612_v26  ;;  %v629_v37 = vsel %vm565_vm5, %v1146_v25, %v597_v30  ;;  %v626_v38 = vsel %vm562_vm4, %v507_v20, %v594_v23 }
 0x112   : > { %v1052_v39 = vpack.c.bf16 %v629_v37, %v628_v34  ;;  %v611_v40 = vsel %vm547_vm6, %v446_v28, %v579_v32  ;;  %v627_v41 = vsel %vm563_vm7, %v510_v29, %v595_v33  ;;  %v1133_v42 = vpop.f32.mrb[12].mxu0  ;;  %v1149_v43 = vpop.f32.mrb[12].mxu1 }
 0x113   : > { %1068 = vst [vmem:[%s1327_s8 + $0x28] sm:$0xff] %v1012_v36   ;;  %v1007_v44 = vpack.c.bf16 %v611_v40, %v610_v35  ;;  %v1047_v45 = vpack.c.bf16 %v627_v41, %v626_v38  ;;  %vm552_vm8 = vcmp.gt.f32.partialorder %v1133_v42, 0.0  ;;  %v584_v46 = vmul.f32 0.2, %v1133_v42  ;;  %v459_v47 = vpop.f32.mrb[13].mxu0  ;;  %v523_v48 = vpop.f32.mrb[13].mxu1 }
 0x114   : > { %1076 = vst [vmem:[%s1327_s8 + $0x68] sm:$0xff] %v1052_v39   ;;  %vm568_vm9 = vcmp.gt.f32.partialorder %v1149_v43, 0.0  ;;  %v600_v49 = vmul.f32 0.2, %v1149_v43  ;;  %v582_v50 = vmul.f32 0.2, %v459_v47 }
 0x115   : > { %1067 = vst [vmem:[%s1327_s8 + $0x20] sm:$0xff] %v1007_v44   ;;  %1075 = vst [vmem:[%s1327_s8 + $0x60] sm:$0xff] %v1047_v45   ;;  %v598_v51 = vmul.f32 0.2, %v523_v48  ;;  %v1134_v52 = vpop.f32.mrb[14].mxu0  ;;  %v1150_v53 = vpop.f32.mrb[14].mxu1  ;;  %v616_v54 = vsel %vm552_vm8, %v1133_v42, %v584_v46 }
 0x116   : > { %vm550_vm10 = vcmp.gt.f32.partialorder %v459_v47, 0.0  ;;  %vm553_vm11 = vcmp.gt.f32.partialorder %v1134_v52, 0.0  ;;  %v585_v55 = vmul.f32 0.2, %v1134_v52  ;;  %v462_v56 = vpop.f32.mrb[15].mxu0  ;;  %v526_v57 = vpop.f32.mrb[15].mxu1  ;;  %v632_v62 = vsel %vm568_vm9, %v1149_v43, %v600_v49 }
 0x117   : > { %vm566_vm12 = vcmp.gt.f32.partialorder %v523_v48, 0.0  ;;  %vm569_vm13 = vcmp.gt.f32.partialorder %v1150_v53, 0.0  ;;  %v601_v58 = vmul.f32 0.2, %v1150_v53  ;;  %vm551_vm14 = vcmp.gt.f32.partialorder %v462_v56, 0.0 }
 0x118   : > { %v617_v59 = vsel %vm553_vm11, %v1134_v52, %v585_v55  ;;  %v583_v60 = vmul.f32 0.2, %v462_v56  ;;  %vm567_vm15 = vcmp.gt.f32.partialorder %v526_v57, 0.0  ;;  %v599_v61 = vmul.f32 0.2, %v526_v57 }
 0x119   : > { %v614_v63 = vsel %vm550_vm10, %v459_v47, %v582_v50  ;;  %v1022_v0 = vpack.c.bf16 %v617_v59, %v616_v54  ;;  %v633_v1 = vsel %vm569_vm13, %v1150_v53, %v601_v58  ;;  %v630_v2 = vsel %vm566_vm12, %v523_v48, %v598_v51 }
 0x11a   : > { %v1062_v3 = vpack.c.bf16 %v633_v1, %v632_v62  ;;  %v615_v4 = vsel %vm551_vm14, %v462_v56, %v583_v60  ;;  %v631_v5 = vsel %vm567_vm15, %v526_v57, %v599_v61 }
 0x11b   : > { %1070 = vst [vmem:[%s1327_s8 + $0x38] sm:$0xff] %v1022_v0   ;;  %v1017_v6 = vpack.c.bf16 %v615_v4, %v614_v63  ;;  %v1057_v7 = vpack.c.bf16 %v631_v5, %v630_v2 }
 0x11c   : > { %1078 = vst [vmem:[%s1327_s8 + $0x78] sm:$0xff] %v1062_v3  }
 0x11d   : > { %1069 = vst [vmem:[%s1327_s8 + $0x30] sm:$0xff] %v1017_v6   ;;  %1077 = vst [vmem:[%s1327_s8 + $0x70] sm:$0xff] %v1057_v7  }
 0x11e PF: > { %s12_s11 = sadd.s32 1, %s1237_s11   ;;  %s1360_s9 = smov %s1233_s10 }
 0x11f   : > { %p9_p5 = scmp.ge.s32.totalorder %s12_s11, 4   ;;  %s1361_s10 = smov %s1363_s12 }
 0x121   :  { %11 = sbr.rel (!%p9_p5) target bundleno = 2 (0x2), region = 61 }

// kernel: discriminator_forward.6
= control target key start
LH: loop header
LB: loop body
LE: loop exit
PB: predicated region body
PF: predicated region fallthrough
CT: control target
= control target key end

     0   :  { %s2692_s1 = inlined_call_operand.vmem [shape: bf16[1024,128], index: 1, kind: input, shape index: {}]   ;;  %s2693_s0 = inlined_call_operand.vmem [shape: bf16[128,1024], index: 0, kind: input, shape index: {}]   ;;  %s2694_s2 = inlined_call_operand.vmem [shape: f32[1,128], index: 2, kind: input, shape index: {}]   ;;  %s2695_s3 = inlined_call_operand.vmem [shape: f32[1,128], index: 3, kind: input, shape index: {}]   ;;  %s2696_s4 = inlined_call_operand.vmem [shape: bf16[128,128], index: 4, kind: output, shape index: {}]  }
   0x1   :  { %v2024_v0 = vld [vmem:[%s2692_s1 + $0x40] sm:$0xff]   ;;  %v2028_v4 = vld [vmem:[%s2692_s1 + $0x48] sm:$0xff]   ;;  %v2032_v8 = vld [vmem:[%s2692_s1 + $0x50] sm:$0xff]  }
   0x2   :  { %v2025_v1 = vld [vmem:[%s2692_s1 + $0xc0] sm:$0xff]   ;;  %1768 = vmatprep.subr.bf16.mxu0 %v2024_v0  ;;  %v2029_v5 = vld [vmem:[%s2692_s1 + $0xc8] sm:$0xff]   ;;  %v2033_v9 = vld [vmem:[%s2692_s1 + $0xd0] sm:$0xff]  }
   0x3   :  { %v2026_v2 = vld [vmem:[%s2692_s1] sm:$0xff]   ;;  %1832 = vmatprep.subr.bf16.mxu1 %v2025_v1  ;;  %v2030_v6 = vld [vmem:[%s2692_s1 + $0x8] sm:$0xff]   ;;  %v2034_v10 = vld [vmem:[%s2692_s1 + $0x10] sm:$0xff]  }
   0x4   :  { %v2027_v3 = vld [vmem:[%s2692_s1 + $0x80] sm:$0xff]   ;;  %1769 = vmatpush3.bf16.msra.mxu0 %v2026_v2  ;;  %v2031_v7 = vld [vmem:[%s2692_s1 + $0x88] sm:$0xff]   ;;  %v2035_v11 = vld [vmem:[%s2692_s1 + $0x90] sm:$0xff]  }
   0x5   :  { %1833 = vmatpush3.bf16.msra.mxu1 %v2027_v3  ;;  %1770 = vmatprep.subr.bf16.mxu0 %v2028_v4  ;;  %v2036_v12 = vld [vmem:[%s2692_s1 + $0x58] sm:$0xff]   ;;  %v2040_v16 = vld [vmem:[%s2692_s1 + $0x60] sm:$0xff]   ;;  %v2044_v20 = vld [vmem:[%s2692_s1 + $0x68] sm:$0xff]  }
   0x6   :  { %1834 = vmatprep.subr.bf16.mxu1 %v2029_v5  ;;  %v2037_v13 = vld [vmem:[%s2692_s1 + $0xd8] sm:$0xff]   ;;  %v2041_v17 = vld [vmem:[%s2692_s1 + $0xe0] sm:$0xff]   ;;  %v2045_v21 = vld [vmem:[%s2692_s1 + $0xe8] sm:$0xff]  }
   0x7   :  { %v2038_v14 = vld [vmem:[%s2692_s1 + $0x18] sm:$0xff]   ;;  %v2042_v18 = vld [vmem:[%s2692_s1 + $0x20] sm:$0xff]   ;;  %v2046_v22 = vld [vmem:[%s2692_s1 + $0x28] sm:$0xff]  }
   0x8   :  { %1771 = vmatpush3.bf16.msra.mxu0 %v2030_v6  ;;  %v2039_v15 = vld [vmem:[%s2692_s1 + $0x98] sm:$0xff]   ;;  %v2043_v19 = vld [vmem:[%s2692_s1 + $0xa0] sm:$0xff]   ;;  %v2047_v23 = vld [vmem:[%s2692_s1 + $0xa8] sm:$0xff]  }
   0x9   :  { %1835 = vmatpush3.bf16.msra.mxu1 %v2031_v7  ;;  %1772 = vmatprep.subr.bf16.mxu0 %v2032_v8  ;;  %v2048_v24 = vld [vmem:[%s2692_s1 + $0x70] sm:$0xff]   ;;  %v2052_v28 = vld [vmem:[%s2692_s1 + $0x78] sm:$0xff]   ;;  %v18_v32 = vld [vmem:[%s2693_s0] sm:$0xff] }
   0xa   :  { %1836 = vmatprep.subr.bf16.mxu1 %v2033_v9  ;;  %v2049_v25 = vld [vmem:[%s2692_s1 + $0xf0] sm:$0xff]   ;;  %v2053_v29 = vld [vmem:[%s2692_s1 + $0xf8] sm:$0xff]   ;;  %v22_v33 = vld [vmem:[%s2693_s0 + $0x20] sm:$0xff] }
   0xb   :  { %v2050_v26 = vld [vmem:[%s2692_s1 + $0x30] sm:$0xff]   ;;  %v2054_v30 = vld [vmem:[%s2692_s1 + $0x38] sm:$0xff]   ;;  %v19_v34 = vld [vmem:[%s2693_s0 + $0x8] sm:$0xff]  ;;  %v1561_v35 = vcombine.low %v18_v32, %v22_v33  ;;  %v1562_v36 = vcombine.high %v18_v32, %v22_v33 }
   0xc   :  { %1773 = vmatpush3.bf16.msra.mxu0 %v2034_v10  ;;  %v2051_v27 = vld [vmem:[%s2692_s1 + $0xb0] sm:$0xff]   ;;  %v2055_v31 = vld [vmem:[%s2692_s1 + $0xb8] sm:$0xff]   ;;  %v23_v37 = vld [vmem:[%s2693_s0 + $0x28] sm:$0xff] }
   0xd   :  { %1837 = vmatpush3.bf16.msra.mxu1 %v2035_v11  ;;  %1774 = vmatprep.subr.bf16.mxu0 %v2036_v12  ;;  %v1563_v38 = vcombine.low %v19_v34, %v23_v37  ;;  %v1564_v39 = vcombine.high %v19_v34, %v23_v37  ;;  %v2056_v40 = vld [vmem:[%s2692_s1 + $0x140] sm:$0xff]   ;;  %v27_v47 = vld [vmem:[%s2693_s0 + $0x48] sm:$0xff]  ;;  %v2064_v62 = vld [vmem:[%s2692_s1 + $0x150] sm:$0xff]  }
   0xe   :  { %1838 = vmatprep.subr.bf16.mxu1 %v2037_v13  ;;  %946 = vmatprep.mubr.bf16.mxu0 %v1562_v36  ;;  %v2057_v41 = vld [vmem:[%s2692_s1 + $0x100] sm:$0xff]   ;;  %v31_v48 = vld [vmem:[%s2693_s0 + $0x68] sm:$0xff]  ;;  %v2065_v63 = vld [vmem:[%s2692_s1 + $0x110] sm:$0xff]  }
   0xf   :  { %1043 = vmatprep.mubr.bf16.mxu1 %v1564_v39  ;;  %v2058_v42 = vld [vmem:[%s2692_s1 + $0x1c0] sm:$0xff]   ;;  %v1572_v49 = vcombine.high %v27_v47, %v31_v48  ;;  %v2060_v50 = vld [vmem:[%s2692_s1 + $0x148] sm:$0xff]   ;;  %v1571_v53 = vcombine.low %v27_v47, %v31_v48  ;;  %v2066_v0 = vld [vmem:[%s2692_s1 + $0x1d0] sm:$0xff]  }
  0x10   :  { %1775 = vmatpush3.bf16.msra.mxu0 %v2038_v14  ;;  %v2059_v43 = vld [vmem:[%s2692_s1 + $0x180] sm:$0xff]   ;;  %v2061_v52 = vld [vmem:[%s2692_s1 + $0x108] sm:$0xff]   ;;  %v2067_v1 = vld [vmem:[%s2692_s1 + $0x190] sm:$0xff]  }
  0x11   :  { %1839 = vmatpush3.bf16.msra.mxu1 %v2039_v15  ;;  %1776 = vmatprep.subr.bf16.mxu0 %v2040_v16  ;;  %v26_v44 = vld [vmem:[%s2693_s0 + $0x40] sm:$0xff]  ;;  %v2062_v54 = vld [vmem:[%s2692_s1 + $0x1c8] sm:$0xff]   ;;  %v2068_v10 = vld [vmem:[%s2692_s1 + $0x158] sm:$0xff]  }
  0x12   :  { %1840 = vmatprep.subr.bf16.mxu1 %v2041_v17  ;;  %v30_v45 = vld [vmem:[%s2693_s0 + $0x60] sm:$0xff]  ;;  %v2063_v55 = vld [vmem:[%s2692_s1 + $0x188] sm:$0xff]   ;;  %v2069_v11 = vld [vmem:[%s2692_s1 + $0x118] sm:$0xff]  }
  0x13   :  { %v1570_v46 = vcombine.high %v26_v44, %v30_v45  ;;  %v1569_v51 = vcombine.low %v26_v44, %v30_v45  ;;  %v34_v56 = vld [vmem:[%s2693_s0 + $0x80] sm:$0xff]  ;;  %v35_v58 = vld [vmem:[%s2693_s0 + $0x88] sm:$0xff]  ;;  %v2070_v12 = vld [vmem:[%s2692_s1 + $0x1d8] sm:$0xff]  }
  0x14   :  { %1777 = vmatpush3.bf16.msra.mxu0 %v2042_v18  ;;  %v38_v57 = vld [vmem:[%s2693_s0 + $0xa0] sm:$0xff]  ;;  %v39_v59 = vld [vmem:[%s2693_s0 + $0xa8] sm:$0xff]  ;;  %v2071_v13 = vld [vmem:[%s2692_s1 + $0x198] sm:$0xff]  }
  0x15   :  { %1841 = vmatpush3.bf16.msra.mxu1 %v2043_v19  ;;  %1778 = vmatprep.subr.bf16.mxu0 %v2044_v20  ;;  %v1578_v60 = vcombine.high %v34_v56, %v38_v57  ;;  %v1580_v61 = vcombine.high %v35_v58, %v39_v59  ;;  %v1577_v2 = vcombine.low %v34_v56, %v38_v57  ;;  %v42_v3 = vld [vmem:[%s2693_s0 + $0xc0] sm:$0xff]  ;;  %v43_v5 = vld [vmem:[%s2693_s0 + $0xc8] sm:$0xff]  ;;  %v2081_v39 = vld [vmem:[%s2692_s1 + $0x130] sm:$0xff]  }
  0x16   :  { %1842 = vmatprep.subr.bf16.mxu1 %v2045_v21  ;;  %v46_v4 = vld [vmem:[%s2693_s0 + $0xe0] sm:$0xff]  ;;  %v1579_v6 = vcombine.low %v35_v58, %v39_v59  ;;  %v47_v8 = vld [vmem:[%s2693_s0 + $0xe8] sm:$0xff]  ;;  %v2085_v48 = vld [vmem:[%s2692_s1 + $0x138] sm:$0xff]  }
  0x17   :  { %v1586_v7 = vcombine.high %v42_v3, %v46_v4  ;;  %v1588_v9 = vcombine.high %v43_v5, %v47_v8  ;;  %v50_v14 = vld [vmem:[%s2693_s0 + $0x100] sm:$0xff]  ;;  %v51_v16 = vld [vmem:[%s2693_s0 + $0x108] sm:$0xff]  ;;  %v1585_v19 = vcombine.low %v42_v3, %v46_v4  ;;  %v1587_v21 = vcombine.low %v43_v5, %v47_v8  ;;  %v29_v8 = vld [vmem:[%s2693_s0 + $0x58] sm:$0xff] }
  0x18   :  { %1779 = vmatpush3.bf16.msra.mxu0 %v2046_v22  ;;  %v54_v15 = vld [vmem:[%s2693_s0 + $0x120] sm:$0xff]  ;;  %v55_v17 = vld [vmem:[%s2693_s0 + $0x128] sm:$0xff] }
  0x19   :  { %1843 = vmatpush3.bf16.msra.mxu1 %v2047_v23  ;;  %1780 = vmatprep.subr.bf16.mxu0 %v2048_v24  ;;  %v2072_v18 = vld [vmem:[%s2692_s1 + $0x160] sm:$0xff]   ;;  %v1594_v22 = vcombine.high %v50_v14, %v54_v15  ;;  %v1596_v24 = vcombine.high %v51_v16, %v55_v17  ;;  %v2078_v32 = vld [vmem:[%s2692_s1 + $0x1e8] sm:$0xff]   ;;  %v1593_v34 = vcombine.low %v50_v14, %v54_v15  ;;  %v36_v14 = vld [vmem:[%s2693_s0 + $0x90] sm:$0xff] }
  0x1a   :  { %1844 = vmatprep.subr.bf16.mxu1 %v2049_v25  ;;  %v2073_v20 = vld [vmem:[%s2692_s1 + $0x120] sm:$0xff]   ;;  %v2079_v33 = vld [vmem:[%s2692_s1 + $0x1a8] sm:$0xff]   ;;  %v40_v15 = vld [vmem:[%s2693_s0 + $0xb0] sm:$0xff] }
  0x1b   :  { %v2074_v23 = vld [vmem:[%s2692_s1 + $0x1e0] sm:$0xff]   ;;  %v67_v44 = vld [vmem:[%s2693_s0 + $0x188] sm:$0xff] }
  0x1c   :  { %1781 = vmatpush3.bf16.msra.mxu0 %v2050_v26  ;;  %v2075_v25 = vld [vmem:[%s2692_s1 + $0x1a0] sm:$0xff]   ;;  %v71_v45 = vld [vmem:[%s2693_s0 + $0x1a8] sm:$0xff] }
  0x1d   :  { %1845 = vmatpush3.bf16.msra.mxu1 %v2051_v27  ;;  %1782 = vmatprep.subr.bf16.mxu0 %v2052_v28  ;;  %v58_v26 = vld [vmem:[%s2693_s0 + $0x140] sm:$0xff]  ;;  %v2076_v28 = vld [vmem:[%s2692_s1 + $0x168] sm:$0xff]   ;;  %v1611_v59 = vcombine.low %v67_v44, %v71_v45 }
  0x1e   :  { %1846 = vmatprep.subr.bf16.mxu1 %v2053_v29  ;;  %v62_v27 = vld [vmem:[%s2693_s0 + $0x160] sm:$0xff]  ;;  %v59_v29 = vld [vmem:[%s2693_s0 + $0x148] sm:$0xff] }
  0x1f   :  { %v1602_v36 = vcombine.high %v58_v26, %v62_v27  ;;  %v1601_v47 = vcombine.low %v58_v26, %v62_v27  ;;  %v75_v56 = vld [vmem:[%s2693_s0 + $0x1c8] sm:$0xff]  ;;  %v1581_v26 = vcombine.low %v36_v14, %v40_v15 }
  0x20   :  { %1783 = vmatpush3.bf16.msra.mxu0 %v2054_v30  ;;  %v63_v30 = vld [vmem:[%s2693_s0 + $0x168] sm:$0xff] }
  0x21   :  { %1847 = vmatpush3.bf16.msra.mxu1 %v2055_v31  ;;  %1896 = vmatprep.subr.bf16.mxu0 %v2056_v40  ;;  %v2077_v31 = vld [vmem:[%s2692_s1 + $0x128] sm:$0xff]   ;;  %v1604_v37 = vcombine.high %v59_v29, %v63_v30  ;;  %v2082_v40 = vld [vmem:[%s2692_s1 + $0x1f0] sm:$0xff]  }
  0x22   :  { %1960 = vmatprep.subr.bf16.mxu1 %v2058_v42  ;;  %v70_v42 = vld [vmem:[%s2693_s0 + $0x1a0] sm:$0xff]  ;;  %v79_v57 = vld [vmem:[%s2693_s0 + $0x1e8] sm:$0xff] }
  0x23   :  { %947 = vmatmul.mubr.bf16.vlgmr.msra.gmra.mrb[0].mxu0 %v1561_v35  ;;  %v1595_v35 = vcombine.low %v51_v16, %v55_v17  ;;  %v1619_v3 = vcombine.low %v75_v56, %v79_v57  ;;  %v37_v16 = vld [vmem:[%s2693_s0 + $0x98] sm:$0xff] }
  0x24   :  { %1044 = vmatmul.mubr.bf16.vlgmr.msra.gmra.mrb[0].mxu1 %v1563_v38  ;;  %1897 = vmatpush3.bf16.msra.mxu0 %v2057_v41  ;;  %v2080_v38 = vld [vmem:[%s2692_s1 + $0x170] sm:$0xff]   ;;  %v66_v41 = vld [vmem:[%s2693_s0 + $0x180] sm:$0xff]  ;;  %v41_v17 = vld [vmem:[%s2693_s0 + $0xb8] sm:$0xff] }
  0x25   :  { %1961 = vmatpush3.bf16.msra.mxu1 %v2059_v43  ;;  %954 = vmatprep.mubr.bf16.mxu0 %v1570_v46  ;;  %v2083_v43 = vld [vmem:[%s2692_s1 + $0x1b0] sm:$0xff]   ;;  %v2084_v46 = vld [vmem:[%s2692_s1 + $0x178] sm:$0xff]   ;;  %v1609_v58 = vcombine.low %v66_v41, %v70_v42  ;;  %v1583_v27 = vcombine.low %v37_v16, %v41_v17 }
  0x26   :  { %1051 = vmatprep.mubr.bf16.mxu1 %v1572_v49  ;;  %1898 = vmatprep.subr.bf16.mxu0 %v2060_v50  ;;  %v1603_v49 = vcombine.low %v59_v29, %v63_v30  ;;  %v1610_v50 = vcombine.high %v66_v41, %v70_v42  ;;  %v52_v30 = vld [vmem:[%s2693_s0 + $0x110] sm:$0xff]  ;;  %v65_v41 = vld [vmem:[%s2693_s0 + $0x178] sm:$0xff] }
  0x27   :  { %1962 = vmatprep.subr.bf16.mxu1 %v2062_v54  ;;  %v74_v54 = vld [vmem:[%s2693_s0 + $0x1c0] sm:$0xff] }
  0x28   :  { %1899 = vmatpush3.bf16.msra.mxu0 %v2061_v52  ;;  %v1612_v52 = vcombine.high %v67_v44, %v71_v45 }
  0x29   :  { %1963 = vmatpush3.bf16.msra.mxu1 %v2063_v55  ;;  %1900 = vmatprep.subr.bf16.mxu0 %v2064_v62  ;;  %v78_v55 = vld [vmem:[%s2693_s0 + $0x1e0] sm:$0xff]  ;;  %v20_v62 = vld [vmem:[%s2693_s0 + $0x10] sm:$0xff] }
  0x2a   :  { %1964 = vmatprep.subr.bf16.mxu1 %v2066_v0  ;;  %v21_v0 = vld [vmem:[%s2693_s0 + $0x18] sm:$0xff] }
  0x2b   :  { %955 = vmatmul.mubr.bf16.gmra.mrb[4].mxu0 %v1569_v51  ;;  %v2086_v51 = vld [vmem:[%s2692_s1 + $0x1f8] sm:$0xff]  }
  0x2c   :  { %1052 = vmatmul.mubr.bf16.gmra.mrb[4].mxu1 %v1571_v53  ;;  %962 = vmatprep.mubr.bf16.mxu0 %v1578_v60  ;;  %v2087_v53 = vld [vmem:[%s2692_s1 + $0x1b8] sm:$0xff]   ;;  %v1618_v60 = vcombine.high %v74_v54, %v78_v55 }
  0x2d   :  { %1059 = vmatprep.mubr.bf16.mxu1 %v1580_v61  ;;  %1901 = vmatpush3.bf16.msra.mxu0 %v2065_v63  ;;  %v1620_v61 = vcombine.high %v75_v56, %v79_v57  ;;  %v24_v63 = vld [vmem:[%s2693_s0 + $0x30] sm:$0xff]  ;;  %v77_v56 = vld [vmem:[%s2693_s0 + $0x1d8] sm:$0xff] }
  0x2e   :  { %1965 = vmatpush3.bf16.msra.mxu1 %v2067_v1  ;;  %1902 = vmatprep.subr.bf16.mxu0 %v2068_v10  ;;  %v25_v1 = vld [vmem:[%s2693_s0 + $0x38] sm:$0xff]  ;;  %v1566_v4 = vcombine.high %v20_v62, %v24_v63  ;;  %v1565_v10 = vcombine.low %v20_v62, %v24_v63 }
  0x2f   :  { %1966 = vmatprep.subr.bf16.mxu1 %v2070_v12  ;;  %v1568_v5 = vcombine.high %v21_v0, %v25_v1  ;;  %v81_v57 = vld [vmem:[%s2693_s0 + $0x1f8] sm:$0xff] }
  0x30   :  { %v1623_v63 = vcombine.low %v77_v56, %v81_v57 }
  0x31   :  { %1903 = vmatpush3.bf16.msra.mxu0 %v2069_v11  ;;  %v1567_v11 = vcombine.low %v21_v0, %v25_v1 }
  0x32   :  { %1967 = vmatpush3.bf16.msra.mxu1 %v2071_v13  ;;  %1904 = vmatprep.subr.bf16.mxu0 %v2072_v18 }
  0x33   :  { %963 = vmatmul.mubr.bf16.gmra.mrb[8].mxu0 %v1577_v2  ;;  %1968 = vmatprep.subr.bf16.mxu1 %v2074_v23  ;;  %v1617_v2 = vcombine.low %v74_v54, %v78_v55  ;;  %v48_v23 = vld [vmem:[%s2693_s0 + $0xf0] sm:$0xff] }
  0x34   :  { %1060 = vmatmul.mubr.bf16.gmra.mrb[8].mxu1 %v1579_v6  ;;  %970 = vmatprep.mubr.bf16.mxu0 %v1586_v7  ;;  %v28_v6 = vld [vmem:[%s2693_s0 + $0x50] sm:$0xff] }
  0x35   :  { %1067 = vmatprep.mubr.bf16.mxu1 %v1588_v9  ;;  %1905 = vmatpush3.bf16.msra.mxu0 %v2073_v20  ;;  %v32_v7 = vld [vmem:[%s2693_s0 + $0x70] sm:$0xff]  ;;  %v33_v9 = vld [vmem:[%s2693_s0 + $0x78] sm:$0xff]  ;;  %v1582_v20 = vcombine.high %v36_v14, %v40_v15 }
  0x36   :  { %1969 = vmatpush3.bf16.msra.mxu1 %v2075_v25  ;;  %1906 = vmatprep.subr.bf16.mxu0 %v2076_v28  ;;  %v1574_v12 = vcombine.high %v28_v6, %v32_v7  ;;  %v1576_v13 = vcombine.high %v29_v8, %v33_v9  ;;  %v1573_v18 = vcombine.low %v28_v6, %v32_v7  ;;  %v49_v25 = vld [vmem:[%s2693_s0 + $0xf8] sm:$0xff]  ;;  %v76_v54 = vld [vmem:[%s2693_s0 + $0x1d0] sm:$0xff] }
  0x37   :  { %1970 = vmatprep.subr.bf16.mxu1 %v2078_v32  ;;  %v53_v32 = vld [vmem:[%s2693_s0 + $0x118] sm:$0xff]  ;;  %v80_v55 = vld [vmem:[%s2693_s0 + $0x1f0] sm:$0xff] }
  0x38   :  { %v1621_v62 = vcombine.low %v76_v54, %v80_v55 }
  0x39   :  { %1907 = vmatpush3.bf16.msra.mxu0 %v2077_v31  ;;  %v56_v31 = vld [vmem:[%s2693_s0 + $0x130] sm:$0xff] }
  0x3a   :  { %1971 = vmatpush3.bf16.msra.mxu1 %v2079_v33  ;;  %1908 = vmatprep.subr.bf16.mxu0 %v2080_v38  ;;  %v57_v33 = vld [vmem:[%s2693_s0 + $0x138] sm:$0xff]  ;;  %v60_v38 = vld [vmem:[%s2693_s0 + $0x150] sm:$0xff]  ;;  %v1597_v42 = vcombine.low %v52_v30, %v56_v31 }
  0x3b   :  { %971 = vmatmul.mubr.bf16.gmra.mrb[12].mxu0 %v1585_v19  ;;  %1972 = vmatprep.subr.bf16.mxu1 %v2082_v40  ;;  %v1575_v19 = vcombine.low %v29_v8, %v33_v9  ;;  %v61_v40 = vld [vmem:[%s2693_s0 + $0x158] sm:$0xff] }
  0x3c   :  { %1068 = vmatmul.mubr.bf16.gmra.mrb[12].mxu1 %v1587_v21  ;;  %978 = vmatprep.mubr.bf16.mxu0 %v1594_v22  ;;  %v1584_v21 = vcombine.high %v37_v16, %v41_v17  ;;  %v44_v22 = vld [vmem:[%s2693_s0 + $0xd0] sm:$0xff]  ;;  %v1608_v45 = vcombine.high %v61_v40, %v65_v41 }
  0x3d   :  { %1075 = vmatprep.mubr.bf16.mxu1 %v1596_v24  ;;  %1909 = vmatpush3.bf16.msra.mxu0 %v2081_v39  ;;  %v45_v24 = vld [vmem:[%s2693_s0 + $0xd8] sm:$0xff]  ;;  %v1590_v28 = vcombine.high %v44_v22, %v48_v23  ;;  %v64_v39 = vld [vmem:[%s2693_s0 + $0x170] sm:$0xff] }
  0x3e   :  { %1973 = vmatpush3.bf16.msra.mxu1 %v2083_v43  ;;  %1910 = vmatprep.subr.bf16.mxu0 %v2084_v46  ;;  %v1592_v29 = vcombine.high %v45_v24, %v49_v25  ;;  %v1599_v43 = vcombine.low %v53_v32, %v57_v33  ;;  %v1606_v44 = vcombine.high %v60_v38, %v64_v39  ;;  %v68_v46 = vld [vmem:[%s2693_s0 + $0x190] sm:$0xff] }
  0x3f   :  { %1974 = vmatprep.subr.bf16.mxu1 %v2086_v51  ;;  %v1607_v51 = vcombine.low %v61_v40, %v65_v41 }
  0x41   :  { %1911 = vmatpush3.bf16.msra.mxu0 %v2085_v48  ;;  %v69_v48 = vld [vmem:[%s2693_s0 + $0x198] sm:$0xff] }
  0x42   :  { %1975 = vmatpush3.bf16.msra.mxu1 %v2087_v53 }
  0x43   :  { %979 = vmatmul.mubr.bf16.gmra.mrb[16].mxu0 %v1593_v34  ;;  %v1589_v34 = vcombine.low %v44_v22, %v48_v23 }
  0x44   :  { %1076 = vmatmul.mubr.bf16.gmra.mrb[16].mxu1 %v1595_v35  ;;  %986 = vmatprep.mubr.bf16.mxu0 %v1602_v36  ;;  %v1591_v35 = vcombine.low %v45_v24, %v49_v25  ;;  %v1598_v36 = vcombine.high %v52_v30, %v56_v31 }
  0x45   :  { %1083 = vmatprep.mubr.bf16.mxu1 %v1604_v37  ;;  %v1600_v37 = vcombine.high %v53_v32, %v57_v33 }
  0x4b   :  { %987 = vmatmul.mubr.bf16.gmra.mrb[20].mxu0 %v1601_v47  ;;  %v72_v47 = vld [vmem:[%s2693_s0 + $0x1b0] sm:$0xff] }
  0x4c   :  { %1084 = vmatmul.mubr.bf16.gmra.mrb[20].mxu1 %v1603_v49  ;;  %994 = vmatprep.mubr.bf16.mxu0 %v1610_v50  ;;  %v73_v49 = vld [vmem:[%s2693_s0 + $0x1b8] sm:$0xff]  ;;  %v1605_v50 = vcombine.low %v60_v38, %v64_v39 }
  0x4d   :  { %1091 = vmatprep.mubr.bf16.mxu1 %v1612_v52  ;;  %v1614_v52 = vcombine.high %v68_v46, %v72_v47  ;;  %v1616_v53 = vcombine.high %v69_v48, %v73_v49 }
  0x53   :  { %995 = vmatmul.mubr.bf16.gmra.mrb[24].mxu0 %v1609_v58  ;;  %v1613_v58 = vcombine.low %v68_v46, %v72_v47 }
  0x54   :  { %1092 = vmatmul.mubr.bf16.gmra.mrb[24].mxu1 %v1611_v59  ;;  %1002 = vmatprep.mubr.bf16.mxu0 %v1618_v60  ;;  %v1615_v59 = vcombine.low %v69_v48, %v73_v49  ;;  %v1622_v60 = vcombine.high %v76_v54, %v80_v55 }
  0x55   :  { %1099 = vmatprep.mubr.bf16.mxu1 %v1620_v61  ;;  %v1624_v61 = vcombine.high %v77_v56, %v81_v57 }
  0x5b   :  { %1003 = vmatmul.mubr.bf16.gmra.mrb[28].mxu0 %v1617_v2 }
  0x5c   :  { %1100 = vmatmul.mubr.bf16.gmra.mrb[28].mxu1 %v1619_v3  ;;  %1140 = vmatprep.mubr.bf16.mxu0 %v1566_v4 }
  0x5d   :  { %1237 = vmatprep.mubr.bf16.mxu1 %v1568_v5 }
  0x63   :  { %1141 = vmatmul.mubr.bf16.vlgmr.msra.gmra.mrb[32].mxu0 %v1565_v10 }
  0x64   :  { %1238 = vmatmul.mubr.bf16.vlgmr.msra.gmra.mrb[32].mxu1 %v1567_v11  ;;  %1148 = vmatprep.mubr.bf16.mxu0 %v1574_v12 }
  0x65   :  { %1245 = vmatprep.mubr.bf16.mxu1 %v1576_v13 }
  0x6b   :  { %1149 = vmatmul.mubr.bf16.gmra.mrb[36].mxu0 %v1573_v18 }
  0x6c   :  { %1246 = vmatmul.mubr.bf16.gmra.mrb[36].mxu1 %v1575_v19  ;;  %1156 = vmatprep.mubr.bf16.mxu0 %v1582_v20 }
  0x6d   :  { %1253 = vmatprep.mubr.bf16.mxu1 %v1584_v21 }
  0x73   :  { %1157 = vmatmul.mubr.bf16.gmra.mrb[40].mxu0 %v1581_v26 }
  0x74   :  { %1254 = vmatmul.mubr.bf16.gmra.mrb[40].mxu1 %v1583_v27  ;;  %1164 = vmatprep.mubr.bf16.mxu0 %v1590_v28 }
  0x75   :  { %1261 = vmatprep.mubr.bf16.mxu1 %v1592_v29 }
  0x7b   :  { %1165 = vmatmul.mubr.bf16.gmra.mrb[44].mxu0 %v1589_v34 }
  0x7c   :  { %1262 = vmatmul.mubr.bf16.gmra.mrb[44].mxu1 %v1591_v35  ;;  %1172 = vmatprep.mubr.bf16.mxu0 %v1598_v36 }
  0x7d   :  { %1269 = vmatprep.mubr.bf16.mxu1 %v1600_v37 }
  0x83   :  { %1173 = vmatmul.mubr.bf16.gmra.mrb[48].mxu0 %v1597_v42 }
  0x84   :  { %1270 = vmatmul.mubr.bf16.gmra.mrb[48].mxu1 %v1599_v43  ;;  %1180 = vmatprep.mubr.bf16.mxu0 %v1606_v44 }
  0x85   :  { %1277 = vmatprep.mubr.bf16.mxu1 %v1608_v45 }
  0x8b   :  { %1181 = vmatmul.mubr.bf16.gmra.mrb[52].mxu0 %v1605_v50 }
  0x8c   :  { %1278 = vmatmul.mubr.bf16.gmra.mrb[52].mxu1 %v1607_v51  ;;  %1188 = vmatprep.mubr.bf16.mxu0 %v1614_v52 }
  0x8d   :  { %1285 = vmatprep.mubr.bf16.mxu1 %v1616_v53 }
  0x93   :  { %1189 = vmatmul.mubr.bf16.gmra.mrb[56].mxu0 %v1613_v58 }
  0x94   :  { %1286 = vmatmul.mubr.bf16.gmra.mrb[56].mxu1 %v1615_v59  ;;  %1196 = vmatprep.mubr.bf16.mxu0 %v1622_v60 }
  0x95   :  { %1293 = vmatprep.mubr.bf16.mxu1 %v1624_v61 }
  0x9b   :  { %1197 = vmatmul.mubr.bf16.gmra.mrb[60].mxu0 %v1621_v62 }
  0x9c   :  { %1294 = vmatmul.mubr.bf16.gmra.mrb[60].mxu1 %v1623_v63 }
  0xf6   :  { %v1784_v0 = vpop.f32.mrb[0].mxu0 }
  0xf7   :  { %v1848_v1 = vpop.f32.mrb[0].mxu1  ;;  %v1785_v2 = vpop.f32.mrb[1].mxu0 }
  0xf8   :  { %v1786_v3 = vadd.f32 %v1785_v2, %v1784_v0  ;;  %v1849_v4 = vpop.f32.mrb[1].mxu1  ;;  %v1787_v5 = vpop.f32.mrb[2].mxu0 }
  0xf9   :  { %v1850_v6 = vadd.f32 %v1849_v4, %v1848_v1  ;;  %v1851_v7 = vpop.f32.mrb[2].mxu1  ;;  %v1788_v8 = vpop.f32.mrb[3].mxu0 }
  0xfa   :  { %v1789_v9 = vadd.f32 %v1788_v8, %v1787_v5  ;;  %v1852_v10 = vpop.f32.mrb[3].mxu1 }
  0xfb   :  { %v2499_v11 = vadd.f32 %v1850_v6, %v1786_v3  ;;  %v1853_v12 = vadd.f32 %v1852_v10, %v1851_v7 }
  0xfd   :  { %v2501_v13 = vadd.f32 %v1853_v12, %v1789_v9 }
  0xfe   :  { %v1790_v14 = vpop.f32.mrb[4].mxu0 }
  0xff   :  { %v1854_v15 = vpop.f32.mrb[4].mxu1  ;;  %v1791_v16 = vpop.f32.mrb[5].mxu0 }
 0x100   :  { %v1792_v17 = vadd.f32 %v1791_v16, %v1790_v14  ;;  %v1855_v18 = vpop.f32.mrb[5].mxu1  ;;  %v1793_v19 = vpop.f32.mrb[6].mxu0 }
 0x101   :  { %v1856_v20 = vadd.f32 %v1855_v18, %v1854_v15  ;;  %v1857_v21 = vpop.f32.mrb[6].mxu1  ;;  %v1794_v22 = vpop.f32.mrb[7].mxu0 }
 0x102   :  { %v1795_v23 = vadd.f32 %v1794_v22, %v1793_v19  ;;  %v1858_v24 = vpop.f32.mrb[7].mxu1 }
 0x103   :  { %v2503_v25 = vadd.f32 %v1856_v20, %v1792_v17  ;;  %v1859_v26 = vadd.f32 %v1858_v24, %v1857_v21 }
 0x105   :  { %v2505_v27 = vadd.f32 %v1859_v26, %v1795_v23 }
 0x106   :  { %v1796_v28 = vpop.f32.mrb[8].mxu0 }
 0x107   :  { %v1860_v29 = vpop.f32.mrb[8].mxu1  ;;  %v1797_v30 = vpop.f32.mrb[9].mxu0 }
 0x108   :  { %v1798_v31 = vadd.f32 %v1797_v30, %v1796_v28  ;;  %v1861_v32 = vpop.f32.mrb[9].mxu1  ;;  %v1799_v33 = vpop.f32.mrb[10].mxu0 }
 0x109   :  { %v1862_v34 = vadd.f32 %v1861_v32, %v1860_v29  ;;  %v1863_v35 = vpop.f32.mrb[10].mxu1  ;;  %v1800_v36 = vpop.f32.mrb[11].mxu0 }
 0x10a   :  { %v1801_v37 = vadd.f32 %v1800_v36, %v1799_v33  ;;  %v1864_v38 = vpop.f32.mrb[11].mxu1 }
 0x10b   :  { %v2507_v39 = vadd.f32 %v1862_v34, %v1798_v31  ;;  %v1865_v40 = vadd.f32 %v1864_v38, %v1863_v35 }
 0x10d   :  { %v2509_v41 = vadd.f32 %v1865_v40, %v1801_v37 }
 0x10e   :  { %v1802_v42 = vpop.f32.mrb[12].mxu0 }
 0x10f   :  { %v1866_v43 = vpop.f32.mrb[12].mxu1  ;;  %v1803_v44 = vpop.f32.mrb[13].mxu0 }
 0x110   :  { %v1804_v45 = vadd.f32 %v1803_v44, %v1802_v42  ;;  %v1867_v46 = vpop.f32.mrb[13].mxu1  ;;  %v1805_v47 = vpop.f32.mrb[14].mxu0 }
 0x111   :  { %v1868_v48 = vadd.f32 %v1867_v46, %v1866_v43  ;;  %v1869_v49 = vpop.f32.mrb[14].mxu1  ;;  %v1806_v50 = vpop.f32.mrb[15].mxu0 }
 0x112   :  { %v1807_v51 = vadd.f32 %v1806_v50, %v1805_v47  ;;  %v1870_v52 = vpop.f32.mrb[15].mxu1 }
 0x113   :  { %v2511_v53 = vadd.f32 %v1868_v48, %v1804_v45  ;;  %v1871_v54 = vadd.f32 %v1870_v52, %v1869_v49 }
 0x115   :  { %v2513_v55 = vadd.f32 %v1871_v54, %v1807_v51 }
 0x116   :  { %v1808_v56 = vpop.f32.mrb[16].mxu0 }
 0x117   :  { %v1872_v57 = vpop.f32.mrb[16].mxu1  ;;  %v1809_v58 = vpop.f32.mrb[17].mxu0 }
 0x118   :  { %v1810_v59 = vadd.f32 %v1809_v58, %v1808_v56  ;;  %v1873_v60 = vpop.f32.mrb[17].mxu1  ;;  %v1811_v61 = vpop.f32.mrb[18].mxu0 }
 0x119   :  { %v1874_v62 = vadd.f32 %v1873_v60, %v1872_v57  ;;  %v1875_v63 = vpop.f32.mrb[18].mxu1  ;;  %v1812_v0 = vpop.f32.mrb[19].mxu0 }
 0x11a   :  { %v1813_v1 = vadd.f32 %v1812_v0, %v1811_v61  ;;  %v1876_v2 = vpop.f32.mrb[19].mxu1 }
 0x11b   :  { %v2515_v3 = vadd.f32 %v1874_v62, %v1810_v59  ;;  %v1877_v4 = vadd.f32 %v1876_v2, %v1875_v63 }
 0x11d   :  { %v2517_v5 = vadd.f32 %v1877_v4, %v1813_v1 }
 0x11e   :  { %v1814_v6 = vpop.f32.mrb[20].mxu0 }
 0x11f   :  { %v1878_v7 = vpop.f32.mrb[20].mxu1  ;;  %v1815_v8 = vpop.f32.mrb[21].mxu0 }
 0x120   :  { %v1816_v9 = vadd.f32 %v1815_v8, %v1814_v6  ;;  %v1879_v10 = vpop.f32.mrb[21].mxu1  ;;  %v1817_v12 = vpop.f32.mrb[22].mxu0 }
 0x121   :  { %v1880_v14 = vadd.f32 %v1879_v10, %v1878_v7  ;;  %v1881_v15 = vpop.f32.mrb[22].mxu1  ;;  %v1818_v16 = vpop.f32.mrb[23].mxu0 }
 0x122   :  { %v1819_v17 = vadd.f32 %v1818_v16, %v1817_v12  ;;  %v1882_v18 = vpop.f32.mrb[23].mxu1 }
 0x123   :  { %v2519_v19 = vadd.f32 %v1880_v14, %v1816_v9  ;;  %v1883_v20 = vadd.f32 %v1882_v18, %v1881_v15 }
 0x125   :  { %v2521_v21 = vadd.f32 %v1883_v20, %v1819_v17 }
 0x126   :  { %v1820_v22 = vpop.f32.mrb[24].mxu0 }
 0x127   :  { %v1884_v23 = vpop.f32.mrb[24].mxu1  ;;  %v1821_v24 = vpop.f32.mrb[25].mxu0 }
 0x128   :  { %v1822_v26 = vadd.f32 %v1821_v24, %v1820_v22  ;;  %v1885_v28 = vpop.f32.mrb[25].mxu1  ;;  %v1823_v29 = vpop.f32.mrb[26].mxu0 }
 0x129   :  { %v1886_v30 = vadd.f32 %v1885_v28, %v1884_v23  ;;  %v1887_v31 = vpop.f32.mrb[26].mxu1  ;;  %v1824_v32 = vpop.f32.mrb[27].mxu0 }
 0x12a   :  { %v1825_v33 = vadd.f32 %v1824_v32, %v1823_v29  ;;  %v1888_v34 = vpop.f32.mrb[27].mxu1 }
 0x12b   :  { %v2523_v35 = vadd.f32 %v1886_v30, %v1822_v26  ;;  %v1889_v36 = vadd.f32 %v1888_v34, %v1887_v31 }
 0x12d   :  { %v2525_v37 = vadd.f32 %v1889_v36, %v1825_v33 }
 0x12e   :  { %v1826_v38 = vpop.f32.mrb[28].mxu0 }
 0x12f   :  { %v1890_v40 = vpop.f32.mrb[28].mxu1  ;;  %v1827_v42 = vpop.f32.mrb[29].mxu0 }
 0x130   :  { %v1828_v43 = vadd.f32 %v1827_v42, %v1826_v38  ;;  %v1891_v44 = vpop.f32.mrb[29].mxu1  ;;  %v1829_v45 = vpop.f32.mrb[30].mxu0 }
 0x131   :  { %v1892_v46 = vadd.f32 %v1891_v44, %v1890_v40  ;;  %v1893_v47 = vpop.f32.mrb[30].mxu1  ;;  %v1830_v48 = vpop.f32.mrb[31].mxu0 }
 0x132   :  { %v1831_v49 = vadd.f32 %v1830_v48, %v1829_v45  ;;  %v1894_v50 = vpop.f32.mrb[31].mxu1 }
 0x133   :  { %v2527_v51 = vadd.f32 %v1892_v46, %v1828_v43  ;;  %v1895_v52 = vadd.f32 %v1894_v50, %v1893_v47 }
 0x135   :  { %v2529_v54 = vadd.f32 %v1895_v52, %v1831_v49 }
 0x136   :  { %v1912_v56 = vpop.f32.mrb[32].mxu0 }
 0x137   :  { %v1976_v57 = vpop.f32.mrb[32].mxu1  ;;  %v1913_v58 = vpop.f32.mrb[33].mxu0 }
 0x138   :  { %v1914_v59 = vadd.f32 %v1913_v58, %v1912_v56  ;;  %v1977_v60 = vpop.f32.mrb[33].mxu1  ;;  %v1915_v61 = vpop.f32.mrb[34].mxu0 }
 0x139   :  { %v1978_v62 = vadd.f32 %v1977_v60, %v1976_v57  ;;  %v1979_v63 = vpop.f32.mrb[34].mxu1  ;;  %v1916_v0 = vpop.f32.mrb[35].mxu0 }
 0x13a   :  { %v1143_v1 = vadd.f32 %v1914_v59, %v2499_v11  ;;  %v1917_v2 = vadd.f32 %v1916_v0, %v1915_v61  ;;  %v1980_v4 = vpop.f32.mrb[35].mxu1 }
 0x13b   :  { %v1981_v6 = vadd.f32 %v1980_v4, %v1979_v63 }
 0x13c   :  { %v2532_v7 = vadd.f32 %v1978_v62, %v1143_v1  ;;  %v1146_v8 = vadd.f32 %v1917_v2, %v2501_v13 }
 0x13e   :  { %v2535_v9 = vadd.f32 %v1981_v6, %v1146_v8  ;;  %v1918_v10 = vpop.f32.mrb[36].mxu0 }
 0x13f   :  { %v1982_v12 = vpop.f32.mrb[36].mxu1  ;;  %v1919_v14 = vpop.f32.mrb[37].mxu0 }
 0x140   :  { %v1920_v15 = vadd.f32 %v1919_v14, %v1918_v10  ;;  %v1983_v16 = vpop.f32.mrb[37].mxu1  ;;  %v1921_v17 = vpop.f32.mrb[38].mxu0  ;;  %v1302_v52 = vadd.f32 %v2535_v9, %v2532_v7 }
 0x141   :  { %v1984_v18 = vadd.f32 %v1983_v16, %v1982_v12  ;;  %v1985_v20 = vpop.f32.mrb[38].mxu1  ;;  %v1922_v22 = vpop.f32.mrb[39].mxu0 }
 0x142   :  { %v1151_v11 = vadd.f32 %v1920_v15, %v2503_v25  ;;  %v1923_v23 = vadd.f32 %v1922_v22, %v1921_v17  ;;  %v1986_v24 = vpop.f32.mrb[39].mxu1 }
 0x143   :  { %v1987_v26 = vadd.f32 %v1986_v24, %v1985_v20 }
 0x144   :  { %v2538_v28 = vadd.f32 %v1984_v18, %v1151_v11  ;;  %v1154_v13 = vadd.f32 %v1923_v23, %v2505_v27 }
 0x146   :  { %v2541_v29 = vadd.f32 %v1987_v26, %v1154_v13  ;;  %v1924_v30 = vpop.f32.mrb[40].mxu0  ;;  %v1303_v61 = vadd.f32 %v1302_v52, %v2538_v28 }
 0x147   :  { %v1988_v31 = vpop.f32.mrb[40].mxu1  ;;  %v1925_v32 = vpop.f32.mrb[41].mxu0 }
 0x148   :  { %v1926_v33 = vadd.f32 %v1925_v32, %v1924_v30  ;;  %v1989_v34 = vpop.f32.mrb[41].mxu1  ;;  %v1927_v36 = vpop.f32.mrb[42].mxu0  ;;  %v1304_v4 = vadd.f32 %v1303_v61, %v2541_v29 }
 0x149   :  { %v1990_v38 = vadd.f32 %v1989_v34, %v1988_v31  ;;  %v1991_v40 = vpop.f32.mrb[42].mxu1  ;;  %v1928_v42 = vpop.f32.mrb[43].mxu0 }
 0x14a   :  { %v1159_v25 = vadd.f32 %v1926_v33, %v2507_v39  ;;  %v1929_v43 = vadd.f32 %v1928_v42, %v1927_v36  ;;  %v1992_v44 = vpop.f32.mrb[43].mxu1 }
 0x14b   :  { %v1993_v45 = vadd.f32 %v1992_v44, %v1991_v40 }
 0x14c   :  { %v2544_v46 = vadd.f32 %v1990_v38, %v1159_v25  ;;  %v1162_v27 = vadd.f32 %v1929_v43, %v2509_v41 }
 0x14e   :  { %v2547_v47 = vadd.f32 %v1993_v45, %v1162_v27  ;;  %v1930_v48 = vpop.f32.mrb[44].mxu0  ;;  %v1305_v14 = vadd.f32 %v1304_v4, %v2544_v46 }
 0x14f   :  { %v1994_v49 = vpop.f32.mrb[44].mxu1  ;;  %v1931_v50 = vpop.f32.mrb[45].mxu0 }
 0x150   :  { %v1932_v56 = vadd.f32 %v1931_v50, %v1930_v48  ;;  %v1995_v57 = vpop.f32.mrb[45].mxu1  ;;  %v1933_v58 = vpop.f32.mrb[46].mxu0  ;;  %v1306_v24 = vadd.f32 %v1305_v14, %v2547_v47 }
 0x151   :  { %v1996_v59 = vadd.f32 %v1995_v57, %v1994_v49  ;;  %v1997_v39 = vpop.f32.mrb[46].mxu1  ;;  %v1934_v60 = vpop.f32.mrb[47].mxu0 }
 0x152   :  { %v1167_v62 = vadd.f32 %v1932_v56, %v2511_v53  ;;  %v1935_v63 = vadd.f32 %v1934_v60, %v1933_v58  ;;  %v1998_v41 = vpop.f32.mrb[47].mxu1 }
 0x153   :  { %v1999_v0 = vadd.f32 %v1998_v41, %v1997_v39 }
 0x154   :  { %v2553_v1 = vadd.f32 %v1996_v59, %v1167_v62  ;;  %v1170_v2 = vadd.f32 %v1935_v63, %v2513_v55 }
 0x156   :  { %v2557_v6 = vadd.f32 %v1999_v0, %v1170_v2  ;;  %v1936_v8 = vpop.f32.mrb[48].mxu0  ;;  %v1307_v30 = vadd.f32 %v1306_v24, %v2553_v1 }
 0x157   :  { %v2000_v10 = vpop.f32.mrb[48].mxu1  ;;  %v1937_v12 = vpop.f32.mrb[49].mxu0 }
 0x158   :  { %v1938_v15 = vadd.f32 %v1937_v12, %v1936_v8  ;;  %v2001_v16 = vpop.f32.mrb[49].mxu1  ;;  %v1939_v17 = vpop.f32.mrb[50].mxu0  ;;  %v1308_v43 = vadd.f32 %v1307_v30, %v2557_v6 }
 0x159   :  { %v2002_v53 = vadd.f32 %v2001_v16, %v2000_v10  ;;  %v2003_v18 = vpop.f32.mrb[50].mxu1  ;;  %v1940_v20 = vpop.f32.mrb[51].mxu0 }
 0x15a   :  { %v1175_v22 = vadd.f32 %v1938_v15, %v2515_v3  ;;  %v1941_v11 = vadd.f32 %v1940_v20, %v1939_v17  ;;  %v2004_v23 = vpop.f32.mrb[51].mxu1 }
 0x15b   :  { %v2005_v55 = vadd.f32 %v2004_v23, %v2003_v18 }
 0x15c   :  { %v2562_v26 = vadd.f32 %v2002_v53, %v1175_v22  ;;  %v1178_v13 = vadd.f32 %v1941_v11, %v2517_v5 }
 0x15e   :  { %v2566_v31 = vadd.f32 %v2005_v55, %v1178_v13  ;;  %v1942_v32 = vpop.f32.mrb[52].mxu0  ;;  %v1309_v48 = vadd.f32 %v1308_v43, %v2562_v26 }
 0x15f   :  { %v2006_v33 = vpop.f32.mrb[52].mxu1  ;;  %v1943_v34 = vpop.f32.mrb[53].mxu0 }
 0x160   :  { %v1944_v36 = vadd.f32 %v1943_v34, %v1942_v32  ;;  %v2007_v38 = vpop.f32.mrb[53].mxu1  ;;  %v1945_v40 = vpop.f32.mrb[54].mxu0  ;;  %v1310_v59 = vadd.f32 %v1309_v48, %v2566_v31 }
 0x161   :  { %v2008_v3 = vadd.f32 %v2007_v38, %v2006_v33  ;;  %v2009_v42 = vpop.f32.mrb[54].mxu1  ;;  %v1946_v25 = vpop.f32.mrb[55].mxu0 }
 0x162   :  { %v1183_v44 = vadd.f32 %v1944_v36, %v2519_v19  ;;  %v1947_v45 = vadd.f32 %v1946_v25, %v1945_v40  ;;  %v2010_v27 = vpop.f32.mrb[55].mxu1 }
 0x163   :  { %v2011_v5 = vadd.f32 %v2010_v27, %v2009_v42 }
 0x164   :  { %v2571_v49 = vadd.f32 %v2008_v3, %v1183_v44  ;;  %v1186_v50 = vadd.f32 %v1947_v45, %v2521_v21 }
 0x166   :  { %v2574_v52 = vadd.f32 %v2011_v5, %v1186_v50  ;;  %v1948_v56 = vpop.f32.mrb[56].mxu0  ;;  %v1311_v41 = vadd.f32 %v1310_v59, %v2571_v49 }
 0x167   :  { %v2012_v57 = vpop.f32.mrb[56].mxu1  ;;  %v1949_v58 = vpop.f32.mrb[57].mxu0 }
 0x168   :  { %v1950_v39 = vadd.f32 %v1949_v58, %v1948_v56  ;;  %v2013_v60 = vpop.f32.mrb[57].mxu1  ;;  %v1951_v61 = vpop.f32.mrb[58].mxu0  ;;  %v1312_v12 = vadd.f32 %v1311_v41, %v2574_v52 }
 0x169   :  { %v2014_v19 = vadd.f32 %v2013_v60, %v2012_v57  ;;  %v2015_v62 = vpop.f32.mrb[58].mxu1  ;;  %v1952_v63 = vpop.f32.mrb[59].mxu0 }
 0x16a   :  { %v1191_v0 = vadd.f32 %v1950_v39, %v2523_v35  ;;  %v1953_v2 = vadd.f32 %v1952_v63, %v1951_v61  ;;  %v2016_v4 = vpop.f32.mrb[59].mxu1 }
 0x16b   :  { %v2017_v21 = vadd.f32 %v2016_v4, %v2015_v62 }
 0x16c   :  { %v2579_v8 = vadd.f32 %v2014_v19, %v1191_v0  ;;  %v1194_v10 = vadd.f32 %v1953_v2, %v2525_v37 }
 0x16e   :  { %v2583_v14 = vadd.f32 %v2017_v21, %v1194_v10  ;;  %v1954_v15 = vpop.f32.mrb[60].mxu0  ;;  %v1313_v53 = vadd.f32 %v1312_v12, %v2579_v8 }
 0x16f   :  { %v2018_v16 = vpop.f32.mrb[60].mxu1  ;;  %v1955_v17 = vpop.f32.mrb[61].mxu0 }
 0x170   :  { %v1956_v18 = vadd.f32 %v1955_v17, %v1954_v15  ;;  %v2019_v20 = vpop.f32.mrb[61].mxu1  ;;  %v1957_v22 = vpop.f32.mrb[62].mxu0  ;;  %v1314_v30 = vadd.f32 %v1313_v53, %v2583_v14 }
 0x171   :  { %v2020_v35 = vadd.f32 %v2019_v20, %v2018_v16  ;;  %v2021_v11 = vpop.f32.mrb[62].mxu1  ;;  %v1958_v23 = vpop.f32.mrb[63].mxu0 }
 0x172   :  { %v1199_v55 = vadd.f32 %v1956_v18, %v2527_v51  ;;  %v1959_v24 = vadd.f32 %v1958_v23, %v1957_v22  ;;  %v2022_v13 = vpop.f32.mrb[63].mxu1 }
 0x173   :  { %v2023_v37 = vadd.f32 %v2022_v13, %v2021_v11 }
 0x174   :  { %v2588_v32 = vadd.f32 %v2020_v35, %v1199_v55  ;;  %v1202_v33 = vadd.f32 %v1959_v24, %v2529_v54 }
 0x176   :  { %v1315_v34 = vadd.f32 %v1314_v30, %v2588_v32  ;;  %v2592_v36 = vadd.f32 %v2023_v37, %v1202_v33 }
 0x178   :  { %v1316_v38 = vadd.f32 %v1315_v34, %v2592_v36 }
 0x17a   :  { %v1317_v40 = vrot.slane %v1316_v38, 4 }
 0x17c   :  { %v1318_v3 = vadd.f32 %v1317_v40, %v1316_v38 }
 0x17e   :  { %v1319_v42 = vrot.slane %v1318_v3, 2 }
 0x180   :  { %v1320_v25 = vadd.f32 %v1319_v42, %v1318_v3 }
 0x182   :  { %v1321_v51 = vrot.slane %v1320_v25, 1 }
 0x184   :  { %v1322_v43 = vadd.f32 %v1321_v51, %v1320_v25 }
 0x186   :  { %v2595_v44 = vmul.f32 0.0078125, %v1322_v43 }
 0x188   :  { %v1324_v45 = vsub.f32 %v2532_v7, %v2595_v44  ;;  %v1325_v54 = vsub.f32 %v2535_v9, %v2595_v44  ;;  %v1326_v27 = vsub.f32 %v2538_v28, %v2595_v44  ;;  %v1327_v50 = vsub.f32 %v2541_v29, %v2595_v44 }
 0x189   :  { %v1328_v56 = vsub.f32 %v2544_v46, %v2595_v44  ;;  %v1329_v59 = vsub.f32 %v2547_v47, %v2595_v44  ;;  %v1330_v61 = vsub.f32 %v2553_v1, %v2595_v44  ;;  %v1331_v63 = vsub.f32 %v2557_v6, %v2595_v44 }
 0x18a   :  { %v1340_v5 = vmul.f32 %v1324_v45, %v1324_v45  ;;  %v1341_v48 = vmul.f32 %v1325_v54, %v1325_v54  ;;  %v1342_v57 = vmul.f32 %v1326_v27, %v1326_v27  ;;  %v1343_v39 = vmul.f32 %v1327_v50, %v1327_v50 }
 0x18b   :  { %v1344_v19 = vmul.f32 %v1328_v56, %v1328_v56  ;;  %v1345_v41 = vmul.f32 %v1329_v59, %v1329_v59  ;;  %v1332_v2 = vsub.f32 %v2562_v26, %v2595_v44  ;;  %v1346_v4 = vmul.f32 %v1330_v61, %v1330_v61 }
 0x18c   :  { %v1356_v58 = vadd.f32 %v1341_v48, %v1340_v5  ;;  %v1333_v10 = vsub.f32 %v2566_v31, %v2595_v44  ;;  %v1347_v12 = vmul.f32 %v1331_v63, %v1331_v63  ;;  %v1334_v16 = vsub.f32 %v2571_v49, %v2595_v44 }
 0x18d   :  { %v1348_v17 = vmul.f32 %v1332_v2, %v1332_v2  ;;  %v1335_v18 = vsub.f32 %v2574_v52, %v2595_v44  ;;  %v1336_v35 = vsub.f32 %v2579_v8, %v2595_v44  ;;  %v1337_v55 = vsub.f32 %v2583_v14, %v2595_v44 }
 0x18e   :  { %v1357_v60 = vadd.f32 %v1356_v58, %v1342_v57  ;;  %v1349_v20 = vmul.f32 %v1333_v10, %v1333_v10  ;;  %v1350_v11 = vmul.f32 %v1334_v16, %v1334_v16  ;;  %v1338_v37 = vsub.f32 %v2588_v32, %v2595_v44 }
 0x18f   :  { %v1351_v24 = vmul.f32 %v1335_v18, %v1335_v18  ;;  %v1352_v30 = vmul.f32 %v1336_v35, %v1336_v35  ;;  %v1339_v34 = vsub.f32 %v2592_v36, %v2595_v44  ;;  %v1353_v38 = vmul.f32 %v1337_v55, %v1337_v55 }
 0x190   :  { %v1358_v62 = vadd.f32 %v1357_v60, %v1343_v39  ;;  %v1354_v3 = vmul.f32 %v1338_v37, %v1338_v37  ;;  %v1386_v58 = vlaneseq  ;;  %v1378_v39 = vld [vmem:[%s2694_s2] sm:$0x1] }
 0x191   :  { %v1355_v25 = vmul.f32 %v1339_v34, %v1339_v34 }
 0x192   :  { %v1359_v0 = vadd.f32 %v1358_v62, %v1344_v19  ;;  %v1387_v59 = vshrl.u32 %v1386_v58, 7  ;;  %v1382_v62 = vld [vmem:[%s2695_s3] sm:$0x1] }
 0x194   :  { %v1360_v21 = vadd.f32 %v1359_v0, %v1345_v41  ;;  %v1388_v60 = vsub.s32 0, %v1387_v59 }
 0x196   :  { %v1361_v15 = vadd.f32 %v1360_v21, %v1346_v4 }
 0x198   :  { %v1362_v53 = vadd.f32 %v1361_v15, %v1347_v12 }
 0x19a   :  { %v1363_v22 = vadd.f32 %v1362_v53, %v1348_v17 }
 0x19c   :  { %v1364_v23 = vadd.f32 %v1363_v22, %v1349_v20 }
 0x19e   :  { %v1365_v13 = vadd.f32 %v1364_v23, %v1350_v11 }
 0x1a0   :  { %v1366_v33 = vadd.f32 %v1365_v13, %v1351_v24 }
 0x1a2   :  { %v1367_v40 = vadd.f32 %v1366_v33, %v1352_v30 }
 0x1a4   :  { %v1368_v42 = vadd.f32 %v1367_v40, %v1353_v38 }
 0x1a6   :  { %v1369_v51 = vadd.f32 %v1368_v42, %v1354_v3 }
 0x1a8   :  { %v1370_v43 = vadd.f32 %v1369_v51, %v1355_v25 }
 0x1aa   :  { %v1371_v45 = vrot.slane %v1370_v43, 4 }
 0x1ac   :  { %v1372_v54 = vadd.f32 %v1371_v45, %v1370_v43 }
 0x1ae   :  { %v1373_v27 = vrot.slane %v1372_v54, 2 }
 0x1b0   :  { %v1374_v5 = vadd.f32 %v1373_v27, %v1372_v54 }
 0x1b2   :  { %v1375_v48 = vrot.slane %v1374_v5, 1 }
 0x1b4   :  { %v1376_v50 = vadd.f32 %v1375_v48, %v1374_v5 }
 0x1b6   :  { %v1377_v56 = vmul.f32 0.0078125, %v1376_v50 }
 0x1b8   :  { %v1379_v57 = vadd.f32 1e-05, %v1377_v56 }
 0x1ba   :  { %2088 = vrsqrt.f32 %v1379_v57 }
 0x1c4   :  { %v2089_v61 = vpop.eup %2088 }
 0x1c5   :  { %v1381_v19 = vmul.f32 %v2089_v61, %v1378_v39 }
 0x1c7   :  { %v1383_v63 = vmul.f32 %v1381_v19, %v2595_v44  ;;  %v1389_v41 = vrot.slane %v1381_v19, %v1388_v60 }
 0x1c9   :  { %v1384_v0 = vsub.f32 %v1382_v62, %v1383_v63  ;;  %v1391_v2 = vmul.f32 %v1389_v41, %v2532_v7  ;;  %v1392_v4 = vmul.f32 %v1389_v41, %v2535_v9  ;;  %v1393_v21 = vmul.f32 %v1389_v41, %v2538_v28 }
 0x1ca   :  { %v1394_v10 = vmul.f32 %v1389_v41, %v2541_v29  ;;  %v1395_v12 = vmul.f32 %v1389_v41, %v2544_v46  ;;  %v1396_v15 = vmul.f32 %v1389_v41, %v2547_v47  ;;  %v1397_v16 = vmul.f32 %v1389_v41, %v2553_v1 }
 0x1cb   :  { %v1398_v17 = vmul.f32 %v1389_v41, %v2557_v6  ;;  %v1399_v44 = vmul.f32 %v1389_v41, %v2562_v26  ;;  %v1400_v53 = vmul.f32 %v1389_v41, %v2566_v31  ;;  %v1401_v7 = vmul.f32 %v1389_v41, %v2571_v49 }
 0x1cc   :  { %v1402_v9 = vmul.f32 %v1389_v41, %v2574_v52  ;;  %v1411_v18 = vrot.slane %v1384_v0, %v1388_v60  ;;  %v1403_v28 = vmul.f32 %v1389_v41, %v2579_v8  ;;  %v1404_v29 = vmul.f32 %v1389_v41, %v2583_v14 }
 0x1cd   :  { %v1405_v46 = vmul.f32 %v1389_v41, %v2588_v32  ;;  %v1406_v47 = vmul.f32 %v1389_v41, %v2592_v36 }
 0x1ce   :  { %v1413_v1 = vadd.f32 %v1411_v18, %v1391_v2  ;;  %v1414_v20 = vadd.f32 %v1411_v18, %v1392_v4  ;;  %v1415_v6 = vadd.f32 %v1411_v18, %v1393_v21  ;;  %v1416_v22 = vadd.f32 %v1411_v18, %v1394_v10 }
 0x1cf   :  { %v1417_v26 = vadd.f32 %v1411_v18, %v1395_v12  ;;  %v1418_v35 = vadd.f32 %v1411_v18, %v1396_v15  ;;  %v1419_v31 = vadd.f32 %v1411_v18, %v1397_v16  ;;  %v1420_v11 = vadd.f32 %v1411_v18, %v1398_v17 }
 0x1d0   :  { %v1421_v49 = vadd.f32 %v1411_v18, %v1399_v44  ;;  %v1422_v23 = vadd.f32 %v1411_v18, %v1400_v53  ;;  %v1423_v52 = vadd.f32 %v1411_v18, %v1401_v7  ;;  %v1424_v55 = vadd.f32 %v1411_v18, %v1402_v9 }
 0x1d1   :  { %v1425_v24 = vadd.f32 %v1411_v18, %v1403_v28  ;;  %v1426_v8 = vadd.f32 %v1411_v18, %v1404_v29  ;;  %v1427_v13 = vadd.f32 %v1411_v18, %v1405_v46  ;;  %v1428_v14 = vadd.f32 %v1411_v18, %v1406_v47 }
 0x1d2   :  { %vm1429_vm0 = vcmp.gt.f32.partialorder %v1413_v1, 0.0  ;;  %vm1430_vm1 = vcmp.gt.f32.partialorder %v1414_v20, 0.0  ;;  %vm1431_vm2 = vcmp.gt.f32.partialorder %v1415_v6, 0.0  ;;  %vm1432_vm3 = vcmp.gt.f32.partialorder %v1416_v22, 0.0 }
 0x1d3   :  { %vm1433_vm4 = vcmp.gt.f32.partialorder %v1417_v26, 0.0  ;;  %vm1434_vm5 = vcmp.gt.f32.partialorder %v1418_v35, 0.0  ;;  %vm1435_vm6 = vcmp.gt.f32.partialorder %v1419_v31, 0.0  ;;  %vm1436_vm7 = vcmp.gt.f32.partialorder %v1420_v11, 0.0 }
 0x1d4   :  { %vm1437_vm8 = vcmp.gt.f32.partialorder %v1421_v49, 0.0  ;;  %vm1438_vm9 = vcmp.gt.f32.partialorder %v1422_v23, 0.0  ;;  %vm1439_vm10 = vcmp.gt.f32.partialorder %v1423_v52, 0.0  ;;  %vm1440_vm11 = vcmp.gt.f32.partialorder %v1424_v55, 0.0 }
 0x1d5   :  { %vm1441_vm12 = vcmp.gt.f32.partialorder %v1425_v24, 0.0  ;;  %vm1442_vm13 = vcmp.gt.f32.partialorder %v1426_v8, 0.0  ;;  %vm1443_vm14 = vcmp.gt.f32.partialorder %v1427_v13, 0.0  ;;  %vm1444_vm15 = vcmp.gt.f32.partialorder %v1428_v14, 0.0 }
 0x1d6   :  { %v1445_v32 = vmul.f32 0.2, %v1413_v1  ;;  %v1446_v36 = vmul.f32 0.2, %v1414_v20  ;;  %v1447_v37 = vmul.f32 0.2, %v1415_v6 }
 0x1d7   :  { %v1448_v30 = vmul.f32 0.2, %v1416_v22  ;;  %v1449_v33 = vmul.f32 0.2, %v1417_v26  ;;  %v1450_v34 = vmul.f32 0.2, %v1418_v35 }
 0x1d8   :  { %v1451_v38 = vmul.f32 0.2, %v1419_v31  ;;  %v1452_v40 = vmul.f32 0.2, %v1420_v11  ;;  %v1453_v3 = vmul.f32 0.2, %v1421_v49  ;;  %v1461_v42 = vsel %vm1429_vm0, %v1413_v1, %v1445_v32 }
 0x1d9   :  { %v1454_v25 = vmul.f32 0.2, %v1422_v23  ;;  %v1455_v51 = vmul.f32 0.2, %v1423_v52  ;;  %v1456_v43 = vmul.f32 0.2, %v1424_v55  ;;  %v1462_v45 = vsel %vm1430_vm1, %v1414_v20, %v1446_v36 }
 0x1da   :  { %v1457_v54 = vmul.f32 0.2, %v1425_v24  ;;  %v1458_v27 = vmul.f32 0.2, %v1426_v8  ;;  %v1459_v5 = vmul.f32 0.2, %v1427_v13  ;;  %v1463_v48 = vsel %vm1431_vm2, %v1415_v6, %v1447_v37 }
 0x1db   :  { %v1460_v50 = vmul.f32 0.2, %v1428_v14  ;;  %v1464_v56 = vsel %vm1432_vm3, %v1416_v22, %v1448_v30  ;;  %v1465_v57 = vsel %vm1433_vm4, %v1417_v26, %v1449_v33  ;;  %v1466_v58 = vsel %vm1434_vm5, %v1418_v35, %v1450_v34 }
 0x1dc   :  { %v1467_v59 = vsel %vm1435_vm6, %v1419_v31, %v1451_v38  ;;  %v1468_v39 = vsel %vm1436_vm7, %v1420_v11, %v1452_v40  ;;  %v1469_v60 = vsel %vm1437_vm8, %v1421_v49, %v1453_v3  ;;  %v1470_v61 = vsel %vm1438_vm9, %v1422_v23, %v1454_v25 }
 0x1dd   :  { %v1471_v19 = vsel %vm1439_vm10, %v1423_v52, %v1455_v51  ;;  %v1472_v62 = vsel %vm1440_vm11, %v1424_v55, %v1456_v43  ;;  %v1473_v63 = vsel %vm1441_vm12, %v1425_v24, %v1457_v54  ;;  %v1474_v41 = vsel %vm1442_vm13, %v1426_v8, %v1458_v27 }
 0x1de   :  { %v1475_v0 = vsel %vm1443_vm14, %v1427_v13, %v1459_v5  ;;  %v1476_v2 = vsel %vm1444_vm15, %v1428_v14, %v1460_v50  ;;  %v1724_v4 = vpack.c.bf16 %v1462_v45, %v1461_v42  ;;  %v1729_v21 = vpack.c.bf16 %v1464_v56, %v1463_v48 }
 0x1df   :  { %v1734_v10 = vpack.c.bf16 %v1466_v58, %v1465_v57  ;;  %v1739_v12 = vpack.c.bf16 %v1468_v39, %v1467_v59  ;;  %v1744_v15 = vpack.c.bf16 %v1470_v61, %v1469_v60  ;;  %v1749_v16 = vpack.c.bf16 %v1472_v62, %v1471_v19 }
 0x1e0   :  { %1725 = vst [vmem:[%s2696_s4] sm:$0xff] %v1724_v4   ;;  %1761 = vst [vmem:[%s2696_s4 + $0x8] sm:$0xff] %v1729_v21   ;;  %v1754_v17 = vpack.c.bf16 %v1474_v41, %v1473_v63  ;;  %v1759_v44 = vpack.c.bf16 %v1476_v2, %v1475_v0 }
 0x1e1   :  { %1762 = vst [vmem:[%s2696_s4 + $0x10] sm:$0xff] %v1734_v10   ;;  %1763 = vst [vmem:[%s2696_s4 + $0x18] sm:$0xff] %v1739_v12  }
 0x1e2   :  { %1764 = vst [vmem:[%s2696_s4 + $0x20] sm:$0xff] %v1744_v15   ;;  %1765 = vst [vmem:[%s2696_s4 + $0x28] sm:$0xff] %v1749_v16  }
 0x1e3   :  { %1766 = vst [vmem:[%s2696_s4 + $0x30] sm:$0xff] %v1754_v17   ;;  %1767 = vst [vmem:[%s2696_s4 + $0x38] sm:$0xff] %v1759_v44  }

// kernel: discriminator_forward.7
= control target key start
LH: loop header
LB: loop body
LE: loop exit
PB: predicated region body
PF: predicated region fallthrough
CT: control target
= control target key end

     0   :  { %s4110_s1 = inlined_call_operand.vmem [shape: bf16[2048,256], index: 1, kind: input, shape index: {}]   ;;  %s4111_s0 = inlined_call_operand.vmem [shape: bf16[32,2048], index: 0, kind: input, shape index: {}]   ;;  %s4112_s2 = inlined_call_operand.vmem [shape: f32[1,256], index: 2, kind: input, shape index: {}]   ;;  %s4113_s3 = inlined_call_operand.vmem [shape: f32[1,256], index: 3, kind: input, shape index: {}]   ;;  %s4114_s4 = inlined_call_operand.vmem [shape: bf16[32,256], index: 4, kind: output, shape index: {}]  }
   0x1   :  { %v2718_v0 = vld [vmem:[%s4110_s1 + $0x4] ss:$8 sps:$4 sm:$0xff]   ;;  %v2722_v2 = vld [vmem:[%s4110_s1] ss:$8 sps:$4 sm:$0xff]   ;;  %v2724_v4 = vld [vmem:[%s4110_s1 + $0x14] ss:$8 sps:$4 sm:$0xff]  }
   0x2   :  { %v2720_v1 = vld [vmem:[%s4110_s1 + $0x404] ss:$8 sps:$4 sm:$0xff]   ;;  %1745 = vmatprep.subr.bf16.mxu1 %v2718_v0  ;;  %v2723_v3 = vld [vmem:[%s4110_s1 + $0x400] ss:$8 sps:$4 sm:$0xff]   ;;  %v2726_v5 = vld [vmem:[%s4110_s1 + $0x414] ss:$8 sps:$4 sm:$0xff]  }
   0x3   :  { %1957 = vmatprep.subr.bf16.mxu0 %v2720_v1  ;;  %1746 = vmatpush1.bf16.msra.mxu1 %v2722_v2  ;;  %v2728_v6 = vld [vmem:[%s4110_s1 + $0x10] ss:$8 sps:$4 sm:$0xff]   ;;  %v2730_v8 = vld [vmem:[%s4110_s1 + $0x24] ss:$8 sps:$4 sm:$0xff]   ;;  %v2734_v10 = vld [vmem:[%s4110_s1 + $0x20] ss:$8 sps:$4 sm:$0xff]  }
   0x4   :  { %1958 = vmatpush1.bf16.msra.mxu0 %v2723_v3  ;;  %1747 = vmatprep.subr.bf16.mxu1 %v2724_v4  ;;  %v2729_v7 = vld [vmem:[%s4110_s1 + $0x410] ss:$8 sps:$4 sm:$0xff]   ;;  %v2732_v9 = vld [vmem:[%s4110_s1 + $0x424] ss:$8 sps:$4 sm:$0xff]   ;;  %v2735_v11 = vld [vmem:[%s4110_s1 + $0x420] ss:$8 sps:$4 sm:$0xff]  }
   0x5   :  { %1959 = vmatprep.subr.bf16.mxu0 %v2726_v5  ;;  %v2736_v12 = vld [vmem:[%s4110_s1 + $0x34] ss:$8 sps:$4 sm:$0xff]   ;;  %v2740_v14 = vld [vmem:[%s4110_s1 + $0x30] ss:$8 sps:$4 sm:$0xff]   ;;  %v2742_v16 = vld [vmem:[%s4110_s1 + $0x44] ss:$8 sps:$4 sm:$0xff]  }
   0x6   :  { %v2738_v13 = vld [vmem:[%s4110_s1 + $0x434] ss:$8 sps:$4 sm:$0xff]   ;;  %v2741_v15 = vld [vmem:[%s4110_s1 + $0x430] ss:$8 sps:$4 sm:$0xff]   ;;  %v2744_v17 = vld [vmem:[%s4110_s1 + $0x444] ss:$8 sps:$4 sm:$0xff]  }
   0x7   :  { %1748 = vmatpush1.bf16.msra.mxu1 %v2728_v6  ;;  %v2746_v18 = vld [vmem:[%s4110_s1 + $0x40] ss:$8 sps:$4 sm:$0xff]   ;;  %v2748_v20 = vld [vmem:[%s4110_s1 + $0x54] ss:$8 sps:$4 sm:$0xff]   ;;  %v2752_v22 = vld [vmem:[%s4110_s1 + $0x50] ss:$8 sps:$4 sm:$0xff]  }
   0x8   :  { %1960 = vmatpush1.bf16.msra.mxu0 %v2729_v7  ;;  %1749 = vmatprep.subr.bf16.mxu1 %v2730_v8  ;;  %v2747_v19 = vld [vmem:[%s4110_s1 + $0x440] ss:$8 sps:$4 sm:$0xff]   ;;  %v2750_v21 = vld [vmem:[%s4110_s1 + $0x454] ss:$8 sps:$4 sm:$0xff]   ;;  %v2753_v23 = vld [vmem:[%s4110_s1 + $0x450] ss:$8 sps:$4 sm:$0xff]  }
   0x9   :  { %1961 = vmatprep.subr.bf16.mxu0 %v2732_v9  ;;  %v2754_v24 = vld [vmem:[%s4110_s1 + $0x64] ss:$8 sps:$4 sm:$0xff]   ;;  %v2758_v26 = vld [vmem:[%s4110_s1 + $0x60] ss:$8 sps:$4 sm:$0xff]   ;;  %v2760_v28 = vld [vmem:[%s4110_s1 + $0x74] ss:$8 sps:$4 sm:$0xff]  }
   0xa   :  { %v2756_v25 = vld [vmem:[%s4110_s1 + $0x464] ss:$8 sps:$4 sm:$0xff]   ;;  %v2759_v27 = vld [vmem:[%s4110_s1 + $0x460] ss:$8 sps:$4 sm:$0xff]   ;;  %v2762_v29 = vld [vmem:[%s4110_s1 + $0x474] ss:$8 sps:$4 sm:$0xff]  }
   0xb   :  { %1750 = vmatpush1.bf16.msra.mxu1 %v2734_v10  ;;  %v2764_v30 = vld [vmem:[%s4110_s1 + $0x70] ss:$8 sps:$4 sm:$0xff]   ;;  %v2766_v32 = vld [vmem:[%s4110_s1 + $0x84] ss:$8 sps:$4 sm:$0xff]   ;;  %v2770_v34 = vld [vmem:[%s4110_s1 + $0x80] ss:$8 sps:$4 sm:$0xff]  }
   0xc   :  { %1962 = vmatpush1.bf16.msra.mxu0 %v2735_v11  ;;  %1751 = vmatprep.subr.bf16.mxu1 %v2736_v12  ;;  %v2765_v31 = vld [vmem:[%s4110_s1 + $0x470] ss:$8 sps:$4 sm:$0xff]   ;;  %v2768_v33 = vld [vmem:[%s4110_s1 + $0x484] ss:$8 sps:$4 sm:$0xff]   ;;  %v2771_v35 = vld [vmem:[%s4110_s1 + $0x480] ss:$8 sps:$4 sm:$0xff]  }
   0xd   :  { %1963 = vmatprep.subr.bf16.mxu0 %v2738_v13  ;;  %v2772_v36 = vld [vmem:[%s4110_s1 + $0x94] ss:$8 sps:$4 sm:$0xff]   ;;  %v2776_v38 = vld [vmem:[%s4110_s1 + $0x90] ss:$8 sps:$4 sm:$0xff]   ;;  %v2778_v40 = vld [vmem:[%s4110_s1 + $0xa4] ss:$8 sps:$4 sm:$0xff]  }
   0xe   :  { %v2774_v37 = vld [vmem:[%s4110_s1 + $0x494] ss:$8 sps:$4 sm:$0xff]   ;;  %v2777_v39 = vld [vmem:[%s4110_s1 + $0x490] ss:$8 sps:$4 sm:$0xff]   ;;  %v2780_v41 = vld [vmem:[%s4110_s1 + $0x4a4] ss:$8 sps:$4 sm:$0xff]  }
   0xf   :  { %1752 = vmatpush1.bf16.msra.mxu1 %v2740_v14  ;;  %v2782_v42 = vld [vmem:[%s4110_s1 + $0xa0] ss:$8 sps:$4 sm:$0xff]   ;;  %v2784_v44 = vld [vmem:[%s4110_s1 + $0xb4] ss:$8 sps:$4 sm:$0xff]   ;;  %v2788_v46 = vld [vmem:[%s4110_s1 + $0xb0] ss:$8 sps:$4 sm:$0xff]  }
  0x10   :  { %1964 = vmatpush1.bf16.msra.mxu0 %v2741_v15  ;;  %1753 = vmatprep.subr.bf16.mxu1 %v2742_v16  ;;  %v2783_v43 = vld [vmem:[%s4110_s1 + $0x4a0] ss:$8 sps:$4 sm:$0xff]   ;;  %v2786_v45 = vld [vmem:[%s4110_s1 + $0x4b4] ss:$8 sps:$4 sm:$0xff]   ;;  %v2789_v47 = vld [vmem:[%s4110_s1 + $0x4b0] ss:$8 sps:$4 sm:$0xff]  }
  0x11   :  { %1965 = vmatprep.subr.bf16.mxu0 %v2744_v17  ;;  %v17_v48 = vld [vmem:[%s4111_s0] sm:$0xff]  ;;  %v2796_v58 = vld [vmem:[%s4110_s1 + $0xd4] ss:$8 sps:$4 sm:$0xff]   ;;  %v2800_v60 = vld [vmem:[%s4110_s1 + $0xd0] ss:$8 sps:$4 sm:$0xff]  }
  0x12   :  { %v25_v49 = vld [vmem:[%s4111_s0 + $0x40] sm:$0xff]  ;;  %v2798_v59 = vld [vmem:[%s4110_s1 + $0x4d4] ss:$8 sps:$4 sm:$0xff]   ;;  %v2801_v61 = vld [vmem:[%s4110_s1 + $0x4d0] ss:$8 sps:$4 sm:$0xff]  }
  0x13   :  { %1754 = vmatpush1.bf16.msra.mxu1 %v2746_v18  ;;  %v2790_v50 = vld [vmem:[%s4110_s1 + $0xc4] ss:$8 sps:$4 sm:$0xff]   ;;  %v2366_v52 = vcombine.high %v17_v48, %v25_v49  ;;  %v2794_v56 = vld [vmem:[%s4110_s1 + $0xc0] ss:$8 sps:$4 sm:$0xff]   ;;  %v2808_v2 = vld [vmem:[%s4110_s1 + $0xf4] ss:$8 sps:$4 sm:$0xff]   ;;  %v2365_v8 = vcombine.low %v17_v48, %v25_v49 }
  0x14   :  { %1966 = vmatpush1.bf16.msra.mxu0 %v2747_v19  ;;  %1755 = vmatprep.subr.bf16.mxu1 %v2748_v20  ;;  %v2792_v51 = vld [vmem:[%s4110_s1 + $0x4c4] ss:$8 sps:$4 sm:$0xff]   ;;  %v2795_v57 = vld [vmem:[%s4110_s1 + $0x4c0] ss:$8 sps:$4 sm:$0xff]   ;;  %v2810_v3 = vld [vmem:[%s4110_s1 + $0x4f4] ss:$8 sps:$4 sm:$0xff]  }
  0x15   :  { %1967 = vmatprep.subr.bf16.mxu0 %v2750_v21  ;;  %v21_v53 = vld [vmem:[%s4111_s0 + $0x20] sm:$0xff]  ;;  %1777 = vmatprep.mubr.bf16.mxu1 %v2366_v52  ;;  %v2812_v4 = vld [vmem:[%s4110_s1 + $0xf0] ss:$8 sps:$4 sm:$0xff]   ;;  %v2822_v12 = vld [vmem:[%s4110_s1 + $0x114] ss:$8 sps:$4 sm:$0xff]  }
  0x16   :  { %v29_v54 = vld [vmem:[%s4111_s0 + $0x60] sm:$0xff]  ;;  %v2813_v5 = vld [vmem:[%s4110_s1 + $0x4f0] ss:$8 sps:$4 sm:$0xff]   ;;  %v2825_v13 = vld [vmem:[%s4110_s1 + $0x514] ss:$8 sps:$4 sm:$0xff]  }
  0x17   :  { %1756 = vmatpush1.bf16.msra.mxu1 %v2752_v22  ;;  %v2374_v55 = vcombine.high %v21_v53, %v29_v54  ;;  %v2802_v62 = vld [vmem:[%s4110_s1 + $0xe4] ss:$8 sps:$4 sm:$0xff]   ;;  %v2806_v0 = vld [vmem:[%s4110_s1 + $0xe0] ss:$8 sps:$4 sm:$0xff]   ;;  %v2373_v10 = vcombine.low %v21_v53, %v29_v54  ;;  %v2820_v14 = vld [vmem:[%s4110_s1 + $0x110] ss:$8 sps:$4 sm:$0xff]  }
  0x18   :  { %1968 = vmatpush1.bf16.msra.mxu0 %v2753_v23  ;;  %1757 = vmatprep.subr.bf16.mxu1 %v2754_v24  ;;  %v2804_v63 = vld [vmem:[%s4110_s1 + $0x4e4] ss:$8 sps:$4 sm:$0xff]   ;;  %v2807_v1 = vld [vmem:[%s4110_s1 + $0x4e0] ss:$8 sps:$4 sm:$0xff]   ;;  %v2823_v15 = vld [vmem:[%s4110_s1 + $0x510] ss:$8 sps:$4 sm:$0xff]  }
  0x19   :  { %1969 = vmatprep.subr.bf16.mxu0 %v2756_v25  ;;  %1989 = vmatprep.mubr.bf16.mxu0 %v2374_v55  ;;  %v2816_v6 = vld [vmem:[%s4110_s1 + $0x104] ss:$8 sps:$4 sm:$0xff]   ;;  %v2814_v9 = vld [vmem:[%s4110_s1 + $0x100] ss:$8 sps:$4 sm:$0xff]   ;;  %v2834_v20 = vld [vmem:[%s4110_s1 + $0x134] ss:$8 sps:$4 sm:$0xff]  }
  0x1a   :  { %v2819_v7 = vld [vmem:[%s4110_s1 + $0x504] ss:$8 sps:$4 sm:$0xff]   ;;  %v2817_v11 = vld [vmem:[%s4110_s1 + $0x500] ss:$8 sps:$4 sm:$0xff]   ;;  %v2837_v21 = vld [vmem:[%s4110_s1 + $0x534] ss:$8 sps:$4 sm:$0xff]  }
  0x1b   :  { %1758 = vmatpush1.bf16.msra.mxu1 %v2758_v26  ;;  %v2828_v16 = vld [vmem:[%s4110_s1 + $0x124] ss:$8 sps:$4 sm:$0xff]   ;;  %v2826_v18 = vld [vmem:[%s4110_s1 + $0x120] ss:$8 sps:$4 sm:$0xff]   ;;  %v2832_v22 = vld [vmem:[%s4110_s1 + $0x130] ss:$8 sps:$4 sm:$0xff]  }
  0x1c   :  { %1970 = vmatpush1.bf16.msra.mxu0 %v2759_v27  ;;  %1759 = vmatprep.subr.bf16.mxu1 %v2760_v28  ;;  %v2831_v17 = vld [vmem:[%s4110_s1 + $0x524] ss:$8 sps:$4 sm:$0xff]   ;;  %v2829_v19 = vld [vmem:[%s4110_s1 + $0x520] ss:$8 sps:$4 sm:$0xff]   ;;  %v2835_v23 = vld [vmem:[%s4110_s1 + $0x530] ss:$8 sps:$4 sm:$0xff]  }
  0x1d   :  { %1971 = vmatprep.subr.bf16.mxu0 %v2762_v29  ;;  %v2840_v24 = vld [vmem:[%s4110_s1 + $0x144] ss:$8 sps:$4 sm:$0xff]   ;;  %v2838_v26 = vld [vmem:[%s4110_s1 + $0x140] ss:$8 sps:$4 sm:$0xff]   ;;  %v2846_v28 = vld [vmem:[%s4110_s1 + $0x154] ss:$8 sps:$4 sm:$0xff]  }
  0x1e   :  { %v2843_v25 = vld [vmem:[%s4110_s1 + $0x544] ss:$8 sps:$4 sm:$0xff]   ;;  %v2841_v27 = vld [vmem:[%s4110_s1 + $0x540] ss:$8 sps:$4 sm:$0xff]   ;;  %v2849_v29 = vld [vmem:[%s4110_s1 + $0x554] ss:$8 sps:$4 sm:$0xff]  }
  0x1f   :  { %1760 = vmatpush1.bf16.msra.mxu1 %v2764_v30  ;;  %v33_v30 = vld [vmem:[%s4111_s0 + $0x80] sm:$0xff]  ;;  %v3453_v49 = vld [vmem:[%s4111_s0 + $0x28] sm:$0xff]  ;;  %v2859_v52 = vld [vmem:[%s4110_s1 + $0x570] ss:$8 sps:$4 sm:$0xff]  }
  0x20   :  { %1972 = vmatpush1.bf16.msra.mxu0 %v2765_v31  ;;  %1761 = vmatprep.subr.bf16.mxu1 %v2766_v32  ;;  %v41_v31 = vld [vmem:[%s4111_s0 + $0xc0] sm:$0xff]  ;;  %v2844_v32 = vld [vmem:[%s4110_s1 + $0x150] ss:$8 sps:$4 sm:$0xff]  }
  0x21   :  { %1973 = vmatprep.subr.bf16.mxu0 %v2768_v33  ;;  %v2382_v33 = vcombine.high %v33_v30, %v41_v31  ;;  %v2864_v54 = vld [vmem:[%s4110_s1 + $0x184] ss:$8 sps:$4 sm:$0xff]  }
  0x22   :  { %v2867_v55 = vld [vmem:[%s4110_s1 + $0x584] ss:$8 sps:$4 sm:$0xff]  }
  0x23   :  { %1762 = vmatpush1.bf16.msra.mxu1 %v2770_v34  ;;  %v2847_v34 = vld [vmem:[%s4110_s1 + $0x550] ss:$8 sps:$4 sm:$0xff]  }
  0x24   :  { %1974 = vmatpush1.bf16.msra.mxu0 %v2771_v35  ;;  %1763 = vmatprep.subr.bf16.mxu1 %v2772_v36  ;;  %v37_v35 = vld [vmem:[%s4111_s0 + $0xa0] sm:$0xff] }
  0x25   :  { %1975 = vmatprep.subr.bf16.mxu0 %v2774_v37  ;;  %v45_v36 = vld [vmem:[%s4111_s0 + $0xe0] sm:$0xff]  ;;  %v2381_v37 = vcombine.low %v33_v30, %v41_v31  ;;  %v2918_v30 = vld [vmem:[%s4110_s1 + $0x214] ss:$8 sps:$4 sm:$0xff]  }
  0x26   :  { %v2921_v31 = vld [vmem:[%s4110_s1 + $0x614] ss:$8 sps:$4 sm:$0xff]  }
  0x27   :  { %1764 = vmatpush1.bf16.msra.mxu1 %v2776_v38  ;;  %v2852_v38 = vld [vmem:[%s4110_s1 + $0x164] ss:$8 sps:$4 sm:$0xff]  }
  0x28   :  { %1976 = vmatpush1.bf16.msra.mxu0 %v2777_v39  ;;  %1765 = vmatprep.subr.bf16.mxu1 %v2778_v40  ;;  %v2390_v39 = vcombine.high %v37_v35, %v45_v36  ;;  %v2389_v40 = vcombine.low %v37_v35, %v45_v36  ;;  %v2916_v36 = vld [vmem:[%s4110_s1 + $0x210] ss:$8 sps:$4 sm:$0xff]  }
  0x29   :  { %1977 = vmatprep.subr.bf16.mxu0 %v2780_v41  ;;  %v2855_v41 = vld [vmem:[%s4110_s1 + $0x564] ss:$8 sps:$4 sm:$0xff]  }
  0x2b   :  { %1766 = vmatpush1.bf16.msra.mxu1 %v2782_v42  ;;  %v2850_v42 = vld [vmem:[%s4110_s1 + $0x160] ss:$8 sps:$4 sm:$0xff]  }
  0x2c   :  { %1978 = vmatpush1.bf16.msra.mxu0 %v2783_v43  ;;  %1767 = vmatprep.subr.bf16.mxu1 %v2784_v44  ;;  %v2853_v43 = vld [vmem:[%s4110_s1 + $0x560] ss:$8 sps:$4 sm:$0xff]  }
  0x2d   :  { %1979 = vmatprep.subr.bf16.mxu0 %v2786_v45  ;;  %v3435_v44 = vld [vmem:[%s4111_s0 + $0x8] sm:$0xff] }
  0x2e   :  { %v3440_v45 = vld [vmem:[%s4111_s0 + $0x48] sm:$0xff] }
  0x2f   :  { %1768 = vmatpush1.bf16.msra.mxu1 %v2788_v46  ;;  %v2858_v46 = vld [vmem:[%s4110_s1 + $0x174] ss:$8 sps:$4 sm:$0xff]   ;;  %v2368_v48 = vcombine.high %v3435_v44, %v3440_v45 }
  0x30   :  { %1980 = vmatpush1.bf16.msra.mxu0 %v2789_v47  ;;  %1769 = vmatprep.subr.bf16.mxu1 %v2790_v50  ;;  %v2861_v47 = vld [vmem:[%s4110_s1 + $0x574] ss:$8 sps:$4 sm:$0xff]   ;;  %v3458_v50 = vld [vmem:[%s4111_s0 + $0x68] sm:$0xff] }
  0x31   :  { %1981 = vmatprep.subr.bf16.mxu0 %v2792_v51  ;;  %v2856_v51 = vld [vmem:[%s4110_s1 + $0x170] ss:$8 sps:$4 sm:$0xff]   ;;  %v2376_v53 = vcombine.high %v3453_v49, %v3458_v50 }
  0x33   :  { %1770 = vmatpush1.bf16.msra.mxu1 %v2794_v56  ;;  %v2862_v56 = vld [vmem:[%s4110_s1 + $0x180] ss:$8 sps:$4 sm:$0xff]  }
  0x34   :  { %1982 = vmatpush1.bf16.msra.mxu0 %v2795_v57  ;;  %1771 = vmatprep.subr.bf16.mxu1 %v2796_v58  ;;  %v2865_v57 = vld [vmem:[%s4110_s1 + $0x580] ss:$8 sps:$4 sm:$0xff]   ;;  %v2870_v58 = vld [vmem:[%s4110_s1 + $0x194] ss:$8 sps:$4 sm:$0xff]  }
  0x35   :  { %1983 = vmatprep.subr.bf16.mxu0 %v2798_v59  ;;  %v2873_v59 = vld [vmem:[%s4110_s1 + $0x594] ss:$8 sps:$4 sm:$0xff]  }
  0x37   :  { %1772 = vmatpush1.bf16.msra.mxu1 %v2800_v60  ;;  %v2868_v60 = vld [vmem:[%s4110_s1 + $0x190] ss:$8 sps:$4 sm:$0xff]  }
  0x38   :  { %1984 = vmatpush1.bf16.msra.mxu0 %v2801_v61  ;;  %1773 = vmatprep.subr.bf16.mxu1 %v2802_v62  ;;  %v2871_v61 = vld [vmem:[%s4110_s1 + $0x590] ss:$8 sps:$4 sm:$0xff]   ;;  %v2876_v62 = vld [vmem:[%s4110_s1 + $0x1a4] ss:$8 sps:$4 sm:$0xff]  }
  0x39   :  { %1985 = vmatprep.subr.bf16.mxu0 %v2804_v63  ;;  %v2879_v63 = vld [vmem:[%s4110_s1 + $0x5a4] ss:$8 sps:$4 sm:$0xff]  }
  0x3b   :  { %1774 = vmatpush1.bf16.msra.mxu1 %v2806_v0  ;;  %v2874_v0 = vld [vmem:[%s4110_s1 + $0x1a0] ss:$8 sps:$4 sm:$0xff]  }
  0x3c   :  { %1986 = vmatpush1.bf16.msra.mxu0 %v2807_v1  ;;  %1775 = vmatprep.subr.bf16.mxu1 %v2808_v2  ;;  %v2877_v1 = vld [vmem:[%s4110_s1 + $0x5a0] ss:$8 sps:$4 sm:$0xff]   ;;  %v2882_v2 = vld [vmem:[%s4110_s1 + $0x1b4] ss:$8 sps:$4 sm:$0xff]  }
  0x3d   :  { %1987 = vmatprep.subr.bf16.mxu0 %v2810_v3  ;;  %v2885_v3 = vld [vmem:[%s4110_s1 + $0x5b4] ss:$8 sps:$4 sm:$0xff]  }
  0x3f   :  { %1776 = vmatpush1.bf16.msra.mxu1 %v2812_v4  ;;  %v2880_v4 = vld [vmem:[%s4110_s1 + $0x1b0] ss:$8 sps:$4 sm:$0xff]  }
  0x40   :  { %1988 = vmatpush1.bf16.msra.mxu0 %v2813_v5  ;;  %1798 = vmatprep.subr.bf16.mxu1 %v2816_v6  ;;  %v2883_v5 = vld [vmem:[%s4110_s1 + $0x5b0] ss:$8 sps:$4 sm:$0xff]   ;;  %v2888_v6 = vld [vmem:[%s4110_s1 + $0x1c4] ss:$8 sps:$4 sm:$0xff]  }
  0x41   :  { %2010 = vmatprep.subr.bf16.mxu0 %v2819_v7  ;;  %v2891_v7 = vld [vmem:[%s4110_s1 + $0x5c4] ss:$8 sps:$4 sm:$0xff]  }
  0x42   :  { %1778 = vmatmul.mubr.bf16.vlgmr.msra.gmra.mrb[0].mxu1 %v2365_v8  ;;  %v2886_v8 = vld [vmem:[%s4110_s1 + $0x1c0] ss:$8 sps:$4 sm:$0xff]  }
  0x43   :  { %1990 = vmatmul.mubr.bf16.vlgmr.msra.gmra.mrb[0].mxu0 %v2373_v10  ;;  %1799 = vmatpush1.bf16.msra.mxu1 %v2814_v9  ;;  %v2889_v9 = vld [vmem:[%s4110_s1 + $0x5c0] ss:$8 sps:$4 sm:$0xff]   ;;  %v2894_v10 = vld [vmem:[%s4110_s1 + $0x1d4] ss:$8 sps:$4 sm:$0xff]  }
  0x44   :  { %2011 = vmatpush1.bf16.msra.mxu0 %v2817_v11  ;;  %1800 = vmatprep.subr.bf16.mxu1 %v2822_v12  ;;  %v2897_v11 = vld [vmem:[%s4110_s1 + $0x5d4] ss:$8 sps:$4 sm:$0xff]   ;;  %v2892_v12 = vld [vmem:[%s4110_s1 + $0x1d0] ss:$8 sps:$4 sm:$0xff]  }
  0x45   :  { %2012 = vmatprep.subr.bf16.mxu0 %v2825_v13  ;;  %1787 = vmatprep.mubr.bf16.mxu1 %v2382_v33  ;;  %v2895_v13 = vld [vmem:[%s4110_s1 + $0x5d0] ss:$8 sps:$4 sm:$0xff]   ;;  %v46_v33 = vld [vmem:[%s4111_s0 + $0xe8] sm:$0xff] }
  0x46   :  { %1999 = vmatprep.mubr.bf16.mxu0 %v2390_v39  ;;  %v2927_v39 = vld [vmem:[%s4110_s1 + $0x624] ss:$8 sps:$4 sm:$0xff]  }
  0x47   :  { %1801 = vmatpush1.bf16.msra.mxu1 %v2820_v14  ;;  %v2900_v14 = vld [vmem:[%s4110_s1 + $0x1e4] ss:$8 sps:$4 sm:$0xff]  }
  0x48   :  { %2013 = vmatpush1.bf16.msra.mxu0 %v2823_v15  ;;  %1802 = vmatprep.subr.bf16.mxu1 %v2828_v16  ;;  %v2903_v15 = vld [vmem:[%s4110_s1 + $0x5e4] ss:$8 sps:$4 sm:$0xff]   ;;  %v2898_v16 = vld [vmem:[%s4110_s1 + $0x1e0] ss:$8 sps:$4 sm:$0xff]  }
  0x49   :  { %2014 = vmatprep.subr.bf16.mxu0 %v2831_v17  ;;  %v2901_v17 = vld [vmem:[%s4110_s1 + $0x5e0] ss:$8 sps:$4 sm:$0xff]  }
  0x4a   :  { %1788 = vmatmul.mubr.bf16.gmra.mrb[4].mxu1 %v2381_v37  ;;  %v2919_v37 = vld [vmem:[%s4110_s1 + $0x610] ss:$8 sps:$4 sm:$0xff]  }
  0x4b   :  { %1803 = vmatpush1.bf16.msra.mxu1 %v2826_v18  ;;  %2000 = vmatmul.mubr.bf16.gmra.mrb[4].mxu0 %v2389_v40  ;;  %v2906_v18 = vld [vmem:[%s4110_s1 + $0x1f4] ss:$8 sps:$4 sm:$0xff]   ;;  %v2922_v40 = vld [vmem:[%s4110_s1 + $0x220] ss:$8 sps:$4 sm:$0xff]  }
  0x4c   :  { %2015 = vmatpush1.bf16.msra.mxu0 %v2829_v19  ;;  %1804 = vmatprep.subr.bf16.mxu1 %v2834_v20  ;;  %v2909_v19 = vld [vmem:[%s4110_s1 + $0x5f4] ss:$8 sps:$4 sm:$0xff]   ;;  %v2904_v20 = vld [vmem:[%s4110_s1 + $0x1f0] ss:$8 sps:$4 sm:$0xff]  }
  0x4d   :  { %2016 = vmatprep.subr.bf16.mxu0 %v2837_v21  ;;  %1830 = vmatprep.mubr.bf16.mxu1 %v2368_v48  ;;  %v2907_v21 = vld [vmem:[%s4110_s1 + $0x5f0] ss:$8 sps:$4 sm:$0xff]   ;;  %v2930_v48 = vld [vmem:[%s4110_s1 + $0x234] ss:$8 sps:$4 sm:$0xff]  }
  0x4e   :  { %2042 = vmatprep.mubr.bf16.mxu0 %v2376_v53  ;;  %v2931_v53 = vld [vmem:[%s4110_s1 + $0x630] ss:$8 sps:$4 sm:$0xff]  }
  0x4f   :  { %1805 = vmatpush1.bf16.msra.mxu1 %v2832_v22  ;;  %v2912_v22 = vld [vmem:[%s4110_s1 + $0x204] ss:$8 sps:$4 sm:$0xff]  }
  0x50   :  { %2017 = vmatpush1.bf16.msra.mxu0 %v2835_v23  ;;  %1806 = vmatprep.subr.bf16.mxu1 %v2840_v24  ;;  %v2915_v23 = vld [vmem:[%s4110_s1 + $0x604] ss:$8 sps:$4 sm:$0xff]   ;;  %v2910_v24 = vld [vmem:[%s4110_s1 + $0x200] ss:$8 sps:$4 sm:$0xff]  }
  0x51   :  { %2018 = vmatprep.subr.bf16.mxu0 %v2843_v25  ;;  %v2913_v25 = vld [vmem:[%s4110_s1 + $0x600] ss:$8 sps:$4 sm:$0xff]  }
  0x53   :  { %1807 = vmatpush1.bf16.msra.mxu1 %v2838_v26  ;;  %v34_v26 = vld [vmem:[%s4111_s0 + $0x88] sm:$0xff] }
  0x54   :  { %2019 = vmatpush1.bf16.msra.mxu0 %v2841_v27  ;;  %1808 = vmatprep.subr.bf16.mxu1 %v2846_v28  ;;  %v2367_v27 = vcombine.low %v3435_v44, %v3440_v45  ;;  %v2375_v28 = vcombine.low %v3453_v49, %v3458_v50  ;;  %v3624_v45 = vld [vmem:[%s4111_s0 + $0x50] sm:$0xff] }
  0x55   :  { %2020 = vmatprep.subr.bf16.mxu0 %v2849_v29  ;;  %v42_v29 = vld [vmem:[%s4111_s0 + $0xc8] sm:$0xff]  ;;  %v2933_v49 = vld [vmem:[%s4110_s1 + $0x634] ss:$8 sps:$4 sm:$0xff]  }
  0x57   :  { %1809 = vmatpush1.bf16.msra.mxu1 %v2844_v32  ;;  %v38_v32 = vld [vmem:[%s4111_s0 + $0xa8] sm:$0xff] }
  0x58   :  { %2021 = vmatpush1.bf16.msra.mxu0 %v2847_v34  ;;  %1810 = vmatprep.subr.bf16.mxu1 %v2852_v38  ;;  %v2384_v34 = vcombine.high %v34_v26, %v42_v29  ;;  %v2392_v35 = vcombine.high %v38_v32, %v46_v33  ;;  %v2924_v38 = vld [vmem:[%s4110_s1 + $0x224] ss:$8 sps:$4 sm:$0xff]   ;;  %v2391_v44 = vcombine.low %v38_v32, %v46_v33  ;;  %v2994_v32 = vld [vmem:[%s4110_s1 + $0x2e0] ss:$8 sps:$4 sm:$0xff]  }
  0x59   :  { %2022 = vmatprep.subr.bf16.mxu0 %v2855_v41  ;;  %v2925_v41 = vld [vmem:[%s4110_s1 + $0x620] ss:$8 sps:$4 sm:$0xff]  }
  0x5a   :  { %v2997_v33 = vld [vmem:[%s4110_s1 + $0x6e0] ss:$8 sps:$4 sm:$0xff]  }
  0x5b   :  { %1811 = vmatpush1.bf16.msra.mxu1 %v2850_v42  ;;  %v3619_v42 = vld [vmem:[%s4111_s0 + $0x10] sm:$0xff] }
  0x5c   :  { %2023 = vmatpush1.bf16.msra.mxu0 %v2853_v43  ;;  %1812 = vmatprep.subr.bf16.mxu1 %v2858_v46  ;;  %v2383_v43 = vcombine.low %v34_v26, %v42_v29  ;;  %v3629_v46 = vld [vmem:[%s4111_s0 + $0x30] sm:$0xff]  ;;  %v2370_v50 = vcombine.high %v3619_v42, %v3624_v45 }
  0x5d   :  { %2024 = vmatprep.subr.bf16.mxu0 %v2861_v47  ;;  %v3634_v47 = vld [vmem:[%s4111_s0 + $0x70] sm:$0xff] }
  0x5e   :  { %v2990_v26 = vld [vmem:[%s4110_s1 + $0x2d4] ss:$8 sps:$4 sm:$0xff]   ;;  %v2991_v29 = vld [vmem:[%s4110_s1 + $0x6d0] ss:$8 sps:$4 sm:$0xff]  }
  0x5f   :  { %1813 = vmatpush1.bf16.msra.mxu1 %v2856_v51  ;;  %v2378_v51 = vcombine.high %v3629_v46, %v3634_v47 }
  0x60   :  { %2025 = vmatpush1.bf16.msra.mxu0 %v2859_v52  ;;  %1814 = vmatprep.subr.bf16.mxu1 %v2864_v54  ;;  %v2928_v52 = vld [vmem:[%s4110_s1 + $0x230] ss:$8 sps:$4 sm:$0xff]   ;;  %v2936_v54 = vld [vmem:[%s4110_s1 + $0x244] ss:$8 sps:$4 sm:$0xff]  }
  0x61   :  { %2026 = vmatprep.subr.bf16.mxu0 %v2867_v55  ;;  %v2939_v55 = vld [vmem:[%s4110_s1 + $0x644] ss:$8 sps:$4 sm:$0xff]  }
  0x63   :  { %1815 = vmatpush1.bf16.msra.mxu1 %v2862_v56  ;;  %v2934_v56 = vld [vmem:[%s4110_s1 + $0x240] ss:$8 sps:$4 sm:$0xff]  }
  0x64   :  { %2027 = vmatpush1.bf16.msra.mxu0 %v2865_v57  ;;  %1816 = vmatprep.subr.bf16.mxu1 %v2870_v58  ;;  %v2937_v57 = vld [vmem:[%s4110_s1 + $0x640] ss:$8 sps:$4 sm:$0xff]   ;;  %v2942_v58 = vld [vmem:[%s4110_s1 + $0x254] ss:$8 sps:$4 sm:$0xff]  }
  0x65   :  { %2028 = vmatprep.subr.bf16.mxu0 %v2873_v59  ;;  %v2945_v59 = vld [vmem:[%s4110_s1 + $0x654] ss:$8 sps:$4 sm:$0xff]  }
  0x67   :  { %1817 = vmatpush1.bf16.msra.mxu1 %v2868_v60  ;;  %v2940_v60 = vld [vmem:[%s4110_s1 + $0x250] ss:$8 sps:$4 sm:$0xff]  }
  0x68   :  { %2029 = vmatpush1.bf16.msra.mxu0 %v2871_v61  ;;  %1818 = vmatprep.subr.bf16.mxu1 %v2876_v62  ;;  %v2943_v61 = vld [vmem:[%s4110_s1 + $0x650] ss:$8 sps:$4 sm:$0xff]   ;;  %v2948_v62 = vld [vmem:[%s4110_s1 + $0x264] ss:$8 sps:$4 sm:$0xff]  }
  0x69   :  { %2030 = vmatprep.subr.bf16.mxu0 %v2879_v63  ;;  %v2951_v63 = vld [vmem:[%s4110_s1 + $0x664] ss:$8 sps:$4 sm:$0xff]  }
  0x6b   :  { %1819 = vmatpush1.bf16.msra.mxu1 %v2874_v0  ;;  %v2946_v0 = vld [vmem:[%s4110_s1 + $0x260] ss:$8 sps:$4 sm:$0xff]  }
  0x6c   :  { %2031 = vmatpush1.bf16.msra.mxu0 %v2877_v1  ;;  %1820 = vmatprep.subr.bf16.mxu1 %v2882_v2  ;;  %v2949_v1 = vld [vmem:[%s4110_s1 + $0x660] ss:$8 sps:$4 sm:$0xff]   ;;  %v2954_v2 = vld [vmem:[%s4110_s1 + $0x274] ss:$8 sps:$4 sm:$0xff]  }
  0x6d   :  { %2032 = vmatprep.subr.bf16.mxu0 %v2885_v3  ;;  %v2957_v3 = vld [vmem:[%s4110_s1 + $0x674] ss:$8 sps:$4 sm:$0xff]  }
  0x6f   :  { %1821 = vmatpush1.bf16.msra.mxu1 %v2880_v4  ;;  %v2952_v4 = vld [vmem:[%s4110_s1 + $0x270] ss:$8 sps:$4 sm:$0xff]  }
  0x70   :  { %2033 = vmatpush1.bf16.msra.mxu0 %v2883_v5  ;;  %1822 = vmatprep.subr.bf16.mxu1 %v2888_v6  ;;  %v2955_v5 = vld [vmem:[%s4110_s1 + $0x670] ss:$8 sps:$4 sm:$0xff]   ;;  %v2960_v6 = vld [vmem:[%s4110_s1 + $0x284] ss:$8 sps:$4 sm:$0xff]  }
  0x71   :  { %2034 = vmatprep.subr.bf16.mxu0 %v2891_v7  ;;  %v2963_v7 = vld [vmem:[%s4110_s1 + $0x684] ss:$8 sps:$4 sm:$0xff]  }
  0x73   :  { %1823 = vmatpush1.bf16.msra.mxu1 %v2886_v8  ;;  %v2958_v8 = vld [vmem:[%s4110_s1 + $0x280] ss:$8 sps:$4 sm:$0xff]  }
  0x74   :  { %2035 = vmatpush1.bf16.msra.mxu0 %v2889_v9  ;;  %1824 = vmatprep.subr.bf16.mxu1 %v2894_v10  ;;  %v2961_v9 = vld [vmem:[%s4110_s1 + $0x680] ss:$8 sps:$4 sm:$0xff]   ;;  %v2966_v10 = vld [vmem:[%s4110_s1 + $0x294] ss:$8 sps:$4 sm:$0xff]  }
  0x75   :  { %2036 = vmatprep.subr.bf16.mxu0 %v2897_v11  ;;  %v2969_v11 = vld [vmem:[%s4110_s1 + $0x694] ss:$8 sps:$4 sm:$0xff]  }
  0x77   :  { %1825 = vmatpush1.bf16.msra.mxu1 %v2892_v12  ;;  %v2964_v12 = vld [vmem:[%s4110_s1 + $0x290] ss:$8 sps:$4 sm:$0xff]  }
  0x78   :  { %2037 = vmatpush1.bf16.msra.mxu0 %v2895_v13  ;;  %1826 = vmatprep.subr.bf16.mxu1 %v2900_v14  ;;  %v2967_v13 = vld [vmem:[%s4110_s1 + $0x690] ss:$8 sps:$4 sm:$0xff]   ;;  %v2972_v14 = vld [vmem:[%s4110_s1 + $0x2a4] ss:$8 sps:$4 sm:$0xff]  }
  0x79   :  { %2038 = vmatprep.subr.bf16.mxu0 %v2903_v15  ;;  %v2975_v15 = vld [vmem:[%s4110_s1 + $0x6a4] ss:$8 sps:$4 sm:$0xff]  }
  0x7b   :  { %1827 = vmatpush1.bf16.msra.mxu1 %v2898_v16  ;;  %v2970_v16 = vld [vmem:[%s4110_s1 + $0x2a0] ss:$8 sps:$4 sm:$0xff]  }
  0x7c   :  { %2039 = vmatpush1.bf16.msra.mxu0 %v2901_v17  ;;  %1828 = vmatprep.subr.bf16.mxu1 %v2906_v18  ;;  %v2973_v17 = vld [vmem:[%s4110_s1 + $0x6a0] ss:$8 sps:$4 sm:$0xff]   ;;  %v2978_v18 = vld [vmem:[%s4110_s1 + $0x2b4] ss:$8 sps:$4 sm:$0xff]  }
  0x7d   :  { %2040 = vmatprep.subr.bf16.mxu0 %v2909_v19  ;;  %v2981_v19 = vld [vmem:[%s4110_s1 + $0x6b4] ss:$8 sps:$4 sm:$0xff]  }
  0x7f   :  { %1829 = vmatpush1.bf16.msra.mxu1 %v2904_v20  ;;  %v2976_v20 = vld [vmem:[%s4110_s1 + $0x2b0] ss:$8 sps:$4 sm:$0xff]  }
  0x80   :  { %2041 = vmatpush1.bf16.msra.mxu0 %v2907_v21  ;;  %1851 = vmatprep.subr.bf16.mxu1 %v2912_v22  ;;  %v2979_v21 = vld [vmem:[%s4110_s1 + $0x6b0] ss:$8 sps:$4 sm:$0xff]   ;;  %v2984_v22 = vld [vmem:[%s4110_s1 + $0x2c4] ss:$8 sps:$4 sm:$0xff]  }
  0x81   :  { %2063 = vmatprep.subr.bf16.mxu0 %v2915_v23  ;;  %v2987_v23 = vld [vmem:[%s4110_s1 + $0x6c4] ss:$8 sps:$4 sm:$0xff]  }
  0x82   :  { %1831 = vmatmul.mubr.bf16.vlgmr.msra.gmra.mrb[0].mxu1 %v2367_v27  ;;  %v2993_v27 = vld [vmem:[%s4110_s1 + $0x6d4] ss:$8 sps:$4 sm:$0xff]  }
  0x83   :  { %2043 = vmatmul.mubr.bf16.vlgmr.msra.gmra.mrb[0].mxu0 %v2375_v28  ;;  %1852 = vmatpush1.bf16.msra.mxu1 %v2910_v24  ;;  %v2982_v24 = vld [vmem:[%s4110_s1 + $0x2c0] ss:$8 sps:$4 sm:$0xff]   ;;  %v2988_v28 = vld [vmem:[%s4110_s1 + $0x2d0] ss:$8 sps:$4 sm:$0xff]  }
  0x84   :  { %2064 = vmatpush1.bf16.msra.mxu0 %v2913_v25  ;;  %1853 = vmatprep.subr.bf16.mxu1 %v2918_v30  ;;  %v2985_v25 = vld [vmem:[%s4110_s1 + $0x6c0] ss:$8 sps:$4 sm:$0xff]   ;;  %v2996_v30 = vld [vmem:[%s4110_s1 + $0x2e4] ss:$8 sps:$4 sm:$0xff]  }
  0x85   :  { %2065 = vmatprep.subr.bf16.mxu0 %v2921_v31  ;;  %1840 = vmatprep.mubr.bf16.mxu1 %v2384_v34  ;;  %v2999_v31 = vld [vmem:[%s4110_s1 + $0x6e4] ss:$8 sps:$4 sm:$0xff]   ;;  %v3002_v34 = vld [vmem:[%s4110_s1 + $0x2f4] ss:$8 sps:$4 sm:$0xff]  }
  0x86   :  { %2052 = vmatprep.mubr.bf16.mxu0 %v2392_v35  ;;  %v3005_v35 = vld [vmem:[%s4110_s1 + $0x6f4] ss:$8 sps:$4 sm:$0xff]  }
  0x87   :  { %1854 = vmatpush1.bf16.msra.mxu1 %v2916_v36  ;;  %v3000_v36 = vld [vmem:[%s4110_s1 + $0x2f0] ss:$8 sps:$4 sm:$0xff]  }
  0x88   :  { %2066 = vmatpush1.bf16.msra.mxu0 %v2919_v37  ;;  %1855 = vmatprep.subr.bf16.mxu1 %v2924_v38  ;;  %v3003_v37 = vld [vmem:[%s4110_s1 + $0x6f0] ss:$8 sps:$4 sm:$0xff]   ;;  %v3008_v38 = vld [vmem:[%s4110_s1 + $0x304] ss:$8 sps:$4 sm:$0xff]  }
  0x89   :  { %2067 = vmatprep.subr.bf16.mxu0 %v2927_v39  ;;  %v3011_v39 = vld [vmem:[%s4110_s1 + $0x704] ss:$8 sps:$4 sm:$0xff]  }
  0x8a   :  { %1841 = vmatmul.mubr.bf16.gmra.mrb[4].mxu1 %v2383_v43  ;;  %v2377_v43 = vcombine.low %v3629_v46, %v3634_v47  ;;  %v3014_v46 = vld [vmem:[%s4110_s1 + $0x314] ss:$8 sps:$4 sm:$0xff]  }
  0x8b   :  { %2053 = vmatmul.mubr.bf16.gmra.mrb[4].mxu0 %v2391_v44  ;;  %1856 = vmatpush1.bf16.msra.mxu1 %v2922_v40  ;;  %v35_v40 = vld [vmem:[%s4111_s0 + $0x90] sm:$0xff] }
  0x8c   :  { %2068 = vmatpush1.bf16.msra.mxu0 %v2925_v41  ;;  %1857 = vmatprep.subr.bf16.mxu1 %v2930_v48  ;;  %v2369_v41 = vcombine.low %v3619_v42, %v3624_v45  ;;  %v43_v44 = vld [vmem:[%s4111_s0 + $0xd0] sm:$0xff]  ;;  %v3006_v42 = vld [vmem:[%s4110_s1 + $0x300] ss:$8 sps:$4 sm:$0xff]  }
  0x8d   :  { %2069 = vmatprep.subr.bf16.mxu0 %v2933_v49  ;;  %1883 = vmatprep.mubr.bf16.mxu1 %v2370_v50  ;;  %v39_v48 = vld [vmem:[%s4111_s0 + $0xb0] sm:$0xff]  ;;  %v3009_v45 = vld [vmem:[%s4110_s1 + $0x700] ss:$8 sps:$4 sm:$0xff]   ;;  %v2386_v50 = vcombine.high %v35_v40, %v43_v44 }
  0x8e   :  { %2095 = vmatprep.mubr.bf16.mxu0 %v2378_v51  ;;  %v47_v49 = vld [vmem:[%s4111_s0 + $0xf0] sm:$0xff] }
  0x8f   :  { %1858 = vmatpush1.bf16.msra.mxu1 %v2928_v52  ;;  %v3017_v47 = vld [vmem:[%s4110_s1 + $0x714] ss:$8 sps:$4 sm:$0xff]   ;;  %v2394_v51 = vcombine.high %v39_v48, %v47_v49  ;;  %v3012_v52 = vld [vmem:[%s4110_s1 + $0x310] ss:$8 sps:$4 sm:$0xff]  }
  0x90   :  { %2070 = vmatpush1.bf16.msra.mxu0 %v2931_v53  ;;  %1859 = vmatprep.subr.bf16.mxu1 %v2936_v54  ;;  %v3015_v53 = vld [vmem:[%s4110_s1 + $0x710] ss:$8 sps:$4 sm:$0xff]   ;;  %v3020_v54 = vld [vmem:[%s4110_s1 + $0x324] ss:$8 sps:$4 sm:$0xff]  }
  0x91   :  { %2071 = vmatprep.subr.bf16.mxu0 %v2939_v55  ;;  %v3023_v55 = vld [vmem:[%s4110_s1 + $0x724] ss:$8 sps:$4 sm:$0xff]  }
  0x93   :  { %1860 = vmatpush1.bf16.msra.mxu1 %v2934_v56  ;;  %v3845_v56 = vld [vmem:[%s4111_s0 + $0x18] sm:$0xff] }
  0x94   :  { %2072 = vmatpush1.bf16.msra.mxu0 %v2937_v57  ;;  %1861 = vmatprep.subr.bf16.mxu1 %v2942_v58  ;;  %v2385_v57 = vcombine.low %v35_v40, %v43_v44  ;;  %v2393_v58 = vcombine.low %v39_v48, %v47_v49  ;;  %v3078_v40 = vld [vmem:[%s4110_s1 + $0x3c0] ss:$8 sps:$4 sm:$0xff]   ;;  %v3089_v44 = vld [vmem:[%s4110_s1 + $0x7d4] ss:$8 sps:$4 sm:$0xff]   ;;  %v3084_v48 = vld [vmem:[%s4110_s1 + $0x3d0] ss:$8 sps:$4 sm:$0xff]  }
  0x95   :  { %2073 = vmatprep.subr.bf16.mxu0 %v2945_v59  ;;  %v3850_v59 = vld [vmem:[%s4111_s0 + $0x58] sm:$0xff] }
  0x96   :  { %v3087_v49 = vld [vmem:[%s4110_s1 + $0x7d0] ss:$8 sps:$4 sm:$0xff]  }
  0x97   :  { %1862 = vmatpush1.bf16.msra.mxu1 %v2940_v60  ;;  %v3855_v60 = vld [vmem:[%s4111_s0 + $0x38] sm:$0xff] }
  0x98   :  { %2074 = vmatpush1.bf16.msra.mxu0 %v2943_v61  ;;  %1863 = vmatprep.subr.bf16.mxu1 %v2948_v62  ;;  %v3860_v61 = vld [vmem:[%s4111_s0 + $0x78] sm:$0xff]  ;;  %v3018_v62 = vld [vmem:[%s4110_s1 + $0x320] ss:$8 sps:$4 sm:$0xff]  }
  0x99   :  { %2075 = vmatprep.subr.bf16.mxu0 %v2951_v63  ;;  %v3021_v63 = vld [vmem:[%s4110_s1 + $0x720] ss:$8 sps:$4 sm:$0xff]  }
  0x9b   :  { %1864 = vmatpush1.bf16.msra.mxu1 %v2946_v0  ;;  %v3026_v0 = vld [vmem:[%s4110_s1 + $0x334] ss:$8 sps:$4 sm:$0xff]  }
  0x9c   :  { %2076 = vmatpush1.bf16.msra.mxu0 %v2949_v1  ;;  %1865 = vmatprep.subr.bf16.mxu1 %v2954_v2  ;;  %v3029_v1 = vld [vmem:[%s4110_s1 + $0x734] ss:$8 sps:$4 sm:$0xff]   ;;  %v2372_v2 = vcombine.high %v3845_v56, %v3850_v59 }
  0x9d   :  { %2077 = vmatprep.subr.bf16.mxu0 %v2957_v3  ;;  %v2380_v3 = vcombine.high %v3855_v60, %v3860_v61 }
  0x9f   :  { %1866 = vmatpush1.bf16.msra.mxu1 %v2952_v4  ;;  %v3024_v4 = vld [vmem:[%s4110_s1 + $0x330] ss:$8 sps:$4 sm:$0xff]  }
  0xa0   :  { %2078 = vmatpush1.bf16.msra.mxu0 %v2955_v5  ;;  %1867 = vmatprep.subr.bf16.mxu1 %v2960_v6  ;;  %v3027_v5 = vld [vmem:[%s4110_s1 + $0x730] ss:$8 sps:$4 sm:$0xff]   ;;  %v3032_v6 = vld [vmem:[%s4110_s1 + $0x344] ss:$8 sps:$4 sm:$0xff]  }
  0xa1   :  { %2079 = vmatprep.subr.bf16.mxu0 %v2963_v7  ;;  %v3035_v7 = vld [vmem:[%s4110_s1 + $0x744] ss:$8 sps:$4 sm:$0xff]  }
  0xa3   :  { %1868 = vmatpush1.bf16.msra.mxu1 %v2958_v8  ;;  %v3030_v8 = vld [vmem:[%s4110_s1 + $0x340] ss:$8 sps:$4 sm:$0xff]  }
  0xa4   :  { %2080 = vmatpush1.bf16.msra.mxu0 %v2961_v9  ;;  %1869 = vmatprep.subr.bf16.mxu1 %v2966_v10  ;;  %v3033_v9 = vld [vmem:[%s4110_s1 + $0x740] ss:$8 sps:$4 sm:$0xff]   ;;  %v3038_v10 = vld [vmem:[%s4110_s1 + $0x354] ss:$8 sps:$4 sm:$0xff]  }
  0xa5   :  { %2081 = vmatprep.subr.bf16.mxu0 %v2969_v11  ;;  %v3041_v11 = vld [vmem:[%s4110_s1 + $0x754] ss:$8 sps:$4 sm:$0xff]  }
  0xa7   :  { %1870 = vmatpush1.bf16.msra.mxu1 %v2964_v12  ;;  %v3036_v12 = vld [vmem:[%s4110_s1 + $0x350] ss:$8 sps:$4 sm:$0xff]  }
  0xa8   :  { %2082 = vmatpush1.bf16.msra.mxu0 %v2967_v13  ;;  %1871 = vmatprep.subr.bf16.mxu1 %v2972_v14  ;;  %v3039_v13 = vld [vmem:[%s4110_s1 + $0x750] ss:$8 sps:$4 sm:$0xff]   ;;  %v3044_v14 = vld [vmem:[%s4110_s1 + $0x364] ss:$8 sps:$4 sm:$0xff]  }
  0xa9   :  { %2083 = vmatprep.subr.bf16.mxu0 %v2975_v15  ;;  %v3047_v15 = vld [vmem:[%s4110_s1 + $0x764] ss:$8 sps:$4 sm:$0xff]  }
  0xab   :  { %1872 = vmatpush1.bf16.msra.mxu1 %v2970_v16  ;;  %v3042_v16 = vld [vmem:[%s4110_s1 + $0x360] ss:$8 sps:$4 sm:$0xff]  }
  0xac   :  { %2084 = vmatpush1.bf16.msra.mxu0 %v2973_v17  ;;  %1873 = vmatprep.subr.bf16.mxu1 %v2978_v18  ;;  %v3045_v17 = vld [vmem:[%s4110_s1 + $0x760] ss:$8 sps:$4 sm:$0xff]   ;;  %v3050_v18 = vld [vmem:[%s4110_s1 + $0x374] ss:$8 sps:$4 sm:$0xff]  }
  0xad   :  { %2085 = vmatprep.subr.bf16.mxu0 %v2981_v19  ;;  %v3053_v19 = vld [vmem:[%s4110_s1 + $0x774] ss:$8 sps:$4 sm:$0xff]  }
  0xaf   :  { %1874 = vmatpush1.bf16.msra.mxu1 %v2976_v20  ;;  %v3048_v20 = vld [vmem:[%s4110_s1 + $0x370] ss:$8 sps:$4 sm:$0xff]  }
  0xb0   :  { %2086 = vmatpush1.bf16.msra.mxu0 %v2979_v21  ;;  %1875 = vmatprep.subr.bf16.mxu1 %v2984_v22  ;;  %v3051_v21 = vld [vmem:[%s4110_s1 + $0x770] ss:$8 sps:$4 sm:$0xff]   ;;  %v3056_v22 = vld [vmem:[%s4110_s1 + $0x384] ss:$8 sps:$4 sm:$0xff]  }
  0xb1   :  { %2087 = vmatprep.subr.bf16.mxu0 %v2987_v23  ;;  %v3059_v23 = vld [vmem:[%s4110_s1 + $0x784] ss:$8 sps:$4 sm:$0xff]  }
  0xb3   :  { %1876 = vmatpush1.bf16.msra.mxu1 %v2982_v24  ;;  %v3054_v24 = vld [vmem:[%s4110_s1 + $0x380] ss:$8 sps:$4 sm:$0xff]  }
  0xb4   :  { %2088 = vmatpush1.bf16.msra.mxu0 %v2985_v25  ;;  %1877 = vmatprep.subr.bf16.mxu1 %v2990_v26  ;;  %v3057_v25 = vld [vmem:[%s4110_s1 + $0x780] ss:$8 sps:$4 sm:$0xff]   ;;  %v3062_v26 = vld [vmem:[%s4110_s1 + $0x394] ss:$8 sps:$4 sm:$0xff]  }
  0xb5   :  { %2089 = vmatprep.subr.bf16.mxu0 %v2993_v27  ;;  %v3065_v27 = vld [vmem:[%s4110_s1 + $0x794] ss:$8 sps:$4 sm:$0xff]  }
  0xb7   :  { %1878 = vmatpush1.bf16.msra.mxu1 %v2988_v28  ;;  %v3060_v28 = vld [vmem:[%s4110_s1 + $0x390] ss:$8 sps:$4 sm:$0xff]  }
  0xb8   :  { %2090 = vmatpush1.bf16.msra.mxu0 %v2991_v29  ;;  %1879 = vmatprep.subr.bf16.mxu1 %v2996_v30  ;;  %v3063_v29 = vld [vmem:[%s4110_s1 + $0x790] ss:$8 sps:$4 sm:$0xff]   ;;  %v3068_v30 = vld [vmem:[%s4110_s1 + $0x3a4] ss:$8 sps:$4 sm:$0xff]  }
  0xb9   :  { %2091 = vmatprep.subr.bf16.mxu0 %v2999_v31  ;;  %v3071_v31 = vld [vmem:[%s4110_s1 + $0x7a4] ss:$8 sps:$4 sm:$0xff]  }
  0xbb   :  { %1880 = vmatpush1.bf16.msra.mxu1 %v2994_v32  ;;  %v3066_v32 = vld [vmem:[%s4110_s1 + $0x3a0] ss:$8 sps:$4 sm:$0xff]  }
  0xbc   :  { %2092 = vmatpush1.bf16.msra.mxu0 %v2997_v33  ;;  %1881 = vmatprep.subr.bf16.mxu1 %v3002_v34  ;;  %v3069_v33 = vld [vmem:[%s4110_s1 + $0x7a0] ss:$8 sps:$4 sm:$0xff]   ;;  %v3074_v34 = vld [vmem:[%s4110_s1 + $0x3b4] ss:$8 sps:$4 sm:$0xff]  }
  0xbd   :  { %2093 = vmatprep.subr.bf16.mxu0 %v3005_v35  ;;  %v3077_v35 = vld [vmem:[%s4110_s1 + $0x7b4] ss:$8 sps:$4 sm:$0xff]  }
  0xbf   :  { %1882 = vmatpush1.bf16.msra.mxu1 %v3000_v36  ;;  %v3072_v36 = vld [vmem:[%s4110_s1 + $0x3b0] ss:$8 sps:$4 sm:$0xff]  }
  0xc0   :  { %2094 = vmatpush1.bf16.msra.mxu0 %v3003_v37  ;;  %1904 = vmatprep.subr.bf16.mxu1 %v3008_v38  ;;  %v3075_v37 = vld [vmem:[%s4110_s1 + $0x7b0] ss:$8 sps:$4 sm:$0xff]   ;;  %v3080_v38 = vld [vmem:[%s4110_s1 + $0x3c4] ss:$8 sps:$4 sm:$0xff]  }
  0xc1   :  { %2116 = vmatprep.subr.bf16.mxu0 %v3011_v39  ;;  %v3083_v39 = vld [vmem:[%s4110_s1 + $0x7c4] ss:$8 sps:$4 sm:$0xff]  }
  0xc2   :  { %1884 = vmatmul.mubr.bf16.vlgmr.msra.gmra.mrb[0].mxu1 %v2369_v41  ;;  %v3081_v41 = vld [vmem:[%s4110_s1 + $0x7c0] ss:$8 sps:$4 sm:$0xff]  }
  0xc3   :  { %2096 = vmatmul.mubr.bf16.vlgmr.msra.gmra.mrb[0].mxu0 %v2377_v43  ;;  %1905 = vmatpush1.bf16.msra.mxu1 %v3006_v42  ;;  %v3086_v43 = vld [vmem:[%s4110_s1 + $0x3d4] ss:$8 sps:$4 sm:$0xff]   ;;  %v3092_v42 = vld [vmem:[%s4110_s1 + $0x3e4] ss:$8 sps:$4 sm:$0xff]  }
  0xc4   :  { %2117 = vmatpush1.bf16.msra.mxu0 %v3009_v45  ;;  %1906 = vmatprep.subr.bf16.mxu1 %v3014_v46  ;;  %v3095_v45 = vld [vmem:[%s4110_s1 + $0x7e4] ss:$8 sps:$4 sm:$0xff]   ;;  %v3090_v46 = vld [vmem:[%s4110_s1 + $0x3e0] ss:$8 sps:$4 sm:$0xff]  }
  0xc5   :  { %2118 = vmatprep.subr.bf16.mxu0 %v3017_v47  ;;  %1893 = vmatprep.mubr.bf16.mxu1 %v2386_v50  ;;  %v3093_v47 = vld [vmem:[%s4110_s1 + $0x7e0] ss:$8 sps:$4 sm:$0xff]   ;;  %v3098_v50 = vld [vmem:[%s4110_s1 + $0x3f4] ss:$8 sps:$4 sm:$0xff]  }
  0xc6   :  { %2105 = vmatprep.mubr.bf16.mxu0 %v2394_v51  ;;  %v3101_v51 = vld [vmem:[%s4110_s1 + $0x7f4] ss:$8 sps:$4 sm:$0xff]  }
  0xc7   :  { %1907 = vmatpush1.bf16.msra.mxu1 %v3012_v52  ;;  %v3096_v52 = vld [vmem:[%s4110_s1 + $0x3f0] ss:$8 sps:$4 sm:$0xff]  }
  0xc8   :  { %2119 = vmatpush1.bf16.msra.mxu0 %v3015_v53  ;;  %1908 = vmatprep.subr.bf16.mxu1 %v3020_v54  ;;  %v3099_v53 = vld [vmem:[%s4110_s1 + $0x7f0] ss:$8 sps:$4 sm:$0xff]  }
  0xc9   :  { %2120 = vmatprep.subr.bf16.mxu0 %v3023_v55  ;;  %v36_v54 = vld [vmem:[%s4111_s0 + $0x98] sm:$0xff] }
  0xca   :  { %1894 = vmatmul.mubr.bf16.gmra.mrb[4].mxu1 %v2385_v57  ;;  %v44_v55 = vld [vmem:[%s4111_s0 + $0xd8] sm:$0xff] }
  0xcb   :  { %2106 = vmatmul.mubr.bf16.gmra.mrb[4].mxu0 %v2393_v58  ;;  %1909 = vmatpush1.bf16.msra.mxu1 %v3018_v62  ;;  %v40_v57 = vld [vmem:[%s4111_s0 + $0xb8] sm:$0xff]  ;;  %v2371_v62 = vcombine.low %v3845_v56, %v3850_v59 }
  0xcc   :  { %2121 = vmatpush1.bf16.msra.mxu0 %v3021_v63  ;;  %1910 = vmatprep.subr.bf16.mxu1 %v3026_v0  ;;  %v48_v58 = vld [vmem:[%s4111_s0 + $0xf8] sm:$0xff]  ;;  %v2379_v63 = vcombine.low %v3855_v60, %v3860_v61  ;;  %v2388_v0 = vcombine.high %v36_v54, %v44_v55 }
  0xcd   :  { %2122 = vmatprep.subr.bf16.mxu0 %v3029_v1  ;;  %1936 = vmatprep.mubr.bf16.mxu1 %v2372_v2  ;;  %v2396_v1 = vcombine.high %v40_v57, %v48_v58  ;;  %v2387_v2 = vcombine.low %v36_v54, %v44_v55 }
  0xce   :  { %2148 = vmatprep.mubr.bf16.mxu0 %v2380_v3  ;;  %v2395_v3 = vcombine.low %v40_v57, %v48_v58 }
  0xcf   :  { %1911 = vmatpush1.bf16.msra.mxu1 %v3024_v4 }
  0xd0   :  { %2123 = vmatpush1.bf16.msra.mxu0 %v3027_v5  ;;  %1912 = vmatprep.subr.bf16.mxu1 %v3032_v6 }
  0xd1   :  { %2124 = vmatprep.subr.bf16.mxu0 %v3035_v7 }
  0xd3   :  { %1913 = vmatpush1.bf16.msra.mxu1 %v3030_v8 }
  0xd4   :  { %2125 = vmatpush1.bf16.msra.mxu0 %v3033_v9  ;;  %1914 = vmatprep.subr.bf16.mxu1 %v3038_v10 }
  0xd5   :  { %2126 = vmatprep.subr.bf16.mxu0 %v3041_v11 }
  0xd7   :  { %1915 = vmatpush1.bf16.msra.mxu1 %v3036_v12 }
  0xd8   :  { %2127 = vmatpush1.bf16.msra.mxu0 %v3039_v13  ;;  %1916 = vmatprep.subr.bf16.mxu1 %v3044_v14 }
  0xd9   :  { %2128 = vmatprep.subr.bf16.mxu0 %v3047_v15 }
  0xdb   :  { %1917 = vmatpush1.bf16.msra.mxu1 %v3042_v16 }
  0xdc   :  { %2129 = vmatpush1.bf16.msra.mxu0 %v3045_v17  ;;  %1918 = vmatprep.subr.bf16.mxu1 %v3050_v18 }
  0xdd   :  { %2130 = vmatprep.subr.bf16.mxu0 %v3053_v19 }
  0xdf   :  { %1919 = vmatpush1.bf16.msra.mxu1 %v3048_v20 }
  0xe0   :  { %2131 = vmatpush1.bf16.msra.mxu0 %v3051_v21  ;;  %1920 = vmatprep.subr.bf16.mxu1 %v3056_v22 }
  0xe1   :  { %2132 = vmatprep.subr.bf16.mxu0 %v3059_v23 }
  0xe3   :  { %1921 = vmatpush1.bf16.msra.mxu1 %v3054_v24 }
  0xe4   :  { %2133 = vmatpush1.bf16.msra.mxu0 %v3057_v25  ;;  %1922 = vmatprep.subr.bf16.mxu1 %v3062_v26 }
  0xe5   :  { %2134 = vmatprep.subr.bf16.mxu0 %v3065_v27 }
  0xe7   :  { %1923 = vmatpush1.bf16.msra.mxu1 %v3060_v28 }
  0xe8   :  { %2135 = vmatpush1.bf16.msra.mxu0 %v3063_v29  ;;  %1924 = vmatprep.subr.bf16.mxu1 %v3068_v30 }
  0xe9   :  { %2136 = vmatprep.subr.bf16.mxu0 %v3071_v31 }
  0xeb   :  { %1925 = vmatpush1.bf16.msra.mxu1 %v3066_v32 }
  0xec   :  { %2137 = vmatpush1.bf16.msra.mxu0 %v3069_v33  ;;  %1926 = vmatprep.subr.bf16.mxu1 %v3074_v34 }
  0xed   :  { %2138 = vmatprep.subr.bf16.mxu0 %v3077_v35 }
  0xef   :  { %1927 = vmatpush1.bf16.msra.mxu1 %v3072_v36 }
  0xf0   :  { %2139 = vmatpush1.bf16.msra.mxu0 %v3075_v37  ;;  %1928 = vmatprep.subr.bf16.mxu1 %v3080_v38 }
  0xf1   :  { %2140 = vmatprep.subr.bf16.mxu0 %v3083_v39 }
  0xf3   :  { %1929 = vmatpush1.bf16.msra.mxu1 %v3078_v40 }
  0xf4   :  { %2141 = vmatpush1.bf16.msra.mxu0 %v3081_v41  ;;  %1930 = vmatprep.subr.bf16.mxu1 %v3086_v43 }
  0xf5   :  { %2142 = vmatprep.subr.bf16.mxu0 %v3089_v44 }
  0xf7   :  { %1931 = vmatpush1.bf16.msra.mxu1 %v3084_v48 }
  0xf8   :  { %2143 = vmatpush1.bf16.msra.mxu0 %v3087_v49  ;;  %1932 = vmatprep.subr.bf16.mxu1 %v3092_v42 }
  0xf9   :  { %2144 = vmatprep.subr.bf16.mxu0 %v3095_v45 }
  0xfb   :  { %1933 = vmatpush1.bf16.msra.mxu1 %v3090_v46 }
  0xfc   :  { %2145 = vmatpush1.bf16.msra.mxu0 %v3093_v47  ;;  %1934 = vmatprep.subr.bf16.mxu1 %v3098_v50 }
  0xfd   :  { %2146 = vmatprep.subr.bf16.mxu0 %v3101_v51 }
  0xff   :  { %1935 = vmatpush1.bf16.msra.mxu1 %v3096_v52 }
 0x100   :  { %2147 = vmatpush1.bf16.msra.mxu0 %v3099_v53 }
 0x102   :  { %1937 = vmatmul.mubr.bf16.vlgmr.msra.gmra.mrb[0].mxu1 %v2371_v62 }
 0x103   :  { %2149 = vmatmul.mubr.bf16.vlgmr.msra.gmra.mrb[0].mxu0 %v2379_v63  ;;  %1946 = vmatprep.mubr.bf16.mxu1 %v2388_v0 }
 0x104   :  { %2158 = vmatprep.mubr.bf16.mxu0 %v2396_v1 }
 0x10a   :  { %1947 = vmatmul.mubr.bf16.gmra.mrb[4].mxu1 %v2387_v2 }
 0x10b   :  { %2159 = vmatmul.mubr.bf16.gmra.mrb[4].mxu0 %v2395_v3 }
 0x1d5   :  { %v1938_v4 = vpop.f32.mrb[0].mxu1 }
 0x1d6   :  { %v2150_v5 = vpop.f32.mrb[0].mxu0  ;;  %v1940_v56 = vpop.f32.mrb[1].mxu1 }
 0x1d7   :  { %v4044_v6 = vadd.f32 %v2150_v5, %v1938_v4  ;;  %v2152_v59 = vpop.f32.mrb[1].mxu0  ;;  %v1942_v60 = vpop.f32.mrb[2].mxu1 }
 0x1d8   :  { %v4046_v7 = vadd.f32 %v2152_v59, %v1940_v56  ;;  %v2154_v61 = vpop.f32.mrb[2].mxu0  ;;  %v1944_v9 = vpop.f32.mrb[3].mxu1 }
 0x1d9   :  { %v4048_v8 = vadd.f32 %v2154_v61, %v1942_v60  ;;  %v2156_v10 = vpop.f32.mrb[3].mxu0 }
 0x1da   :  { %v4050_v11 = vadd.f32 %v2156_v10, %v1944_v9 }
 0x1db   :  { %v2169_v14 = vadd.f32 %v4048_v8, %v4044_v6 }
 0x1dc   :  { %v2178_v18 = vadd.f32 %v4050_v11, %v4046_v7 }
 0x1dd   :  { %v1948_v12 = vpop.f32.mrb[4].mxu1 }
 0x1de   :  { %v2160_v13 = vpop.f32.mrb[4].mxu0  ;;  %v1950_v16 = vpop.f32.mrb[5].mxu1 }
 0x1df   :  { %v4054_v15 = vadd.f32 %v2160_v13, %v1948_v12  ;;  %v2162_v17 = vpop.f32.mrb[5].mxu0  ;;  %v1952_v20 = vpop.f32.mrb[6].mxu1 }
 0x1e0   :  { %v4058_v19 = vadd.f32 %v2162_v17, %v1950_v16  ;;  %v2164_v21 = vpop.f32.mrb[6].mxu0  ;;  %v1954_v24 = vpop.f32.mrb[7].mxu1 }
 0x1e1   :  { %v2170_v22 = vadd.f32 %v4054_v15, %v2169_v14  ;;  %v4061_v23 = vadd.f32 %v2164_v21, %v1952_v20  ;;  %v2166_v25 = vpop.f32.mrb[7].mxu0 }
 0x1e2   :  { %v2179_v26 = vadd.f32 %v4058_v19, %v2178_v18  ;;  %v4064_v27 = vadd.f32 %v2166_v25, %v1954_v24  ;;  %v3106_v25 = vmov 1966171168  }
 0x1e3   :  { %v2171_v28 = vadd.f32 %v4061_v23, %v2170_v22 }
 0x1e4   :  { %v2180_v29 = vadd.f32 %v4064_v27, %v2179_v26  ;;  %v2234_v26 = vunpack.c.l.s4 %v3106_v25 }
 0x1e5   :  { %v2172_v30 = vrot.slane %v2171_v28, 4 }
 0x1e6   :  { %v2181_v31 = vrot.slane %v2180_v29, 4 }
 0x1e7   :  { %v2173_v32 = vadd.f32 %v2172_v30, %v2171_v28  ;;  %v2236_v28 = vlaneseq }
 0x1e8   :  { %v2182_v33 = vadd.f32 %v2181_v31, %v2180_v29  ;;  %v2235_v29 = vunpack.c.0.s8 %v2234_v26 }
 0x1e9   :  { %v2174_v34 = vrot.slane %v2173_v32, 2  ;;  %v2237_v30 = vshrl.u32 %v2236_v28, 7 }
 0x1ea   :  { %v2183_v35 = vrot.slane %v2182_v33, 2 }
 0x1eb   :  { %v2175_v36 = vadd.f32 %v2174_v34, %v2173_v32  ;;  %v2238_v32 = vsub.s32 %v2235_v29, %v2237_v30 }
 0x1ec   :  { %v2184_v37 = vadd.f32 %v2183_v35, %v2182_v33 }
 0x1ed   :  { %v2176_v38 = vrot.slane %v2175_v36, 1 }
 0x1ee   :  { %v2185_v39 = vrot.slane %v2184_v37, 1 }
 0x1ef   :  { %v2177_v40 = vadd.f32 %v2176_v38, %v2175_v36  ;;  %v2225_v36 = vld [vmem:[%s4112_s2] sm:$0x3]  ;;  %v2253_v38 = vsub.s32 0, %v2237_v30 }
 0x1f0   :  { %v2186_v41 = vadd.f32 %v2185_v39, %v2184_v37  ;;  %v2257_v39 = vsub.s32 1, %v2237_v30 }
 0x1f1   :  { %v2187_v43 = vmul.f32 0.03125, %v2177_v40 }
 0x1f2   :  { %v2188_v44 = vmul.f32 0.03125, %v2186_v41 }
 0x1f3   :  { %v2189_v48 = vsub.f32 %v4044_v6, %v2187_v43  ;;  %v2191_v49 = vsub.f32 %v4048_v8, %v2187_v43  ;;  %v2193_v42 = vsub.f32 %v4054_v15, %v2187_v43  ;;  %v2195_v50 = vsub.f32 %v4061_v23, %v2187_v43 }
 0x1f4   :  { %v2190_v45 = vsub.f32 %v4046_v7, %v2188_v44  ;;  %v2192_v46 = vsub.f32 %v4050_v11, %v2188_v44  ;;  %v2194_v47 = vsub.f32 %v4058_v19, %v2188_v44  ;;  %v2196_v53 = vsub.f32 %v4064_v27, %v2188_v44 }
 0x1f5   :  { %v2197_v51 = vmul.f32 %v2189_v48, %v2189_v48  ;;  %v2199_v52 = vmul.f32 %v2191_v49, %v2191_v49  ;;  %v2201_v57 = vmul.f32 %v2193_v42, %v2193_v42  ;;  %v2203_v0 = vmul.f32 %v2195_v50, %v2195_v50 }
 0x1f6   :  { %v2198_v54 = vmul.f32 %v2190_v45, %v2190_v45  ;;  %v2200_v55 = vmul.f32 %v2192_v46, %v2192_v46  ;;  %v2202_v62 = vmul.f32 %v2194_v47, %v2194_v47  ;;  %v2204_v2 = vmul.f32 %v2196_v53, %v2196_v53  ;;  %v2249_v47 = vld [vmem:[%s4113_s3] sm:$0x3] }
 0x1f7   :  { %v2205_v58 = vadd.f32 %v2199_v52, %v2197_v51 }
 0x1f8   :  { %v2214_v63 = vadd.f32 %v2200_v55, %v2198_v54 }
 0x1f9   :  { %v2206_v1 = vadd.f32 %v2205_v58, %v2201_v57 }
 0x1fa   :  { %v2215_v3 = vadd.f32 %v2214_v63, %v2202_v62 }
 0x1fb   :  { %v2207_v4 = vadd.f32 %v2206_v1, %v2203_v0 }
 0x1fc   :  { %v2216_v5 = vadd.f32 %v2215_v3, %v2204_v2 }
 0x1fd   :  { %v2208_v56 = vrot.slane %v2207_v4, 4 }
 0x1fe   :  { %v2217_v59 = vrot.slane %v2216_v5, 4 }
 0x1ff   :  { %v2209_v60 = vadd.f32 %v2208_v56, %v2207_v4 }
 0x200   :  { %v2218_v61 = vadd.f32 %v2217_v59, %v2216_v5 }
 0x201   :  { %v2210_v9 = vrot.slane %v2209_v60, 2 }
 0x202   :  { %v2219_v10 = vrot.slane %v2218_v61, 2 }
 0x203   :  { %v2211_v12 = vadd.f32 %v2210_v9, %v2209_v60 }
 0x204   :  { %v2220_v13 = vadd.f32 %v2219_v10, %v2218_v61 }
 0x205   :  { %v2212_v14 = vrot.slane %v2211_v12, 1 }
 0x206   :  { %v2221_v16 = vrot.slane %v2220_v13, 1 }
 0x207   :  { %v2213_v17 = vadd.f32 %v2212_v14, %v2211_v12 }
 0x208   :  { %v2222_v18 = vadd.f32 %v2221_v16, %v2220_v13 }
 0x209   :  { %v2223_v20 = vmul.f32 0.03125, %v2213_v17 }
 0x20a   :  { %v2224_v21 = vmul.f32 0.03125, %v2222_v18 }
 0x20b   :  { %v2226_v22 = vadd.f32 1e-05, %v2223_v20 }
 0x20c   :  { %v2227_v24 = vadd.f32 1e-05, %v2224_v21 }
 0x20d   :  { %3102 = vrsqrt.f32 %v2226_v22 }
 0x20e   :  { %3104 = vrsqrt.f32 %v2227_v24 }
 0x217   :  { %v3103_v31 = vpop.eup %3102 }
 0x218   :  { %v3105_v33 = vpop.eup %3104 }
 0x219   :  { %v2232_v34 = vcombine.low %v3103_v31, %v3105_v33 }
 0x21b   :  { %v2239_v35 = vrot.slane %v2232_v34, %v2238_v32 }
 0x21d   :  { %v2246_v37 = vrot.slane %v2239_v35, %v2238_v32 }
 0x21f   :  { %v2248_v40 = vmul.f32 %v2246_v37, %v2225_v36 }
 0x221   :  { %v2254_v41 = vrot.slane %v2248_v40, %v2253_v38  ;;  %v2258_v48 = vrot.slane %v2248_v40, %v2257_v39 }
 0x223   :  { %v2261_v49 = vmul.f32 %v2254_v41, %v2187_v43  ;;  %v2262_v42 = vmul.f32 %v2258_v48, %v2188_v44  ;;  %v2282_v52 = vmul.f32 %v4044_v6, %v2254_v41  ;;  %v2283_v53 = vmul.f32 %v4046_v7, %v2258_v48 }
 0x224   :  { %v2284_v54 = vmul.f32 %v4048_v8, %v2254_v41  ;;  %v2285_v55 = vmul.f32 %v4050_v11, %v2258_v48  ;;  %v2286_v43 = vmul.f32 %v4054_v15, %v2254_v41  ;;  %v2287_v44 = vmul.f32 %v4058_v19, %v2258_v48 }
 0x225   :  { %v2265_v45 = vcombine.low %v2261_v49, %v2262_v42  ;;  %v2288_v62 = vmul.f32 %v4061_v23, %v2254_v41  ;;  %v2289_v63 = vmul.f32 %v4064_v27, %v2258_v48 }
 0x227   :  { %v2272_v46 = vrot.slane %v2265_v45, %v2238_v32 }
 0x229   :  { %v2279_v50 = vrot.slane %v2272_v46, %v2238_v32 }
 0x22b   :  { %v2281_v51 = vsub.f32 %v2249_v47, %v2279_v50 }
 0x22d   :  { %v2294_v57 = vrot.slane %v2281_v51, %v2253_v38  ;;  %v2298_v58 = vrot.slane %v2281_v51, %v2257_v39 }
 0x22f   :  { %v2301_v0 = vadd.f32 %v2294_v57, %v2282_v52  ;;  %v2302_v1 = vadd.f32 %v2298_v58, %v2283_v53  ;;  %v2303_v2 = vadd.f32 %v2294_v57, %v2284_v54  ;;  %v2304_v6 = vadd.f32 %v2298_v58, %v2285_v55 }
 0x230   :  { %v2305_v3 = vadd.f32 %v2294_v57, %v2286_v43  ;;  %v2306_v7 = vadd.f32 %v2298_v58, %v2287_v44  ;;  %v2307_v4 = vadd.f32 %v2294_v57, %v2288_v62  ;;  %v2308_v8 = vadd.f32 %v2298_v58, %v2289_v63 }
 0x231   :  { %vm2309_vm0 = vcmp.gt.f32.partialorder %v2301_v0, 0.0  ;;  %vm2310_vm1 = vcmp.gt.f32.partialorder %v2302_v1, 0.0  ;;  %vm2311_vm2 = vcmp.gt.f32.partialorder %v2303_v2, 0.0  ;;  %vm2312_vm3 = vcmp.gt.f32.partialorder %v2304_v6, 0.0 }
 0x232   :  { %vm2313_vm4 = vcmp.gt.f32.partialorder %v2305_v3, 0.0  ;;  %vm2314_vm5 = vcmp.gt.f32.partialorder %v2306_v7, 0.0  ;;  %vm2315_vm6 = vcmp.gt.f32.partialorder %v2307_v4, 0.0  ;;  %vm2316_vm7 = vcmp.gt.f32.partialorder %v2308_v8, 0.0 }
 0x233   :  { %v2317_v11 = vmul.f32 0.2, %v2301_v0  ;;  %v2318_v15 = vmul.f32 0.2, %v2302_v1  ;;  %v2319_v19 = vmul.f32 0.2, %v2303_v2 }
 0x234   :  { %v2320_v23 = vmul.f32 0.2, %v2304_v6  ;;  %v2321_v27 = vmul.f32 0.2, %v2305_v3  ;;  %v2322_v5 = vmul.f32 0.2, %v2306_v7 }
 0x235   :  { %v2323_v56 = vmul.f32 0.2, %v2307_v4  ;;  %v2324_v59 = vmul.f32 0.2, %v2308_v8  ;;  %v2325_v60 = vsel %vm2309_vm0, %v2301_v0, %v2317_v11  ;;  %v2326_v61 = vsel %vm2310_vm1, %v2302_v1, %v2318_v15 }
 0x236   :  { %v2327_v9 = vsel %vm2311_vm2, %v2303_v2, %v2319_v19  ;;  %v2328_v10 = vsel %vm2312_vm3, %v2304_v6, %v2320_v23  ;;  %v2329_v12 = vsel %vm2313_vm4, %v2305_v3, %v2321_v27  ;;  %v2330_v13 = vsel %vm2314_vm5, %v2306_v7, %v2322_v5 }
 0x237   :  { %v2331_v14 = vsel %vm2315_vm6, %v2307_v4, %v2323_v56  ;;  %v2332_v16 = vsel %vm2316_vm7, %v2308_v8, %v2324_v59  ;;  %v2657_v17 = vpack.c.bf16 %v2326_v61, %v2325_v60  ;;  %v2658_v18 = vpack.c.bf16 %v2328_v10, %v2327_v9 }
 0x238   :  { %v2659_v20 = vpack.c.bf16 %v2330_v13, %v2329_v12  ;;  %v2660_v21 = vpack.c.bf16 %v2332_v16, %v2331_v14 }
 0x239   :  { %2357 = vst [vmem:[%s4114_s4] sm:$0xff] %v2657_v17  ;;  %2358 = vst [vmem:[%s4114_s4 + $0x8] sm:$0xff] %v2658_v18 }
 0x23a   :  { %2359 = vst [vmem:[%s4114_s4 + $0x10] sm:$0xff] %v2659_v20  ;;  %2360 = vst [vmem:[%s4114_s4 + $0x18] sm:$0xff] %v2660_v21 }

// kernel: discriminator_forward.9
= control target key start
LH: loop header
LB: loop body
LE: loop exit
PB: predicated region body
PF: predicated region fallthrough
CT: control target
= control target key end

     0   :  { %v37_v0 = vlaneseq  ;;  %vm839_vm0 = vcmask 7168   ;;  %s1231_s0 = inlined_call_operand.vmem [shape: bf16[16,8192], index: 0, kind: input, shape index: {}]   ;;  %s1232_s1 = inlined_call_operand.vmem [shape: f32[1,8192], index: 1, kind: input, shape index: {}]   ;;  %s1233_s2 = inlined_call_operand.vmem [shape: f32[16,1], index: 2, kind: output, shape index: {}]  }
   0x1   :  { %v113_v1 = vld [vmem:[%s1231_s0 + $0x20] sm:$0xff]  ;;  %v114_v2 = vld [vmem:[%s1231_s0 + $0x28] sm:$0xff]  ;;  %v115_v3 = vld [vmem:[%s1231_s0 + $0x30] sm:$0xff] }
   0x2   :  { %v38_v4 = vshrl.u32 %v37_v0, 7  ;;  %v116_v5 = vld [vmem:[%s1231_s0 + $0x38] sm:$0xff]  ;;  %v121_v6 = vunpack.c.l.bf16 %v113_v1  ;;  %v122_v7 = vunpack.c.h.bf16 %v113_v1  ;;  %v123_v8 = vunpack.c.l.bf16 %v114_v2  ;;  %v137_v13 = vld [vmem:[%s1232_s1 + $0x8] sm:$0xff]  ;;  %v11_v30 = vld [vmem:[%s1231_s0] sm:$0xff] }
   0x3   :  { %v124_v9 = vunpack.c.h.bf16 %v114_v2  ;;  %v125_v10 = vunpack.c.l.bf16 %v115_v3  ;;  %v126_v11 = vunpack.c.h.bf16 %v115_v3  ;;  %v127_v12 = vunpack.c.l.bf16 %v116_v5  ;;  %v12_v35 = vld [vmem:[%s1231_s0 + $0x8] sm:$0xff]  ;;  %v13_v36 = vld [vmem:[%s1231_s0 + $0x10] sm:$0xff]  ;;  %v14_v41 = vld [vmem:[%s1231_s0 + $0x18] sm:$0xff] }
   0x4   :  { %v884_v14 = vsub.s32 0, %v38_v4  ;;  %v886_v15 = vsub.s32 1, %v38_v4  ;;  %v888_v16 = vsub.s32 2, %v38_v4  ;;  %v890_v17 = vsub.s32 3, %v38_v4  ;;  %v35_v42 = vld [vmem:[%s1232_s1] sm:$0xff] }
   0x5   :  { %v892_v18 = vsub.s32 4, %v38_v4  ;;  %v894_v19 = vsub.s32 5, %v38_v4  ;;  %v896_v20 = vsub.s32 6, %v38_v4  ;;  %v898_v21 = vsub.s32 7, %v38_v4  ;;  %v117_v63 = vld [vmem:[%s1231_s0 + $0x120] sm:$0xff]  ;;  %v118_v4 = vld [vmem:[%s1231_s0 + $0x128] sm:$0xff] }
   0x6   :  { %v128_v22 = vunpack.c.h.bf16 %v116_v5  ;;  %v901_v23 = vrot.slane %v137_v13, %v884_v14  ;;  %v904_v24 = vrot.slane %v137_v13, %v886_v15  ;;  %v907_v25 = vrot.slane %v137_v13, %v888_v16  ;;  %v119_v5 = vld [vmem:[%s1231_s0 + $0x130] sm:$0xff] }
   0x7   :  { %v910_v26 = vrot.slane %v137_v13, %v890_v17  ;;  %v913_v27 = vrot.slane %v137_v13, %v892_v18  ;;  %v916_v28 = vrot.slane %v137_v13, %v894_v19  ;;  %v919_v29 = vrot.slane %v137_v13, %v896_v20 }
   0x8   :  { %v925_v31 = vrot.slane %v137_v13, %v898_v21  ;;  %v179_v32 = vmul.f32 %v901_v23, %v121_v6  ;;  %v180_v33 = vmul.f32 %v904_v24, %v122_v7  ;;  %v181_v34 = vmul.f32 %v907_v25, %v123_v8 }
   0x9   :  { %v182_v37 = vmul.f32 %v910_v26, %v124_v9  ;;  %v183_v38 = vmul.f32 %v913_v27, %v125_v10  ;;  %v184_v39 = vmul.f32 %v916_v28, %v126_v11  ;;  %v185_v40 = vmul.f32 %v919_v29, %v127_v12  ;;  %v120_v10 = vld [vmem:[%s1231_s0 + $0x138] sm:$0xff] }
   0xa   :  { %v186_v43 = vmul.f32 %v925_v31, %v128_v22  ;;  %v195_v44 = vadd.f32 %v180_v33, %v179_v32  ;;  %v19_v45 = vunpack.c.l.bf16 %v11_v30  ;;  %v20_v46 = vunpack.c.h.bf16 %v11_v30 }
   0xb   :  { %v21_v47 = vunpack.c.l.bf16 %v12_v35  ;;  %v22_v48 = vunpack.c.h.bf16 %v12_v35  ;;  %v23_v49 = vunpack.c.l.bf16 %v13_v36  ;;  %v24_v50 = vunpack.c.h.bf16 %v13_v36 }
   0xc   :  { %v196_v51 = vadd.f32 %v195_v44, %v181_v34  ;;  %v25_v52 = vunpack.c.l.bf16 %v14_v41  ;;  %v26_v53 = vunpack.c.h.bf16 %v14_v41  ;;  %v40_v54 = vrot.slane %v35_v42, %v884_v14 }
   0xd   :  { %v949_v55 = vrot.slane %v35_v42, %v886_v15  ;;  %v952_v56 = vrot.slane %v35_v42, %v888_v16  ;;  %v955_v57 = vrot.slane %v35_v42, %v890_v17  ;;  %v958_v58 = vrot.slane %v35_v42, %v892_v18 }
   0xe   :  { %v197_v59 = vadd.f32 %v196_v51, %v182_v37  ;;  %v961_v60 = vrot.slane %v35_v42, %v894_v19  ;;  %v964_v61 = vrot.slane %v35_v42, %v896_v20  ;;  %v967_v62 = vrot.slane %v35_v42, %v898_v21 }
   0xf   :  { %v77_v0 = vmul.f32 %v40_v54, %v19_v45  ;;  %v78_v1 = vmul.f32 %v949_v55, %v20_v46  ;;  %v79_v2 = vmul.f32 %v952_v56, %v21_v47  ;;  %v80_v3 = vmul.f32 %v955_v57, %v22_v48  ;;  %v15_v46 = vld [vmem:[%s1231_s0 + $0x100] sm:$0xff] }
  0x10   :  { %v198_v6 = vadd.f32 %v197_v59, %v183_v38  ;;  %v81_v7 = vmul.f32 %v958_v58, %v23_v49  ;;  %v82_v8 = vmul.f32 %v961_v60, %v24_v50  ;;  %v83_v9 = vmul.f32 %v964_v61, %v25_v52  ;;  %v18_v52 = vld [vmem:[%s1231_s0 + $0x118] sm:$0xff] }
  0x11   :  { %v84_v11 = vmul.f32 %v967_v62, %v26_v53  ;;  %v93_v12 = vadd.f32 %v78_v1, %v77_v0  ;;  %v129_v13 = vunpack.c.l.bf16 %v117_v63  ;;  %v130_v22 = vunpack.c.h.bf16 %v117_v63 }
  0x12   :  { %v199_v30 = vadd.f32 %v198_v6, %v184_v39  ;;  %v131_v32 = vunpack.c.l.bf16 %v118_v4  ;;  %v132_v33 = vunpack.c.h.bf16 %v118_v4  ;;  %v133_v34 = vunpack.c.l.bf16 %v119_v5  ;;  %v16_v39 = vld [vmem:[%s1231_s0 + $0x108] sm:$0xff] }
  0x13   :  { %v94_v35 = vadd.f32 %v93_v12, %v79_v2  ;;  %v134_v36 = vunpack.c.h.bf16 %v119_v5  ;;  %v135_v37 = vunpack.c.l.bf16 %v120_v10  ;;  %v136_v38 = vunpack.c.h.bf16 %v120_v10  ;;  %v220_v10 = vld [vmem:[%s1231_s0 + $0x148] sm:$0xff] }
  0x14   :  { %v200_v41 = vadd.f32 %v199_v30, %v185_v40  ;;  %v187_v42 = vmul.f32 %v901_v23, %v129_v13  ;;  %v188_v44 = vmul.f32 %v904_v24, %v130_v22  ;;  %v189_v45 = vmul.f32 %v907_v25, %v131_v32  ;;  %v17_v23 = vld [vmem:[%s1231_s0 + $0x110] sm:$0xff] }
  0x15   :  { %v95_v47 = vadd.f32 %v94_v35, %v80_v3  ;;  %v190_v48 = vmul.f32 %v910_v26, %v132_v33  ;;  %v191_v49 = vmul.f32 %v913_v27, %v133_v34  ;;  %v192_v40 = vmul.f32 %v916_v28, %v134_v36  ;;  %v221_v22 = vld [vmem:[%s1231_s0 + $0x150] sm:$0xff] }
  0x16   :  { %v201_v24 = vadd.f32 %v200_v41, %v186_v43  ;;  %v193_v25 = vmul.f32 %v919_v29, %v135_v37  ;;  %v194_v50 = vmul.f32 %v925_v31, %v136_v38  ;;  %v204_v51 = vadd.f32 %v188_v44, %v187_v42  ;;  %v219_v31 = vld [vmem:[%s1231_s0 + $0x140] sm:$0xff] }
  0x17   :  { %v96_v53 = vadd.f32 %v95_v47, %v81_v7  ;;  %v27_v26 = vunpack.c.l.bf16 %v15_v46  ;;  %v28_v59 = vunpack.c.h.bf16 %v15_v46  ;;  %v29_v27 = vunpack.c.l.bf16 %v16_v39 }
  0x18   :  { %202 = vadd.xlane.f32.xlu1 %v201_v24  ;;  %v205_v28 = vadd.f32 %v204_v51, %v189_v45  ;;  %v30_v63 = vunpack.c.h.bf16 %v16_v39  ;;  %v31_v0 = vunpack.c.l.bf16 %v17_v23  ;;  %v32_v1 = vunpack.c.h.bf16 %v17_v23 }
  0x19   :  { %v97_v2 = vadd.f32 %v96_v53, %v82_v8  ;;  %v33_v43 = vunpack.c.l.bf16 %v18_v52  ;;  %v34_v3 = vunpack.c.h.bf16 %v18_v52  ;;  %v85_v29 = vmul.f32 %v40_v54, %v27_v26  ;;  %v216_v52 = vld [vmem:[%s1231_s0 + $0x48] sm:$0xff] }
  0x1a   :  { %v206_v4 = vadd.f32 %v205_v28, %v190_v48  ;;  %v86_v5 = vmul.f32 %v949_v55, %v28_v59  ;;  %v87_v6 = vmul.f32 %v952_v56, %v29_v27  ;;  %v88_v7 = vmul.f32 %v955_v57, %v30_v63  ;;  %v222_v57 = vld [vmem:[%s1231_s0 + $0x158] sm:$0xff]  ;;  %v217_v28 = vld [vmem:[%s1231_s0 + $0x50] sm:$0xff] }
  0x1b   :  { %v98_v12 = vadd.f32 %v97_v2, %v83_v9  ;;  %v89_v8 = vmul.f32 %v958_v58, %v31_v0  ;;  %v90_v54 = vmul.f32 %v961_v60, %v32_v1  ;;  %v91_v13 = vmul.f32 %v964_v61, %v33_v43  ;;  %v239_v58 = vld [vmem:[%s1232_s1 + $0x10] sm:$0xff]  ;;  %v218_v2 = vld [vmem:[%s1231_s0 + $0x58] sm:$0xff] }
  0x1c   :  { %v207_v55 = vadd.f32 %v206_v4, %v191_v49  ;;  %v92_v56 = vmul.f32 %v967_v62, %v34_v3  ;;  %v102_v30 = vadd.f32 %v86_v5, %v85_v29  ;;  %v231_v32 = vunpack.c.l.bf16 %v219_v31 }
  0x1d   :  { %v99_v60 = vadd.f32 %v98_v12, %v84_v11  ;;  %v232_v9 = vunpack.c.h.bf16 %v219_v31  ;;  %v233_v61 = vunpack.c.l.bf16 %v220_v10  ;;  %v234_v33 = vunpack.c.h.bf16 %v220_v10 }
  0x1e   :  { %v208_v34 = vadd.f32 %v207_v55, %v192_v40  ;;  %v103_v35 = vadd.f32 %v102_v30, %v87_v6  ;;  %v235_v36 = vunpack.c.l.bf16 %v221_v22  ;;  %v236_v37 = vunpack.c.h.bf16 %v221_v22 }
  0x1f   :  { %100 = vadd.xlane.f32.xlu0 %v99_v60  ;;  %v237_v62 = vunpack.c.l.bf16 %v222_v57  ;;  %v238_v38 = vunpack.c.h.bf16 %v222_v57  ;;  %v244_v41 = vrot.slane %v239_v58, %v884_v14  ;;  %v248_v42 = vrot.slane %v239_v58, %v886_v15 }
  0x20   :  { %v209_v44 = vadd.f32 %v208_v34, %v193_v25  ;;  %v104_v45 = vadd.f32 %v103_v35, %v88_v7  ;;  %v252_v46 = vrot.slane %v239_v58, %v888_v16  ;;  %v256_v11 = vrot.slane %v239_v58, %v890_v17  ;;  %v215_v25 = vld [vmem:[%s1231_s0 + $0x40] sm:$0xff]  ;;  %v324_v34 = vld [vmem:[%s1231_s0 + $0x178] sm:$0xff] }
  0x21   :  { %v260_v39 = vrot.slane %v239_v58, %v892_v18  ;;  %v264_v47 = vrot.slane %v239_v58, %v894_v19  ;;  %v268_v48 = vrot.slane %v239_v58, %v896_v20  ;;  %v272_v49 = vrot.slane %v239_v58, %v898_v21  ;;  %v322_v58 = vld [vmem:[%s1231_s0 + $0x168] sm:$0xff] }
  0x22   :  { %v210_v40 = vadd.f32 %v209_v44, %v194_v50  ;;  %v105_v23 = vadd.f32 %v104_v45, %v89_v8  ;;  %v289_v24 = vmul.f32 %v244_v41, %v231_v32  ;;  %v290_v51 = vmul.f32 %v248_v42, %v232_v9 }
  0x23   :  { %v291_v53 = vmul.f32 %v252_v46, %v233_v61  ;;  %v292_v26 = vmul.f32 %v256_v11, %v234_v33  ;;  %v293_v59 = vmul.f32 %v260_v39, %v235_v36  ;;  %v294_v27 = vmul.f32 %v264_v47, %v236_v37 }
  0x24   :  { %211 = vadd.xlane.f32.xlu1 %v210_v40  ;;  %v106_v50 = vadd.f32 %v105_v23, %v90_v54  ;;  %v295_v63 = vmul.f32 %v268_v48, %v237_v62  ;;  %v296_v0 = vmul.f32 %v272_v49, %v238_v38  ;;  %v306_v1 = vadd.f32 %v290_v51, %v289_v24  ;;  %v321_v54 = vld [vmem:[%s1231_s0 + $0x160] sm:$0xff]  ;;  %v341_v62 = vld [vmem:[%s1232_s1 + $0x18] sm:$0xff] }
  0x25   :  { %v223_v43 = vunpack.c.l.bf16 %v215_v25  ;;  %v224_v3 = vunpack.c.h.bf16 %v215_v25  ;;  %v225_v29 = vunpack.c.l.bf16 %v216_v52  ;;  %v226_v31 = vunpack.c.h.bf16 %v216_v52 }
  0x26   :  { %v107_v4 = vadd.f32 %v106_v50, %v91_v13  ;;  %v307_v5 = vadd.f32 %v306_v1, %v291_v53  ;;  %v227_v6 = vunpack.c.l.bf16 %v217_v28  ;;  %v228_v7 = vunpack.c.h.bf16 %v217_v28  ;;  %v323_v13 = vld [vmem:[%s1231_s0 + $0x170] sm:$0xff] }
  0x27   :  { %v229_v10 = vunpack.c.l.bf16 %v218_v2  ;;  %v230_v12 = vunpack.c.h.bf16 %v218_v2  ;;  %v281_v8 = vmul.f32 %v244_v41, %v223_v43  ;;  %v282_v22 = vmul.f32 %v248_v42, %v224_v3  ;;  %v319_v43 = vld [vmem:[%s1231_s0 + $0x70] sm:$0xff] }
  0x28   :  { %v108_v55 = vadd.f32 %v107_v4, %v92_v56  ;;  %v308_v30 = vadd.f32 %v307_v5, %v292_v26  ;;  %v283_v57 = vmul.f32 %v252_v46, %v225_v29  ;;  %v284_v32 = vmul.f32 %v256_v11, %v226_v31  ;;  %v320_v5 = vld [vmem:[%s1231_s0 + $0x78] sm:$0xff] }
  0x29   :  { %v285_v60 = vmul.f32 %v260_v39, %v227_v6  ;;  %v286_v9 = vmul.f32 %v264_v47, %v228_v7  ;;  %v287_v61 = vmul.f32 %v268_v48, %v229_v10  ;;  %v288_v33 = vmul.f32 %v272_v49, %v230_v12 }
  0x2a   :  { %109 = vadd.xlane.f32.xlu0 %v108_v55  ;;  %v309_v56 = vadd.f32 %v308_v30, %v293_v59  ;;  %v297_v35 = vadd.f32 %v282_v22, %v281_v8  ;;  %v333_v36 = vunpack.c.l.bf16 %v321_v54  ;;  %v334_v37 = vunpack.c.h.bf16 %v321_v54 }
  0x2b   :  { %v335_v38 = vunpack.c.l.bf16 %v322_v58  ;;  %v336_v41 = vunpack.c.h.bf16 %v322_v58  ;;  %v337_v42 = vunpack.c.l.bf16 %v323_v13  ;;  %v338_v44 = vunpack.c.h.bf16 %v323_v13  ;;  %v423_v58 = vld [vmem:[%s1231_s0 + $0x180] sm:$0xff] }
  0x2c   :  { %v310_v45 = vadd.f32 %v309_v56, %v294_v27  ;;  %v298_v46 = vadd.f32 %v297_v35, %v283_v57  ;;  %v339_v11 = vunpack.c.l.bf16 %v324_v34  ;;  %v340_v39 = vunpack.c.h.bf16 %v324_v34  ;;  %v317_v27 = vld [vmem:[%s1231_s0 + $0x60] sm:$0xff] }
  0x2d   :  { %v346_v47 = vrot.slane %v341_v62, %v884_v14  ;;  %v350_v48 = vrot.slane %v341_v62, %v886_v15  ;;  %v354_v49 = vrot.slane %v341_v62, %v888_v16  ;;  %v358_v40 = vrot.slane %v341_v62, %v890_v17 }
  0x2e   :  { %v311_v23 = vadd.f32 %v310_v45, %v295_v63  ;;  %v299_v24 = vadd.f32 %v298_v46, %v284_v32  ;;  %v362_v51 = vrot.slane %v341_v62, %v892_v18  ;;  %v366_v25 = vrot.slane %v341_v62, %v894_v19  ;;  %v318_v63 = vld [vmem:[%s1231_s0 + $0x68] sm:$0xff]  ;;  %v443_v46 = vld [vmem:[%s1232_s1 + $0x20] sm:$0xff] }
  0x2f   :  { %v370_v52 = vrot.slane %v341_v62, %v896_v20  ;;  %v374_v53 = vrot.slane %v341_v62, %v898_v21  ;;  %v391_v26 = vmul.f32 %v346_v47, %v333_v36  ;;  %v392_v59 = vmul.f32 %v350_v48, %v334_v37 }
  0x30   :  { %v312_v28 = vadd.f32 %v311_v23, %v296_v0  ;;  %v300_v50 = vadd.f32 %v299_v24, %v285_v60  ;;  %v393_v1 = vmul.f32 %v354_v49, %v335_v38  ;;  %v394_v2 = vmul.f32 %v358_v40, %v336_v41  ;;  %v426_v38 = vld [vmem:[%s1231_s0 + $0x198] sm:$0xff] }
  0x31   :  { %v395_v3 = vmul.f32 %v362_v51, %v337_v42  ;;  %v396_v29 = vmul.f32 %v366_v25, %v338_v44  ;;  %v397_v31 = vmul.f32 %v370_v52, %v339_v11  ;;  %v398_v4 = vmul.f32 %v374_v53, %v340_v39 }
  0x32   :  { %313 = vadd.xlane.f32.xlu1 %v312_v28  ;;  %v301_v0 = vadd.f32 %v300_v50, %v286_v9  ;;  %v408_v6 = vadd.f32 %v392_v59, %v391_v26  ;;  %v325_v7 = vunpack.c.l.bf16 %v317_v27  ;;  %v326_v10 = vunpack.c.h.bf16 %v317_v27  ;;  %v424_v9 = vld [vmem:[%s1231_s0 + $0x188] sm:$0xff] }
  0x33   :  { %v327_v12 = vunpack.c.l.bf16 %v318_v63  ;;  %v328_v8 = vunpack.c.h.bf16 %v318_v63  ;;  %v329_v22 = vunpack.c.l.bf16 %v319_v43  ;;  %v330_v54 = vunpack.c.h.bf16 %v319_v43 }
  0x34   :  { %v302_v55 = vadd.f32 %v301_v0, %v287_v61  ;;  %v409_v30 = vadd.f32 %v408_v6, %v393_v1  ;;  %v331_v57 = vunpack.c.l.bf16 %v320_v5  ;;  %v332_v32 = vunpack.c.h.bf16 %v320_v5  ;;  %v425_v61 = vld [vmem:[%s1231_s0 + $0x190] sm:$0xff]  ;;  %v419_v5 = vld [vmem:[%s1231_s0 + $0x80] sm:$0xff]  ;;  %v420_v0 = vld [vmem:[%s1231_s0 + $0x88] sm:$0xff] }
  0x35   :  { %v383_v13 = vmul.f32 %v346_v47, %v325_v7  ;;  %v384_v60 = vmul.f32 %v350_v48, %v326_v10  ;;  %v385_v34 = vmul.f32 %v354_v49, %v327_v12  ;;  %v386_v56 = vmul.f32 %v358_v40, %v328_v8  ;;  %v421_v12 = vld [vmem:[%s1231_s0 + $0x90] sm:$0xff] }
  0x36   :  { %v303_v35 = vadd.f32 %v302_v55, %v288_v33  ;;  %v410_v36 = vadd.f32 %v409_v30, %v394_v2  ;;  %v387_v37 = vmul.f32 %v362_v51, %v329_v22  ;;  %v388_v62 = vmul.f32 %v366_v25, %v330_v54  ;;  %v422_v30 = vld [vmem:[%s1231_s0 + $0x98] sm:$0xff] }
  0x37   :  { %v389_v41 = vmul.f32 %v370_v52, %v331_v57  ;;  %v390_v42 = vmul.f32 %v374_v53, %v332_v32  ;;  %v399_v44 = vadd.f32 %v384_v60, %v383_v13  ;;  %v435_v45 = vunpack.c.l.bf16 %v423_v58 }
  0x38   :  { %304 = vadd.xlane.f32.xlu0 %v303_v35  ;;  %v411_v33 = vadd.f32 %v410_v36, %v395_v3  ;;  %v436_v11 = vunpack.c.h.bf16 %v423_v58  ;;  %v437_v39 = vunpack.c.l.bf16 %v424_v9  ;;  %v438_v47 = vunpack.c.h.bf16 %v424_v9 }
  0x39   :  { %v400_v48 = vadd.f32 %v399_v44, %v385_v34  ;;  %v439_v49 = vunpack.c.l.bf16 %v425_v61  ;;  %v440_v40 = vunpack.c.h.bf16 %v425_v61  ;;  %v441_v23 = vunpack.c.l.bf16 %v426_v38 }
  0x3a   :  { %v412_v24 = vadd.f32 %v411_v33, %v396_v29  ;;  %v442_v51 = vunpack.c.h.bf16 %v426_v38  ;;  %v448_v25 = vrot.slane %v443_v46, %v884_v14  ;;  %v452_v52 = vrot.slane %v443_v46, %v886_v15 }
  0x3b   :  { %v401_v53 = vadd.f32 %v400_v48, %v386_v56  ;;  %v456_v26 = vrot.slane %v443_v46, %v888_v16  ;;  %v460_v59 = vrot.slane %v443_v46, %v890_v17  ;;  %v464_v27 = vrot.slane %v443_v46, %v892_v18  ;;  %v528_v48 = vld [vmem:[%s1231_s0 + $0x1b8] sm:$0xff] }
  0x3c   :  { %v413_v28 = vadd.f32 %v412_v24, %v397_v31  ;;  %v468_v50 = vrot.slane %v443_v46, %v894_v19  ;;  %v472_v1 = vrot.slane %v443_v46, %v896_v20  ;;  %v476_v2 = vrot.slane %v443_v46, %v898_v21  ;;  %v526_v46 = vld [vmem:[%s1231_s0 + $0x1a8] sm:$0xff] }
  0x3d   :  { %v402_v63 = vadd.f32 %v401_v53, %v387_v37  ;;  %v493_v43 = vmul.f32 %v448_v25, %v435_v45  ;;  %v494_v3 = vmul.f32 %v452_v52, %v436_v11  ;;  %v495_v29 = vmul.f32 %v456_v26, %v437_v39  ;;  %v545_v24 = vld [vmem:[%s1232_s1 + $0x28] sm:$0xff] }
  0x3e   :  { %v414_v6 = vadd.f32 %v413_v28, %v398_v4  ;;  %v496_v31 = vmul.f32 %v460_v59, %v438_v47  ;;  %v497_v7 = vmul.f32 %v464_v27, %v439_v49  ;;  %v498_v10 = vmul.f32 %v468_v50, %v440_v40 }
  0x3f   :  { %v403_v8 = vadd.f32 %v402_v63, %v388_v62  ;;  %v499_v22 = vmul.f32 %v472_v1, %v441_v23  ;;  %v500_v54 = vmul.f32 %v476_v2, %v442_v51  ;;  %v510_v55 = vadd.f32 %v494_v3, %v493_v43  ;;  %v525_v62 = vld [vmem:[%s1231_s0 + $0x1a0] sm:$0xff] }
  0x40   :  { %415 = vadd.xlane.f32.xlu1 %v414_v6  ;;  %v427_v57 = vunpack.c.l.bf16 %v419_v5  ;;  %v428_v32 = vunpack.c.h.bf16 %v419_v5  ;;  %v429_v58 = vunpack.c.l.bf16 %v420_v0  ;;  %v430_v4 = vunpack.c.h.bf16 %v420_v0 }
  0x41   :  { %v404_v13 = vadd.f32 %v403_v8, %v389_v41  ;;  %v511_v60 = vadd.f32 %v510_v55, %v495_v29  ;;  %v431_v34 = vunpack.c.l.bf16 %v421_v12  ;;  %v432_v56 = vunpack.c.h.bf16 %v421_v12  ;;  %v527_v41 = vld [vmem:[%s1231_s0 + $0x1b0] sm:$0xff] }
  0x42   :  { %v433_v9 = vunpack.c.l.bf16 %v422_v30  ;;  %v434_v35 = vunpack.c.h.bf16 %v422_v30  ;;  %v485_v36 = vmul.f32 %v448_v25, %v427_v57  ;;  %v486_v37 = vmul.f32 %v452_v52, %v428_v32  ;;  %v523_v57 = vld [vmem:[%s1231_s0 + $0xb0] sm:$0xff] }
  0x43   :  { %v405_v61 = vadd.f32 %v404_v13, %v390_v42  ;;  %v512_v38 = vadd.f32 %v511_v60, %v496_v31  ;;  %v487_v44 = vmul.f32 %v456_v26, %v429_v58  ;;  %v488_v45 = vmul.f32 %v460_v59, %v430_v4  ;;  %v524_v60 = vld [vmem:[%s1231_s0 + $0xb8] sm:$0xff] }
  0x44   :  { %v489_v33 = vmul.f32 %v464_v27, %v431_v34  ;;  %v490_v11 = vmul.f32 %v468_v50, %v432_v56  ;;  %v491_v39 = vmul.f32 %v472_v1, %v433_v9  ;;  %v492_v47 = vmul.f32 %v476_v2, %v434_v35 }
  0x45   :  { %406 = vadd.xlane.f32.xlu0 %v405_v61  ;;  %v513_v42 = vadd.f32 %v512_v38, %v497_v7  ;;  %v501_v49 = vadd.f32 %v486_v37, %v485_v36  ;;  %v537_v40 = vunpack.c.l.bf16 %v525_v62  ;;  %v538_v23 = vunpack.c.h.bf16 %v525_v62 }
  0x46   :  { %v539_v51 = vunpack.c.l.bf16 %v526_v46  ;;  %v540_v25 = vunpack.c.h.bf16 %v526_v46  ;;  %v541_v52 = vunpack.c.l.bf16 %v527_v41  ;;  %v542_v53 = vunpack.c.h.bf16 %v527_v41  ;;  %v627_v46 = vld [vmem:[%s1231_s0 + $0x1c0] sm:$0xff] }
  0x47   :  { %v514_v26 = vadd.f32 %v513_v42, %v498_v10  ;;  %v502_v59 = vadd.f32 %v501_v49, %v487_v44  ;;  %v543_v27 = vunpack.c.l.bf16 %v528_v48  ;;  %v544_v28 = vunpack.c.h.bf16 %v528_v48  ;;  %v521_v10 = vld [vmem:[%s1231_s0 + $0xa0] sm:$0xff] }
  0x48   :  { %v550_v50 = vrot.slane %v545_v24, %v884_v14  ;;  %v554_v1 = vrot.slane %v545_v24, %v886_v15  ;;  %v558_v2 = vrot.slane %v545_v24, %v888_v16  ;;  %v562_v63 = vrot.slane %v545_v24, %v890_v17 }
  0x49   :  { %v515_v43 = vadd.f32 %v514_v26, %v499_v22  ;;  %v503_v3 = vadd.f32 %v502_v59, %v488_v45  ;;  %v566_v29 = vrot.slane %v545_v24, %v892_v18  ;;  %v570_v5 = vrot.slane %v545_v24, %v894_v19  ;;  %v522_v22 = vld [vmem:[%s1231_s0 + $0xa8] sm:$0xff]  ;;  %v647_v59 = vld [vmem:[%s1232_s1 + $0x30] sm:$0xff] }
  0x4a   :  { %v574_v0 = vrot.slane %v545_v24, %v896_v20  ;;  %v578_v6 = vrot.slane %v545_v24, %v898_v21  ;;  %v595_v31 = vmul.f32 %v550_v50, %v537_v40  ;;  %v596_v7 = vmul.f32 %v554_v1, %v538_v23 }
  0x4b   :  { %v516_v12 = vadd.f32 %v515_v43, %v500_v54  ;;  %v504_v8 = vadd.f32 %v503_v3, %v489_v33  ;;  %v597_v55 = vmul.f32 %v558_v2, %v539_v51  ;;  %v598_v30 = vmul.f32 %v562_v63, %v540_v25  ;;  %v630_v51 = vld [vmem:[%s1231_s0 + $0x1d8] sm:$0xff] }
  0x4c   :  { %v599_v32 = vmul.f32 %v566_v29, %v541_v52  ;;  %v600_v58 = vmul.f32 %v570_v5, %v542_v53  ;;  %v601_v4 = vmul.f32 %v574_v0, %v543_v27  ;;  %v602_v13 = vmul.f32 %v578_v6, %v544_v28 }
  0x4d   :  { %517 = vadd.xlane.f32.xlu1 %v516_v12  ;;  %v505_v54 = vadd.f32 %v504_v8, %v490_v11  ;;  %v612_v34 = vadd.f32 %v596_v7, %v595_v31  ;;  %v529_v56 = vunpack.c.l.bf16 %v521_v10  ;;  %v530_v9 = vunpack.c.h.bf16 %v521_v10  ;;  %v628_v11 = vld [vmem:[%s1231_s0 + $0x1c8] sm:$0xff] }
  0x4e   :  { %v531_v35 = vunpack.c.l.bf16 %v522_v22  ;;  %v532_v36 = vunpack.c.h.bf16 %v522_v22  ;;  %v533_v37 = vunpack.c.l.bf16 %v523_v57  ;;  %v534_v62 = vunpack.c.h.bf16 %v523_v57 }
  0x4f   :  { %v506_v61 = vadd.f32 %v505_v54, %v491_v39  ;;  %v613_v38 = vadd.f32 %v612_v34, %v597_v55  ;;  %v535_v44 = vunpack.c.l.bf16 %v524_v60  ;;  %v536_v45 = vunpack.c.h.bf16 %v524_v60  ;;  %v629_v39 = vld [vmem:[%s1231_s0 + $0x1d0] sm:$0xff]  ;;  %v623_v60 = vld [vmem:[%s1231_s0 + $0xc0] sm:$0xff]  ;;  %v624_v54 = vld [vmem:[%s1231_s0 + $0xc8] sm:$0xff] }
  0x50   :  { %v587_v41 = vmul.f32 %v550_v50, %v529_v56  ;;  %v588_v33 = vmul.f32 %v554_v1, %v530_v9  ;;  %v589_v48 = vmul.f32 %v558_v2, %v531_v35  ;;  %v590_v42 = vmul.f32 %v562_v63, %v532_v36  ;;  %v625_v35 = vld [vmem:[%s1231_s0 + $0xd0] sm:$0xff] }
  0x51   :  { %v507_v49 = vadd.f32 %v506_v61, %v492_v47  ;;  %v614_v40 = vadd.f32 %v613_v38, %v598_v30  ;;  %v591_v23 = vmul.f32 %v566_v29, %v533_v37  ;;  %v592_v24 = vmul.f32 %v570_v5, %v534_v62  ;;  %v626_v38 = vld [vmem:[%s1231_s0 + $0xd8] sm:$0xff] }
  0x52   :  { %v593_v25 = vmul.f32 %v574_v0, %v535_v44  ;;  %v594_v52 = vmul.f32 %v578_v6, %v536_v45  ;;  %v603_v53 = vadd.f32 %v588_v33, %v587_v41  ;;  %v639_v26 = vunpack.c.l.bf16 %v627_v46 }
  0x53   :  { %508 = vadd.xlane.f32.xlu0 %v507_v49  ;;  %v615_v47 = vadd.f32 %v614_v40, %v599_v32  ;;  %v640_v27 = vunpack.c.h.bf16 %v627_v46  ;;  %v641_v28 = vunpack.c.l.bf16 %v628_v11  ;;  %v642_v50 = vunpack.c.h.bf16 %v628_v11 }
  0x54   :  { %v604_v1 = vadd.f32 %v603_v53, %v589_v48  ;;  %v643_v2 = vunpack.c.l.bf16 %v629_v39  ;;  %v644_v63 = vunpack.c.h.bf16 %v629_v39  ;;  %v645_v43 = vunpack.c.l.bf16 %v630_v51 }
  0x55   :  { %v616_v3 = vadd.f32 %v615_v47, %v600_v58  ;;  %v646_v29 = vunpack.c.h.bf16 %v630_v51  ;;  %v652_v5 = vrot.slane %v647_v59, %v884_v14  ;;  %v656_v0 = vrot.slane %v647_v59, %v886_v15 }
  0x56   :  { %v605_v6 = vadd.f32 %v604_v1, %v590_v42  ;;  %v660_v31 = vrot.slane %v647_v59, %v888_v16  ;;  %v664_v7 = vrot.slane %v647_v59, %v890_v17  ;;  %v668_v10 = vrot.slane %v647_v59, %v892_v18  ;;  %v732_v1 = vld [vmem:[%s1231_s0 + $0x1f8] sm:$0xff] }
  0x57   :  { %v617_v12 = vadd.f32 %v616_v3, %v601_v4  ;;  %v672_v8 = vrot.slane %v647_v59, %v894_v19  ;;  %v676_v55 = vrot.slane %v647_v59, %v896_v20  ;;  %v680_v30 = vrot.slane %v647_v59, %v898_v21  ;;  %v730_v59 = vld [vmem:[%s1231_s0 + $0x1e8] sm:$0xff]  ;;  %v749_v3 = vld [vmem:[%s1232_s1 + $0x38] sm:$0xff] }
  0x58   :  { %v606_v22 = vadd.f32 %v605_v6, %v591_v23  ;;  %v697_v57 = vmul.f32 %v652_v5, %v639_v26  ;;  %v698_v32 = vmul.f32 %v656_v0, %v640_v27  ;;  %v699_v58 = vmul.f32 %v660_v31, %v641_v28 }
  0x59   :  { %v618_v34 = vadd.f32 %v617_v12, %v602_v13  ;;  %v700_v4 = vmul.f32 %v664_v7, %v642_v50  ;;  %v701_v56 = vmul.f32 %v668_v10, %v643_v2  ;;  %v702_v9 = vmul.f32 %v672_v8, %v644_v63 }
  0x5a   :  { %v607_v36 = vadd.f32 %v606_v22, %v592_v24  ;;  %v703_v37 = vmul.f32 %v676_v55, %v645_v43  ;;  %v704_v62 = vmul.f32 %v680_v30, %v646_v29  ;;  %v714_v61 = vadd.f32 %v698_v32, %v697_v57  ;;  %v729_v24 = vld [vmem:[%s1231_s0 + $0x1e0] sm:$0xff] }
  0x5b   :  { %619 = vadd.xlane.f32.xlu1 %v618_v34  ;;  %v631_v44 = vunpack.c.l.bf16 %v623_v60  ;;  %v632_v45 = vunpack.c.h.bf16 %v623_v60  ;;  %v633_v46 = vunpack.c.l.bf16 %v624_v54  ;;  %v634_v13 = vunpack.c.h.bf16 %v624_v54 }
  0x5c   :  { %v608_v41 = vadd.f32 %v607_v36, %v593_v25  ;;  %v715_v33 = vadd.f32 %v714_v61, %v699_v58  ;;  %v635_v48 = vunpack.c.l.bf16 %v625_v35  ;;  %v636_v42 = vunpack.c.h.bf16 %v625_v35  ;;  %v731_v25 = vld [vmem:[%s1231_s0 + $0x1f0] sm:$0xff] }
  0x5d   :  { %v637_v11 = vunpack.c.l.bf16 %v626_v38  ;;  %v638_v49 = vunpack.c.h.bf16 %v626_v38  ;;  %v689_v40 = vmul.f32 %v652_v5, %v631_v44  ;;  %v690_v23 = vmul.f32 %v656_v0, %v632_v45 }
  0x5e   :  { %v609_v39 = vadd.f32 %v608_v41, %v594_v52  ;;  %v716_v51 = vadd.f32 %v715_v33, %v700_v4  ;;  %v691_v53 = vmul.f32 %v660_v31, %v633_v46  ;;  %v692_v26 = vmul.f32 %v664_v7, %v634_v13 }
  0x5f   :  { %v693_v47 = vmul.f32 %v668_v10, %v635_v48  ;;  %v694_v27 = vmul.f32 %v672_v8, %v636_v42  ;;  %v695_v28 = vmul.f32 %v676_v55, %v637_v11  ;;  %v696_v50 = vmul.f32 %v680_v30, %v638_v49 }
  0x60   :  { %610 = vadd.xlane.f32.xlu0 %v609_v39  ;;  %v717_v52 = vadd.f32 %v716_v51, %v701_v56  ;;  %v705_v2 = vadd.f32 %v690_v23, %v689_v40  ;;  %v741_v63 = vunpack.c.l.bf16 %v729_v24  ;;  %v742_v43 = vunpack.c.h.bf16 %v729_v24 }
  0x61   :  { %v743_v29 = vunpack.c.l.bf16 %v730_v59  ;;  %v744_v5 = vunpack.c.h.bf16 %v730_v59  ;;  %v745_v0 = vunpack.c.l.bf16 %v731_v25  ;;  %v746_v6 = vunpack.c.h.bf16 %v731_v25 }
  0x62   :  { %v718_v31 = vadd.f32 %v717_v52, %v702_v9  ;;  %v706_v7 = vadd.f32 %v705_v2, %v691_v53  ;;  %v747_v10 = vunpack.c.l.bf16 %v732_v1  ;;  %v748_v12 = vunpack.c.h.bf16 %v732_v1 }
  0x63   :  { %v754_v8 = vrot.slane %v749_v3, %v884_v14  ;;  %v758_v55 = vrot.slane %v749_v3, %v886_v15  ;;  %v762_v30 = vrot.slane %v749_v3, %v888_v16  ;;  %v766_v22 = vrot.slane %v749_v3, %v890_v17  ;;  %v725_v14 = vld [vmem:[%s1231_s0 + $0xe0] sm:$0xff] }
  0x64   :  { %v719_v57 = vadd.f32 %v718_v31, %v703_v37  ;;  %v707_v32 = vadd.f32 %v706_v7, %v692_v26  ;;  %v770_v58 = vrot.slane %v749_v3, %v892_v18  ;;  %v774_v60 = vrot.slane %v749_v3, %v894_v19  ;;  %v726_v18 = vld [vmem:[%s1231_s0 + $0xe8] sm:$0xff]  ;;  %v727_v19 = vld [vmem:[%s1231_s0 + $0xf0] sm:$0xff]  ;;  %v728_v37 = vld [vmem:[%s1231_s0 + $0xf8] sm:$0xff] }
  0x65   :  { %v778_v54 = vrot.slane %v749_v3, %v896_v20  ;;  %v782_v34 = vrot.slane %v749_v3, %v898_v21  ;;  %v799_v4 = vmul.f32 %v754_v8, %v741_v63  ;;  %v800_v56 = vmul.f32 %v758_v55, %v742_v43 }
  0x66   :  { %v720_v15 = vadd.f32 %v719_v57, %v704_v62  ;;  %v708_v16 = vadd.f32 %v707_v32, %v693_v47  ;;  %v801_v9 = vmul.f32 %v762_v30, %v743_v29  ;;  %v802_v17 = vmul.f32 %v766_v22, %v744_v5 }
  0x67   :  { %v803_v20 = vmul.f32 %v770_v58, %v745_v0  ;;  %v804_v21 = vmul.f32 %v774_v60, %v746_v6  ;;  %v805_v35 = vmul.f32 %v778_v54, %v747_v10  ;;  %v806_v36 = vmul.f32 %v782_v34, %v748_v12 }
  0x68   :  { %721 = vadd.xlane.f32.xlu1 %v720_v15  ;;  %v709_v62 = vadd.f32 %v708_v16, %v694_v27  ;;  %v816_v61 = vadd.f32 %v800_v56, %v799_v4  ;;  %v733_v38 = vunpack.c.l.bf16 %v725_v14  ;;  %v734_v44 = vunpack.c.h.bf16 %v725_v14 }
  0x69   :  { %v735_v45 = vunpack.c.l.bf16 %v726_v18  ;;  %v736_v46 = vunpack.c.h.bf16 %v726_v18  ;;  %v737_v13 = vunpack.c.l.bf16 %v727_v19  ;;  %v738_v41 = vunpack.c.h.bf16 %v727_v19 }
  0x6a   :  { %v710_v33 = vadd.f32 %v709_v62, %v695_v28  ;;  %v817_v48 = vadd.f32 %v816_v61, %v801_v9  ;;  %v739_v42 = vunpack.c.l.bf16 %v728_v37  ;;  %v740_v11 = vunpack.c.h.bf16 %v728_v37 }
  0x6b   :  { %v791_v49 = vmul.f32 %v754_v8, %v733_v38  ;;  %v792_v40 = vmul.f32 %v758_v55, %v734_v44  ;;  %v793_v23 = vmul.f32 %v762_v30, %v735_v45  ;;  %v794_v24 = vmul.f32 %v766_v22, %v736_v46 }
  0x6c   :  { %v711_v39 = vadd.f32 %v710_v33, %v696_v50  ;;  %v818_v51 = vadd.f32 %v817_v48, %v802_v17  ;;  %v795_v53 = vmul.f32 %v770_v58, %v737_v13  ;;  %v796_v26 = vmul.f32 %v774_v60, %v738_v41 }
  0x6d   :  { %v797_v59 = vmul.f32 %v778_v54, %v739_v42  ;;  %v798_v25 = vmul.f32 %v782_v34, %v740_v11  ;;  %v807_v47 = vadd.f32 %v792_v40, %v791_v49 }
  0x6e   :  { %712 = vadd.xlane.f32.xlu0 %v711_v39  ;;  %v819_v27 = vadd.f32 %v818_v51, %v803_v20 }
  0x6f   :  { %v808_v1 = vadd.f32 %v807_v47, %v793_v23 }
  0x70   :  { %v820_v52 = vadd.f32 %v819_v27, %v804_v21 }
  0x71   :  { %v809_v2 = vadd.f32 %v808_v1, %v794_v24 }
  0x72   :  { %v821_v28 = vadd.f32 %v820_v52, %v805_v35 }
  0x73   :  { %v810_v63 = vadd.f32 %v809_v2, %v795_v53 }
  0x74   :  { %v822_v43 = vadd.f32 %v821_v28, %v806_v36 }
  0x75   :  { %v811_v3 = vadd.f32 %v810_v63, %v796_v26 }
  0x76   :  { %823 = vadd.xlane.f32.xlu1 %v822_v43 }
  0x77   :  { %v812_v29 = vadd.f32 %v811_v3, %v797_v59 }
  0x79   :  { %v813_v5 = vadd.f32 %v812_v29, %v798_v25 }
  0x7b   :  { %814 = vadd.xlane.f32.xlu0 %v813_v5 }
  0xa5   :  { %v203_v50 = vpop.xlane.xlu1 %202 }
  0xac   :  { %v101_v0 = vpop.xlane.xlu0 %100 }
  0xad   :  { %v213_v54 = vadd.f32 %v203_v50, %v101_v0 }
  0xb1   :  { %v212_v6 = vpop.xlane.xlu1 %211 }
  0xb7   :  { %v110_v31 = vpop.xlane.xlu0 %109 }
  0xb8   :  { %v214_v57 = vadd.f32 %v212_v6, %v110_v31 }
  0xbf   :  { %v314_v7 = vpop.xlane.xlu1 %313 }
  0xc0   :  { %v316_v32 = vadd.f32 %v314_v7, %v214_v57 }
  0xc5   :  { %v305_v10 = vpop.xlane.xlu0 %304 }
  0xc6   :  { %v315_v56 = vadd.f32 %v305_v10, %v213_v54 }
  0xcd   :  { %v416_v12 = vpop.xlane.xlu1 %415 }
  0xce   :  { %v418_v58 = vadd.f32 %v416_v12, %v316_v32 }
  0xd2   :  { %v407_v8 = vpop.xlane.xlu0 %406 }
  0xd3   :  { %v417_v15 = vadd.f32 %v407_v8, %v315_v56 }
  0xda   :  { %v518_v55 = vpop.xlane.xlu1 %517 }
  0xdb   :  { %v520_v4 = vadd.f32 %v518_v55, %v418_v58 }
  0xe0   :  { %v509_v30 = vpop.xlane.xlu0 %508 }
  0xe1   :  { %v519_v17 = vadd.f32 %v509_v30, %v417_v15 }
  0xe8   :  { %v620_v22 = vpop.xlane.xlu1 %619 }
  0xe9   :  { %v622_v14 = vadd.f32 %v620_v22, %v520_v4 }
  0xed   :  { %v611_v60 = vpop.xlane.xlu0 %610 }
  0xee   :  { %v621_v20 = vadd.f32 %v611_v60, %v519_v17 }
  0xf5   :  { %v722_v34 = vpop.xlane.xlu1 %721 }
  0xf6   :  { %v724_v16 = vadd.f32 %v722_v34, %v622_v14 }
  0xfb   :  { %v713_v9 = vpop.xlane.xlu0 %712 }
  0xfc   :  { %v723_v35 = vadd.f32 %v713_v9, %v621_v20 }
 0x103   :  { %v824_v18 = vpop.xlane.xlu1 %823 }
 0x104   :  { %v826_v19 = vadd.f32 %v824_v18, %v724_v16 }
 0x106   :  { %v828_v21 = vsub.f32 0.0, %v826_v19 }
 0x108   :  { %v831_v36 = vmul.f32 1.442695, %v828_v21  ;;  %v815_v37 = vpop.xlane.xlu0 %814 }
 0x109   :  { %v825_v62 = vadd.f32 %v815_v37, %v723_v35 }
 0x10a   :  { %846 = vpow2.f32 %v831_v36 }
 0x10b   :  { %v827_v61 = vsub.f32 0.0, %v825_v62 }
 0x10d   :  { %v829_v38 = vmul.f32 1.442695, %v827_v61 }
 0x10f   :  { %848 = vpow2.f32 %v829_v38 }
 0x114   :  { %v847_v44 = vpop.eup %846 }
 0x115   :  { %v834_v45 = vadd.f32 1.0, %v847_v44 }
 0x117   :  { %850 = vrcp.f32 %v834_v45 }
 0x119   :  { %v849_v46 = vpop.eup %848 }
 0x11a   :  { %v833_v13 = vadd.f32 1.0, %v849_v46 }
 0x11c   :  { %852 = vrcp.f32 %v833_v13 }
 0x121   :  { %v851_v41 = vpop.eup %850 }
 0x122   :  { %841 = vst.msk [vmem:[%s1233_s2 + $0x8] sm:$0xff] %vm839_vm0, %v851_v41 }
 0x126   :  { %v853_v33 = vpop.eup %852 }
 0x127   :  { %840 = vst.msk [vmem:[%s1233_s2] sm:$0xff] %vm839_vm0, %v853_v33 }

// kernel: discriminator_forward.8
= control target key start
LH: loop header
LB: loop body
LE: loop exit
PB: predicated region body
PF: predicated region fallthrough
CT: control target
= control target key end

     0   :  { %s10207_s15 = smov 0   ;;  %s10209_s16 = smov 0   ;;  %s12080_s0 = inlined_call_operand.vmem [shape: bf16[16,4096], index: 0, kind: input, shape index: {}]   ;;  %s12081_s1 = inlined_call_operand.vmem [shape: bf16[4096,512], index: 1, kind: input, shape index: {}]   ;;  %s12082_s2 = inlined_call_operand.vmem [shape: f32[1,512], index: 2, kind: input, shape index: {}]   ;;  %s12083_s3 = inlined_call_operand.vmem [shape: f32[1,512], index: 3, kind: input, shape index: {}]   ;;  %s12084_s4 = inlined_call_operand.vmem [shape: bf16[16,512], index: 4, kind: output, shape index: {}]  }
   0x1   :  { %s10211_s17 = smov 0   ;;  %s10213_s18 = smov 0  }
   0x2   :  { %s10215_s19 = smov 0  }
   0x3 LB: > { %s23_s20 = sadd.s32 1, %s10175_s18  ;;  %s8700_s21 = sadd.s32 4294967295, %s10179_s19   ;;  %s10179_s19 = sphi %s10215_s19, %s14_s19   ;;  %s10175_s18 = sphi %s10213_s18, %s12089_s18   ;;  %s10171_s17 = sphi %s10211_s17, %s12088_s17   ;;  %s10167_s16 = sphi %s10209_s16, %s12087_s16   ;;  %s10163_s15 = sphi %s10207_s15, %s12086_s15  }
   0x4   : > { %p24_p0 = scmp.ge.s32.totalorder %s23_s20, 2  ;;  %p66_p1 = scmp.ne.s32.totalorder %s10167_s16, %s10163_s15 }
   0x5   : > { %p67_p2 = scmp.eq.s32.totalorder %s10179_s19, 0  ;;  %p150_p4 = scmp.eq.s32.totalorder %s8700_s21, 1 }
   0x6   : > { %s12091_s20 = smov (%p24_p0, %s23_s20), 0  ;;  %s59_s23 = sadd.s32 1, %s10167_s16 }
   0x7   : > { %p68_p3 = por %p67_p2, %p66_p1  ;;  %s56_s22 = ssub.s32 %s10175_s18, %s12091_s20 }
   0x8   : > { %p57_p5 = scmp.eq.s32.totalorder %s56_s22, 0  ;;  %p10242_p6 = por %p150_p4, %p66_p1 }
   0x9   : > { %p8704_p7 = scmp.ge.s32.totalorder %s10179_s19, 2 }
   0xa   : > { %s10247_s25 = scalar_select %p57_p5, %s10167_s16, %s59_s23  }
   0xb   : > { %182 = sbr.rel (%p8704_p7) target bundleno = 278 (0x116), region = 20 }
  0x12   : > { %185 = sbr.rel (!%p68_p3) target bundleno = 278 (0x116), region = 24  ;;  %s187_s26 = sand.u32 (%p68_p3), 1, %s10167_s16  }
  0x13   : > { %s9264_s27 = sshll.u32 (%p68_p3), %s10175_s18, 3  ;;  %s8705_s28 = sshll.u32 (%p68_p3), %s187_s26, 12 }
  0x14   : > { %s10255_s5 = scalar_lea.vmem (%p68_p3), %s12081_s1, %s9264_s27  ;;  %s10260_s6 = scalar_lea.vmem (%p68_p3), [#allocation2], %s8705_s28 }
  0x15   : > { %v1245_v0 = vld [vmem:[%s10255_s5] sm:$0xff] (%p68_p3)  ;;  %v1247_v1 = vld [vmem:[%s10255_s5 + $0x10] sm:$0xff] (%p68_p3) }
  0x16   : > { %v1249_v2 = vld [vmem:[%s10255_s5 + $0x20] sm:$0xff] (%p68_p3)  ;;  %1246 = vst [vmem:[%s10260_s6] sm:$0xff] (%p68_p3), %v1245_v0  ;;  %1248 = vst [vmem:[%s10260_s6 + $0x8] sm:$0xff] (%p68_p3), %v1247_v1  ;;  %v1251_v3 = vld [vmem:[%s10255_s5 + $0x30] sm:$0xff] (%p68_p3) }
  0x17   : > { %1250 = vst [vmem:[%s10260_s6 + $0x10] sm:$0xff] (%p68_p3), %v1249_v2  ;;  %v1253_v4 = vld [vmem:[%s10255_s5 + $0x40] sm:$0xff] (%p68_p3)  ;;  %v1255_v5 = vld [vmem:[%s10255_s5 + $0x50] sm:$0xff] (%p68_p3)  ;;  %1252 = vst [vmem:[%s10260_s6 + $0x18] sm:$0xff] (%p68_p3), %v1251_v3 }
  0x18   : > { %1254 = vst [vmem:[%s10260_s6 + $0x20] sm:$0xff] (%p68_p3), %v1253_v4  ;;  %1256 = vst [vmem:[%s10260_s6 + $0x28] sm:$0xff] (%p68_p3), %v1255_v5  ;;  %v1257_v6 = vld [vmem:[%s10255_s5 + $0x60] sm:$0xff] (%p68_p3)  ;;  %v1259_v7 = vld [vmem:[%s10255_s5 + $0x70] sm:$0xff] (%p68_p3) }
  0x19   : > { %v1261_v8 = vld [vmem:[%s10255_s5 + $0x80] sm:$0xff]  ;;  %1258 = vst [vmem:[%s10260_s6 + $0x30] sm:$0xff] %v1257_v6  ;;  %1260 = vst [vmem:[%s10260_s6 + $0x38] sm:$0xff] %v1259_v7  ;;  %v1263_v9 = vld [vmem:[%s10255_s5 + $0x90] sm:$0xff] }
  0x1a   : > { %1262 = vst [vmem:[%s10260_s6 + $0x40] sm:$0xff] %v1261_v8  ;;  %v1265_v10 = vld [vmem:[%s10255_s5 + $0xa0] sm:$0xff]  ;;  %v1267_v11 = vld [vmem:[%s10255_s5 + $0xb0] sm:$0xff]  ;;  %1264 = vst [vmem:[%s10260_s6 + $0x48] sm:$0xff] %v1263_v9 }
  0x1b   : > { %1266 = vst [vmem:[%s10260_s6 + $0x50] sm:$0xff] %v1265_v10  ;;  %1268 = vst [vmem:[%s10260_s6 + $0x58] sm:$0xff] %v1267_v11  ;;  %v1269_v12 = vld [vmem:[%s10255_s5 + $0xc0] sm:$0xff]  ;;  %v1271_v13 = vld [vmem:[%s10255_s5 + $0xd0] sm:$0xff] }
  0x1c   : > { %v1273_v14 = vld [vmem:[%s10255_s5 + $0xe0] sm:$0xff]  ;;  %1270 = vst [vmem:[%s10260_s6 + $0x60] sm:$0xff] %v1269_v12  ;;  %1272 = vst [vmem:[%s10260_s6 + $0x68] sm:$0xff] %v1271_v13  ;;  %v1275_v15 = vld [vmem:[%s10255_s5 + $0xf0] sm:$0xff] }
  0x1d   : > { %1274 = vst [vmem:[%s10260_s6 + $0x70] sm:$0xff] %v1273_v14  ;;  %v1277_v16 = vld [vmem:[%s10255_s5 + $0x100] sm:$0xff]  ;;  %v1279_v17 = vld [vmem:[%s10255_s5 + $0x110] sm:$0xff]  ;;  %1276 = vst [vmem:[%s10260_s6 + $0x78] sm:$0xff] %v1275_v15 }
  0x1e   : > { %1278 = vst [vmem:[%s10260_s6 + $0x80] sm:$0xff] %v1277_v16  ;;  %1280 = vst [vmem:[%s10260_s6 + $0x88] sm:$0xff] %v1279_v17  ;;  %v1281_v18 = vld [vmem:[%s10255_s5 + $0x120] sm:$0xff]  ;;  %v1283_v19 = vld [vmem:[%s10255_s5 + $0x130] sm:$0xff] }
  0x1f   : > { %v1285_v20 = vld [vmem:[%s10255_s5 + $0x140] sm:$0xff]  ;;  %1282 = vst [vmem:[%s10260_s6 + $0x90] sm:$0xff] %v1281_v18  ;;  %1284 = vst [vmem:[%s10260_s6 + $0x98] sm:$0xff] %v1283_v19  ;;  %v1287_v21 = vld [vmem:[%s10255_s5 + $0x150] sm:$0xff] }
  0x20   : > { %1286 = vst [vmem:[%s10260_s6 + $0xa0] sm:$0xff] %v1285_v20  ;;  %v1289_v22 = vld [vmem:[%s10255_s5 + $0x160] sm:$0xff]  ;;  %v1291_v23 = vld [vmem:[%s10255_s5 + $0x170] sm:$0xff]  ;;  %1288 = vst [vmem:[%s10260_s6 + $0xa8] sm:$0xff] %v1287_v21 }
  0x21   : > { %1290 = vst [vmem:[%s10260_s6 + $0xb0] sm:$0xff] %v1289_v22  ;;  %1292 = vst [vmem:[%s10260_s6 + $0xb8] sm:$0xff] %v1291_v23  ;;  %v1293_v24 = vld [vmem:[%s10255_s5 + $0x180] sm:$0xff]  ;;  %v1295_v25 = vld [vmem:[%s10255_s5 + $0x190] sm:$0xff] }
  0x22   : > { %v1297_v26 = vld [vmem:[%s10255_s5 + $0x1a0] sm:$0xff]  ;;  %1294 = vst [vmem:[%s10260_s6 + $0xc0] sm:$0xff] %v1293_v24  ;;  %1296 = vst [vmem:[%s10260_s6 + $0xc8] sm:$0xff] %v1295_v25  ;;  %v1299_v27 = vld [vmem:[%s10255_s5 + $0x1b0] sm:$0xff] }
  0x23   : > { %1298 = vst [vmem:[%s10260_s6 + $0xd0] sm:$0xff] %v1297_v26  ;;  %v1301_v28 = vld [vmem:[%s10255_s5 + $0x1c0] sm:$0xff]  ;;  %v1303_v29 = vld [vmem:[%s10255_s5 + $0x1d0] sm:$0xff]  ;;  %1300 = vst [vmem:[%s10260_s6 + $0xd8] sm:$0xff] %v1299_v27 }
  0x24   : > { %1302 = vst [vmem:[%s10260_s6 + $0xe0] sm:$0xff] %v1301_v28  ;;  %1304 = vst [vmem:[%s10260_s6 + $0xe8] sm:$0xff] %v1303_v29  ;;  %v1305_v30 = vld [vmem:[%s10255_s5 + $0x1e0] sm:$0xff]  ;;  %v1307_v31 = vld [vmem:[%s10255_s5 + $0x1f0] sm:$0xff] }
  0x25   : > { %v1309_v32 = vld [vmem:[%s10255_s5 + $0x200] sm:$0xff]  ;;  %1306 = vst [vmem:[%s10260_s6 + $0xf0] sm:$0xff] %v1305_v30  ;;  %1308 = vst [vmem:[%s10260_s6 + $0xf8] sm:$0xff] %v1307_v31  ;;  %v1311_v33 = vld [vmem:[%s10255_s5 + $0x210] sm:$0xff] }
  0x26   : > { %1310 = vst [vmem:[%s10260_s6 + $0x100] sm:$0xff] %v1309_v32  ;;  %v1313_v34 = vld [vmem:[%s10255_s5 + $0x220] sm:$0xff]  ;;  %v1315_v35 = vld [vmem:[%s10255_s5 + $0x230] sm:$0xff]  ;;  %1312 = vst [vmem:[%s10260_s6 + $0x108] sm:$0xff] %v1311_v33 }
  0x27   : > { %1314 = vst [vmem:[%s10260_s6 + $0x110] sm:$0xff] %v1313_v34  ;;  %1316 = vst [vmem:[%s10260_s6 + $0x118] sm:$0xff] %v1315_v35  ;;  %v1317_v36 = vld [vmem:[%s10255_s5 + $0x240] sm:$0xff]  ;;  %v1319_v37 = vld [vmem:[%s10255_s5 + $0x250] sm:$0xff] }
  0x28   : > { %v1321_v38 = vld [vmem:[%s10255_s5 + $0x260] sm:$0xff]  ;;  %1318 = vst [vmem:[%s10260_s6 + $0x120] sm:$0xff] %v1317_v36  ;;  %1320 = vst [vmem:[%s10260_s6 + $0x128] sm:$0xff] %v1319_v37  ;;  %v1323_v39 = vld [vmem:[%s10255_s5 + $0x270] sm:$0xff] }
  0x29   : > { %1322 = vst [vmem:[%s10260_s6 + $0x130] sm:$0xff] %v1321_v38  ;;  %v1325_v40 = vld [vmem:[%s10255_s5 + $0x280] sm:$0xff]  ;;  %v1327_v41 = vld [vmem:[%s10255_s5 + $0x290] sm:$0xff]  ;;  %1324 = vst [vmem:[%s10260_s6 + $0x138] sm:$0xff] %v1323_v39 }
  0x2a   : > { %1326 = vst [vmem:[%s10260_s6 + $0x140] sm:$0xff] %v1325_v40  ;;  %1328 = vst [vmem:[%s10260_s6 + $0x148] sm:$0xff] %v1327_v41  ;;  %v1329_v42 = vld [vmem:[%s10255_s5 + $0x2a0] sm:$0xff]  ;;  %v1331_v43 = vld [vmem:[%s10255_s5 + $0x2b0] sm:$0xff] }
  0x2b   : > { %v1333_v44 = vld [vmem:[%s10255_s5 + $0x2c0] sm:$0xff]  ;;  %1330 = vst [vmem:[%s10260_s6 + $0x150] sm:$0xff] %v1329_v42  ;;  %1332 = vst [vmem:[%s10260_s6 + $0x158] sm:$0xff] %v1331_v43  ;;  %v1335_v45 = vld [vmem:[%s10255_s5 + $0x2d0] sm:$0xff] }
  0x2c   : > { %1334 = vst [vmem:[%s10260_s6 + $0x160] sm:$0xff] %v1333_v44  ;;  %v1337_v46 = vld [vmem:[%s10255_s5 + $0x2e0] sm:$0xff]  ;;  %v1339_v47 = vld [vmem:[%s10255_s5 + $0x2f0] sm:$0xff]  ;;  %1336 = vst [vmem:[%s10260_s6 + $0x168] sm:$0xff] %v1335_v45 }
  0x2d   : > { %1338 = vst [vmem:[%s10260_s6 + $0x170] sm:$0xff] %v1337_v46  ;;  %1340 = vst [vmem:[%s10260_s6 + $0x178] sm:$0xff] %v1339_v47  ;;  %v1341_v48 = vld [vmem:[%s10255_s5 + $0x300] sm:$0xff]  ;;  %v1343_v49 = vld [vmem:[%s10255_s5 + $0x310] sm:$0xff] }
  0x2e   : > { %v1345_v50 = vld [vmem:[%s10255_s5 + $0x320] sm:$0xff]  ;;  %1342 = vst [vmem:[%s10260_s6 + $0x180] sm:$0xff] %v1341_v48  ;;  %1344 = vst [vmem:[%s10260_s6 + $0x188] sm:$0xff] %v1343_v49  ;;  %v1347_v51 = vld [vmem:[%s10255_s5 + $0x330] sm:$0xff] }
  0x2f   : > { %1346 = vst [vmem:[%s10260_s6 + $0x190] sm:$0xff] %v1345_v50  ;;  %v1349_v52 = vld [vmem:[%s10255_s5 + $0x340] sm:$0xff]  ;;  %v1351_v53 = vld [vmem:[%s10255_s5 + $0x350] sm:$0xff]  ;;  %1348 = vst [vmem:[%s10260_s6 + $0x198] sm:$0xff] %v1347_v51 }
  0x30   : > { %1350 = vst [vmem:[%s10260_s6 + $0x1a0] sm:$0xff] %v1349_v52  ;;  %1352 = vst [vmem:[%s10260_s6 + $0x1a8] sm:$0xff] %v1351_v53  ;;  %v1353_v54 = vld [vmem:[%s10255_s5 + $0x360] sm:$0xff]  ;;  %v1355_v55 = vld [vmem:[%s10255_s5 + $0x370] sm:$0xff] }
  0x31   : > { %v1357_v56 = vld [vmem:[%s10255_s5 + $0x380] sm:$0xff]  ;;  %1354 = vst [vmem:[%s10260_s6 + $0x1b0] sm:$0xff] %v1353_v54  ;;  %1356 = vst [vmem:[%s10260_s6 + $0x1b8] sm:$0xff] %v1355_v55  ;;  %v1359_v57 = vld [vmem:[%s10255_s5 + $0x390] sm:$0xff] }
  0x32   : > { %1358 = vst [vmem:[%s10260_s6 + $0x1c0] sm:$0xff] %v1357_v56  ;;  %v1361_v58 = vld [vmem:[%s10255_s5 + $0x3a0] sm:$0xff]  ;;  %v1363_v59 = vld [vmem:[%s10255_s5 + $0x3b0] sm:$0xff]  ;;  %1360 = vst [vmem:[%s10260_s6 + $0x1c8] sm:$0xff] %v1359_v57 }
  0x33   : > { %1362 = vst [vmem:[%s10260_s6 + $0x1d0] sm:$0xff] %v1361_v58  ;;  %1364 = vst [vmem:[%s10260_s6 + $0x1d8] sm:$0xff] %v1363_v59  ;;  %v1365_v60 = vld [vmem:[%s10255_s5 + $0x3c0] sm:$0xff]  ;;  %v1367_v61 = vld [vmem:[%s10255_s5 + $0x3d0] sm:$0xff] }
  0x34   : > { %v1369_v62 = vld [vmem:[%s10255_s5 + $0x3e0] sm:$0xff]  ;;  %1366 = vst [vmem:[%s10260_s6 + $0x1e0] sm:$0xff] %v1365_v60  ;;  %1368 = vst [vmem:[%s10260_s6 + $0x1e8] sm:$0xff] %v1367_v61  ;;  %v1371_v63 = vld [vmem:[%s10255_s5 + $0x3f0] sm:$0xff] }
  0x35   : > { %1370 = vst [vmem:[%s10260_s6 + $0x1f0] sm:$0xff] %v1369_v62  ;;  %v1373_v0 = vld [vmem:[%s10255_s5 + $0x400] sm:$0xff]  ;;  %v1375_v1 = vld [vmem:[%s10255_s5 + $0x410] sm:$0xff]  ;;  %1372 = vst [vmem:[%s10260_s6 + $0x1f8] sm:$0xff] %v1371_v63 }
  0x36   : > { %1374 = vst [vmem:[%s10260_s6 + $0x200] sm:$0xff] %v1373_v0  ;;  %1376 = vst [vmem:[%s10260_s6 + $0x208] sm:$0xff] %v1375_v1  ;;  %v1377_v2 = vld [vmem:[%s10255_s5 + $0x420] sm:$0xff]  ;;  %v1379_v3 = vld [vmem:[%s10255_s5 + $0x430] sm:$0xff] }
  0x37   : > { %v1381_v4 = vld [vmem:[%s10255_s5 + $0x440] sm:$0xff]  ;;  %1378 = vst [vmem:[%s10260_s6 + $0x210] sm:$0xff] %v1377_v2  ;;  %1380 = vst [vmem:[%s10260_s6 + $0x218] sm:$0xff] %v1379_v3  ;;  %v1383_v5 = vld [vmem:[%s10255_s5 + $0x450] sm:$0xff] }
  0x38   : > { %1382 = vst [vmem:[%s10260_s6 + $0x220] sm:$0xff] %v1381_v4  ;;  %v1385_v6 = vld [vmem:[%s10255_s5 + $0x460] sm:$0xff]  ;;  %v1387_v7 = vld [vmem:[%s10255_s5 + $0x470] sm:$0xff]  ;;  %1384 = vst [vmem:[%s10260_s6 + $0x228] sm:$0xff] %v1383_v5 }
  0x39   : > { %1386 = vst [vmem:[%s10260_s6 + $0x230] sm:$0xff] %v1385_v6  ;;  %1388 = vst [vmem:[%s10260_s6 + $0x238] sm:$0xff] %v1387_v7  ;;  %v1389_v8 = vld [vmem:[%s10255_s5 + $0x480] sm:$0xff]  ;;  %v1391_v9 = vld [vmem:[%s10255_s5 + $0x490] sm:$0xff] }
  0x3a   : > { %v1393_v10 = vld [vmem:[%s10255_s5 + $0x4a0] sm:$0xff]  ;;  %1390 = vst [vmem:[%s10260_s6 + $0x240] sm:$0xff] %v1389_v8  ;;  %1392 = vst [vmem:[%s10260_s6 + $0x248] sm:$0xff] %v1391_v9  ;;  %v1395_v11 = vld [vmem:[%s10255_s5 + $0x4b0] sm:$0xff] }
  0x3b   : > { %1394 = vst [vmem:[%s10260_s6 + $0x250] sm:$0xff] %v1393_v10  ;;  %v1397_v12 = vld [vmem:[%s10255_s5 + $0x4c0] sm:$0xff]  ;;  %v1399_v13 = vld [vmem:[%s10255_s5 + $0x4d0] sm:$0xff]  ;;  %1396 = vst [vmem:[%s10260_s6 + $0x258] sm:$0xff] %v1395_v11 }
  0x3c   : > { %1398 = vst [vmem:[%s10260_s6 + $0x260] sm:$0xff] %v1397_v12  ;;  %1400 = vst [vmem:[%s10260_s6 + $0x268] sm:$0xff] %v1399_v13  ;;  %v1401_v14 = vld [vmem:[%s10255_s5 + $0x4e0] sm:$0xff]  ;;  %v1403_v15 = vld [vmem:[%s10255_s5 + $0x4f0] sm:$0xff] }
  0x3d   : > { %v1405_v16 = vld [vmem:[%s10255_s5 + $0x500] sm:$0xff]  ;;  %1402 = vst [vmem:[%s10260_s6 + $0x270] sm:$0xff] %v1401_v14  ;;  %1404 = vst [vmem:[%s10260_s6 + $0x278] sm:$0xff] %v1403_v15  ;;  %v1407_v17 = vld [vmem:[%s10255_s5 + $0x510] sm:$0xff] }
  0x3e   : > { %1406 = vst [vmem:[%s10260_s6 + $0x280] sm:$0xff] %v1405_v16  ;;  %v1409_v18 = vld [vmem:[%s10255_s5 + $0x520] sm:$0xff]  ;;  %v1411_v19 = vld [vmem:[%s10255_s5 + $0x530] sm:$0xff]  ;;  %1408 = vst [vmem:[%s10260_s6 + $0x288] sm:$0xff] %v1407_v17 }
  0x3f   : > { %1410 = vst [vmem:[%s10260_s6 + $0x290] sm:$0xff] %v1409_v18  ;;  %1412 = vst [vmem:[%s10260_s6 + $0x298] sm:$0xff] %v1411_v19  ;;  %v1413_v20 = vld [vmem:[%s10255_s5 + $0x540] sm:$0xff]  ;;  %v1415_v21 = vld [vmem:[%s10255_s5 + $0x550] sm:$0xff] }
  0x40   : > { %v1417_v22 = vld [vmem:[%s10255_s5 + $0x560] sm:$0xff]  ;;  %1414 = vst [vmem:[%s10260_s6 + $0x2a0] sm:$0xff] %v1413_v20  ;;  %1416 = vst [vmem:[%s10260_s6 + $0x2a8] sm:$0xff] %v1415_v21  ;;  %v1419_v23 = vld [vmem:[%s10255_s5 + $0x570] sm:$0xff] }
  0x41   : > { %1418 = vst [vmem:[%s10260_s6 + $0x2b0] sm:$0xff] %v1417_v22  ;;  %v1421_v24 = vld [vmem:[%s10255_s5 + $0x580] sm:$0xff]  ;;  %v1423_v25 = vld [vmem:[%s10255_s5 + $0x590] sm:$0xff]  ;;  %1420 = vst [vmem:[%s10260_s6 + $0x2b8] sm:$0xff] %v1419_v23 }
  0x42   : > { %1422 = vst [vmem:[%s10260_s6 + $0x2c0] sm:$0xff] %v1421_v24  ;;  %1424 = vst [vmem:[%s10260_s6 + $0x2c8] sm:$0xff] %v1423_v25  ;;  %v1425_v26 = vld [vmem:[%s10255_s5 + $0x5a0] sm:$0xff]  ;;  %v1427_v27 = vld [vmem:[%s10255_s5 + $0x5b0] sm:$0xff] }
  0x43   : > { %v1429_v28 = vld [vmem:[%s10255_s5 + $0x5c0] sm:$0xff]  ;;  %1426 = vst [vmem:[%s10260_s6 + $0x2d0] sm:$0xff] %v1425_v26  ;;  %1428 = vst [vmem:[%s10260_s6 + $0x2d8] sm:$0xff] %v1427_v27  ;;  %v1431_v29 = vld [vmem:[%s10255_s5 + $0x5d0] sm:$0xff] }
  0x44   : > { %1430 = vst [vmem:[%s10260_s6 + $0x2e0] sm:$0xff] %v1429_v28  ;;  %v1433_v30 = vld [vmem:[%s10255_s5 + $0x5e0] sm:$0xff]  ;;  %v1435_v31 = vld [vmem:[%s10255_s5 + $0x5f0] sm:$0xff]  ;;  %1432 = vst [vmem:[%s10260_s6 + $0x2e8] sm:$0xff] %v1431_v29 }
  0x45   : > { %1434 = vst [vmem:[%s10260_s6 + $0x2f0] sm:$0xff] %v1433_v30  ;;  %1436 = vst [vmem:[%s10260_s6 + $0x2f8] sm:$0xff] %v1435_v31  ;;  %v1437_v32 = vld [vmem:[%s10255_s5 + $0x600] sm:$0xff]  ;;  %v1439_v33 = vld [vmem:[%s10255_s5 + $0x610] sm:$0xff] }
  0x46   : > { %v1441_v34 = vld [vmem:[%s10255_s5 + $0x620] sm:$0xff]  ;;  %1438 = vst [vmem:[%s10260_s6 + $0x300] sm:$0xff] %v1437_v32  ;;  %1440 = vst [vmem:[%s10260_s6 + $0x308] sm:$0xff] %v1439_v33  ;;  %v1443_v35 = vld [vmem:[%s10255_s5 + $0x630] sm:$0xff] }
  0x47   : > { %1442 = vst [vmem:[%s10260_s6 + $0x310] sm:$0xff] %v1441_v34  ;;  %v1445_v36 = vld [vmem:[%s10255_s5 + $0x640] sm:$0xff]  ;;  %v1447_v37 = vld [vmem:[%s10255_s5 + $0x650] sm:$0xff]  ;;  %1444 = vst [vmem:[%s10260_s6 + $0x318] sm:$0xff] %v1443_v35 }
  0x48   : > { %1446 = vst [vmem:[%s10260_s6 + $0x320] sm:$0xff] %v1445_v36  ;;  %1448 = vst [vmem:[%s10260_s6 + $0x328] sm:$0xff] %v1447_v37  ;;  %v1449_v38 = vld [vmem:[%s10255_s5 + $0x660] sm:$0xff]  ;;  %v1451_v39 = vld [vmem:[%s10255_s5 + $0x670] sm:$0xff] }
  0x49   : > { %v1453_v40 = vld [vmem:[%s10255_s5 + $0x680] sm:$0xff]  ;;  %1450 = vst [vmem:[%s10260_s6 + $0x330] sm:$0xff] %v1449_v38  ;;  %1452 = vst [vmem:[%s10260_s6 + $0x338] sm:$0xff] %v1451_v39  ;;  %v1455_v41 = vld [vmem:[%s10255_s5 + $0x690] sm:$0xff] }
  0x4a   : > { %1454 = vst [vmem:[%s10260_s6 + $0x340] sm:$0xff] %v1453_v40  ;;  %v1457_v42 = vld [vmem:[%s10255_s5 + $0x6a0] sm:$0xff]  ;;  %v1459_v43 = vld [vmem:[%s10255_s5 + $0x6b0] sm:$0xff]  ;;  %1456 = vst [vmem:[%s10260_s6 + $0x348] sm:$0xff] %v1455_v41 }
  0x4b   : > { %1458 = vst [vmem:[%s10260_s6 + $0x350] sm:$0xff] %v1457_v42  ;;  %1460 = vst [vmem:[%s10260_s6 + $0x358] sm:$0xff] %v1459_v43  ;;  %v1461_v44 = vld [vmem:[%s10255_s5 + $0x6c0] sm:$0xff]  ;;  %v1463_v45 = vld [vmem:[%s10255_s5 + $0x6d0] sm:$0xff] }
  0x4c   : > { %v1465_v46 = vld [vmem:[%s10255_s5 + $0x6e0] sm:$0xff]  ;;  %1462 = vst [vmem:[%s10260_s6 + $0x360] sm:$0xff] %v1461_v44  ;;  %1464 = vst [vmem:[%s10260_s6 + $0x368] sm:$0xff] %v1463_v45  ;;  %v1467_v47 = vld [vmem:[%s10255_s5 + $0x6f0] sm:$0xff] }
  0x4d   : > { %1466 = vst [vmem:[%s10260_s6 + $0x370] sm:$0xff] %v1465_v46  ;;  %v1469_v48 = vld [vmem:[%s10255_s5 + $0x700] sm:$0xff]  ;;  %v1471_v49 = vld [vmem:[%s10255_s5 + $0x710] sm:$0xff]  ;;  %1468 = vst [vmem:[%s10260_s6 + $0x378] sm:$0xff] %v1467_v47 }
  0x4e   : > { %1470 = vst [vmem:[%s10260_s6 + $0x380] sm:$0xff] %v1469_v48  ;;  %1472 = vst [vmem:[%s10260_s6 + $0x388] sm:$0xff] %v1471_v49  ;;  %v1473_v50 = vld [vmem:[%s10255_s5 + $0x720] sm:$0xff]  ;;  %v1475_v51 = vld [vmem:[%s10255_s5 + $0x730] sm:$0xff] }
  0x4f   : > { %v1477_v52 = vld [vmem:[%s10255_s5 + $0x740] sm:$0xff]  ;;  %1474 = vst [vmem:[%s10260_s6 + $0x390] sm:$0xff] %v1473_v50  ;;  %1476 = vst [vmem:[%s10260_s6 + $0x398] sm:$0xff] %v1475_v51  ;;  %v1479_v53 = vld [vmem:[%s10255_s5 + $0x750] sm:$0xff] }
  0x50   : > { %1478 = vst [vmem:[%s10260_s6 + $0x3a0] sm:$0xff] %v1477_v52  ;;  %v1481_v54 = vld [vmem:[%s10255_s5 + $0x760] sm:$0xff]  ;;  %v1483_v55 = vld [vmem:[%s10255_s5 + $0x770] sm:$0xff]  ;;  %1480 = vst [vmem:[%s10260_s6 + $0x3a8] sm:$0xff] %v1479_v53 }
  0x51   : > { %1482 = vst [vmem:[%s10260_s6 + $0x3b0] sm:$0xff] %v1481_v54  ;;  %1484 = vst [vmem:[%s10260_s6 + $0x3b8] sm:$0xff] %v1483_v55  ;;  %v1485_v56 = vld [vmem:[%s10255_s5 + $0x780] sm:$0xff]  ;;  %v1487_v57 = vld [vmem:[%s10255_s5 + $0x790] sm:$0xff] }
  0x52   : > { %v1489_v58 = vld [vmem:[%s10255_s5 + $0x7a0] sm:$0xff]  ;;  %1486 = vst [vmem:[%s10260_s6 + $0x3c0] sm:$0xff] %v1485_v56  ;;  %1488 = vst [vmem:[%s10260_s6 + $0x3c8] sm:$0xff] %v1487_v57  ;;  %v1491_v59 = vld [vmem:[%s10255_s5 + $0x7b0] sm:$0xff] }
  0x53   : > { %1490 = vst [vmem:[%s10260_s6 + $0x3d0] sm:$0xff] %v1489_v58  ;;  %v1493_v60 = vld [vmem:[%s10255_s5 + $0x7c0] sm:$0xff]  ;;  %v1495_v61 = vld [vmem:[%s10255_s5 + $0x7d0] sm:$0xff]  ;;  %1492 = vst [vmem:[%s10260_s6 + $0x3d8] sm:$0xff] %v1491_v59 }
  0x54   : > { %1494 = vst [vmem:[%s10260_s6 + $0x3e0] sm:$0xff] %v1493_v60  ;;  %1496 = vst [vmem:[%s10260_s6 + $0x3e8] sm:$0xff] %v1495_v61  ;;  %v1497_v62 = vld [vmem:[%s10255_s5 + $0x7e0] sm:$0xff]  ;;  %v1499_v63 = vld [vmem:[%s10255_s5 + $0x7f0] sm:$0xff] }
  0x55   : > { %v1501_v0 = vld [vmem:[%s10255_s5 + $0x800] sm:$0xff]  ;;  %1498 = vst [vmem:[%s10260_s6 + $0x3f0] sm:$0xff] %v1497_v62  ;;  %1500 = vst [vmem:[%s10260_s6 + $0x3f8] sm:$0xff] %v1499_v63  ;;  %v1503_v1 = vld [vmem:[%s10255_s5 + $0x810] sm:$0xff] }
  0x56   : > { %1502 = vst [vmem:[%s10260_s6 + $0x400] sm:$0xff] %v1501_v0  ;;  %v1505_v2 = vld [vmem:[%s10255_s5 + $0x820] sm:$0xff]  ;;  %v1507_v3 = vld [vmem:[%s10255_s5 + $0x830] sm:$0xff]  ;;  %1504 = vst [vmem:[%s10260_s6 + $0x408] sm:$0xff] %v1503_v1 }
  0x57   : > { %1506 = vst [vmem:[%s10260_s6 + $0x410] sm:$0xff] %v1505_v2  ;;  %1508 = vst [vmem:[%s10260_s6 + $0x418] sm:$0xff] %v1507_v3  ;;  %v1509_v4 = vld [vmem:[%s10255_s5 + $0x840] sm:$0xff]  ;;  %v1511_v5 = vld [vmem:[%s10255_s5 + $0x850] sm:$0xff] }
  0x58   : > { %v1513_v6 = vld [vmem:[%s10255_s5 + $0x860] sm:$0xff]  ;;  %1510 = vst [vmem:[%s10260_s6 + $0x420] sm:$0xff] %v1509_v4  ;;  %1512 = vst [vmem:[%s10260_s6 + $0x428] sm:$0xff] %v1511_v5  ;;  %v1515_v7 = vld [vmem:[%s10255_s5 + $0x870] sm:$0xff] }
  0x59   : > { %1514 = vst [vmem:[%s10260_s6 + $0x430] sm:$0xff] %v1513_v6  ;;  %v1517_v8 = vld [vmem:[%s10255_s5 + $0x880] sm:$0xff]  ;;  %v1519_v9 = vld [vmem:[%s10255_s5 + $0x890] sm:$0xff]  ;;  %1516 = vst [vmem:[%s10260_s6 + $0x438] sm:$0xff] %v1515_v7 }
  0x5a   : > { %1518 = vst [vmem:[%s10260_s6 + $0x440] sm:$0xff] %v1517_v8  ;;  %1520 = vst [vmem:[%s10260_s6 + $0x448] sm:$0xff] %v1519_v9  ;;  %v1521_v10 = vld [vmem:[%s10255_s5 + $0x8a0] sm:$0xff]  ;;  %v1523_v11 = vld [vmem:[%s10255_s5 + $0x8b0] sm:$0xff] }
  0x5b   : > { %v1525_v12 = vld [vmem:[%s10255_s5 + $0x8c0] sm:$0xff]  ;;  %1522 = vst [vmem:[%s10260_s6 + $0x450] sm:$0xff] %v1521_v10  ;;  %1524 = vst [vmem:[%s10260_s6 + $0x458] sm:$0xff] %v1523_v11  ;;  %v1527_v13 = vld [vmem:[%s10255_s5 + $0x8d0] sm:$0xff] }
  0x5c   : > { %1526 = vst [vmem:[%s10260_s6 + $0x460] sm:$0xff] %v1525_v12  ;;  %v1529_v14 = vld [vmem:[%s10255_s5 + $0x8e0] sm:$0xff]  ;;  %v1531_v15 = vld [vmem:[%s10255_s5 + $0x8f0] sm:$0xff]  ;;  %1528 = vst [vmem:[%s10260_s6 + $0x468] sm:$0xff] %v1527_v13 }
  0x5d   : > { %1530 = vst [vmem:[%s10260_s6 + $0x470] sm:$0xff] %v1529_v14  ;;  %1532 = vst [vmem:[%s10260_s6 + $0x478] sm:$0xff] %v1531_v15  ;;  %v1533_v16 = vld [vmem:[%s10255_s5 + $0x900] sm:$0xff]  ;;  %v1535_v17 = vld [vmem:[%s10255_s5 + $0x910] sm:$0xff] }
  0x5e   : > { %v1537_v18 = vld [vmem:[%s10255_s5 + $0x920] sm:$0xff]  ;;  %1534 = vst [vmem:[%s10260_s6 + $0x480] sm:$0xff] %v1533_v16  ;;  %1536 = vst [vmem:[%s10260_s6 + $0x488] sm:$0xff] %v1535_v17  ;;  %v1539_v19 = vld [vmem:[%s10255_s5 + $0x930] sm:$0xff] }
  0x5f   : > { %1538 = vst [vmem:[%s10260_s6 + $0x490] sm:$0xff] %v1537_v18  ;;  %v1541_v20 = vld [vmem:[%s10255_s5 + $0x940] sm:$0xff]  ;;  %v1543_v21 = vld [vmem:[%s10255_s5 + $0x950] sm:$0xff]  ;;  %1540 = vst [vmem:[%s10260_s6 + $0x498] sm:$0xff] %v1539_v19 }
  0x60   : > { %1542 = vst [vmem:[%s10260_s6 + $0x4a0] sm:$0xff] %v1541_v20  ;;  %1544 = vst [vmem:[%s10260_s6 + $0x4a8] sm:$0xff] %v1543_v21  ;;  %v1545_v22 = vld [vmem:[%s10255_s5 + $0x960] sm:$0xff]  ;;  %v1547_v23 = vld [vmem:[%s10255_s5 + $0x970] sm:$0xff] }
  0x61   : > { %v1549_v24 = vld [vmem:[%s10255_s5 + $0x980] sm:$0xff]  ;;  %1546 = vst [vmem:[%s10260_s6 + $0x4b0] sm:$0xff] %v1545_v22  ;;  %1548 = vst [vmem:[%s10260_s6 + $0x4b8] sm:$0xff] %v1547_v23  ;;  %v1551_v25 = vld [vmem:[%s10255_s5 + $0x990] sm:$0xff] }
  0x62   : > { %1550 = vst [vmem:[%s10260_s6 + $0x4c0] sm:$0xff] %v1549_v24  ;;  %v1553_v26 = vld [vmem:[%s10255_s5 + $0x9a0] sm:$0xff]  ;;  %v1555_v27 = vld [vmem:[%s10255_s5 + $0x9b0] sm:$0xff]  ;;  %1552 = vst [vmem:[%s10260_s6 + $0x4c8] sm:$0xff] %v1551_v25 }
  0x63   : > { %1554 = vst [vmem:[%s10260_s6 + $0x4d0] sm:$0xff] %v1553_v26  ;;  %1556 = vst [vmem:[%s10260_s6 + $0x4d8] sm:$0xff] %v1555_v27  ;;  %v1557_v28 = vld [vmem:[%s10255_s5 + $0x9c0] sm:$0xff]  ;;  %v1559_v29 = vld [vmem:[%s10255_s5 + $0x9d0] sm:$0xff] }
  0x64   : > { %v1561_v30 = vld [vmem:[%s10255_s5 + $0x9e0] sm:$0xff]  ;;  %1558 = vst [vmem:[%s10260_s6 + $0x4e0] sm:$0xff] %v1557_v28  ;;  %1560 = vst [vmem:[%s10260_s6 + $0x4e8] sm:$0xff] %v1559_v29  ;;  %v1563_v31 = vld [vmem:[%s10255_s5 + $0x9f0] sm:$0xff] }
  0x65   : > { %1562 = vst [vmem:[%s10260_s6 + $0x4f0] sm:$0xff] %v1561_v30  ;;  %v1565_v32 = vld [vmem:[%s10255_s5 + $0xa00] sm:$0xff]  ;;  %v1567_v33 = vld [vmem:[%s10255_s5 + $0xa10] sm:$0xff]  ;;  %1564 = vst [vmem:[%s10260_s6 + $0x4f8] sm:$0xff] %v1563_v31 }
  0x66   : > { %1566 = vst [vmem:[%s10260_s6 + $0x500] sm:$0xff] %v1565_v32  ;;  %1568 = vst [vmem:[%s10260_s6 + $0x508] sm:$0xff] %v1567_v33  ;;  %v1569_v34 = vld [vmem:[%s10255_s5 + $0xa20] sm:$0xff]  ;;  %v1571_v35 = vld [vmem:[%s10255_s5 + $0xa30] sm:$0xff] }
  0x67   : > { %v1573_v36 = vld [vmem:[%s10255_s5 + $0xa40] sm:$0xff]  ;;  %1570 = vst [vmem:[%s10260_s6 + $0x510] sm:$0xff] %v1569_v34  ;;  %1572 = vst [vmem:[%s10260_s6 + $0x518] sm:$0xff] %v1571_v35  ;;  %v1575_v37 = vld [vmem:[%s10255_s5 + $0xa50] sm:$0xff] }
  0x68   : > { %1574 = vst [vmem:[%s10260_s6 + $0x520] sm:$0xff] %v1573_v36  ;;  %v1577_v38 = vld [vmem:[%s10255_s5 + $0xa60] sm:$0xff]  ;;  %v1579_v39 = vld [vmem:[%s10255_s5 + $0xa70] sm:$0xff]  ;;  %1576 = vst [vmem:[%s10260_s6 + $0x528] sm:$0xff] %v1575_v37 }
  0x69   : > { %1578 = vst [vmem:[%s10260_s6 + $0x530] sm:$0xff] %v1577_v38  ;;  %1580 = vst [vmem:[%s10260_s6 + $0x538] sm:$0xff] %v1579_v39  ;;  %v1581_v40 = vld [vmem:[%s10255_s5 + $0xa80] sm:$0xff]  ;;  %v1583_v41 = vld [vmem:[%s10255_s5 + $0xa90] sm:$0xff] }
  0x6a   : > { %v1585_v42 = vld [vmem:[%s10255_s5 + $0xaa0] sm:$0xff]  ;;  %1582 = vst [vmem:[%s10260_s6 + $0x540] sm:$0xff] %v1581_v40  ;;  %1584 = vst [vmem:[%s10260_s6 + $0x548] sm:$0xff] %v1583_v41  ;;  %v1587_v43 = vld [vmem:[%s10255_s5 + $0xab0] sm:$0xff] }
  0x6b   : > { %1586 = vst [vmem:[%s10260_s6 + $0x550] sm:$0xff] %v1585_v42  ;;  %v1589_v44 = vld [vmem:[%s10255_s5 + $0xac0] sm:$0xff]  ;;  %v1591_v45 = vld [vmem:[%s10255_s5 + $0xad0] sm:$0xff]  ;;  %1588 = vst [vmem:[%s10260_s6 + $0x558] sm:$0xff] %v1587_v43 }
  0x6c   : > { %1590 = vst [vmem:[%s10260_s6 + $0x560] sm:$0xff] %v1589_v44  ;;  %1592 = vst [vmem:[%s10260_s6 + $0x568] sm:$0xff] %v1591_v45  ;;  %v1593_v46 = vld [vmem:[%s10255_s5 + $0xae0] sm:$0xff]  ;;  %v1595_v47 = vld [vmem:[%s10255_s5 + $0xaf0] sm:$0xff] }
  0x6d   : > { %v1597_v48 = vld [vmem:[%s10255_s5 + $0xb00] sm:$0xff]  ;;  %1594 = vst [vmem:[%s10260_s6 + $0x570] sm:$0xff] %v1593_v46  ;;  %1596 = vst [vmem:[%s10260_s6 + $0x578] sm:$0xff] %v1595_v47  ;;  %v1599_v49 = vld [vmem:[%s10255_s5 + $0xb10] sm:$0xff] }
  0x6e   : > { %1598 = vst [vmem:[%s10260_s6 + $0x580] sm:$0xff] %v1597_v48  ;;  %v1601_v50 = vld [vmem:[%s10255_s5 + $0xb20] sm:$0xff]  ;;  %v1603_v51 = vld [vmem:[%s10255_s5 + $0xb30] sm:$0xff]  ;;  %1600 = vst [vmem:[%s10260_s6 + $0x588] sm:$0xff] %v1599_v49 }
  0x6f   : > { %1602 = vst [vmem:[%s10260_s6 + $0x590] sm:$0xff] %v1601_v50  ;;  %1604 = vst [vmem:[%s10260_s6 + $0x598] sm:$0xff] %v1603_v51  ;;  %v1605_v52 = vld [vmem:[%s10255_s5 + $0xb40] sm:$0xff]  ;;  %v1607_v53 = vld [vmem:[%s10255_s5 + $0xb50] sm:$0xff] }
  0x70   : > { %v1609_v54 = vld [vmem:[%s10255_s5 + $0xb60] sm:$0xff]  ;;  %1606 = vst [vmem:[%s10260_s6 + $0x5a0] sm:$0xff] %v1605_v52  ;;  %1608 = vst [vmem:[%s10260_s6 + $0x5a8] sm:$0xff] %v1607_v53  ;;  %v1611_v55 = vld [vmem:[%s10255_s5 + $0xb70] sm:$0xff] }
  0x71   : > { %1610 = vst [vmem:[%s10260_s6 + $0x5b0] sm:$0xff] %v1609_v54  ;;  %v1613_v56 = vld [vmem:[%s10255_s5 + $0xb80] sm:$0xff]  ;;  %v1615_v57 = vld [vmem:[%s10255_s5 + $0xb90] sm:$0xff]  ;;  %1612 = vst [vmem:[%s10260_s6 + $0x5b8] sm:$0xff] %v1611_v55 }
  0x72   : > { %1614 = vst [vmem:[%s10260_s6 + $0x5c0] sm:$0xff] %v1613_v56  ;;  %1616 = vst [vmem:[%s10260_s6 + $0x5c8] sm:$0xff] %v1615_v57  ;;  %v1617_v58 = vld [vmem:[%s10255_s5 + $0xba0] sm:$0xff]  ;;  %v1619_v59 = vld [vmem:[%s10255_s5 + $0xbb0] sm:$0xff] }
  0x73   : > { %v1621_v60 = vld [vmem:[%s10255_s5 + $0xbc0] sm:$0xff]  ;;  %1618 = vst [vmem:[%s10260_s6 + $0x5d0] sm:$0xff] %v1617_v58  ;;  %1620 = vst [vmem:[%s10260_s6 + $0x5d8] sm:$0xff] %v1619_v59  ;;  %v1623_v61 = vld [vmem:[%s10255_s5 + $0xbd0] sm:$0xff] }
  0x74   : > { %1622 = vst [vmem:[%s10260_s6 + $0x5e0] sm:$0xff] %v1621_v60  ;;  %v1625_v62 = vld [vmem:[%s10255_s5 + $0xbe0] sm:$0xff]  ;;  %v1627_v63 = vld [vmem:[%s10255_s5 + $0xbf0] sm:$0xff]  ;;  %1624 = vst [vmem:[%s10260_s6 + $0x5e8] sm:$0xff] %v1623_v61 }
  0x75   : > { %1626 = vst [vmem:[%s10260_s6 + $0x5f0] sm:$0xff] %v1625_v62  ;;  %1628 = vst [vmem:[%s10260_s6 + $0x5f8] sm:$0xff] %v1627_v63  ;;  %v1629_v0 = vld [vmem:[%s10255_s5 + $0xc00] sm:$0xff]  ;;  %v1631_v1 = vld [vmem:[%s10255_s5 + $0xc10] sm:$0xff] }
  0x76   : > { %v1633_v2 = vld [vmem:[%s10255_s5 + $0xc20] sm:$0xff]  ;;  %1630 = vst [vmem:[%s10260_s6 + $0x600] sm:$0xff] %v1629_v0  ;;  %1632 = vst [vmem:[%s10260_s6 + $0x608] sm:$0xff] %v1631_v1  ;;  %v1635_v3 = vld [vmem:[%s10255_s5 + $0xc30] sm:$0xff] }
  0x77   : > { %1634 = vst [vmem:[%s10260_s6 + $0x610] sm:$0xff] %v1633_v2  ;;  %v1637_v4 = vld [vmem:[%s10255_s5 + $0xc40] sm:$0xff]  ;;  %v1639_v5 = vld [vmem:[%s10255_s5 + $0xc50] sm:$0xff]  ;;  %1636 = vst [vmem:[%s10260_s6 + $0x618] sm:$0xff] %v1635_v3 }
  0x78   : > { %1638 = vst [vmem:[%s10260_s6 + $0x620] sm:$0xff] %v1637_v4  ;;  %1640 = vst [vmem:[%s10260_s6 + $0x628] sm:$0xff] %v1639_v5  ;;  %v1641_v6 = vld [vmem:[%s10255_s5 + $0xc60] sm:$0xff]  ;;  %v1643_v7 = vld [vmem:[%s10255_s5 + $0xc70] sm:$0xff] }
  0x79   : > { %v1645_v8 = vld [vmem:[%s10255_s5 + $0xc80] sm:$0xff]  ;;  %1642 = vst [vmem:[%s10260_s6 + $0x630] sm:$0xff] %v1641_v6  ;;  %1644 = vst [vmem:[%s10260_s6 + $0x638] sm:$0xff] %v1643_v7  ;;  %v1647_v9 = vld [vmem:[%s10255_s5 + $0xc90] sm:$0xff] }
  0x7a   : > { %1646 = vst [vmem:[%s10260_s6 + $0x640] sm:$0xff] %v1645_v8  ;;  %v1649_v10 = vld [vmem:[%s10255_s5 + $0xca0] sm:$0xff]  ;;  %v1651_v11 = vld [vmem:[%s10255_s5 + $0xcb0] sm:$0xff]  ;;  %1648 = vst [vmem:[%s10260_s6 + $0x648] sm:$0xff] %v1647_v9 }
  0x7b   : > { %1650 = vst [vmem:[%s10260_s6 + $0x650] sm:$0xff] %v1649_v10  ;;  %1652 = vst [vmem:[%s10260_s6 + $0x658] sm:$0xff] %v1651_v11  ;;  %v1653_v12 = vld [vmem:[%s10255_s5 + $0xcc0] sm:$0xff]  ;;  %v1655_v13 = vld [vmem:[%s10255_s5 + $0xcd0] sm:$0xff] }
  0x7c   : > { %v1657_v14 = vld [vmem:[%s10255_s5 + $0xce0] sm:$0xff]  ;;  %1654 = vst [vmem:[%s10260_s6 + $0x660] sm:$0xff] %v1653_v12  ;;  %1656 = vst [vmem:[%s10260_s6 + $0x668] sm:$0xff] %v1655_v13  ;;  %v1659_v15 = vld [vmem:[%s10255_s5 + $0xcf0] sm:$0xff] }
  0x7d   : > { %1658 = vst [vmem:[%s10260_s6 + $0x670] sm:$0xff] %v1657_v14  ;;  %v1661_v16 = vld [vmem:[%s10255_s5 + $0xd00] sm:$0xff]  ;;  %v1663_v17 = vld [vmem:[%s10255_s5 + $0xd10] sm:$0xff]  ;;  %1660 = vst [vmem:[%s10260_s6 + $0x678] sm:$0xff] %v1659_v15 }
  0x7e   : > { %1662 = vst [vmem:[%s10260_s6 + $0x680] sm:$0xff] %v1661_v16  ;;  %1664 = vst [vmem:[%s10260_s6 + $0x688] sm:$0xff] %v1663_v17  ;;  %v1665_v18 = vld [vmem:[%s10255_s5 + $0xd20] sm:$0xff]  ;;  %v1667_v19 = vld [vmem:[%s10255_s5 + $0xd30] sm:$0xff] }
  0x7f   : > { %v1669_v20 = vld [vmem:[%s10255_s5 + $0xd40] sm:$0xff]  ;;  %1666 = vst [vmem:[%s10260_s6 + $0x690] sm:$0xff] %v1665_v18  ;;  %1668 = vst [vmem:[%s10260_s6 + $0x698] sm:$0xff] %v1667_v19  ;;  %v1671_v21 = vld [vmem:[%s10255_s5 + $0xd50] sm:$0xff] }
  0x80   : > { %1670 = vst [vmem:[%s10260_s6 + $0x6a0] sm:$0xff] %v1669_v20  ;;  %v1673_v22 = vld [vmem:[%s10255_s5 + $0xd60] sm:$0xff]  ;;  %v1675_v23 = vld [vmem:[%s10255_s5 + $0xd70] sm:$0xff]  ;;  %1672 = vst [vmem:[%s10260_s6 + $0x6a8] sm:$0xff] %v1671_v21 }
  0x81   : > { %1674 = vst [vmem:[%s10260_s6 + $0x6b0] sm:$0xff] %v1673_v22  ;;  %1676 = vst [vmem:[%s10260_s6 + $0x6b8] sm:$0xff] %v1675_v23  ;;  %v1677_v24 = vld [vmem:[%s10255_s5 + $0xd80] sm:$0xff]  ;;  %v1679_v25 = vld [vmem:[%s10255_s5 + $0xd90] sm:$0xff] }
  0x82   : > { %v1681_v26 = vld [vmem:[%s10255_s5 + $0xda0] sm:$0xff]  ;;  %1678 = vst [vmem:[%s10260_s6 + $0x6c0] sm:$0xff] %v1677_v24  ;;  %1680 = vst [vmem:[%s10260_s6 + $0x6c8] sm:$0xff] %v1679_v25  ;;  %v1683_v27 = vld [vmem:[%s10255_s5 + $0xdb0] sm:$0xff] }
  0x83   : > { %1682 = vst [vmem:[%s10260_s6 + $0x6d0] sm:$0xff] %v1681_v26  ;;  %v1685_v28 = vld [vmem:[%s10255_s5 + $0xdc0] sm:$0xff]  ;;  %v1687_v29 = vld [vmem:[%s10255_s5 + $0xdd0] sm:$0xff]  ;;  %1684 = vst [vmem:[%s10260_s6 + $0x6d8] sm:$0xff] %v1683_v27 }
  0x84   : > { %1686 = vst [vmem:[%s10260_s6 + $0x6e0] sm:$0xff] %v1685_v28  ;;  %1688 = vst [vmem:[%s10260_s6 + $0x6e8] sm:$0xff] %v1687_v29  ;;  %v1689_v30 = vld [vmem:[%s10255_s5 + $0xde0] sm:$0xff]  ;;  %v1691_v31 = vld [vmem:[%s10255_s5 + $0xdf0] sm:$0xff] }
  0x85   : > { %v1693_v32 = vld [vmem:[%s10255_s5 + $0xe00] sm:$0xff]  ;;  %1690 = vst [vmem:[%s10260_s6 + $0x6f0] sm:$0xff] %v1689_v30  ;;  %1692 = vst [vmem:[%s10260_s6 + $0x6f8] sm:$0xff] %v1691_v31  ;;  %v1695_v33 = vld [vmem:[%s10255_s5 + $0xe10] sm:$0xff] }
  0x86   : > { %1694 = vst [vmem:[%s10260_s6 + $0x700] sm:$0xff] %v1693_v32  ;;  %v1697_v34 = vld [vmem:[%s10255_s5 + $0xe20] sm:$0xff]  ;;  %v1699_v35 = vld [vmem:[%s10255_s5 + $0xe30] sm:$0xff]  ;;  %1696 = vst [vmem:[%s10260_s6 + $0x708] sm:$0xff] %v1695_v33 }
  0x87   : > { %1698 = vst [vmem:[%s10260_s6 + $0x710] sm:$0xff] %v1697_v34  ;;  %1700 = vst [vmem:[%s10260_s6 + $0x718] sm:$0xff] %v1699_v35  ;;  %v1701_v36 = vld [vmem:[%s10255_s5 + $0xe40] sm:$0xff]  ;;  %v1703_v37 = vld [vmem:[%s10255_s5 + $0xe50] sm:$0xff] }
  0x88   : > { %v1705_v38 = vld [vmem:[%s10255_s5 + $0xe60] sm:$0xff]  ;;  %1702 = vst [vmem:[%s10260_s6 + $0x720] sm:$0xff] %v1701_v36  ;;  %1704 = vst [vmem:[%s10260_s6 + $0x728] sm:$0xff] %v1703_v37  ;;  %v1707_v39 = vld [vmem:[%s10255_s5 + $0xe70] sm:$0xff] }
  0x89   : > { %1706 = vst [vmem:[%s10260_s6 + $0x730] sm:$0xff] %v1705_v38  ;;  %v1709_v40 = vld [vmem:[%s10255_s5 + $0xe80] sm:$0xff]  ;;  %v1711_v41 = vld [vmem:[%s10255_s5 + $0xe90] sm:$0xff]  ;;  %1708 = vst [vmem:[%s10260_s6 + $0x738] sm:$0xff] %v1707_v39 }
  0x8a   : > { %1710 = vst [vmem:[%s10260_s6 + $0x740] sm:$0xff] %v1709_v40  ;;  %1712 = vst [vmem:[%s10260_s6 + $0x748] sm:$0xff] %v1711_v41  ;;  %v1713_v42 = vld [vmem:[%s10255_s5 + $0xea0] sm:$0xff]  ;;  %v1715_v43 = vld [vmem:[%s10255_s5 + $0xeb0] sm:$0xff] }
  0x8b   : > { %v1717_v44 = vld [vmem:[%s10255_s5 + $0xec0] sm:$0xff]  ;;  %1714 = vst [vmem:[%s10260_s6 + $0x750] sm:$0xff] %v1713_v42  ;;  %1716 = vst [vmem:[%s10260_s6 + $0x758] sm:$0xff] %v1715_v43  ;;  %v1719_v45 = vld [vmem:[%s10255_s5 + $0xed0] sm:$0xff] }
  0x8c   : > { %1718 = vst [vmem:[%s10260_s6 + $0x760] sm:$0xff] %v1717_v44  ;;  %v1721_v46 = vld [vmem:[%s10255_s5 + $0xee0] sm:$0xff]  ;;  %v1723_v47 = vld [vmem:[%s10255_s5 + $0xef0] sm:$0xff]  ;;  %1720 = vst [vmem:[%s10260_s6 + $0x768] sm:$0xff] %v1719_v45 }
  0x8d   : > { %1722 = vst [vmem:[%s10260_s6 + $0x770] sm:$0xff] %v1721_v46  ;;  %1724 = vst [vmem:[%s10260_s6 + $0x778] sm:$0xff] %v1723_v47  ;;  %v1725_v48 = vld [vmem:[%s10255_s5 + $0xf00] sm:$0xff]  ;;  %v1727_v49 = vld [vmem:[%s10255_s5 + $0xf10] sm:$0xff] }
  0x8e   : > { %v1729_v50 = vld [vmem:[%s10255_s5 + $0xf20] sm:$0xff]  ;;  %1726 = vst [vmem:[%s10260_s6 + $0x780] sm:$0xff] %v1725_v48  ;;  %1728 = vst [vmem:[%s10260_s6 + $0x788] sm:$0xff] %v1727_v49  ;;  %v1731_v51 = vld [vmem:[%s10255_s5 + $0xf30] sm:$0xff] }
  0x8f   : > { %1730 = vst [vmem:[%s10260_s6 + $0x790] sm:$0xff] %v1729_v50  ;;  %v1733_v52 = vld [vmem:[%s10255_s5 + $0xf40] sm:$0xff]  ;;  %v1735_v53 = vld [vmem:[%s10255_s5 + $0xf50] sm:$0xff]  ;;  %1732 = vst [vmem:[%s10260_s6 + $0x798] sm:$0xff] %v1731_v51 }
  0x90   : > { %1734 = vst [vmem:[%s10260_s6 + $0x7a0] sm:$0xff] %v1733_v52  ;;  %1736 = vst [vmem:[%s10260_s6 + $0x7a8] sm:$0xff] %v1735_v53  ;;  %v1737_v54 = vld [vmem:[%s10255_s5 + $0xf60] sm:$0xff]  ;;  %v1739_v55 = vld [vmem:[%s10255_s5 + $0xf70] sm:$0xff] }
  0x91   : > { %v1741_v56 = vld [vmem:[%s10255_s5 + $0xf80] sm:$0xff]  ;;  %1738 = vst [vmem:[%s10260_s6 + $0x7b0] sm:$0xff] %v1737_v54  ;;  %1740 = vst [vmem:[%s10260_s6 + $0x7b8] sm:$0xff] %v1739_v55  ;;  %v1743_v57 = vld [vmem:[%s10255_s5 + $0xf90] sm:$0xff] }
  0x92   : > { %1742 = vst [vmem:[%s10260_s6 + $0x7c0] sm:$0xff] %v1741_v56  ;;  %v1745_v58 = vld [vmem:[%s10255_s5 + $0xfa0] sm:$0xff]  ;;  %v1747_v59 = vld [vmem:[%s10255_s5 + $0xfb0] sm:$0xff]  ;;  %1744 = vst [vmem:[%s10260_s6 + $0x7c8] sm:$0xff] %v1743_v57 }
  0x93   : > { %1746 = vst [vmem:[%s10260_s6 + $0x7d0] sm:$0xff] %v1745_v58  ;;  %1748 = vst [vmem:[%s10260_s6 + $0x7d8] sm:$0xff] %v1747_v59  ;;  %v1749_v60 = vld [vmem:[%s10255_s5 + $0xfc0] sm:$0xff]  ;;  %v1751_v61 = vld [vmem:[%s10255_s5 + $0xfd0] sm:$0xff] }
  0x94   : > { %v1753_v62 = vld [vmem:[%s10255_s5 + $0xfe0] sm:$0xff]  ;;  %1750 = vst [vmem:[%s10260_s6 + $0x7e0] sm:$0xff] %v1749_v60  ;;  %1752 = vst [vmem:[%s10260_s6 + $0x7e8] sm:$0xff] %v1751_v61  ;;  %v1755_v63 = vld [vmem:[%s10255_s5 + $0xff0] sm:$0xff] }
  0x95   : > { %1754 = vst [vmem:[%s10260_s6 + $0x7f0] sm:$0xff] %v1753_v62  ;;  %v1757_v0 = vld [vmem:[%s10255_s5 + $0x1000] sm:$0xff]  ;;  %v1759_v1 = vld [vmem:[%s10255_s5 + $0x1010] sm:$0xff]  ;;  %1756 = vst [vmem:[%s10260_s6 + $0x7f8] sm:$0xff] %v1755_v63 }
  0x96   : > { %1758 = vst [vmem:[%s10260_s6 + $0x800] sm:$0xff] %v1757_v0  ;;  %1760 = vst [vmem:[%s10260_s6 + $0x808] sm:$0xff] %v1759_v1  ;;  %v1761_v2 = vld [vmem:[%s10255_s5 + $0x1020] sm:$0xff]  ;;  %v1763_v3 = vld [vmem:[%s10255_s5 + $0x1030] sm:$0xff] }
  0x97   : > { %v1765_v4 = vld [vmem:[%s10255_s5 + $0x1040] sm:$0xff]  ;;  %1762 = vst [vmem:[%s10260_s6 + $0x810] sm:$0xff] %v1761_v2  ;;  %1764 = vst [vmem:[%s10260_s6 + $0x818] sm:$0xff] %v1763_v3  ;;  %v1767_v5 = vld [vmem:[%s10255_s5 + $0x1050] sm:$0xff] }
  0x98   : > { %1766 = vst [vmem:[%s10260_s6 + $0x820] sm:$0xff] %v1765_v4  ;;  %v1769_v6 = vld [vmem:[%s10255_s5 + $0x1060] sm:$0xff]  ;;  %v1771_v7 = vld [vmem:[%s10255_s5 + $0x1070] sm:$0xff]  ;;  %1768 = vst [vmem:[%s10260_s6 + $0x828] sm:$0xff] %v1767_v5 }
  0x99   : > { %1770 = vst [vmem:[%s10260_s6 + $0x830] sm:$0xff] %v1769_v6  ;;  %1772 = vst [vmem:[%s10260_s6 + $0x838] sm:$0xff] %v1771_v7  ;;  %v1773_v8 = vld [vmem:[%s10255_s5 + $0x1080] sm:$0xff]  ;;  %v1775_v9 = vld [vmem:[%s10255_s5 + $0x1090] sm:$0xff] }
  0x9a   : > { %v1777_v10 = vld [vmem:[%s10255_s5 + $0x10a0] sm:$0xff]  ;;  %1774 = vst [vmem:[%s10260_s6 + $0x840] sm:$0xff] %v1773_v8  ;;  %1776 = vst [vmem:[%s10260_s6 + $0x848] sm:$0xff] %v1775_v9  ;;  %v1779_v11 = vld [vmem:[%s10255_s5 + $0x10b0] sm:$0xff] }
  0x9b   : > { %1778 = vst [vmem:[%s10260_s6 + $0x850] sm:$0xff] %v1777_v10  ;;  %v1781_v12 = vld [vmem:[%s10255_s5 + $0x10c0] sm:$0xff]  ;;  %v1783_v13 = vld [vmem:[%s10255_s5 + $0x10d0] sm:$0xff]  ;;  %1780 = vst [vmem:[%s10260_s6 + $0x858] sm:$0xff] %v1779_v11 }
  0x9c   : > { %1782 = vst [vmem:[%s10260_s6 + $0x860] sm:$0xff] %v1781_v12  ;;  %1784 = vst [vmem:[%s10260_s6 + $0x868] sm:$0xff] %v1783_v13  ;;  %v1785_v14 = vld [vmem:[%s10255_s5 + $0x10e0] sm:$0xff]  ;;  %v1787_v15 = vld [vmem:[%s10255_s5 + $0x10f0] sm:$0xff] }
  0x9d   : > { %v1789_v16 = vld [vmem:[%s10255_s5 + $0x1100] sm:$0xff]  ;;  %1786 = vst [vmem:[%s10260_s6 + $0x870] sm:$0xff] %v1785_v14  ;;  %1788 = vst [vmem:[%s10260_s6 + $0x878] sm:$0xff] %v1787_v15  ;;  %v1791_v17 = vld [vmem:[%s10255_s5 + $0x1110] sm:$0xff] }
  0x9e   : > { %1790 = vst [vmem:[%s10260_s6 + $0x880] sm:$0xff] %v1789_v16  ;;  %v1793_v18 = vld [vmem:[%s10255_s5 + $0x1120] sm:$0xff]  ;;  %v1795_v19 = vld [vmem:[%s10255_s5 + $0x1130] sm:$0xff]  ;;  %1792 = vst [vmem:[%s10260_s6 + $0x888] sm:$0xff] %v1791_v17 }
  0x9f   : > { %1794 = vst [vmem:[%s10260_s6 + $0x890] sm:$0xff] %v1793_v18  ;;  %1796 = vst [vmem:[%s10260_s6 + $0x898] sm:$0xff] %v1795_v19  ;;  %v1797_v20 = vld [vmem:[%s10255_s5 + $0x1140] sm:$0xff]  ;;  %v1799_v21 = vld [vmem:[%s10255_s5 + $0x1150] sm:$0xff] }
  0xa0   : > { %v1801_v22 = vld [vmem:[%s10255_s5 + $0x1160] sm:$0xff]  ;;  %1798 = vst [vmem:[%s10260_s6 + $0x8a0] sm:$0xff] %v1797_v20  ;;  %1800 = vst [vmem:[%s10260_s6 + $0x8a8] sm:$0xff] %v1799_v21  ;;  %v1803_v23 = vld [vmem:[%s10255_s5 + $0x1170] sm:$0xff] }
  0xa1   : > { %1802 = vst [vmem:[%s10260_s6 + $0x8b0] sm:$0xff] %v1801_v22  ;;  %v1805_v24 = vld [vmem:[%s10255_s5 + $0x1180] sm:$0xff]  ;;  %v1807_v25 = vld [vmem:[%s10255_s5 + $0x1190] sm:$0xff]  ;;  %1804 = vst [vmem:[%s10260_s6 + $0x8b8] sm:$0xff] %v1803_v23 }
  0xa2   : > { %1806 = vst [vmem:[%s10260_s6 + $0x8c0] sm:$0xff] %v1805_v24  ;;  %1808 = vst [vmem:[%s10260_s6 + $0x8c8] sm:$0xff] %v1807_v25  ;;  %v1809_v26 = vld [vmem:[%s10255_s5 + $0x11a0] sm:$0xff]  ;;  %v1811_v27 = vld [vmem:[%s10255_s5 + $0x11b0] sm:$0xff] }
  0xa3   : > { %v1813_v28 = vld [vmem:[%s10255_s5 + $0x11c0] sm:$0xff]  ;;  %1810 = vst [vmem:[%s10260_s6 + $0x8d0] sm:$0xff] %v1809_v26  ;;  %1812 = vst [vmem:[%s10260_s6 + $0x8d8] sm:$0xff] %v1811_v27  ;;  %v1815_v29 = vld [vmem:[%s10255_s5 + $0x11d0] sm:$0xff] }
  0xa4   : > { %1814 = vst [vmem:[%s10260_s6 + $0x8e0] sm:$0xff] %v1813_v28  ;;  %v1817_v30 = vld [vmem:[%s10255_s5 + $0x11e0] sm:$0xff]  ;;  %v1819_v31 = vld [vmem:[%s10255_s5 + $0x11f0] sm:$0xff]  ;;  %1816 = vst [vmem:[%s10260_s6 + $0x8e8] sm:$0xff] %v1815_v29 }
  0xa5   : > { %1818 = vst [vmem:[%s10260_s6 + $0x8f0] sm:$0xff] %v1817_v30  ;;  %1820 = vst [vmem:[%s10260_s6 + $0x8f8] sm:$0xff] %v1819_v31  ;;  %v1821_v32 = vld [vmem:[%s10255_s5 + $0x1200] sm:$0xff]  ;;  %v1823_v33 = vld [vmem:[%s10255_s5 + $0x1210] sm:$0xff] }
  0xa6   : > { %v1825_v34 = vld [vmem:[%s10255_s5 + $0x1220] sm:$0xff]  ;;  %1822 = vst [vmem:[%s10260_s6 + $0x900] sm:$0xff] %v1821_v32  ;;  %1824 = vst [vmem:[%s10260_s6 + $0x908] sm:$0xff] %v1823_v33  ;;  %v1827_v35 = vld [vmem:[%s10255_s5 + $0x1230] sm:$0xff] }
  0xa7   : > { %1826 = vst [vmem:[%s10260_s6 + $0x910] sm:$0xff] %v1825_v34  ;;  %v1829_v36 = vld [vmem:[%s10255_s5 + $0x1240] sm:$0xff]  ;;  %v1831_v37 = vld [vmem:[%s10255_s5 + $0x1250] sm:$0xff]  ;;  %1828 = vst [vmem:[%s10260_s6 + $0x918] sm:$0xff] %v1827_v35 }
  0xa8   : > { %1830 = vst [vmem:[%s10260_s6 + $0x920] sm:$0xff] %v1829_v36  ;;  %1832 = vst [vmem:[%s10260_s6 + $0x928] sm:$0xff] %v1831_v37  ;;  %v1833_v38 = vld [vmem:[%s10255_s5 + $0x1260] sm:$0xff]  ;;  %v1835_v39 = vld [vmem:[%s10255_s5 + $0x1270] sm:$0xff] }
  0xa9   : > { %v1837_v40 = vld [vmem:[%s10255_s5 + $0x1280] sm:$0xff]  ;;  %1834 = vst [vmem:[%s10260_s6 + $0x930] sm:$0xff] %v1833_v38  ;;  %1836 = vst [vmem:[%s10260_s6 + $0x938] sm:$0xff] %v1835_v39  ;;  %v1839_v41 = vld [vmem:[%s10255_s5 + $0x1290] sm:$0xff] }
  0xaa   : > { %1838 = vst [vmem:[%s10260_s6 + $0x940] sm:$0xff] %v1837_v40  ;;  %v1841_v42 = vld [vmem:[%s10255_s5 + $0x12a0] sm:$0xff]  ;;  %v1843_v43 = vld [vmem:[%s10255_s5 + $0x12b0] sm:$0xff]  ;;  %1840 = vst [vmem:[%s10260_s6 + $0x948] sm:$0xff] %v1839_v41 }
  0xab   : > { %1842 = vst [vmem:[%s10260_s6 + $0x950] sm:$0xff] %v1841_v42  ;;  %1844 = vst [vmem:[%s10260_s6 + $0x958] sm:$0xff] %v1843_v43  ;;  %v1845_v44 = vld [vmem:[%s10255_s5 + $0x12c0] sm:$0xff]  ;;  %v1847_v45 = vld [vmem:[%s10255_s5 + $0x12d0] sm:$0xff] }
  0xac   : > { %v1849_v46 = vld [vmem:[%s10255_s5 + $0x12e0] sm:$0xff]  ;;  %1846 = vst [vmem:[%s10260_s6 + $0x960] sm:$0xff] %v1845_v44  ;;  %1848 = vst [vmem:[%s10260_s6 + $0x968] sm:$0xff] %v1847_v45  ;;  %v1851_v47 = vld [vmem:[%s10255_s5 + $0x12f0] sm:$0xff] }
  0xad   : > { %1850 = vst [vmem:[%s10260_s6 + $0x970] sm:$0xff] %v1849_v46  ;;  %v1853_v48 = vld [vmem:[%s10255_s5 + $0x1300] sm:$0xff]  ;;  %v1855_v49 = vld [vmem:[%s10255_s5 + $0x1310] sm:$0xff]  ;;  %1852 = vst [vmem:[%s10260_s6 + $0x978] sm:$0xff] %v1851_v47 }
  0xae   : > { %1854 = vst [vmem:[%s10260_s6 + $0x980] sm:$0xff] %v1853_v48  ;;  %1856 = vst [vmem:[%s10260_s6 + $0x988] sm:$0xff] %v1855_v49  ;;  %v1857_v50 = vld [vmem:[%s10255_s5 + $0x1320] sm:$0xff]  ;;  %v1859_v51 = vld [vmem:[%s10255_s5 + $0x1330] sm:$0xff] }
  0xaf   : > { %v1861_v52 = vld [vmem:[%s10255_s5 + $0x1340] sm:$0xff]  ;;  %1858 = vst [vmem:[%s10260_s6 + $0x990] sm:$0xff] %v1857_v50  ;;  %1860 = vst [vmem:[%s10260_s6 + $0x998] sm:$0xff] %v1859_v51  ;;  %v1863_v53 = vld [vmem:[%s10255_s5 + $0x1350] sm:$0xff] }
  0xb0   : > { %1862 = vst [vmem:[%s10260_s6 + $0x9a0] sm:$0xff] %v1861_v52  ;;  %v1865_v54 = vld [vmem:[%s10255_s5 + $0x1360] sm:$0xff]  ;;  %v1867_v55 = vld [vmem:[%s10255_s5 + $0x1370] sm:$0xff]  ;;  %1864 = vst [vmem:[%s10260_s6 + $0x9a8] sm:$0xff] %v1863_v53 }
  0xb1   : > { %1866 = vst [vmem:[%s10260_s6 + $0x9b0] sm:$0xff] %v1865_v54  ;;  %1868 = vst [vmem:[%s10260_s6 + $0x9b8] sm:$0xff] %v1867_v55  ;;  %v1869_v56 = vld [vmem:[%s10255_s5 + $0x1380] sm:$0xff]  ;;  %v1871_v57 = vld [vmem:[%s10255_s5 + $0x1390] sm:$0xff] }
  0xb2   : > { %v1873_v58 = vld [vmem:[%s10255_s5 + $0x13a0] sm:$0xff]  ;;  %1870 = vst [vmem:[%s10260_s6 + $0x9c0] sm:$0xff] %v1869_v56  ;;  %1872 = vst [vmem:[%s10260_s6 + $0x9c8] sm:$0xff] %v1871_v57  ;;  %v1875_v59 = vld [vmem:[%s10255_s5 + $0x13b0] sm:$0xff] }
  0xb3   : > { %1874 = vst [vmem:[%s10260_s6 + $0x9d0] sm:$0xff] %v1873_v58  ;;  %v1877_v60 = vld [vmem:[%s10255_s5 + $0x13c0] sm:$0xff]  ;;  %v1879_v61 = vld [vmem:[%s10255_s5 + $0x13d0] sm:$0xff]  ;;  %1876 = vst [vmem:[%s10260_s6 + $0x9d8] sm:$0xff] %v1875_v59 }
  0xb4   : > { %1878 = vst [vmem:[%s10260_s6 + $0x9e0] sm:$0xff] %v1877_v60  ;;  %1880 = vst [vmem:[%s10260_s6 + $0x9e8] sm:$0xff] %v1879_v61  ;;  %v1881_v62 = vld [vmem:[%s10255_s5 + $0x13e0] sm:$0xff]  ;;  %v1883_v63 = vld [vmem:[%s10255_s5 + $0x13f0] sm:$0xff] }
  0xb5   : > { %v1885_v0 = vld [vmem:[%s10255_s5 + $0x1400] sm:$0xff]  ;;  %1882 = vst [vmem:[%s10260_s6 + $0x9f0] sm:$0xff] %v1881_v62  ;;  %1884 = vst [vmem:[%s10260_s6 + $0x9f8] sm:$0xff] %v1883_v63  ;;  %v1887_v1 = vld [vmem:[%s10255_s5 + $0x1410] sm:$0xff] }
  0xb6   : > { %1886 = vst [vmem:[%s10260_s6 + $0xa00] sm:$0xff] %v1885_v0  ;;  %v1889_v2 = vld [vmem:[%s10255_s5 + $0x1420] sm:$0xff]  ;;  %v1891_v3 = vld [vmem:[%s10255_s5 + $0x1430] sm:$0xff]  ;;  %1888 = vst [vmem:[%s10260_s6 + $0xa08] sm:$0xff] %v1887_v1 }
  0xb7   : > { %1890 = vst [vmem:[%s10260_s6 + $0xa10] sm:$0xff] %v1889_v2  ;;  %1892 = vst [vmem:[%s10260_s6 + $0xa18] sm:$0xff] %v1891_v3  ;;  %v1893_v4 = vld [vmem:[%s10255_s5 + $0x1440] sm:$0xff]  ;;  %v1895_v5 = vld [vmem:[%s10255_s5 + $0x1450] sm:$0xff] }
  0xb8   : > { %v1897_v6 = vld [vmem:[%s10255_s5 + $0x1460] sm:$0xff]  ;;  %1894 = vst [vmem:[%s10260_s6 + $0xa20] sm:$0xff] %v1893_v4  ;;  %1896 = vst [vmem:[%s10260_s6 + $0xa28] sm:$0xff] %v1895_v5  ;;  %v1899_v7 = vld [vmem:[%s10255_s5 + $0x1470] sm:$0xff] }
  0xb9   : > { %1898 = vst [vmem:[%s10260_s6 + $0xa30] sm:$0xff] %v1897_v6  ;;  %v1901_v8 = vld [vmem:[%s10255_s5 + $0x1480] sm:$0xff]  ;;  %v1903_v9 = vld [vmem:[%s10255_s5 + $0x1490] sm:$0xff]  ;;  %1900 = vst [vmem:[%s10260_s6 + $0xa38] sm:$0xff] %v1899_v7 }
  0xba   : > { %1902 = vst [vmem:[%s10260_s6 + $0xa40] sm:$0xff] %v1901_v8  ;;  %1904 = vst [vmem:[%s10260_s6 + $0xa48] sm:$0xff] %v1903_v9  ;;  %v1905_v10 = vld [vmem:[%s10255_s5 + $0x14a0] sm:$0xff]  ;;  %v1907_v11 = vld [vmem:[%s10255_s5 + $0x14b0] sm:$0xff] }
  0xbb   : > { %v1909_v12 = vld [vmem:[%s10255_s5 + $0x14c0] sm:$0xff]  ;;  %1906 = vst [vmem:[%s10260_s6 + $0xa50] sm:$0xff] %v1905_v10  ;;  %1908 = vst [vmem:[%s10260_s6 + $0xa58] sm:$0xff] %v1907_v11  ;;  %v1911_v13 = vld [vmem:[%s10255_s5 + $0x14d0] sm:$0xff] }
  0xbc   : > { %1910 = vst [vmem:[%s10260_s6 + $0xa60] sm:$0xff] %v1909_v12  ;;  %v1913_v14 = vld [vmem:[%s10255_s5 + $0x14e0] sm:$0xff]  ;;  %v1915_v15 = vld [vmem:[%s10255_s5 + $0x14f0] sm:$0xff]  ;;  %1912 = vst [vmem:[%s10260_s6 + $0xa68] sm:$0xff] %v1911_v13 }
  0xbd   : > { %1914 = vst [vmem:[%s10260_s6 + $0xa70] sm:$0xff] %v1913_v14  ;;  %1916 = vst [vmem:[%s10260_s6 + $0xa78] sm:$0xff] %v1915_v15  ;;  %v1917_v16 = vld [vmem:[%s10255_s5 + $0x1500] sm:$0xff]  ;;  %v1919_v17 = vld [vmem:[%s10255_s5 + $0x1510] sm:$0xff] }
  0xbe   : > { %v1921_v18 = vld [vmem:[%s10255_s5 + $0x1520] sm:$0xff]  ;;  %1918 = vst [vmem:[%s10260_s6 + $0xa80] sm:$0xff] %v1917_v16  ;;  %1920 = vst [vmem:[%s10260_s6 + $0xa88] sm:$0xff] %v1919_v17  ;;  %v1923_v19 = vld [vmem:[%s10255_s5 + $0x1530] sm:$0xff] }
  0xbf   : > { %1922 = vst [vmem:[%s10260_s6 + $0xa90] sm:$0xff] %v1921_v18  ;;  %v1925_v20 = vld [vmem:[%s10255_s5 + $0x1540] sm:$0xff]  ;;  %v1927_v21 = vld [vmem:[%s10255_s5 + $0x1550] sm:$0xff]  ;;  %1924 = vst [vmem:[%s10260_s6 + $0xa98] sm:$0xff] %v1923_v19 }
  0xc0   : > { %1926 = vst [vmem:[%s10260_s6 + $0xaa0] sm:$0xff] %v1925_v20  ;;  %1928 = vst [vmem:[%s10260_s6 + $0xaa8] sm:$0xff] %v1927_v21  ;;  %v1929_v22 = vld [vmem:[%s10255_s5 + $0x1560] sm:$0xff]  ;;  %v1931_v23 = vld [vmem:[%s10255_s5 + $0x1570] sm:$0xff] }
  0xc1   : > { %v1933_v24 = vld [vmem:[%s10255_s5 + $0x1580] sm:$0xff]  ;;  %1930 = vst [vmem:[%s10260_s6 + $0xab0] sm:$0xff] %v1929_v22  ;;  %1932 = vst [vmem:[%s10260_s6 + $0xab8] sm:$0xff] %v1931_v23  ;;  %v1935_v25 = vld [vmem:[%s10255_s5 + $0x1590] sm:$0xff] }
  0xc2   : > { %1934 = vst [vmem:[%s10260_s6 + $0xac0] sm:$0xff] %v1933_v24  ;;  %v1937_v26 = vld [vmem:[%s10255_s5 + $0x15a0] sm:$0xff]  ;;  %v1939_v27 = vld [vmem:[%s10255_s5 + $0x15b0] sm:$0xff]  ;;  %1936 = vst [vmem:[%s10260_s6 + $0xac8] sm:$0xff] %v1935_v25 }
  0xc3   : > { %1938 = vst [vmem:[%s10260_s6 + $0xad0] sm:$0xff] %v1937_v26  ;;  %1940 = vst [vmem:[%s10260_s6 + $0xad8] sm:$0xff] %v1939_v27  ;;  %v1941_v28 = vld [vmem:[%s10255_s5 + $0x15c0] sm:$0xff]  ;;  %v1943_v29 = vld [vmem:[%s10255_s5 + $0x15d0] sm:$0xff] }
  0xc4   : > { %v1945_v30 = vld [vmem:[%s10255_s5 + $0x15e0] sm:$0xff]  ;;  %1942 = vst [vmem:[%s10260_s6 + $0xae0] sm:$0xff] %v1941_v28  ;;  %1944 = vst [vmem:[%s10260_s6 + $0xae8] sm:$0xff] %v1943_v29  ;;  %v1947_v31 = vld [vmem:[%s10255_s5 + $0x15f0] sm:$0xff] }
  0xc5   : > { %1946 = vst [vmem:[%s10260_s6 + $0xaf0] sm:$0xff] %v1945_v30  ;;  %v1949_v32 = vld [vmem:[%s10255_s5 + $0x1600] sm:$0xff]  ;;  %v1951_v33 = vld [vmem:[%s10255_s5 + $0x1610] sm:$0xff]  ;;  %1948 = vst [vmem:[%s10260_s6 + $0xaf8] sm:$0xff] %v1947_v31 }
  0xc6   : > { %1950 = vst [vmem:[%s10260_s6 + $0xb00] sm:$0xff] %v1949_v32  ;;  %1952 = vst [vmem:[%s10260_s6 + $0xb08] sm:$0xff] %v1951_v33  ;;  %v1953_v34 = vld [vmem:[%s10255_s5 + $0x1620] sm:$0xff]  ;;  %v1955_v35 = vld [vmem:[%s10255_s5 + $0x1630] sm:$0xff] }
  0xc7   : > { %v1957_v36 = vld [vmem:[%s10255_s5 + $0x1640] sm:$0xff]  ;;  %1954 = vst [vmem:[%s10260_s6 + $0xb10] sm:$0xff] %v1953_v34  ;;  %1956 = vst [vmem:[%s10260_s6 + $0xb18] sm:$0xff] %v1955_v35  ;;  %v1959_v37 = vld [vmem:[%s10255_s5 + $0x1650] sm:$0xff] }
  0xc8   : > { %1958 = vst [vmem:[%s10260_s6 + $0xb20] sm:$0xff] %v1957_v36  ;;  %v1961_v38 = vld [vmem:[%s10255_s5 + $0x1660] sm:$0xff]  ;;  %v1963_v39 = vld [vmem:[%s10255_s5 + $0x1670] sm:$0xff]  ;;  %1960 = vst [vmem:[%s10260_s6 + $0xb28] sm:$0xff] %v1959_v37 }
  0xc9   : > { %1962 = vst [vmem:[%s10260_s6 + $0xb30] sm:$0xff] %v1961_v38  ;;  %1964 = vst [vmem:[%s10260_s6 + $0xb38] sm:$0xff] %v1963_v39  ;;  %v1965_v40 = vld [vmem:[%s10255_s5 + $0x1680] sm:$0xff]  ;;  %v1967_v41 = vld [vmem:[%s10255_s5 + $0x1690] sm:$0xff] }
  0xca   : > { %v1969_v42 = vld [vmem:[%s10255_s5 + $0x16a0] sm:$0xff]  ;;  %1966 = vst [vmem:[%s10260_s6 + $0xb40] sm:$0xff] %v1965_v40  ;;  %1968 = vst [vmem:[%s10260_s6 + $0xb48] sm:$0xff] %v1967_v41  ;;  %v1971_v43 = vld [vmem:[%s10255_s5 + $0x16b0] sm:$0xff] }
  0xcb   : > { %1970 = vst [vmem:[%s10260_s6 + $0xb50] sm:$0xff] %v1969_v42  ;;  %v1973_v44 = vld [vmem:[%s10255_s5 + $0x16c0] sm:$0xff]  ;;  %v1975_v45 = vld [vmem:[%s10255_s5 + $0x16d0] sm:$0xff]  ;;  %1972 = vst [vmem:[%s10260_s6 + $0xb58] sm:$0xff] %v1971_v43 }
  0xcc   : > { %1974 = vst [vmem:[%s10260_s6 + $0xb60] sm:$0xff] %v1973_v44  ;;  %1976 = vst [vmem:[%s10260_s6 + $0xb68] sm:$0xff] %v1975_v45  ;;  %v1977_v46 = vld [vmem:[%s10255_s5 + $0x16e0] sm:$0xff]  ;;  %v1979_v47 = vld [vmem:[%s10255_s5 + $0x16f0] sm:$0xff] }
  0xcd   : > { %v1981_v48 = vld [vmem:[%s10255_s5 + $0x1700] sm:$0xff]  ;;  %1978 = vst [vmem:[%s10260_s6 + $0xb70] sm:$0xff] %v1977_v46  ;;  %1980 = vst [vmem:[%s10260_s6 + $0xb78] sm:$0xff] %v1979_v47  ;;  %v1983_v49 = vld [vmem:[%s10255_s5 + $0x1710] sm:$0xff] }
  0xce   : > { %1982 = vst [vmem:[%s10260_s6 + $0xb80] sm:$0xff] %v1981_v48  ;;  %v1985_v50 = vld [vmem:[%s10255_s5 + $0x1720] sm:$0xff]  ;;  %v1987_v51 = vld [vmem:[%s10255_s5 + $0x1730] sm:$0xff]  ;;  %1984 = vst [vmem:[%s10260_s6 + $0xb88] sm:$0xff] %v1983_v49 }
  0xcf   : > { %1986 = vst [vmem:[%s10260_s6 + $0xb90] sm:$0xff] %v1985_v50  ;;  %1988 = vst [vmem:[%s10260_s6 + $0xb98] sm:$0xff] %v1987_v51  ;;  %v1989_v52 = vld [vmem:[%s10255_s5 + $0x1740] sm:$0xff]  ;;  %v1991_v53 = vld [vmem:[%s10255_s5 + $0x1750] sm:$0xff] }
  0xd0   : > { %v1993_v54 = vld [vmem:[%s10255_s5 + $0x1760] sm:$0xff]  ;;  %1990 = vst [vmem:[%s10260_s6 + $0xba0] sm:$0xff] %v1989_v52  ;;  %1992 = vst [vmem:[%s10260_s6 + $0xba8] sm:$0xff] %v1991_v53  ;;  %v1995_v55 = vld [vmem:[%s10255_s5 + $0x1770] sm:$0xff] }
  0xd1   : > { %1994 = vst [vmem:[%s10260_s6 + $0xbb0] sm:$0xff] %v1993_v54  ;;  %v1997_v56 = vld [vmem:[%s10255_s5 + $0x1780] sm:$0xff]  ;;  %v1999_v57 = vld [vmem:[%s10255_s5 + $0x1790] sm:$0xff]  ;;  %1996 = vst [vmem:[%s10260_s6 + $0xbb8] sm:$0xff] %v1995_v55 }
  0xd2   : > { %1998 = vst [vmem:[%s10260_s6 + $0xbc0] sm:$0xff] %v1997_v56  ;;  %2000 = vst [vmem:[%s10260_s6 + $0xbc8] sm:$0xff] %v1999_v57  ;;  %v2001_v58 = vld [vmem:[%s10255_s5 + $0x17a0] sm:$0xff]  ;;  %v2003_v59 = vld [vmem:[%s10255_s5 + $0x17b0] sm:$0xff] }
  0xd3   : > { %v2005_v60 = vld [vmem:[%s10255_s5 + $0x17c0] sm:$0xff]  ;;  %2002 = vst [vmem:[%s10260_s6 + $0xbd0] sm:$0xff] %v2001_v58  ;;  %2004 = vst [vmem:[%s10260_s6 + $0xbd8] sm:$0xff] %v2003_v59  ;;  %v2007_v61 = vld [vmem:[%s10255_s5 + $0x17d0] sm:$0xff] }
  0xd4   : > { %2006 = vst [vmem:[%s10260_s6 + $0xbe0] sm:$0xff] %v2005_v60  ;;  %v2009_v62 = vld [vmem:[%s10255_s5 + $0x17e0] sm:$0xff]  ;;  %v2011_v63 = vld [vmem:[%s10255_s5 + $0x17f0] sm:$0xff]  ;;  %2008 = vst [vmem:[%s10260_s6 + $0xbe8] sm:$0xff] %v2007_v61 }
  0xd5   : > { %2010 = vst [vmem:[%s10260_s6 + $0xbf0] sm:$0xff] %v2009_v62  ;;  %2012 = vst [vmem:[%s10260_s6 + $0xbf8] sm:$0xff] %v2011_v63  ;;  %v2013_v0 = vld [vmem:[%s10255_s5 + $0x1800] sm:$0xff]  ;;  %v2015_v1 = vld [vmem:[%s10255_s5 + $0x1810] sm:$0xff] }
  0xd6   : > { %v2017_v2 = vld [vmem:[%s10255_s5 + $0x1820] sm:$0xff]  ;;  %2014 = vst [vmem:[%s10260_s6 + $0xc00] sm:$0xff] %v2013_v0  ;;  %2016 = vst [vmem:[%s10260_s6 + $0xc08] sm:$0xff] %v2015_v1  ;;  %v2019_v3 = vld [vmem:[%s10255_s5 + $0x1830] sm:$0xff] }
  0xd7   : > { %2018 = vst [vmem:[%s10260_s6 + $0xc10] sm:$0xff] %v2017_v2  ;;  %v2021_v4 = vld [vmem:[%s10255_s5 + $0x1840] sm:$0xff]  ;;  %v2023_v5 = vld [vmem:[%s10255_s5 + $0x1850] sm:$0xff]  ;;  %2020 = vst [vmem:[%s10260_s6 + $0xc18] sm:$0xff] %v2019_v3 }
  0xd8   : > { %2022 = vst [vmem:[%s10260_s6 + $0xc20] sm:$0xff] %v2021_v4  ;;  %2024 = vst [vmem:[%s10260_s6 + $0xc28] sm:$0xff] %v2023_v5  ;;  %v2025_v6 = vld [vmem:[%s10255_s5 + $0x1860] sm:$0xff]  ;;  %v2027_v7 = vld [vmem:[%s10255_s5 + $0x1870] sm:$0xff] }
  0xd9   : > { %v2029_v8 = vld [vmem:[%s10255_s5 + $0x1880] sm:$0xff]  ;;  %2026 = vst [vmem:[%s10260_s6 + $0xc30] sm:$0xff] %v2025_v6  ;;  %2028 = vst [vmem:[%s10260_s6 + $0xc38] sm:$0xff] %v2027_v7  ;;  %v2031_v9 = vld [vmem:[%s10255_s5 + $0x1890] sm:$0xff] }
  0xda   : > { %2030 = vst [vmem:[%s10260_s6 + $0xc40] sm:$0xff] %v2029_v8  ;;  %v2033_v10 = vld [vmem:[%s10255_s5 + $0x18a0] sm:$0xff]  ;;  %v2035_v11 = vld [vmem:[%s10255_s5 + $0x18b0] sm:$0xff]  ;;  %2032 = vst [vmem:[%s10260_s6 + $0xc48] sm:$0xff] %v2031_v9 }
  0xdb   : > { %2034 = vst [vmem:[%s10260_s6 + $0xc50] sm:$0xff] %v2033_v10  ;;  %2036 = vst [vmem:[%s10260_s6 + $0xc58] sm:$0xff] %v2035_v11  ;;  %v2037_v12 = vld [vmem:[%s10255_s5 + $0x18c0] sm:$0xff]  ;;  %v2039_v13 = vld [vmem:[%s10255_s5 + $0x18d0] sm:$0xff] }
  0xdc   : > { %v2041_v14 = vld [vmem:[%s10255_s5 + $0x18e0] sm:$0xff]  ;;  %2038 = vst [vmem:[%s10260_s6 + $0xc60] sm:$0xff] %v2037_v12  ;;  %2040 = vst [vmem:[%s10260_s6 + $0xc68] sm:$0xff] %v2039_v13  ;;  %v2043_v15 = vld [vmem:[%s10255_s5 + $0x18f0] sm:$0xff] }
  0xdd   : > { %2042 = vst [vmem:[%s10260_s6 + $0xc70] sm:$0xff] %v2041_v14  ;;  %v2045_v16 = vld [vmem:[%s10255_s5 + $0x1900] sm:$0xff]  ;;  %v2047_v17 = vld [vmem:[%s10255_s5 + $0x1910] sm:$0xff]  ;;  %2044 = vst [vmem:[%s10260_s6 + $0xc78] sm:$0xff] %v2043_v15 }
  0xde   : > { %2046 = vst [vmem:[%s10260_s6 + $0xc80] sm:$0xff] %v2045_v16  ;;  %2048 = vst [vmem:[%s10260_s6 + $0xc88] sm:$0xff] %v2047_v17  ;;  %v2049_v18 = vld [vmem:[%s10255_s5 + $0x1920] sm:$0xff]  ;;  %v2051_v19 = vld [vmem:[%s10255_s5 + $0x1930] sm:$0xff] }
  0xdf   : > { %v2053_v20 = vld [vmem:[%s10255_s5 + $0x1940] sm:$0xff]  ;;  %2050 = vst [vmem:[%s10260_s6 + $0xc90] sm:$0xff] %v2049_v18  ;;  %2052 = vst [vmem:[%s10260_s6 + $0xc98] sm:$0xff] %v2051_v19  ;;  %v2055_v21 = vld [vmem:[%s10255_s5 + $0x1950] sm:$0xff] }
  0xe0   : > { %2054 = vst [vmem:[%s10260_s6 + $0xca0] sm:$0xff] %v2053_v20  ;;  %v2057_v22 = vld [vmem:[%s10255_s5 + $0x1960] sm:$0xff]  ;;  %v2059_v23 = vld [vmem:[%s10255_s5 + $0x1970] sm:$0xff]  ;;  %2056 = vst [vmem:[%s10260_s6 + $0xca8] sm:$0xff] %v2055_v21 }
  0xe1   : > { %2058 = vst [vmem:[%s10260_s6 + $0xcb0] sm:$0xff] %v2057_v22  ;;  %2060 = vst [vmem:[%s10260_s6 + $0xcb8] sm:$0xff] %v2059_v23  ;;  %v2061_v24 = vld [vmem:[%s10255_s5 + $0x1980] sm:$0xff]  ;;  %v2063_v25 = vld [vmem:[%s10255_s5 + $0x1990] sm:$0xff] }
  0xe2   : > { %v2065_v26 = vld [vmem:[%s10255_s5 + $0x19a0] sm:$0xff]  ;;  %2062 = vst [vmem:[%s10260_s6 + $0xcc0] sm:$0xff] %v2061_v24  ;;  %2064 = vst [vmem:[%s10260_s6 + $0xcc8] sm:$0xff] %v2063_v25  ;;  %v2067_v27 = vld [vmem:[%s10255_s5 + $0x19b0] sm:$0xff] }
  0xe3   : > { %2066 = vst [vmem:[%s10260_s6 + $0xcd0] sm:$0xff] %v2065_v26  ;;  %v2069_v28 = vld [vmem:[%s10255_s5 + $0x19c0] sm:$0xff]  ;;  %v2071_v29 = vld [vmem:[%s10255_s5 + $0x19d0] sm:$0xff]  ;;  %2068 = vst [vmem:[%s10260_s6 + $0xcd8] sm:$0xff] %v2067_v27 }
  0xe4   : > { %2070 = vst [vmem:[%s10260_s6 + $0xce0] sm:$0xff] %v2069_v28  ;;  %2072 = vst [vmem:[%s10260_s6 + $0xce8] sm:$0xff] %v2071_v29  ;;  %v2073_v30 = vld [vmem:[%s10255_s5 + $0x19e0] sm:$0xff]  ;;  %v2075_v31 = vld [vmem:[%s10255_s5 + $0x19f0] sm:$0xff] }
  0xe5   : > { %v2077_v32 = vld [vmem:[%s10255_s5 + $0x1a00] sm:$0xff]  ;;  %2074 = vst [vmem:[%s10260_s6 + $0xcf0] sm:$0xff] %v2073_v30  ;;  %2076 = vst [vmem:[%s10260_s6 + $0xcf8] sm:$0xff] %v2075_v31  ;;  %v2079_v33 = vld [vmem:[%s10255_s5 + $0x1a10] sm:$0xff] }
  0xe6   : > { %2078 = vst [vmem:[%s10260_s6 + $0xd00] sm:$0xff] %v2077_v32  ;;  %v2081_v34 = vld [vmem:[%s10255_s5 + $0x1a20] sm:$0xff]  ;;  %v2083_v35 = vld [vmem:[%s10255_s5 + $0x1a30] sm:$0xff]  ;;  %2080 = vst [vmem:[%s10260_s6 + $0xd08] sm:$0xff] %v2079_v33 }
  0xe7   : > { %2082 = vst [vmem:[%s10260_s6 + $0xd10] sm:$0xff] %v2081_v34  ;;  %2084 = vst [vmem:[%s10260_s6 + $0xd18] sm:$0xff] %v2083_v35  ;;  %v2085_v36 = vld [vmem:[%s10255_s5 + $0x1a40] sm:$0xff]  ;;  %v2087_v37 = vld [vmem:[%s10255_s5 + $0x1a50] sm:$0xff] }
  0xe8   : > { %v2089_v38 = vld [vmem:[%s10255_s5 + $0x1a60] sm:$0xff]  ;;  %2086 = vst [vmem:[%s10260_s6 + $0xd20] sm:$0xff] %v2085_v36  ;;  %2088 = vst [vmem:[%s10260_s6 + $0xd28] sm:$0xff] %v2087_v37  ;;  %v2091_v39 = vld [vmem:[%s10255_s5 + $0x1a70] sm:$0xff] }
  0xe9   : > { %2090 = vst [vmem:[%s10260_s6 + $0xd30] sm:$0xff] %v2089_v38  ;;  %v2093_v40 = vld [vmem:[%s10255_s5 + $0x1a80] sm:$0xff]  ;;  %v2095_v41 = vld [vmem:[%s10255_s5 + $0x1a90] sm:$0xff]  ;;  %2092 = vst [vmem:[%s10260_s6 + $0xd38] sm:$0xff] %v2091_v39 }
  0xea   : > { %2094 = vst [vmem:[%s10260_s6 + $0xd40] sm:$0xff] %v2093_v40  ;;  %2096 = vst [vmem:[%s10260_s6 + $0xd48] sm:$0xff] %v2095_v41  ;;  %v2097_v42 = vld [vmem:[%s10255_s5 + $0x1aa0] sm:$0xff]  ;;  %v2099_v43 = vld [vmem:[%s10255_s5 + $0x1ab0] sm:$0xff] }
  0xeb   : > { %v2101_v44 = vld [vmem:[%s10255_s5 + $0x1ac0] sm:$0xff]  ;;  %2098 = vst [vmem:[%s10260_s6 + $0xd50] sm:$0xff] %v2097_v42  ;;  %2100 = vst [vmem:[%s10260_s6 + $0xd58] sm:$0xff] %v2099_v43  ;;  %v2103_v45 = vld [vmem:[%s10255_s5 + $0x1ad0] sm:$0xff] }
  0xec   : > { %2102 = vst [vmem:[%s10260_s6 + $0xd60] sm:$0xff] %v2101_v44  ;;  %v2105_v46 = vld [vmem:[%s10255_s5 + $0x1ae0] sm:$0xff]  ;;  %v2107_v47 = vld [vmem:[%s10255_s5 + $0x1af0] sm:$0xff]  ;;  %2104 = vst [vmem:[%s10260_s6 + $0xd68] sm:$0xff] %v2103_v45 }
  0xed   : > { %2106 = vst [vmem:[%s10260_s6 + $0xd70] sm:$0xff] %v2105_v46  ;;  %2108 = vst [vmem:[%s10260_s6 + $0xd78] sm:$0xff] %v2107_v47  ;;  %v2109_v48 = vld [vmem:[%s10255_s5 + $0x1b00] sm:$0xff]  ;;  %v2111_v49 = vld [vmem:[%s10255_s5 + $0x1b10] sm:$0xff] }
  0xee   : > { %v2113_v50 = vld [vmem:[%s10255_s5 + $0x1b20] sm:$0xff]  ;;  %2110 = vst [vmem:[%s10260_s6 + $0xd80] sm:$0xff] %v2109_v48  ;;  %2112 = vst [vmem:[%s10260_s6 + $0xd88] sm:$0xff] %v2111_v49  ;;  %v2115_v51 = vld [vmem:[%s10255_s5 + $0x1b30] sm:$0xff] }
  0xef   : > { %2114 = vst [vmem:[%s10260_s6 + $0xd90] sm:$0xff] %v2113_v50  ;;  %v2117_v52 = vld [vmem:[%s10255_s5 + $0x1b40] sm:$0xff]  ;;  %v2119_v53 = vld [vmem:[%s10255_s5 + $0x1b50] sm:$0xff]  ;;  %2116 = vst [vmem:[%s10260_s6 + $0xd98] sm:$0xff] %v2115_v51 }
  0xf0   : > { %2118 = vst [vmem:[%s10260_s6 + $0xda0] sm:$0xff] %v2117_v52  ;;  %2120 = vst [vmem:[%s10260_s6 + $0xda8] sm:$0xff] %v2119_v53  ;;  %v2121_v54 = vld [vmem:[%s10255_s5 + $0x1b60] sm:$0xff]  ;;  %v2123_v55 = vld [vmem:[%s10255_s5 + $0x1b70] sm:$0xff] }
  0xf1   : > { %v2125_v56 = vld [vmem:[%s10255_s5 + $0x1b80] sm:$0xff]  ;;  %2122 = vst [vmem:[%s10260_s6 + $0xdb0] sm:$0xff] %v2121_v54  ;;  %2124 = vst [vmem:[%s10260_s6 + $0xdb8] sm:$0xff] %v2123_v55  ;;  %v2127_v57 = vld [vmem:[%s10255_s5 + $0x1b90] sm:$0xff] }
  0xf2   : > { %2126 = vst [vmem:[%s10260_s6 + $0xdc0] sm:$0xff] %v2125_v56  ;;  %v2129_v58 = vld [vmem:[%s10255_s5 + $0x1ba0] sm:$0xff]  ;;  %v2131_v59 = vld [vmem:[%s10255_s5 + $0x1bb0] sm:$0xff]  ;;  %2128 = vst [vmem:[%s10260_s6 + $0xdc8] sm:$0xff] %v2127_v57 }
  0xf3   : > { %2130 = vst [vmem:[%s10260_s6 + $0xdd0] sm:$0xff] %v2129_v58  ;;  %2132 = vst [vmem:[%s10260_s6 + $0xdd8] sm:$0xff] %v2131_v59  ;;  %v2133_v60 = vld [vmem:[%s10255_s5 + $0x1bc0] sm:$0xff]  ;;  %v2135_v61 = vld [vmem:[%s10255_s5 + $0x1bd0] sm:$0xff] }
  0xf4   : > { %v2137_v62 = vld [vmem:[%s10255_s5 + $0x1be0] sm:$0xff]  ;;  %2134 = vst [vmem:[%s10260_s6 + $0xde0] sm:$0xff] %v2133_v60  ;;  %2136 = vst [vmem:[%s10260_s6 + $0xde8] sm:$0xff] %v2135_v61  ;;  %v2139_v63 = vld [vmem:[%s10255_s5 + $0x1bf0] sm:$0xff] }
  0xf5   : > { %2138 = vst [vmem:[%s10260_s6 + $0xdf0] sm:$0xff] %v2137_v62  ;;  %v2141_v0 = vld [vmem:[%s10255_s5 + $0x1c00] sm:$0xff]  ;;  %v2143_v1 = vld [vmem:[%s10255_s5 + $0x1c10] sm:$0xff]  ;;  %2140 = vst [vmem:[%s10260_s6 + $0xdf8] sm:$0xff] %v2139_v63 }
  0xf6   : > { %2142 = vst [vmem:[%s10260_s6 + $0xe00] sm:$0xff] %v2141_v0  ;;  %2144 = vst [vmem:[%s10260_s6 + $0xe08] sm:$0xff] %v2143_v1  ;;  %v2145_v2 = vld [vmem:[%s10255_s5 + $0x1c20] sm:$0xff]  ;;  %v2147_v3 = vld [vmem:[%s10255_s5 + $0x1c30] sm:$0xff] }
  0xf7   : > { %v2149_v4 = vld [vmem:[%s10255_s5 + $0x1c40] sm:$0xff]  ;;  %2146 = vst [vmem:[%s10260_s6 + $0xe10] sm:$0xff] %v2145_v2  ;;  %2148 = vst [vmem:[%s10260_s6 + $0xe18] sm:$0xff] %v2147_v3  ;;  %v2151_v5 = vld [vmem:[%s10255_s5 + $0x1c50] sm:$0xff] }
  0xf8   : > { %2150 = vst [vmem:[%s10260_s6 + $0xe20] sm:$0xff] %v2149_v4  ;;  %v2153_v6 = vld [vmem:[%s10255_s5 + $0x1c60] sm:$0xff]  ;;  %v2155_v7 = vld [vmem:[%s10255_s5 + $0x1c70] sm:$0xff]  ;;  %2152 = vst [vmem:[%s10260_s6 + $0xe28] sm:$0xff] %v2151_v5 }
  0xf9   : > { %2154 = vst [vmem:[%s10260_s6 + $0xe30] sm:$0xff] %v2153_v6  ;;  %2156 = vst [vmem:[%s10260_s6 + $0xe38] sm:$0xff] %v2155_v7  ;;  %v2157_v8 = vld [vmem:[%s10255_s5 + $0x1c80] sm:$0xff]  ;;  %v2159_v9 = vld [vmem:[%s10255_s5 + $0x1c90] sm:$0xff] }
  0xfa   : > { %v2161_v10 = vld [vmem:[%s10255_s5 + $0x1ca0] sm:$0xff]  ;;  %2158 = vst [vmem:[%s10260_s6 + $0xe40] sm:$0xff] %v2157_v8  ;;  %2160 = vst [vmem:[%s10260_s6 + $0xe48] sm:$0xff] %v2159_v9  ;;  %v2163_v11 = vld [vmem:[%s10255_s5 + $0x1cb0] sm:$0xff] }
  0xfb   : > { %2162 = vst [vmem:[%s10260_s6 + $0xe50] sm:$0xff] %v2161_v10  ;;  %v2165_v12 = vld [vmem:[%s10255_s5 + $0x1cc0] sm:$0xff]  ;;  %v2167_v13 = vld [vmem:[%s10255_s5 + $0x1cd0] sm:$0xff]  ;;  %2164 = vst [vmem:[%s10260_s6 + $0xe58] sm:$0xff] %v2163_v11 }
  0xfc   : > { %2166 = vst [vmem:[%s10260_s6 + $0xe60] sm:$0xff] %v2165_v12  ;;  %2168 = vst [vmem:[%s10260_s6 + $0xe68] sm:$0xff] %v2167_v13  ;;  %v2169_v14 = vld [vmem:[%s10255_s5 + $0x1ce0] sm:$0xff]  ;;  %v2171_v15 = vld [vmem:[%s10255_s5 + $0x1cf0] sm:$0xff] }
  0xfd   : > { %v2173_v16 = vld [vmem:[%s10255_s5 + $0x1d00] sm:$0xff]  ;;  %2170 = vst [vmem:[%s10260_s6 + $0xe70] sm:$0xff] %v2169_v14  ;;  %2172 = vst [vmem:[%s10260_s6 + $0xe78] sm:$0xff] %v2171_v15  ;;  %v2175_v17 = vld [vmem:[%s10255_s5 + $0x1d10] sm:$0xff] }
  0xfe   : > { %2174 = vst [vmem:[%s10260_s6 + $0xe80] sm:$0xff] %v2173_v16  ;;  %v2177_v18 = vld [vmem:[%s10255_s5 + $0x1d20] sm:$0xff]  ;;  %v2179_v19 = vld [vmem:[%s10255_s5 + $0x1d30] sm:$0xff]  ;;  %2176 = vst [vmem:[%s10260_s6 + $0xe88] sm:$0xff] %v2175_v17 }
  0xff   : > { %2178 = vst [vmem:[%s10260_s6 + $0xe90] sm:$0xff] %v2177_v18  ;;  %2180 = vst [vmem:[%s10260_s6 + $0xe98] sm:$0xff] %v2179_v19  ;;  %v2181_v20 = vld [vmem:[%s10255_s5 + $0x1d40] sm:$0xff]  ;;  %v2183_v21 = vld [vmem:[%s10255_s5 + $0x1d50] sm:$0xff] }
 0x100   : > { %v2185_v22 = vld [vmem:[%s10255_s5 + $0x1d60] sm:$0xff]  ;;  %2182 = vst [vmem:[%s10260_s6 + $0xea0] sm:$0xff] %v2181_v20  ;;  %2184 = vst [vmem:[%s10260_s6 + $0xea8] sm:$0xff] %v2183_v21  ;;  %v2187_v23 = vld [vmem:[%s10255_s5 + $0x1d70] sm:$0xff] }
 0x101   : > { %2186 = vst [vmem:[%s10260_s6 + $0xeb0] sm:$0xff] %v2185_v22  ;;  %v2189_v24 = vld [vmem:[%s10255_s5 + $0x1d80] sm:$0xff]  ;;  %v2191_v25 = vld [vmem:[%s10255_s5 + $0x1d90] sm:$0xff]  ;;  %2188 = vst [vmem:[%s10260_s6 + $0xeb8] sm:$0xff] %v2187_v23 }
 0x102   : > { %2190 = vst [vmem:[%s10260_s6 + $0xec0] sm:$0xff] %v2189_v24  ;;  %2192 = vst [vmem:[%s10260_s6 + $0xec8] sm:$0xff] %v2191_v25  ;;  %v2193_v26 = vld [vmem:[%s10255_s5 + $0x1da0] sm:$0xff]  ;;  %v2195_v27 = vld [vmem:[%s10255_s5 + $0x1db0] sm:$0xff] }
 0x103   : > { %v2197_v28 = vld [vmem:[%s10255_s5 + $0x1dc0] sm:$0xff]  ;;  %2194 = vst [vmem:[%s10260_s6 + $0xed0] sm:$0xff] %v2193_v26  ;;  %2196 = vst [vmem:[%s10260_s6 + $0xed8] sm:$0xff] %v2195_v27  ;;  %v2199_v29 = vld [vmem:[%s10255_s5 + $0x1dd0] sm:$0xff] }
 0x104   : > { %2198 = vst [vmem:[%s10260_s6 + $0xee0] sm:$0xff] %v2197_v28  ;;  %v2201_v30 = vld [vmem:[%s10255_s5 + $0x1de0] sm:$0xff]  ;;  %v2203_v31 = vld [vmem:[%s10255_s5 + $0x1df0] sm:$0xff]  ;;  %2200 = vst [vmem:[%s10260_s6 + $0xee8] sm:$0xff] %v2199_v29 }
 0x105   : > { %2202 = vst [vmem:[%s10260_s6 + $0xef0] sm:$0xff] %v2201_v30  ;;  %2204 = vst [vmem:[%s10260_s6 + $0xef8] sm:$0xff] %v2203_v31  ;;  %v2205_v32 = vld [vmem:[%s10255_s5 + $0x1e00] sm:$0xff]  ;;  %v2207_v33 = vld [vmem:[%s10255_s5 + $0x1e10] sm:$0xff] }
 0x106   : > { %v2209_v34 = vld [vmem:[%s10255_s5 + $0x1e20] sm:$0xff]  ;;  %2206 = vst [vmem:[%s10260_s6 + $0xf00] sm:$0xff] %v2205_v32  ;;  %2208 = vst [vmem:[%s10260_s6 + $0xf08] sm:$0xff] %v2207_v33  ;;  %v2211_v35 = vld [vmem:[%s10255_s5 + $0x1e30] sm:$0xff] }
 0x107   : > { %2210 = vst [vmem:[%s10260_s6 + $0xf10] sm:$0xff] %v2209_v34  ;;  %v2213_v36 = vld [vmem:[%s10255_s5 + $0x1e40] sm:$0xff]  ;;  %v2215_v37 = vld [vmem:[%s10255_s5 + $0x1e50] sm:$0xff]  ;;  %2212 = vst [vmem:[%s10260_s6 + $0xf18] sm:$0xff] %v2211_v35 }
 0x108   : > { %2214 = vst [vmem:[%s10260_s6 + $0xf20] sm:$0xff] %v2213_v36  ;;  %2216 = vst [vmem:[%s10260_s6 + $0xf28] sm:$0xff] %v2215_v37  ;;  %v2217_v38 = vld [vmem:[%s10255_s5 + $0x1e60] sm:$0xff]  ;;  %v2219_v39 = vld [vmem:[%s10255_s5 + $0x1e70] sm:$0xff] }
 0x109   : > { %v2221_v40 = vld [vmem:[%s10255_s5 + $0x1e80] sm:$0xff]  ;;  %2218 = vst [vmem:[%s10260_s6 + $0xf30] sm:$0xff] %v2217_v38  ;;  %2220 = vst [vmem:[%s10260_s6 + $0xf38] sm:$0xff] %v2219_v39  ;;  %v2223_v41 = vld [vmem:[%s10255_s5 + $0x1e90] sm:$0xff] }
 0x10a   : > { %2222 = vst [vmem:[%s10260_s6 + $0xf40] sm:$0xff] %v2221_v40  ;;  %v2225_v42 = vld [vmem:[%s10255_s5 + $0x1ea0] sm:$0xff]  ;;  %v2227_v43 = vld [vmem:[%s10255_s5 + $0x1eb0] sm:$0xff]  ;;  %2224 = vst [vmem:[%s10260_s6 + $0xf48] sm:$0xff] %v2223_v41 }
 0x10b   : > { %2226 = vst [vmem:[%s10260_s6 + $0xf50] sm:$0xff] %v2225_v42  ;;  %2228 = vst [vmem:[%s10260_s6 + $0xf58] sm:$0xff] %v2227_v43  ;;  %v2229_v44 = vld [vmem:[%s10255_s5 + $0x1ec0] sm:$0xff]  ;;  %v2231_v45 = vld [vmem:[%s10255_s5 + $0x1ed0] sm:$0xff] }
 0x10c   : > { %v2233_v46 = vld [vmem:[%s10255_s5 + $0x1ee0] sm:$0xff]  ;;  %2230 = vst [vmem:[%s10260_s6 + $0xf60] sm:$0xff] %v2229_v44  ;;  %2232 = vst [vmem:[%s10260_s6 + $0xf68] sm:$0xff] %v2231_v45  ;;  %v2235_v47 = vld [vmem:[%s10255_s5 + $0x1ef0] sm:$0xff] }
 0x10d   : > { %2234 = vst [vmem:[%s10260_s6 + $0xf70] sm:$0xff] %v2233_v46  ;;  %v2237_v48 = vld [vmem:[%s10255_s5 + $0x1f00] sm:$0xff]  ;;  %v2239_v49 = vld [vmem:[%s10255_s5 + $0x1f10] sm:$0xff]  ;;  %2236 = vst [vmem:[%s10260_s6 + $0xf78] sm:$0xff] %v2235_v47 }
 0x10e   : > { %2238 = vst [vmem:[%s10260_s6 + $0xf80] sm:$0xff] %v2237_v48  ;;  %2240 = vst [vmem:[%s10260_s6 + $0xf88] sm:$0xff] %v2239_v49  ;;  %v2241_v50 = vld [vmem:[%s10255_s5 + $0x1f20] sm:$0xff]  ;;  %v2243_v51 = vld [vmem:[%s10255_s5 + $0x1f30] sm:$0xff] }
 0x10f   : > { %v2245_v52 = vld [vmem:[%s10255_s5 + $0x1f40] sm:$0xff]  ;;  %2242 = vst [vmem:[%s10260_s6 + $0xf90] sm:$0xff] %v2241_v50  ;;  %2244 = vst [vmem:[%s10260_s6 + $0xf98] sm:$0xff] %v2243_v51  ;;  %v2247_v53 = vld [vmem:[%s10255_s5 + $0x1f50] sm:$0xff] }
 0x110   : > { %2246 = vst [vmem:[%s10260_s6 + $0xfa0] sm:$0xff] %v2245_v52  ;;  %v2249_v54 = vld [vmem:[%s10255_s5 + $0x1f60] sm:$0xff]  ;;  %v2251_v55 = vld [vmem:[%s10255_s5 + $0x1f70] sm:$0xff]  ;;  %2248 = vst [vmem:[%s10260_s6 + $0xfa8] sm:$0xff] %v2247_v53 }
 0x111   : > { %2250 = vst [vmem:[%s10260_s6 + $0xfb0] sm:$0xff] %v2249_v54  ;;  %2252 = vst [vmem:[%s10260_s6 + $0xfb8] sm:$0xff] %v2251_v55  ;;  %v2253_v56 = vld [vmem:[%s10255_s5 + $0x1f80] sm:$0xff]  ;;  %v2255_v57 = vld [vmem:[%s10255_s5 + $0x1f90] sm:$0xff] }
 0x112   : > { %v2257_v58 = vld [vmem:[%s10255_s5 + $0x1fa0] sm:$0xff]  ;;  %2254 = vst [vmem:[%s10260_s6 + $0xfc0] sm:$0xff] %v2253_v56  ;;  %2256 = vst [vmem:[%s10260_s6 + $0xfc8] sm:$0xff] %v2255_v57  ;;  %v2259_v59 = vld [vmem:[%s10255_s5 + $0x1fb0] sm:$0xff] }
 0x113   : > { %2258 = vst [vmem:[%s10260_s6 + $0xfd0] sm:$0xff] %v2257_v58  ;;  %v2261_v60 = vld [vmem:[%s10255_s5 + $0x1fc0] sm:$0xff]  ;;  %v2263_v61 = vld [vmem:[%s10255_s5 + $0x1fd0] sm:$0xff]  ;;  %2260 = vst [vmem:[%s10260_s6 + $0xfd8] sm:$0xff] %v2259_v59 }
 0x114   : > { %2262 = vst [vmem:[%s10260_s6 + $0xfe0] sm:$0xff] %v2261_v60  ;;  %2264 = vst [vmem:[%s10260_s6 + $0xfe8] sm:$0xff] %v2263_v61  ;;  %v2265_v62 = vld [vmem:[%s10255_s5 + $0x1fe0] sm:$0xff]  ;;  %v2267_v63 = vld [vmem:[%s10255_s5 + $0x1ff0] sm:$0xff] }
 0x115   : > { %2266 = vst [vmem:[%s10260_s6 + $0xff0] sm:$0xff] %v2265_v62  ;;  %2268 = vst [vmem:[%s10260_s6 + $0xff8] sm:$0xff] %v2267_v63 }
 0x116 PF: > { %p8708_p8 = scmp.ge.s32.totalorder %s10179_s19, 1  ;;  %p4373_p9 = scmp.lt.s32.totalorder %s10179_s19, 3 }
 0x118   : > { %p4374_p10 = pnand %p8708_p8, %p4373_p9 }
 0x119   : > { %s4380_s7 = sand.u32 (!%p4374_p10), 1, %s10163_s15   ;;  %v11289_v0 = vld [vmem:[%s12080_s0] sm:$0xff] (!%p4374_p10) }
 0x11a   : > { %4377 = sbr.rel (%p4374_p10) target bundleno = 1103 (0x44f), region = 84  ;;  %v11294_v1 = vld [vmem:[%s12080_s0 + $0x80] sm:$0xff] (!%p4374_p10)  ;;  %s8709_s14 = sshll.u32 (!%p4374_p10), %s4380_s7, 12 }
 0x11b   : > { %v11299_v2 = vld [vmem:[%s12080_s0 + $0x40] sm:$0xff] (!%p4374_p10)  ;;  %v8713_v3 = vcombine.low (!%p4374_p10), %v11289_v0, %v11294_v1  ;;  %v8714_v4 = vcombine.high (!%p4374_p10), %v11289_v0, %v11294_v1  ;;  %s11316_s23 = scalar_lea.vmem (!%p4374_p10), [#allocation2], %s8709_s14  ;;  %s8710_s21 = sshll.u32 (!%p4374_p10), %s4380_s7, 4 }
 0x11c   : > { %v11310_v5 = vld [vmem:[%s12080_s0 + $0xc0] sm:$0xff] (!%p4374_p10)  ;;  %v9375_v12 = vld [vmem:[%s11316_s23 + $0x14] ss:$8 sps:$4 sm:$0xff] (!%p4374_p10)   ;;  %v9379_v14 = vld [vmem:[%s11316_s23 + $0x10] ss:$8 sps:$4 sm:$0xff] (!%p4374_p10)   ;;  %s4417_s22 = scalar_lea.vmem (!%p4374_p10), [#allocation3], %s8710_s21 }
 0x11d   : > { %v8729_v6 = vcombine.low (!%p4374_p10), %v11299_v2, %v11310_v5  ;;  %v8730_v7 = vcombine.high (!%p4374_p10), %v11299_v2, %v11310_v5  ;;  %v9369_v8 = vld [vmem:[%s11316_s23 + $0x4] ss:$8 sps:$4 sm:$0xff] (!%p4374_p10)   ;;  %7734 = vmatprep.mubr.bf16.mxu1 (!%p4374_p10), %v8714_v4  ;;  %v9373_v10 = vld [vmem:[%s11316_s23] ss:$8 sps:$4 sm:$0xff] (!%p4374_p10)   ;;  %v9377_v13 = vld [vmem:[%s11316_s23 + $0x814] ss:$8 sps:$4 sm:$0xff] (!%p4374_p10)  }
 0x11e   : > { %v9371_v9 = vld [vmem:[%s11316_s23 + $0x804] ss:$8 sps:$4 sm:$0xff] (!%p4374_p10)   ;;  %7702 = vmatprep.subr.bf16.mxu1 (!%p4374_p10), %v9369_v8  ;;  %v9374_v11 = vld [vmem:[%s11316_s23 + $0x800] ss:$8 sps:$4 sm:$0xff] (!%p4374_p10)   ;;  %v9380_v15 = vld [vmem:[%s11316_s23 + $0x810] ss:$8 sps:$4 sm:$0xff] (!%p4374_p10)  }
 0x11f   : > { %8078 = vmatprep.mubr.bf16.mxu0 (!%p4374_p10), %v8730_v7  ;;  %8046 = vmatprep.subr.bf16.mxu0 (!%p4374_p10), %v9371_v9  ;;  %v9381_v16 = vld [vmem:[%s11316_s23 + $0x24] ss:$8 sps:$4 sm:$0xff] (!%p4374_p10)   ;;  %v9385_v18 = vld [vmem:[%s11316_s23 + $0x20] ss:$8 sps:$4 sm:$0xff] (!%p4374_p10)   ;;  %v9387_v20 = vld [vmem:[%s11316_s23 + $0x34] ss:$8 sps:$4 sm:$0xff] (!%p4374_p10)  }
 0x120   : > { %7703 = vmatpush1.bf16.msra.mxu1 (!%p4374_p10), %v9373_v10  ;;  %8047 = vmatpush1.bf16.msra.mxu0 (!%p4374_p10), %v9374_v11  ;;  %v9383_v17 = vld [vmem:[%s11316_s23 + $0x824] ss:$8 sps:$4 sm:$0xff] (!%p4374_p10)   ;;  %v9386_v19 = vld [vmem:[%s11316_s23 + $0x820] ss:$8 sps:$4 sm:$0xff] (!%p4374_p10)   ;;  %v9389_v21 = vld [vmem:[%s11316_s23 + $0x834] ss:$8 sps:$4 sm:$0xff] (!%p4374_p10)  }
 0x121   : > { %7704 = vmatprep.subr.bf16.mxu1 %v9375_v12  ;;  %8048 = vmatprep.subr.bf16.mxu0 %v9377_v13  ;;  %v9391_v22 = vld [vmem:[%s11316_s23 + $0x30] ss:$8 sps:$4 sm:$0xff]   ;;  %v9393_v24 = vld [vmem:[%s11316_s23 + $0x44] ss:$8 sps:$4 sm:$0xff]   ;;  %v9397_v26 = vld [vmem:[%s11316_s23 + $0x40] ss:$8 sps:$4 sm:$0xff]  }
 0x122   : > { %v9392_v23 = vld [vmem:[%s11316_s23 + $0x830] ss:$8 sps:$4 sm:$0xff]   ;;  %v9395_v25 = vld [vmem:[%s11316_s23 + $0x844] ss:$8 sps:$4 sm:$0xff]   ;;  %v9398_v27 = vld [vmem:[%s11316_s23 + $0x840] ss:$8 sps:$4 sm:$0xff]  }
 0x123   : > { %v9399_v28 = vld [vmem:[%s11316_s23 + $0x54] ss:$8 sps:$4 sm:$0xff]   ;;  %v9403_v30 = vld [vmem:[%s11316_s23 + $0x50] ss:$8 sps:$4 sm:$0xff]   ;;  %v9405_v32 = vld [vmem:[%s11316_s23 + $0x64] ss:$8 sps:$4 sm:$0xff]  }
 0x124   : > { %7705 = vmatpush1.bf16.msra.mxu1 %v9379_v14  ;;  %8049 = vmatpush1.bf16.msra.mxu0 %v9380_v15  ;;  %v9401_v29 = vld [vmem:[%s11316_s23 + $0x854] ss:$8 sps:$4 sm:$0xff]   ;;  %v9404_v31 = vld [vmem:[%s11316_s23 + $0x850] ss:$8 sps:$4 sm:$0xff]   ;;  %v9407_v33 = vld [vmem:[%s11316_s23 + $0x864] ss:$8 sps:$4 sm:$0xff]  }
 0x125   : > { %7706 = vmatprep.subr.bf16.mxu1 %v9381_v16  ;;  %8050 = vmatprep.subr.bf16.mxu0 %v9383_v17  ;;  %v9409_v34 = vld [vmem:[%s11316_s23 + $0x60] ss:$8 sps:$4 sm:$0xff]   ;;  %v9411_v36 = vld [vmem:[%s11316_s23 + $0x74] ss:$8 sps:$4 sm:$0xff]   ;;  %v9415_v38 = vld [vmem:[%s11316_s23 + $0x70] ss:$8 sps:$4 sm:$0xff]  }
 0x126   : > { %v9410_v35 = vld [vmem:[%s11316_s23 + $0x860] ss:$8 sps:$4 sm:$0xff]   ;;  %v9413_v37 = vld [vmem:[%s11316_s23 + $0x874] ss:$8 sps:$4 sm:$0xff]   ;;  %v9416_v39 = vld [vmem:[%s11316_s23 + $0x870] ss:$8 sps:$4 sm:$0xff]  }
 0x127   : > { %v9417_v40 = vld [vmem:[%s11316_s23 + $0x84] ss:$8 sps:$4 sm:$0xff]   ;;  %v9421_v42 = vld [vmem:[%s11316_s23 + $0x80] ss:$8 sps:$4 sm:$0xff]   ;;  %v9423_v44 = vld [vmem:[%s11316_s23 + $0x94] ss:$8 sps:$4 sm:$0xff]  }
 0x128   : > { %7707 = vmatpush1.bf16.msra.mxu1 %v9385_v18  ;;  %8051 = vmatpush1.bf16.msra.mxu0 %v9386_v19  ;;  %v9419_v41 = vld [vmem:[%s11316_s23 + $0x884] ss:$8 sps:$4 sm:$0xff]   ;;  %v9422_v43 = vld [vmem:[%s11316_s23 + $0x880] ss:$8 sps:$4 sm:$0xff]   ;;  %v9425_v45 = vld [vmem:[%s11316_s23 + $0x894] ss:$8 sps:$4 sm:$0xff]  }
 0x129   : > { %7708 = vmatprep.subr.bf16.mxu1 %v9387_v20  ;;  %8052 = vmatprep.subr.bf16.mxu0 %v9389_v21  ;;  %v9427_v46 = vld [vmem:[%s11316_s23 + $0x90] ss:$8 sps:$4 sm:$0xff]   ;;  %v9429_v48 = vld [vmem:[%s11316_s23 + $0xa4] ss:$8 sps:$4 sm:$0xff]   ;;  %v9433_v50 = vld [vmem:[%s11316_s23 + $0xa0] ss:$8 sps:$4 sm:$0xff]  }
 0x12a   : > { %v9428_v47 = vld [vmem:[%s11316_s23 + $0x890] ss:$8 sps:$4 sm:$0xff]   ;;  %v9431_v49 = vld [vmem:[%s11316_s23 + $0x8a4] ss:$8 sps:$4 sm:$0xff]   ;;  %v9434_v51 = vld [vmem:[%s11316_s23 + $0x8a0] ss:$8 sps:$4 sm:$0xff]  }
 0x12b   : > { %v9435_v52 = vld [vmem:[%s11316_s23 + $0xb4] ss:$8 sps:$4 sm:$0xff]   ;;  %v9439_v54 = vld [vmem:[%s11316_s23 + $0xb0] ss:$8 sps:$4 sm:$0xff]   ;;  %v9441_v56 = vld [vmem:[%s11316_s23 + $0xc4] ss:$8 sps:$4 sm:$0xff]  }
 0x12c   : > { %7709 = vmatpush1.bf16.msra.mxu1 %v9391_v22  ;;  %8053 = vmatpush1.bf16.msra.mxu0 %v9392_v23  ;;  %v9437_v53 = vld [vmem:[%s11316_s23 + $0x8b4] ss:$8 sps:$4 sm:$0xff]   ;;  %v9440_v55 = vld [vmem:[%s11316_s23 + $0x8b0] ss:$8 sps:$4 sm:$0xff]   ;;  %v9443_v57 = vld [vmem:[%s11316_s23 + $0x8c4] ss:$8 sps:$4 sm:$0xff]  }
 0x12d   : > { %7710 = vmatprep.subr.bf16.mxu1 %v9393_v24  ;;  %8054 = vmatprep.subr.bf16.mxu0 %v9395_v25  ;;  %v9445_v58 = vld [vmem:[%s11316_s23 + $0xc0] ss:$8 sps:$4 sm:$0xff]   ;;  %v9447_v60 = vld [vmem:[%s11316_s23 + $0xd4] ss:$8 sps:$4 sm:$0xff]   ;;  %v9451_v62 = vld [vmem:[%s11316_s23 + $0xd0] ss:$8 sps:$4 sm:$0xff]  }
 0x12e   : > { %v9446_v59 = vld [vmem:[%s11316_s23 + $0x8c0] ss:$8 sps:$4 sm:$0xff]   ;;  %v9449_v61 = vld [vmem:[%s11316_s23 + $0x8d4] ss:$8 sps:$4 sm:$0xff]   ;;  %v9452_v63 = vld [vmem:[%s11316_s23 + $0x8d0] ss:$8 sps:$4 sm:$0xff]  }
 0x12f   : > { %v9453_v4 = vld [vmem:[%s11316_s23 + $0xe4] ss:$8 sps:$4 sm:$0xff]   ;;  %v9457_v8 = vld [vmem:[%s11316_s23 + $0xe0] ss:$8 sps:$4 sm:$0xff]   ;;  %v9459_v10 = vld [vmem:[%s11316_s23 + $0xf4] ss:$8 sps:$4 sm:$0xff]  }
 0x130   : > { %7711 = vmatpush1.bf16.msra.mxu1 %v9397_v26  ;;  %8055 = vmatpush1.bf16.msra.mxu0 %v9398_v27  ;;  %v9455_v7 = vld [vmem:[%s11316_s23 + $0x8e4] ss:$8 sps:$4 sm:$0xff]   ;;  %v9458_v9 = vld [vmem:[%s11316_s23 + $0x8e0] ss:$8 sps:$4 sm:$0xff]   ;;  %v9461_v11 = vld [vmem:[%s11316_s23 + $0x8f4] ss:$8 sps:$4 sm:$0xff]  }
 0x131   : > { %7712 = vmatprep.subr.bf16.mxu1 %v9399_v28  ;;  %8056 = vmatprep.subr.bf16.mxu0 %v9401_v29  ;;  %v9463_v12 = vld [vmem:[%s11316_s23 + $0xf0] ss:$8 sps:$4 sm:$0xff]   ;;  %v9467_v14 = vld [vmem:[%s11316_s23 + $0x104] ss:$8 sps:$4 sm:$0xff]   ;;  %v9465_v16 = vld [vmem:[%s11316_s23 + $0x100] ss:$8 sps:$4 sm:$0xff]  }
 0x132   : > { %v9464_v13 = vld [vmem:[%s11316_s23 + $0x8f0] ss:$8 sps:$4 sm:$0xff]   ;;  %v9470_v15 = vld [vmem:[%s11316_s23 + $0x904] ss:$8 sps:$4 sm:$0xff]   ;;  %v9468_v17 = vld [vmem:[%s11316_s23 + $0x900] ss:$8 sps:$4 sm:$0xff]  }
 0x133   : > { %v9473_v18 = vld [vmem:[%s11316_s23 + $0x114] ss:$8 sps:$4 sm:$0xff]   ;;  %v9471_v20 = vld [vmem:[%s11316_s23 + $0x110] ss:$8 sps:$4 sm:$0xff]   ;;  %v9479_v22 = vld [vmem:[%s11316_s23 + $0x124] ss:$8 sps:$4 sm:$0xff]  }
 0x134   : > { %7713 = vmatpush1.bf16.msra.mxu1 %v9403_v30  ;;  %8057 = vmatpush1.bf16.msra.mxu0 %v9404_v31  ;;  %v9476_v19 = vld [vmem:[%s11316_s23 + $0x914] ss:$8 sps:$4 sm:$0xff]   ;;  %v9474_v21 = vld [vmem:[%s11316_s23 + $0x910] ss:$8 sps:$4 sm:$0xff]   ;;  %v9482_v23 = vld [vmem:[%s11316_s23 + $0x924] ss:$8 sps:$4 sm:$0xff]  }
 0x135   : > { %7714 = vmatprep.subr.bf16.mxu1 %v9405_v32  ;;  %8058 = vmatprep.subr.bf16.mxu0 %v9407_v33  ;;  %v9477_v24 = vld [vmem:[%s11316_s23 + $0x120] ss:$8 sps:$4 sm:$0xff]   ;;  %v9485_v1 = vld [vmem:[%s11316_s23 + $0x134] ss:$8 sps:$4 sm:$0xff]   ;;  %v9486_v5 = vld [vmem:[%s11316_s23 + $0x930] ss:$8 sps:$4 sm:$0xff]  }
 0x136   : > { %v9480_v0 = vld [vmem:[%s11316_s23 + $0x920] ss:$8 sps:$4 sm:$0xff]   ;;  %v9488_v2 = vld [vmem:[%s11316_s23 + $0x934] ss:$8 sps:$4 sm:$0xff]   ;;  %v9494_v25 = vld [vmem:[%s11316_s23 + $0x944] ss:$8 sps:$4 sm:$0xff]  }
 0x137   : > { %v9489_v26 = vld [vmem:[%s11316_s23 + $0x140] ss:$8 sps:$4 sm:$0xff]   ;;  %v9497_v28 = vld [vmem:[%s11316_s23 + $0x154] ss:$8 sps:$4 sm:$0xff]   ;;  %v9495_v30 = vld [vmem:[%s11316_s23 + $0x150] ss:$8 sps:$4 sm:$0xff]  }
 0x138   : > { %7715 = vmatpush1.bf16.msra.mxu1 %v9409_v34  ;;  %8059 = vmatpush1.bf16.msra.mxu0 %v9410_v35  ;;  %v9492_v27 = vld [vmem:[%s11316_s23 + $0x940] ss:$8 sps:$4 sm:$0xff]   ;;  %v9500_v29 = vld [vmem:[%s11316_s23 + $0x954] ss:$8 sps:$4 sm:$0xff]   ;;  %v9498_v31 = vld [vmem:[%s11316_s23 + $0x950] ss:$8 sps:$4 sm:$0xff]  }
 0x139   : > { %7716 = vmatprep.subr.bf16.mxu1 %v9411_v36  ;;  %8060 = vmatprep.subr.bf16.mxu0 %v9413_v37  ;;  %v9503_v32 = vld [vmem:[%s11316_s23 + $0x164] ss:$8 sps:$4 sm:$0xff]   ;;  %v9501_v36 = vld [vmem:[%s11316_s23 + $0x160] ss:$8 sps:$4 sm:$0xff]   ;;  %s9267_s15 = sshll.u32 (%p10242_p6), %s10171_s17, 3 }
 0x13a   : > { %v9506_v33 = vld [vmem:[%s11316_s23 + $0x964] ss:$8 sps:$4 sm:$0xff]   ;;  %s8553_s27 = scalar_lea.vmem (%p10242_p6), %s12084_s4, %s9267_s15 }
 0x13b   : > { %v11417_v34 = vld [vmem:[%s12080_s0 + $0x8] sm:$0xff] }
 0x13c   : > { %7717 = vmatpush1.bf16.msra.mxu1 %v9415_v38  ;;  %8061 = vmatpush1.bf16.msra.mxu0 %v9416_v39  ;;  %v11422_v35 = vld [vmem:[%s12080_s0 + $0x88] sm:$0xff] }
 0x13d   : > { %7718 = vmatprep.subr.bf16.mxu1 %v9417_v40  ;;  %8062 = vmatprep.subr.bf16.mxu0 %v9419_v41  ;;  %v8716_v37 = vcombine.high %v11417_v34, %v11422_v35  ;;  %v9504_v38 = vld [vmem:[%s11316_s23 + $0x960] ss:$8 sps:$4 sm:$0xff]   ;;  %v9509_v41 = vld [vmem:[%s11316_s23 + $0x174] ss:$8 sps:$4 sm:$0xff]  }
 0x13e   : > { %v11431_v39 = vld [vmem:[%s12080_s0 + $0x48] sm:$0xff] }
 0x13f   : > { %v11436_v40 = vld [vmem:[%s12080_s0 + $0xc8] sm:$0xff] }
 0x140   : > { %7719 = vmatpush1.bf16.msra.mxu1 %v9421_v42  ;;  %8063 = vmatpush1.bf16.msra.mxu0 %v9422_v43  ;;  %v8732_v42 = vcombine.high %v11431_v39, %v11436_v40  ;;  %v9512_v43 = vld [vmem:[%s11316_s23 + $0x974] ss:$8 sps:$4 sm:$0xff]  }
 0x141   : > { %7720 = vmatprep.subr.bf16.mxu1 %v9423_v44  ;;  %8064 = vmatprep.subr.bf16.mxu0 %v9425_v45  ;;  %v9507_v44 = vld [vmem:[%s11316_s23 + $0x170] ss:$8 sps:$4 sm:$0xff]  }
 0x142   : > { %v9510_v45 = vld [vmem:[%s11316_s23 + $0x970] ss:$8 sps:$4 sm:$0xff]  }
 0x144   : > { %7721 = vmatpush1.bf16.msra.mxu1 %v9427_v46  ;;  %8065 = vmatpush1.bf16.msra.mxu0 %v9428_v47  ;;  %v9515_v46 = vld [vmem:[%s11316_s23 + $0x184] ss:$8 sps:$4 sm:$0xff]  }
 0x145   : > { %7722 = vmatprep.subr.bf16.mxu1 %v9429_v48  ;;  %8066 = vmatprep.subr.bf16.mxu0 %v9431_v49  ;;  %v9518_v47 = vld [vmem:[%s11316_s23 + $0x984] ss:$8 sps:$4 sm:$0xff]   ;;  %v9513_v48 = vld [vmem:[%s11316_s23 + $0x180] ss:$8 sps:$4 sm:$0xff]  }
 0x146   : > { %v9516_v49 = vld [vmem:[%s11316_s23 + $0x980] ss:$8 sps:$4 sm:$0xff]  }
 0x148   : > { %7723 = vmatpush1.bf16.msra.mxu1 %v9433_v50  ;;  %8067 = vmatpush1.bf16.msra.mxu0 %v9434_v51  ;;  %v9521_v50 = vld [vmem:[%s11316_s23 + $0x194] ss:$8 sps:$4 sm:$0xff]  }
 0x149   : > { %7724 = vmatprep.subr.bf16.mxu1 %v9435_v52  ;;  %8068 = vmatprep.subr.bf16.mxu0 %v9437_v53  ;;  %v9524_v51 = vld [vmem:[%s11316_s23 + $0x994] ss:$8 sps:$4 sm:$0xff]   ;;  %v9519_v52 = vld [vmem:[%s11316_s23 + $0x190] ss:$8 sps:$4 sm:$0xff]  }
 0x14a   : > { %v9522_v53 = vld [vmem:[%s11316_s23 + $0x990] ss:$8 sps:$4 sm:$0xff]  }
 0x14c   : > { %7725 = vmatpush1.bf16.msra.mxu1 %v9439_v54  ;;  %8069 = vmatpush1.bf16.msra.mxu0 %v9440_v55  ;;  %v9527_v54 = vld [vmem:[%s11316_s23 + $0x1a4] ss:$8 sps:$4 sm:$0xff]  }
 0x14d   : > { %7726 = vmatprep.subr.bf16.mxu1 %v9441_v56  ;;  %8070 = vmatprep.subr.bf16.mxu0 %v9443_v57  ;;  %v9530_v55 = vld [vmem:[%s11316_s23 + $0x9a4] ss:$8 sps:$4 sm:$0xff]   ;;  %v9525_v56 = vld [vmem:[%s11316_s23 + $0x1a0] ss:$8 sps:$4 sm:$0xff]  }
 0x14e   : > { %v9528_v57 = vld [vmem:[%s11316_s23 + $0x9a0] ss:$8 sps:$4 sm:$0xff]  }
 0x150   : > { %7727 = vmatpush1.bf16.msra.mxu1 %v9445_v58  ;;  %8071 = vmatpush1.bf16.msra.mxu0 %v9446_v59  ;;  %v9533_v58 = vld [vmem:[%s11316_s23 + $0x1b4] ss:$8 sps:$4 sm:$0xff]  }
 0x151   : > { %7728 = vmatprep.subr.bf16.mxu1 %v9447_v60  ;;  %8072 = vmatprep.subr.bf16.mxu0 %v9449_v61  ;;  %v9536_v59 = vld [vmem:[%s11316_s23 + $0x9b4] ss:$8 sps:$4 sm:$0xff]   ;;  %v9531_v60 = vld [vmem:[%s11316_s23 + $0x1b0] ss:$8 sps:$4 sm:$0xff]  }
 0x152   : > { %v9534_v61 = vld [vmem:[%s11316_s23 + $0x9b0] ss:$8 sps:$4 sm:$0xff]  }
 0x154   : > { %7729 = vmatpush1.bf16.msra.mxu1 %v9451_v62  ;;  %8073 = vmatpush1.bf16.msra.mxu0 %v9452_v63  ;;  %v9539_v62 = vld [vmem:[%s11316_s23 + $0x1c4] ss:$8 sps:$4 sm:$0xff]  }
 0x155   : > { %7730 = vmatprep.subr.bf16.mxu1 %v9453_v4  ;;  %8074 = vmatprep.subr.bf16.mxu0 %v9455_v7  ;;  %v9542_v63 = vld [vmem:[%s11316_s23 + $0x9c4] ss:$8 sps:$4 sm:$0xff]   ;;  %v9537_v4 = vld [vmem:[%s11316_s23 + $0x1c0] ss:$8 sps:$4 sm:$0xff]  }
 0x156   : > { %v9540_v7 = vld [vmem:[%s11316_s23 + $0x9c0] ss:$8 sps:$4 sm:$0xff]  }
 0x158   : > { %7731 = vmatpush1.bf16.msra.mxu1 %v9457_v8  ;;  %8075 = vmatpush1.bf16.msra.mxu0 %v9458_v9  ;;  %v9545_v8 = vld [vmem:[%s11316_s23 + $0x1d4] ss:$8 sps:$4 sm:$0xff]  }
 0x159   : > { %7732 = vmatprep.subr.bf16.mxu1 %v9459_v10  ;;  %8076 = vmatprep.subr.bf16.mxu0 %v9461_v11  ;;  %v9548_v9 = vld [vmem:[%s11316_s23 + $0x9d4] ss:$8 sps:$4 sm:$0xff]   ;;  %v9543_v10 = vld [vmem:[%s11316_s23 + $0x1d0] ss:$8 sps:$4 sm:$0xff]  }
 0x15a   : > { %v9546_v11 = vld [vmem:[%s11316_s23 + $0x9d0] ss:$8 sps:$4 sm:$0xff]  }
 0x15c   : > { %7733 = vmatpush1.bf16.msra.mxu1 %v9463_v12  ;;  %8077 = vmatpush1.bf16.msra.mxu0 %v9464_v13  ;;  %v9551_v12 = vld [vmem:[%s11316_s23 + $0x1e4] ss:$8 sps:$4 sm:$0xff]  }
 0x15d   : > { %7745 = vmatprep.subr.bf16.mxu1 %v9467_v14  ;;  %8089 = vmatprep.subr.bf16.mxu0 %v9470_v15  ;;  %v9554_v13 = vld [vmem:[%s11316_s23 + $0x9e4] ss:$8 sps:$4 sm:$0xff]   ;;  %v9549_v14 = vld [vmem:[%s11316_s23 + $0x1e0] ss:$8 sps:$4 sm:$0xff]  }
 0x15e   : > { %v9552_v15 = vld [vmem:[%s11316_s23 + $0x9e0] ss:$8 sps:$4 sm:$0xff]  }
 0x15f   : > { %7735 = vmatmul.mubr.bf16.vlgmr.msra.gmra.mrb[0].mxu1 %v8713_v3  ;;  %8079 = vmatmul.mubr.bf16.vlgmr.msra.gmra.mrb[0].mxu0 %v8729_v6  ;;  %v9483_v3 = vld [vmem:[%s11316_s23 + $0x130] ss:$8 sps:$4 sm:$0xff]   ;;  %v9491_v6 = vld [vmem:[%s11316_s23 + $0x144] ss:$8 sps:$4 sm:$0xff]  }
 0x160   : > { %7746 = vmatpush1.bf16.msra.mxu1 %v9465_v16  ;;  %8090 = vmatpush1.bf16.msra.mxu0 %v9468_v17  ;;  %v9557_v16 = vld [vmem:[%s11316_s23 + $0x1f4] ss:$8 sps:$4 sm:$0xff]  }
 0x161   : > { %7747 = vmatprep.subr.bf16.mxu1 %v9473_v18  ;;  %8091 = vmatprep.subr.bf16.mxu0 %v9476_v19  ;;  %v9560_v17 = vld [vmem:[%s11316_s23 + $0x9f4] ss:$8 sps:$4 sm:$0xff]   ;;  %v9555_v18 = vld [vmem:[%s11316_s23 + $0x1f0] ss:$8 sps:$4 sm:$0xff]  }
 0x162   : > { %7777 = vmatprep.mubr.bf16.mxu1 %v8716_v37  ;;  %8121 = vmatprep.mubr.bf16.mxu0 %v8732_v42  ;;  %v9558_v19 = vld [vmem:[%s11316_s23 + $0x9f0] ss:$8 sps:$4 sm:$0xff]   ;;  %v9593_v42 = vld [vmem:[%s11316_s23 + $0x254] ss:$8 sps:$4 sm:$0xff]  }
 0x163   : > { %v9582_v37 = vld [vmem:[%s11316_s23 + $0xa30] ss:$8 sps:$4 sm:$0xff]  }
 0x164   : > { %7748 = vmatpush1.bf16.msra.mxu1 %v9471_v20  ;;  %8092 = vmatpush1.bf16.msra.mxu0 %v9474_v21  ;;  %v9563_v20 = vld [vmem:[%s11316_s23 + $0x204] ss:$8 sps:$4 sm:$0xff]  }
 0x165   : > { %7749 = vmatprep.subr.bf16.mxu1 %v9479_v22  ;;  %8093 = vmatprep.subr.bf16.mxu0 %v9482_v23  ;;  %v9566_v21 = vld [vmem:[%s11316_s23 + $0xa04] ss:$8 sps:$4 sm:$0xff]   ;;  %v8715_v22 = vcombine.low %v11417_v34, %v11422_v35  ;;  %v9561_v23 = vld [vmem:[%s11316_s23 + $0x200] ss:$8 sps:$4 sm:$0xff]   ;;  %v9581_v34 = vld [vmem:[%s11316_s23 + $0x234] ss:$8 sps:$4 sm:$0xff]  }
 0x166   : > { %v9584_v35 = vld [vmem:[%s11316_s23 + $0xa34] ss:$8 sps:$4 sm:$0xff]  }
 0x168   : > { %7750 = vmatpush1.bf16.msra.mxu1 %v9477_v24  ;;  %8094 = vmatpush1.bf16.msra.mxu0 %v9480_v0  ;;  %v8731_v24 = vcombine.low %v11431_v39, %v11436_v40  ;;  %v9564_v0 = vld [vmem:[%s11316_s23 + $0xa00] ss:$8 sps:$4 sm:$0xff]   ;;  %v9590_v39 = vld [vmem:[%s11316_s23 + $0xa44] ss:$8 sps:$4 sm:$0xff]  }
 0x169   : > { %7751 = vmatprep.subr.bf16.mxu1 %v9485_v1  ;;  %8095 = vmatprep.subr.bf16.mxu0 %v9488_v2  ;;  %v9569_v1 = vld [vmem:[%s11316_s23 + $0x214] ss:$8 sps:$4 sm:$0xff]   ;;  %v9585_v40 = vld [vmem:[%s11316_s23 + $0x240] ss:$8 sps:$4 sm:$0xff]  }
 0x16a   : > { %v9572_v2 = vld [vmem:[%s11316_s23 + $0xa14] ss:$8 sps:$4 sm:$0xff]  }
 0x16c   : > { %7752 = vmatpush1.bf16.msra.mxu1 %v9483_v3  ;;  %8096 = vmatpush1.bf16.msra.mxu0 %v9486_v5  ;;  %v11489_v3 = vld [vmem:[%s12080_s0 + $0x10] sm:$0xff] }
 0x16d   : > { %7753 = vmatprep.subr.bf16.mxu1 %v9491_v6  ;;  %8097 = vmatprep.subr.bf16.mxu0 %v9494_v25  ;;  %v11494_v5 = vld [vmem:[%s12080_s0 + $0x90] sm:$0xff] }
 0x16e   : > { %v9567_v6 = vld [vmem:[%s11316_s23 + $0x210] ss:$8 sps:$4 sm:$0xff]   ;;  %v8718_v25 = vcombine.high %v11489_v3, %v11494_v5 }
 0x170   : > { %7754 = vmatpush1.bf16.msra.mxu1 %v9489_v26  ;;  %8098 = vmatpush1.bf16.msra.mxu0 %v9492_v27  ;;  %v9570_v26 = vld [vmem:[%s11316_s23 + $0xa10] ss:$8 sps:$4 sm:$0xff]  }
 0x171   : > { %7755 = vmatprep.subr.bf16.mxu1 %v9497_v28  ;;  %8099 = vmatprep.subr.bf16.mxu0 %v9500_v29  ;;  %v11503_v27 = vld [vmem:[%s12080_s0 + $0x50] sm:$0xff]  ;;  %v9575_v29 = vld [vmem:[%s11316_s23 + $0x224] ss:$8 sps:$4 sm:$0xff]  }
 0x172   : > { %v11508_v28 = vld [vmem:[%s12080_s0 + $0xd0] sm:$0xff] }
 0x174   : > { %7756 = vmatpush1.bf16.msra.mxu1 %v9495_v30  ;;  %8100 = vmatpush1.bf16.msra.mxu0 %v9498_v31  ;;  %v8734_v30 = vcombine.high %v11503_v27, %v11508_v28  ;;  %v9578_v31 = vld [vmem:[%s11316_s23 + $0xa24] ss:$8 sps:$4 sm:$0xff]  }
 0x175   : > { %7757 = vmatprep.subr.bf16.mxu1 %v9503_v32  ;;  %8101 = vmatprep.subr.bf16.mxu0 %v9506_v33  ;;  %v9573_v32 = vld [vmem:[%s11316_s23 + $0x220] ss:$8 sps:$4 sm:$0xff]  }
 0x176   : > { %v9576_v33 = vld [vmem:[%s11316_s23 + $0xa20] ss:$8 sps:$4 sm:$0xff]  }
 0x178   : > { %7758 = vmatpush1.bf16.msra.mxu1 %v9501_v36  ;;  %8102 = vmatpush1.bf16.msra.mxu0 %v9504_v38  ;;  %v9579_v36 = vld [vmem:[%s11316_s23 + $0x230] ss:$8 sps:$4 sm:$0xff]   ;;  %v9587_v38 = vld [vmem:[%s11316_s23 + $0x244] ss:$8 sps:$4 sm:$0xff]  }
 0x179   : > { %7759 = vmatprep.subr.bf16.mxu1 %v9509_v41  ;;  %8103 = vmatprep.subr.bf16.mxu0 %v9512_v43  ;;  %v9588_v41 = vld [vmem:[%s11316_s23 + $0xa40] ss:$8 sps:$4 sm:$0xff]   ;;  %v9596_v43 = vld [vmem:[%s11316_s23 + $0xa54] ss:$8 sps:$4 sm:$0xff]  }
 0x17c   : > { %7760 = vmatpush1.bf16.msra.mxu1 %v9507_v44  ;;  %8104 = vmatpush1.bf16.msra.mxu0 %v9510_v45  ;;  %v9591_v44 = vld [vmem:[%s11316_s23 + $0x250] ss:$8 sps:$4 sm:$0xff]  }
 0x17d   : > { %7761 = vmatprep.subr.bf16.mxu1 %v9515_v46  ;;  %8105 = vmatprep.subr.bf16.mxu0 %v9518_v47  ;;  %v9594_v45 = vld [vmem:[%s11316_s23 + $0xa50] ss:$8 sps:$4 sm:$0xff]   ;;  %v9599_v46 = vld [vmem:[%s11316_s23 + $0x264] ss:$8 sps:$4 sm:$0xff]  }
 0x17e   : > { %v9602_v47 = vld [vmem:[%s11316_s23 + $0xa64] ss:$8 sps:$4 sm:$0xff]  }
 0x180   : > { %7762 = vmatpush1.bf16.msra.mxu1 %v9513_v48  ;;  %8106 = vmatpush1.bf16.msra.mxu0 %v9516_v49  ;;  %v9597_v48 = vld [vmem:[%s11316_s23 + $0x260] ss:$8 sps:$4 sm:$0xff]  }
 0x181   : > { %7763 = vmatprep.subr.bf16.mxu1 %v9521_v50  ;;  %8107 = vmatprep.subr.bf16.mxu0 %v9524_v51  ;;  %v9600_v49 = vld [vmem:[%s11316_s23 + $0xa60] ss:$8 sps:$4 sm:$0xff]   ;;  %v9605_v50 = vld [vmem:[%s11316_s23 + $0x274] ss:$8 sps:$4 sm:$0xff]  }
 0x182   : > { %v9608_v51 = vld [vmem:[%s11316_s23 + $0xa74] ss:$8 sps:$4 sm:$0xff]  }
 0x184   : > { %7764 = vmatpush1.bf16.msra.mxu1 %v9519_v52  ;;  %8108 = vmatpush1.bf16.msra.mxu0 %v9522_v53  ;;  %v9603_v52 = vld [vmem:[%s11316_s23 + $0x270] ss:$8 sps:$4 sm:$0xff]  }
 0x185   : > { %7765 = vmatprep.subr.bf16.mxu1 %v9527_v54  ;;  %8109 = vmatprep.subr.bf16.mxu0 %v9530_v55  ;;  %v9606_v53 = vld [vmem:[%s11316_s23 + $0xa70] ss:$8 sps:$4 sm:$0xff]   ;;  %v9611_v54 = vld [vmem:[%s11316_s23 + $0x284] ss:$8 sps:$4 sm:$0xff]  }
 0x186   : > { %v9614_v55 = vld [vmem:[%s11316_s23 + $0xa84] ss:$8 sps:$4 sm:$0xff]  }
 0x188   : > { %7766 = vmatpush1.bf16.msra.mxu1 %v9525_v56  ;;  %8110 = vmatpush1.bf16.msra.mxu0 %v9528_v57  ;;  %v9609_v56 = vld [vmem:[%s11316_s23 + $0x280] ss:$8 sps:$4 sm:$0xff]  }
 0x189   : > { %7767 = vmatprep.subr.bf16.mxu1 %v9533_v58  ;;  %8111 = vmatprep.subr.bf16.mxu0 %v9536_v59  ;;  %v9612_v57 = vld [vmem:[%s11316_s23 + $0xa80] ss:$8 sps:$4 sm:$0xff]   ;;  %v9617_v58 = vld [vmem:[%s11316_s23 + $0x294] ss:$8 sps:$4 sm:$0xff]  }
 0x18a   : > { %v9620_v59 = vld [vmem:[%s11316_s23 + $0xa94] ss:$8 sps:$4 sm:$0xff]  }
 0x18c   : > { %7768 = vmatpush1.bf16.msra.mxu1 %v9531_v60  ;;  %8112 = vmatpush1.bf16.msra.mxu0 %v9534_v61  ;;  %v9615_v60 = vld [vmem:[%s11316_s23 + $0x290] ss:$8 sps:$4 sm:$0xff]  }
 0x18d   : > { %7769 = vmatprep.subr.bf16.mxu1 %v9539_v62  ;;  %8113 = vmatprep.subr.bf16.mxu0 %v9542_v63  ;;  %v9618_v61 = vld [vmem:[%s11316_s23 + $0xa90] ss:$8 sps:$4 sm:$0xff]   ;;  %v9623_v62 = vld [vmem:[%s11316_s23 + $0x2a4] ss:$8 sps:$4 sm:$0xff]  }
 0x18e   : > { %v9626_v63 = vld [vmem:[%s11316_s23 + $0xaa4] ss:$8 sps:$4 sm:$0xff]  }
 0x190   : > { %7770 = vmatpush1.bf16.msra.mxu1 %v9537_v4  ;;  %8114 = vmatpush1.bf16.msra.mxu0 %v9540_v7  ;;  %v9621_v4 = vld [vmem:[%s11316_s23 + $0x2a0] ss:$8 sps:$4 sm:$0xff]  }
 0x191   : > { %7771 = vmatprep.subr.bf16.mxu1 %v9545_v8  ;;  %8115 = vmatprep.subr.bf16.mxu0 %v9548_v9  ;;  %v9624_v7 = vld [vmem:[%s11316_s23 + $0xaa0] ss:$8 sps:$4 sm:$0xff]   ;;  %v9629_v8 = vld [vmem:[%s11316_s23 + $0x2b4] ss:$8 sps:$4 sm:$0xff]  }
 0x192   : > { %v9632_v9 = vld [vmem:[%s11316_s23 + $0xab4] ss:$8 sps:$4 sm:$0xff]  }
 0x194   : > { %7772 = vmatpush1.bf16.msra.mxu1 %v9543_v10  ;;  %8116 = vmatpush1.bf16.msra.mxu0 %v9546_v11  ;;  %v9627_v10 = vld [vmem:[%s11316_s23 + $0x2b0] ss:$8 sps:$4 sm:$0xff]  }
 0x195   : > { %7773 = vmatprep.subr.bf16.mxu1 %v9551_v12  ;;  %8117 = vmatprep.subr.bf16.mxu0 %v9554_v13  ;;  %v9630_v11 = vld [vmem:[%s11316_s23 + $0xab0] ss:$8 sps:$4 sm:$0xff]   ;;  %v9635_v12 = vld [vmem:[%s11316_s23 + $0x2c4] ss:$8 sps:$4 sm:$0xff]  }
 0x196   : > { %v9638_v13 = vld [vmem:[%s11316_s23 + $0xac4] ss:$8 sps:$4 sm:$0xff]  }
 0x198   : > { %7774 = vmatpush1.bf16.msra.mxu1 %v9549_v14  ;;  %8118 = vmatpush1.bf16.msra.mxu0 %v9552_v15  ;;  %v9633_v14 = vld [vmem:[%s11316_s23 + $0x2c0] ss:$8 sps:$4 sm:$0xff]  }
 0x199   : > { %7775 = vmatprep.subr.bf16.mxu1 %v9557_v16  ;;  %8119 = vmatprep.subr.bf16.mxu0 %v9560_v17  ;;  %v9636_v15 = vld [vmem:[%s11316_s23 + $0xac0] ss:$8 sps:$4 sm:$0xff]   ;;  %v9641_v16 = vld [vmem:[%s11316_s23 + $0x2d4] ss:$8 sps:$4 sm:$0xff]  }
 0x19a   : > { %v9644_v17 = vld [vmem:[%s11316_s23 + $0xad4] ss:$8 sps:$4 sm:$0xff]  }
 0x19c   : > { %7776 = vmatpush1.bf16.msra.mxu1 %v9555_v18  ;;  %8120 = vmatpush1.bf16.msra.mxu0 %v9558_v19  ;;  %v9639_v18 = vld [vmem:[%s11316_s23 + $0x2d0] ss:$8 sps:$4 sm:$0xff]  }
 0x19d   : > { %7788 = vmatprep.subr.bf16.mxu1 %v9563_v20  ;;  %8132 = vmatprep.subr.bf16.mxu0 %v9566_v21  ;;  %v9642_v19 = vld [vmem:[%s11316_s23 + $0xad0] ss:$8 sps:$4 sm:$0xff]   ;;  %v9647_v20 = vld [vmem:[%s11316_s23 + $0x2e4] ss:$8 sps:$4 sm:$0xff]  }
 0x19e   : > { %v9650_v21 = vld [vmem:[%s11316_s23 + $0xae4] ss:$8 sps:$4 sm:$0xff]  }
 0x19f   : > { %7778 = vmatmul.mubr.bf16.vlgmr.msra.gmra.mrb[0].mxu1 %v8715_v22  ;;  %8122 = vmatmul.mubr.bf16.vlgmr.msra.gmra.mrb[0].mxu0 %v8731_v24  ;;  %v9645_v22 = vld [vmem:[%s11316_s23 + $0x2e0] ss:$8 sps:$4 sm:$0xff]   ;;  %v9653_v24 = vld [vmem:[%s11316_s23 + $0x2f4] ss:$8 sps:$4 sm:$0xff]  }
 0x1a0   : > { %7789 = vmatpush1.bf16.msra.mxu1 %v9561_v23  ;;  %8133 = vmatpush1.bf16.msra.mxu0 %v9564_v0  ;;  %v9648_v23 = vld [vmem:[%s11316_s23 + $0xae0] ss:$8 sps:$4 sm:$0xff]   ;;  %v9656_v0 = vld [vmem:[%s11316_s23 + $0xaf4] ss:$8 sps:$4 sm:$0xff]  }
 0x1a1   : > { %7790 = vmatprep.subr.bf16.mxu1 %v9569_v1  ;;  %8134 = vmatprep.subr.bf16.mxu0 %v9572_v2  ;;  %v9651_v1 = vld [vmem:[%s11316_s23 + $0x2f0] ss:$8 sps:$4 sm:$0xff]  }
 0x1a2   : > { %7820 = vmatprep.mubr.bf16.mxu1 %v8718_v25  ;;  %8164 = vmatprep.mubr.bf16.mxu0 %v8734_v30  ;;  %v9654_v2 = vld [vmem:[%s11316_s23 + $0xaf0] ss:$8 sps:$4 sm:$0xff]   ;;  %v9662_v25 = vld [vmem:[%s11316_s23 + $0xb04] ss:$8 sps:$4 sm:$0xff]  }
 0x1a3   : > { %v11575_v30 = vld [vmem:[%s12080_s0 + $0x18] sm:$0xff] }
 0x1a4   : > { %7791 = vmatpush1.bf16.msra.mxu1 %v9567_v6  ;;  %8135 = vmatpush1.bf16.msra.mxu0 %v9570_v26  ;;  %v9659_v6 = vld [vmem:[%s11316_s23 + $0x304] ss:$8 sps:$4 sm:$0xff]   ;;  %v9657_v26 = vld [vmem:[%s11316_s23 + $0x300] ss:$8 sps:$4 sm:$0xff]  }
 0x1a5   : > { %7792 = vmatprep.subr.bf16.mxu1 %v9575_v29  ;;  %8136 = vmatprep.subr.bf16.mxu0 %v9578_v31  ;;  %v9660_v29 = vld [vmem:[%s11316_s23 + $0xb00] ss:$8 sps:$4 sm:$0xff]   ;;  %v11580_v31 = vld [vmem:[%s12080_s0 + $0x98] sm:$0xff] }
 0x1a8   : > { %7793 = vmatpush1.bf16.msra.mxu1 %v9573_v32  ;;  %8137 = vmatpush1.bf16.msra.mxu0 %v9576_v33  ;;  %v8717_v32 = vcombine.low %v11489_v3, %v11494_v5  ;;  %v8733_v33 = vcombine.low %v11503_v27, %v11508_v28  ;;  %v9668_v3 = vld [vmem:[%s11316_s23 + $0xb14] ss:$8 sps:$4 sm:$0xff]   ;;  %v8720_v5 = vcombine.high %v11575_v30, %v11580_v31  ;;  %v9663_v28 = vld [vmem:[%s11316_s23 + $0x310] ss:$8 sps:$4 sm:$0xff]  }
 0x1a9   : > { %7794 = vmatprep.subr.bf16.mxu1 %v9581_v34  ;;  %8138 = vmatprep.subr.bf16.mxu0 %v9584_v35  ;;  %v11589_v34 = vld [vmem:[%s12080_s0 + $0x58] sm:$0xff] }
 0x1aa   : > { %v11594_v35 = vld [vmem:[%s12080_s0 + $0xd8] sm:$0xff] }
 0x1ab   : > { %v8736_v27 = vcombine.high %v11589_v34, %v11594_v35 }
 0x1ac   : > { %7795 = vmatpush1.bf16.msra.mxu1 %v9579_v36  ;;  %8139 = vmatpush1.bf16.msra.mxu0 %v9582_v37  ;;  %v9665_v36 = vld [vmem:[%s11316_s23 + $0x314] ss:$8 sps:$4 sm:$0xff]   ;;  %v9666_v37 = vld [vmem:[%s11316_s23 + $0xb10] ss:$8 sps:$4 sm:$0xff]  }
 0x1ad   : > { %7796 = vmatprep.subr.bf16.mxu1 %v9587_v38  ;;  %8140 = vmatprep.subr.bf16.mxu0 %v9590_v39  ;;  %v9671_v38 = vld [vmem:[%s11316_s23 + $0x324] ss:$8 sps:$4 sm:$0xff]  }
 0x1ae   : > { %v9674_v39 = vld [vmem:[%s11316_s23 + $0xb24] ss:$8 sps:$4 sm:$0xff]  }
 0x1b0   : > { %7797 = vmatpush1.bf16.msra.mxu1 %v9585_v40  ;;  %8141 = vmatpush1.bf16.msra.mxu0 %v9588_v41  ;;  %v9669_v40 = vld [vmem:[%s11316_s23 + $0x320] ss:$8 sps:$4 sm:$0xff]  }
 0x1b1   : > { %7798 = vmatprep.subr.bf16.mxu1 %v9593_v42  ;;  %8142 = vmatprep.subr.bf16.mxu0 %v9596_v43  ;;  %v9672_v41 = vld [vmem:[%s11316_s23 + $0xb20] ss:$8 sps:$4 sm:$0xff]   ;;  %v9677_v42 = vld [vmem:[%s11316_s23 + $0x334] ss:$8 sps:$4 sm:$0xff]  }
 0x1b2   : > { %v9680_v43 = vld [vmem:[%s11316_s23 + $0xb34] ss:$8 sps:$4 sm:$0xff]  }
 0x1b4   : > { %7799 = vmatpush1.bf16.msra.mxu1 %v9591_v44  ;;  %8143 = vmatpush1.bf16.msra.mxu0 %v9594_v45  ;;  %v9675_v44 = vld [vmem:[%s11316_s23 + $0x330] ss:$8 sps:$4 sm:$0xff]  }
 0x1b5   : > { %7800 = vmatprep.subr.bf16.mxu1 %v9599_v46  ;;  %8144 = vmatprep.subr.bf16.mxu0 %v9602_v47  ;;  %v9678_v45 = vld [vmem:[%s11316_s23 + $0xb30] ss:$8 sps:$4 sm:$0xff]   ;;  %v9683_v46 = vld [vmem:[%s11316_s23 + $0x344] ss:$8 sps:$4 sm:$0xff]  }
 0x1b6   : > { %v9686_v47 = vld [vmem:[%s11316_s23 + $0xb44] ss:$8 sps:$4 sm:$0xff]  }
 0x1b8   : > { %7801 = vmatpush1.bf16.msra.mxu1 %v9597_v48  ;;  %8145 = vmatpush1.bf16.msra.mxu0 %v9600_v49  ;;  %v9681_v48 = vld [vmem:[%s11316_s23 + $0x340] ss:$8 sps:$4 sm:$0xff]  }
 0x1b9   : > { %7802 = vmatprep.subr.bf16.mxu1 %v9605_v50  ;;  %8146 = vmatprep.subr.bf16.mxu0 %v9608_v51  ;;  %v9684_v49 = vld [vmem:[%s11316_s23 + $0xb40] ss:$8 sps:$4 sm:$0xff]   ;;  %v9689_v50 = vld [vmem:[%s11316_s23 + $0x354] ss:$8 sps:$4 sm:$0xff]  }
 0x1ba   : > { %v9692_v51 = vld [vmem:[%s11316_s23 + $0xb54] ss:$8 sps:$4 sm:$0xff]  }
 0x1bc   : > { %7803 = vmatpush1.bf16.msra.mxu1 %v9603_v52  ;;  %8147 = vmatpush1.bf16.msra.mxu0 %v9606_v53  ;;  %v9687_v52 = vld [vmem:[%s11316_s23 + $0x350] ss:$8 sps:$4 sm:$0xff]  }
 0x1bd   : > { %7804 = vmatprep.subr.bf16.mxu1 %v9611_v54  ;;  %8148 = vmatprep.subr.bf16.mxu0 %v9614_v55  ;;  %v9690_v53 = vld [vmem:[%s11316_s23 + $0xb50] ss:$8 sps:$4 sm:$0xff]   ;;  %v9695_v54 = vld [vmem:[%s11316_s23 + $0x364] ss:$8 sps:$4 sm:$0xff]  }
 0x1be   : > { %v9698_v55 = vld [vmem:[%s11316_s23 + $0xb64] ss:$8 sps:$4 sm:$0xff]  }
 0x1c0   : > { %7805 = vmatpush1.bf16.msra.mxu1 %v9609_v56  ;;  %8149 = vmatpush1.bf16.msra.mxu0 %v9612_v57  ;;  %v9693_v56 = vld [vmem:[%s11316_s23 + $0x360] ss:$8 sps:$4 sm:$0xff]  }
 0x1c1   : > { %7806 = vmatprep.subr.bf16.mxu1 %v9617_v58  ;;  %8150 = vmatprep.subr.bf16.mxu0 %v9620_v59  ;;  %v9696_v57 = vld [vmem:[%s11316_s23 + $0xb60] ss:$8 sps:$4 sm:$0xff]   ;;  %v9701_v58 = vld [vmem:[%s11316_s23 + $0x374] ss:$8 sps:$4 sm:$0xff]  }
 0x1c2   : > { %v9704_v59 = vld [vmem:[%s11316_s23 + $0xb74] ss:$8 sps:$4 sm:$0xff]  }
 0x1c4   : > { %7807 = vmatpush1.bf16.msra.mxu1 %v9615_v60  ;;  %8151 = vmatpush1.bf16.msra.mxu0 %v9618_v61  ;;  %v9699_v60 = vld [vmem:[%s11316_s23 + $0x370] ss:$8 sps:$4 sm:$0xff]  }
 0x1c5   : > { %7808 = vmatprep.subr.bf16.mxu1 %v9623_v62  ;;  %8152 = vmatprep.subr.bf16.mxu0 %v9626_v63  ;;  %v9702_v61 = vld [vmem:[%s11316_s23 + $0xb70] ss:$8 sps:$4 sm:$0xff]   ;;  %v9707_v62 = vld [vmem:[%s11316_s23 + $0x384] ss:$8 sps:$4 sm:$0xff]  }
 0x1c6   : > { %v9710_v63 = vld [vmem:[%s11316_s23 + $0xb84] ss:$8 sps:$4 sm:$0xff]  }
 0x1c8   : > { %7809 = vmatpush1.bf16.msra.mxu1 %v9621_v4  ;;  %8153 = vmatpush1.bf16.msra.mxu0 %v9624_v7  ;;  %v9705_v4 = vld [vmem:[%s11316_s23 + $0x380] ss:$8 sps:$4 sm:$0xff]  }
 0x1c9   : > { %7810 = vmatprep.subr.bf16.mxu1 %v9629_v8  ;;  %8154 = vmatprep.subr.bf16.mxu0 %v9632_v9  ;;  %v9708_v7 = vld [vmem:[%s11316_s23 + $0xb80] ss:$8 sps:$4 sm:$0xff]   ;;  %v9713_v8 = vld [vmem:[%s11316_s23 + $0x394] ss:$8 sps:$4 sm:$0xff]  }
 0x1ca   : > { %v9716_v9 = vld [vmem:[%s11316_s23 + $0xb94] ss:$8 sps:$4 sm:$0xff]  }
 0x1cc   : > { %7811 = vmatpush1.bf16.msra.mxu1 %v9627_v10  ;;  %8155 = vmatpush1.bf16.msra.mxu0 %v9630_v11  ;;  %v9711_v10 = vld [vmem:[%s11316_s23 + $0x390] ss:$8 sps:$4 sm:$0xff]  }
 0x1cd   : > { %7812 = vmatprep.subr.bf16.mxu1 %v9635_v12  ;;  %8156 = vmatprep.subr.bf16.mxu0 %v9638_v13  ;;  %v9714_v11 = vld [vmem:[%s11316_s23 + $0xb90] ss:$8 sps:$4 sm:$0xff]   ;;  %v9719_v12 = vld [vmem:[%s11316_s23 + $0x3a4] ss:$8 sps:$4 sm:$0xff]  }
 0x1ce   : > { %v9722_v13 = vld [vmem:[%s11316_s23 + $0xba4] ss:$8 sps:$4 sm:$0xff]  }
 0x1d0   : > { %7813 = vmatpush1.bf16.msra.mxu1 %v9633_v14  ;;  %8157 = vmatpush1.bf16.msra.mxu0 %v9636_v15  ;;  %v9717_v14 = vld [vmem:[%s11316_s23 + $0x3a0] ss:$8 sps:$4 sm:$0xff]  }
 0x1d1   : > { %7814 = vmatprep.subr.bf16.mxu1 %v9641_v16  ;;  %8158 = vmatprep.subr.bf16.mxu0 %v9644_v17  ;;  %v9720_v15 = vld [vmem:[%s11316_s23 + $0xba0] ss:$8 sps:$4 sm:$0xff]   ;;  %v9725_v16 = vld [vmem:[%s11316_s23 + $0x3b4] ss:$8 sps:$4 sm:$0xff]  }
 0x1d2   : > { %v9728_v17 = vld [vmem:[%s11316_s23 + $0xbb4] ss:$8 sps:$4 sm:$0xff]  }
 0x1d4   : > { %7815 = vmatpush1.bf16.msra.mxu1 %v9639_v18  ;;  %8159 = vmatpush1.bf16.msra.mxu0 %v9642_v19  ;;  %v9723_v18 = vld [vmem:[%s11316_s23 + $0x3b0] ss:$8 sps:$4 sm:$0xff]  }
 0x1d5   : > { %7816 = vmatprep.subr.bf16.mxu1 %v9647_v20  ;;  %8160 = vmatprep.subr.bf16.mxu0 %v9650_v21  ;;  %v9726_v19 = vld [vmem:[%s11316_s23 + $0xbb0] ss:$8 sps:$4 sm:$0xff]   ;;  %v9731_v20 = vld [vmem:[%s11316_s23 + $0x3c4] ss:$8 sps:$4 sm:$0xff]  }
 0x1d6   : > { %v9734_v21 = vld [vmem:[%s11316_s23 + $0xbc4] ss:$8 sps:$4 sm:$0xff]  }
 0x1d8   : > { %7817 = vmatpush1.bf16.msra.mxu1 %v9645_v22  ;;  %8161 = vmatpush1.bf16.msra.mxu0 %v9648_v23  ;;  %v9729_v22 = vld [vmem:[%s11316_s23 + $0x3c0] ss:$8 sps:$4 sm:$0xff]  }
 0x1d9   : > { %7818 = vmatprep.subr.bf16.mxu1 %v9653_v24  ;;  %8162 = vmatprep.subr.bf16.mxu0 %v9656_v0  ;;  %v9732_v23 = vld [vmem:[%s11316_s23 + $0xbc0] ss:$8 sps:$4 sm:$0xff]   ;;  %v9737_v24 = vld [vmem:[%s11316_s23 + $0x3d4] ss:$8 sps:$4 sm:$0xff]  }
 0x1da   : > { %v9740_v0 = vld [vmem:[%s11316_s23 + $0xbd4] ss:$8 sps:$4 sm:$0xff]  }
 0x1dc   : > { %7819 = vmatpush1.bf16.msra.mxu1 %v9651_v1  ;;  %8163 = vmatpush1.bf16.msra.mxu0 %v9654_v2  ;;  %v9735_v1 = vld [vmem:[%s11316_s23 + $0x3d0] ss:$8 sps:$4 sm:$0xff]  }
 0x1dd   : > { %7831 = vmatprep.subr.bf16.mxu1 %v9659_v6  ;;  %8175 = vmatprep.subr.bf16.mxu0 %v9662_v25  ;;  %v9738_v2 = vld [vmem:[%s11316_s23 + $0xbd0] ss:$8 sps:$4 sm:$0xff]   ;;  %v9743_v6 = vld [vmem:[%s11316_s23 + $0x3e4] ss:$8 sps:$4 sm:$0xff]  }
 0x1de   : > { %v9746_v25 = vld [vmem:[%s11316_s23 + $0xbe4] ss:$8 sps:$4 sm:$0xff]  }
 0x1df   : > { %7821 = vmatmul.mubr.bf16.vlgmr.msra.gmra.mrb[0].mxu1 %v8717_v32  ;;  %8165 = vmatmul.mubr.bf16.vlgmr.msra.gmra.mrb[0].mxu0 %v8733_v33  ;;  %v9749_v32 = vld [vmem:[%s11316_s23 + $0x3f4] ss:$8 sps:$4 sm:$0xff]  }
 0x1e0   : > { %7832 = vmatpush1.bf16.msra.mxu1 %v9657_v26  ;;  %8176 = vmatpush1.bf16.msra.mxu0 %v9660_v29  ;;  %v9741_v26 = vld [vmem:[%s11316_s23 + $0x3e0] ss:$8 sps:$4 sm:$0xff]   ;;  %v9752_v33 = vld [vmem:[%s11316_s23 + $0xbf4] ss:$8 sps:$4 sm:$0xff]  }
 0x1e1   : > { %7833 = vmatprep.subr.bf16.mxu1 %v9665_v36  ;;  %8177 = vmatprep.subr.bf16.mxu0 %v9668_v3  ;;  %v9744_v29 = vld [vmem:[%s11316_s23 + $0xbe0] ss:$8 sps:$4 sm:$0xff]   ;;  %v9747_v36 = vld [vmem:[%s11316_s23 + $0x3f0] ss:$8 sps:$4 sm:$0xff]  }
 0x1e2   : > { %7863 = vmatprep.mubr.bf16.mxu1 %v8720_v5  ;;  %8207 = vmatprep.mubr.bf16.mxu0 %v8736_v27  ;;  %v9750_v3 = vld [vmem:[%s11316_s23 + $0xbf0] ss:$8 sps:$4 sm:$0xff]   ;;  %v9755_v5 = vld [vmem:[%s11316_s23 + $0x404] ss:$8 sps:$4 sm:$0xff]  }
 0x1e3   : > { %v9758_v27 = vld [vmem:[%s11316_s23 + $0xc04] ss:$8 sps:$4 sm:$0xff]  }
 0x1e4   : > { %7834 = vmatpush1.bf16.msra.mxu1 %v9663_v28  ;;  %8178 = vmatpush1.bf16.msra.mxu0 %v9666_v37  ;;  %v9753_v28 = vld [vmem:[%s11316_s23 + $0x400] ss:$8 sps:$4 sm:$0xff]  }
 0x1e5   : > { %7835 = vmatprep.subr.bf16.mxu1 %v9671_v38  ;;  %8179 = vmatprep.subr.bf16.mxu0 %v9674_v39  ;;  %v9756_v37 = vld [vmem:[%s11316_s23 + $0xc00] ss:$8 sps:$4 sm:$0xff]  }
 0x1e6   : > { %v11667_v38 = vld [vmem:[%s12080_s0 + $0x20] sm:$0xff] }
 0x1e7   : > { %v11672_v39 = vld [vmem:[%s12080_s0 + $0xa0] sm:$0xff] }
 0x1e8   : > { %7836 = vmatpush1.bf16.msra.mxu1 %v9669_v40  ;;  %8180 = vmatpush1.bf16.msra.mxu0 %v9672_v41  ;;  %v8719_v40 = vcombine.low %v11575_v30, %v11580_v31  ;;  %v8735_v41 = vcombine.low %v11589_v34, %v11594_v35  ;;  %v9764_v30 = vld [vmem:[%s11316_s23 + $0xc14] ss:$8 sps:$4 sm:$0xff]   ;;  %v8722_v31 = vcombine.high %v11667_v38, %v11672_v39  ;;  %v9759_v35 = vld [vmem:[%s11316_s23 + $0x410] ss:$8 sps:$4 sm:$0xff]  }
 0x1e9   : > { %7837 = vmatprep.subr.bf16.mxu1 %v9677_v42  ;;  %8181 = vmatprep.subr.bf16.mxu0 %v9680_v43  ;;  %v11681_v42 = vld [vmem:[%s12080_s0 + $0x60] sm:$0xff] }
 0x1ea   : > { %v11686_v43 = vld [vmem:[%s12080_s0 + $0xe0] sm:$0xff] }
 0x1eb   : > { %v8738_v34 = vcombine.high %v11681_v42, %v11686_v43 }
 0x1ec   : > { %7838 = vmatpush1.bf16.msra.mxu1 %v9675_v44  ;;  %8182 = vmatpush1.bf16.msra.mxu0 %v9678_v45  ;;  %v9761_v44 = vld [vmem:[%s11316_s23 + $0x414] ss:$8 sps:$4 sm:$0xff]   ;;  %v9762_v45 = vld [vmem:[%s11316_s23 + $0xc10] ss:$8 sps:$4 sm:$0xff]  }
 0x1ed   : > { %7839 = vmatprep.subr.bf16.mxu1 %v9683_v46  ;;  %8183 = vmatprep.subr.bf16.mxu0 %v9686_v47  ;;  %v9767_v46 = vld [vmem:[%s11316_s23 + $0x424] ss:$8 sps:$4 sm:$0xff]  }
 0x1ee   : > { %v9770_v47 = vld [vmem:[%s11316_s23 + $0xc24] ss:$8 sps:$4 sm:$0xff]  }
 0x1f0   : > { %7840 = vmatpush1.bf16.msra.mxu1 %v9681_v48  ;;  %8184 = vmatpush1.bf16.msra.mxu0 %v9684_v49  ;;  %v9765_v48 = vld [vmem:[%s11316_s23 + $0x420] ss:$8 sps:$4 sm:$0xff]  }
 0x1f1   : > { %7841 = vmatprep.subr.bf16.mxu1 %v9689_v50  ;;  %8185 = vmatprep.subr.bf16.mxu0 %v9692_v51  ;;  %v9768_v49 = vld [vmem:[%s11316_s23 + $0xc20] ss:$8 sps:$4 sm:$0xff]   ;;  %v9773_v50 = vld [vmem:[%s11316_s23 + $0x434] ss:$8 sps:$4 sm:$0xff]  }
 0x1f2   : > { %v9776_v51 = vld [vmem:[%s11316_s23 + $0xc34] ss:$8 sps:$4 sm:$0xff]  }
 0x1f4   : > { %7842 = vmatpush1.bf16.msra.mxu1 %v9687_v52  ;;  %8186 = vmatpush1.bf16.msra.mxu0 %v9690_v53  ;;  %v9771_v52 = vld [vmem:[%s11316_s23 + $0x430] ss:$8 sps:$4 sm:$0xff]  }
 0x1f5   : > { %7843 = vmatprep.subr.bf16.mxu1 %v9695_v54  ;;  %8187 = vmatprep.subr.bf16.mxu0 %v9698_v55  ;;  %v9774_v53 = vld [vmem:[%s11316_s23 + $0xc30] ss:$8 sps:$4 sm:$0xff]   ;;  %v9779_v54 = vld [vmem:[%s11316_s23 + $0x444] ss:$8 sps:$4 sm:$0xff]  }
 0x1f6   : > { %v9782_v55 = vld [vmem:[%s11316_s23 + $0xc44] ss:$8 sps:$4 sm:$0xff]  }
 0x1f8   : > { %7844 = vmatpush1.bf16.msra.mxu1 %v9693_v56  ;;  %8188 = vmatpush1.bf16.msra.mxu0 %v9696_v57  ;;  %v9777_v56 = vld [vmem:[%s11316_s23 + $0x440] ss:$8 sps:$4 sm:$0xff]  }
 0x1f9   : > { %7845 = vmatprep.subr.bf16.mxu1 %v9701_v58  ;;  %8189 = vmatprep.subr.bf16.mxu0 %v9704_v59  ;;  %v9780_v57 = vld [vmem:[%s11316_s23 + $0xc40] ss:$8 sps:$4 sm:$0xff]   ;;  %v9785_v58 = vld [vmem:[%s11316_s23 + $0x454] ss:$8 sps:$4 sm:$0xff]  }
 0x1fa   : > { %v9788_v59 = vld [vmem:[%s11316_s23 + $0xc54] ss:$8 sps:$4 sm:$0xff]  }
 0x1fc   : > { %7846 = vmatpush1.bf16.msra.mxu1 %v9699_v60  ;;  %8190 = vmatpush1.bf16.msra.mxu0 %v9702_v61  ;;  %v9783_v60 = vld [vmem:[%s11316_s23 + $0x450] ss:$8 sps:$4 sm:$0xff]  }
 0x1fd   : > { %7847 = vmatprep.subr.bf16.mxu1 %v9707_v62  ;;  %8191 = vmatprep.subr.bf16.mxu0 %v9710_v63  ;;  %v9786_v61 = vld [vmem:[%s11316_s23 + $0xc50] ss:$8 sps:$4 sm:$0xff]   ;;  %v9791_v62 = vld [vmem:[%s11316_s23 + $0x464] ss:$8 sps:$4 sm:$0xff]  }
 0x1fe   : > { %v9794_v63 = vld [vmem:[%s11316_s23 + $0xc64] ss:$8 sps:$4 sm:$0xff]  }
 0x200   : > { %7848 = vmatpush1.bf16.msra.mxu1 %v9705_v4  ;;  %8192 = vmatpush1.bf16.msra.mxu0 %v9708_v7  ;;  %v9789_v4 = vld [vmem:[%s11316_s23 + $0x460] ss:$8 sps:$4 sm:$0xff]  }
 0x201   : > { %7849 = vmatprep.subr.bf16.mxu1 %v9713_v8  ;;  %8193 = vmatprep.subr.bf16.mxu0 %v9716_v9  ;;  %v9792_v7 = vld [vmem:[%s11316_s23 + $0xc60] ss:$8 sps:$4 sm:$0xff]   ;;  %v9797_v8 = vld [vmem:[%s11316_s23 + $0x474] ss:$8 sps:$4 sm:$0xff]  }
 0x202   : > { %v9800_v9 = vld [vmem:[%s11316_s23 + $0xc74] ss:$8 sps:$4 sm:$0xff]  }
 0x204   : > { %7850 = vmatpush1.bf16.msra.mxu1 %v9711_v10  ;;  %8194 = vmatpush1.bf16.msra.mxu0 %v9714_v11  ;;  %v9795_v10 = vld [vmem:[%s11316_s23 + $0x470] ss:$8 sps:$4 sm:$0xff]  }
 0x205   : > { %7851 = vmatprep.subr.bf16.mxu1 %v9719_v12  ;;  %8195 = vmatprep.subr.bf16.mxu0 %v9722_v13  ;;  %v9798_v11 = vld [vmem:[%s11316_s23 + $0xc70] ss:$8 sps:$4 sm:$0xff]   ;;  %v9803_v12 = vld [vmem:[%s11316_s23 + $0x484] ss:$8 sps:$4 sm:$0xff]  }
 0x206   : > { %v9806_v13 = vld [vmem:[%s11316_s23 + $0xc84] ss:$8 sps:$4 sm:$0xff]  }
 0x208   : > { %7852 = vmatpush1.bf16.msra.mxu1 %v9717_v14  ;;  %8196 = vmatpush1.bf16.msra.mxu0 %v9720_v15  ;;  %v9801_v14 = vld [vmem:[%s11316_s23 + $0x480] ss:$8 sps:$4 sm:$0xff]  }
 0x209   : > { %7853 = vmatprep.subr.bf16.mxu1 %v9725_v16  ;;  %8197 = vmatprep.subr.bf16.mxu0 %v9728_v17  ;;  %v9804_v15 = vld [vmem:[%s11316_s23 + $0xc80] ss:$8 sps:$4 sm:$0xff]   ;;  %v9809_v16 = vld [vmem:[%s11316_s23 + $0x494] ss:$8 sps:$4 sm:$0xff]  }
 0x20a   : > { %v9812_v17 = vld [vmem:[%s11316_s23 + $0xc94] ss:$8 sps:$4 sm:$0xff]  }
 0x20c   : > { %7854 = vmatpush1.bf16.msra.mxu1 %v9723_v18  ;;  %8198 = vmatpush1.bf16.msra.mxu0 %v9726_v19  ;;  %v9807_v18 = vld [vmem:[%s11316_s23 + $0x490] ss:$8 sps:$4 sm:$0xff]  }
 0x20d   : > { %7855 = vmatprep.subr.bf16.mxu1 %v9731_v20  ;;  %8199 = vmatprep.subr.bf16.mxu0 %v9734_v21  ;;  %v9810_v19 = vld [vmem:[%s11316_s23 + $0xc90] ss:$8 sps:$4 sm:$0xff]   ;;  %v9815_v20 = vld [vmem:[%s11316_s23 + $0x4a4] ss:$8 sps:$4 sm:$0xff]  }
 0x20e   : > { %v9818_v21 = vld [vmem:[%s11316_s23 + $0xca4] ss:$8 sps:$4 sm:$0xff]  }
 0x210   : > { %7856 = vmatpush1.bf16.msra.mxu1 %v9729_v22  ;;  %8200 = vmatpush1.bf16.msra.mxu0 %v9732_v23  ;;  %v9813_v22 = vld [vmem:[%s11316_s23 + $0x4a0] ss:$8 sps:$4 sm:$0xff]  }
 0x211   : > { %7857 = vmatprep.subr.bf16.mxu1 %v9737_v24  ;;  %8201 = vmatprep.subr.bf16.mxu0 %v9740_v0  ;;  %v9816_v23 = vld [vmem:[%s11316_s23 + $0xca0] ss:$8 sps:$4 sm:$0xff]   ;;  %v9821_v24 = vld [vmem:[%s11316_s23 + $0x4b4] ss:$8 sps:$4 sm:$0xff]  }
 0x212   : > { %v9824_v0 = vld [vmem:[%s11316_s23 + $0xcb4] ss:$8 sps:$4 sm:$0xff]  }
 0x214   : > { %7858 = vmatpush1.bf16.msra.mxu1 %v9735_v1  ;;  %8202 = vmatpush1.bf16.msra.mxu0 %v9738_v2  ;;  %v9819_v1 = vld [vmem:[%s11316_s23 + $0x4b0] ss:$8 sps:$4 sm:$0xff]  }
 0x215   : > { %7859 = vmatprep.subr.bf16.mxu1 %v9743_v6  ;;  %8203 = vmatprep.subr.bf16.mxu0 %v9746_v25  ;;  %v9822_v2 = vld [vmem:[%s11316_s23 + $0xcb0] ss:$8 sps:$4 sm:$0xff]   ;;  %v9827_v6 = vld [vmem:[%s11316_s23 + $0x4c4] ss:$8 sps:$4 sm:$0xff]  }
 0x216   : > { %v9830_v25 = vld [vmem:[%s11316_s23 + $0xcc4] ss:$8 sps:$4 sm:$0xff]  }
 0x218   : > { %7860 = vmatpush1.bf16.msra.mxu1 %v9741_v26  ;;  %8204 = vmatpush1.bf16.msra.mxu0 %v9744_v29  ;;  %v9825_v26 = vld [vmem:[%s11316_s23 + $0x4c0] ss:$8 sps:$4 sm:$0xff]  }
 0x219   : > { %7861 = vmatprep.subr.bf16.mxu1 %v9749_v32  ;;  %8205 = vmatprep.subr.bf16.mxu0 %v9752_v33  ;;  %v9828_v29 = vld [vmem:[%s11316_s23 + $0xcc0] ss:$8 sps:$4 sm:$0xff]   ;;  %v9833_v32 = vld [vmem:[%s11316_s23 + $0x4d4] ss:$8 sps:$4 sm:$0xff]  }
 0x21a   : > { %v9836_v33 = vld [vmem:[%s11316_s23 + $0xcd4] ss:$8 sps:$4 sm:$0xff]  }
 0x21c   : > { %7862 = vmatpush1.bf16.msra.mxu1 %v9747_v36  ;;  %8206 = vmatpush1.bf16.msra.mxu0 %v9750_v3  ;;  %v9831_v36 = vld [vmem:[%s11316_s23 + $0x4d0] ss:$8 sps:$4 sm:$0xff]  }
 0x21d   : > { %7874 = vmatprep.subr.bf16.mxu1 %v9755_v5  ;;  %8218 = vmatprep.subr.bf16.mxu0 %v9758_v27  ;;  %v9834_v3 = vld [vmem:[%s11316_s23 + $0xcd0] ss:$8 sps:$4 sm:$0xff]   ;;  %v9839_v5 = vld [vmem:[%s11316_s23 + $0x4e4] ss:$8 sps:$4 sm:$0xff]  }
 0x21e   : > { %v9842_v27 = vld [vmem:[%s11316_s23 + $0xce4] ss:$8 sps:$4 sm:$0xff]  }
 0x21f   : > { %7864 = vmatmul.mubr.bf16.vlgmr.msra.gmra.mrb[0].mxu1 %v8719_v40  ;;  %8208 = vmatmul.mubr.bf16.vlgmr.msra.gmra.mrb[0].mxu0 %v8735_v41  ;;  %v9845_v40 = vld [vmem:[%s11316_s23 + $0x4f4] ss:$8 sps:$4 sm:$0xff]  }
 0x220   : > { %7875 = vmatpush1.bf16.msra.mxu1 %v9753_v28  ;;  %8219 = vmatpush1.bf16.msra.mxu0 %v9756_v37  ;;  %v9837_v28 = vld [vmem:[%s11316_s23 + $0x4e0] ss:$8 sps:$4 sm:$0xff]   ;;  %v9848_v41 = vld [vmem:[%s11316_s23 + $0xcf4] ss:$8 sps:$4 sm:$0xff]  }
 0x221   : > { %7876 = vmatprep.subr.bf16.mxu1 %v9761_v44  ;;  %8220 = vmatprep.subr.bf16.mxu0 %v9764_v30  ;;  %v9840_v37 = vld [vmem:[%s11316_s23 + $0xce0] ss:$8 sps:$4 sm:$0xff]   ;;  %v9843_v44 = vld [vmem:[%s11316_s23 + $0x4f0] ss:$8 sps:$4 sm:$0xff]  }
 0x222   : > { %7906 = vmatprep.mubr.bf16.mxu1 %v8722_v31  ;;  %8250 = vmatprep.mubr.bf16.mxu0 %v8738_v34  ;;  %v9846_v30 = vld [vmem:[%s11316_s23 + $0xcf0] ss:$8 sps:$4 sm:$0xff]   ;;  %v9851_v31 = vld [vmem:[%s11316_s23 + $0x504] ss:$8 sps:$4 sm:$0xff]  }
 0x223   : > { %v9854_v34 = vld [vmem:[%s11316_s23 + $0xd04] ss:$8 sps:$4 sm:$0xff]  }
 0x224   : > { %7877 = vmatpush1.bf16.msra.mxu1 %v9759_v35  ;;  %8221 = vmatpush1.bf16.msra.mxu0 %v9762_v45  ;;  %v11757_v35 = vld [vmem:[%s12080_s0 + $0x28] sm:$0xff] }
 0x225   : > { %7878 = vmatprep.subr.bf16.mxu1 %v9767_v46  ;;  %8222 = vmatprep.subr.bf16.mxu0 %v9770_v47  ;;  %v11762_v45 = vld [vmem:[%s12080_s0 + $0xa8] sm:$0xff] }
 0x226   : > { %v11767_v46 = vld [vmem:[%s12080_s0 + $0x68] sm:$0xff] }
 0x227   : > { %v11772_v47 = vld [vmem:[%s12080_s0 + $0xe8] sm:$0xff] }
 0x228   : > { %7879 = vmatpush1.bf16.msra.mxu1 %v9765_v48  ;;  %8223 = vmatpush1.bf16.msra.mxu0 %v9768_v49  ;;  %v8721_v48 = vcombine.low %v11667_v38, %v11672_v39  ;;  %v8737_v49 = vcombine.low %v11681_v42, %v11686_v43  ;;  %v8740_v38 = vcombine.high %v11767_v46, %v11772_v47  ;;  %v9855_v39 = vld [vmem:[%s11316_s23 + $0x510] ss:$8 sps:$4 sm:$0xff]   ;;  %v9863_v43 = vld [vmem:[%s11316_s23 + $0x524] ss:$8 sps:$4 sm:$0xff]  }
 0x229   : > { %7880 = vmatprep.subr.bf16.mxu1 %v9773_v50  ;;  %8224 = vmatprep.subr.bf16.mxu0 %v9776_v51  ;;  %v9849_v50 = vld [vmem:[%s11316_s23 + $0x500] ss:$8 sps:$4 sm:$0xff]   ;;  %v9858_v42 = vld [vmem:[%s11316_s23 + $0xd10] ss:$8 sps:$4 sm:$0xff]  }
 0x22a   : > { %v9852_v51 = vld [vmem:[%s11316_s23 + $0xd00] ss:$8 sps:$4 sm:$0xff]  }
 0x22c   : > { %7881 = vmatpush1.bf16.msra.mxu1 %v9771_v52  ;;  %8225 = vmatpush1.bf16.msra.mxu0 %v9774_v53  ;;  %v9857_v52 = vld [vmem:[%s11316_s23 + $0x514] ss:$8 sps:$4 sm:$0xff]  }
 0x22d   : > { %7882 = vmatprep.subr.bf16.mxu1 %v9779_v54  ;;  %8226 = vmatprep.subr.bf16.mxu0 %v9782_v55  ;;  %v9860_v53 = vld [vmem:[%s11316_s23 + $0xd14] ss:$8 sps:$4 sm:$0xff]   ;;  %v8724_v54 = vcombine.high %v11757_v35, %v11762_v45  ;;  %v9866_v55 = vld [vmem:[%s11316_s23 + $0xd24] ss:$8 sps:$4 sm:$0xff]  }
 0x230   : > { %7883 = vmatpush1.bf16.msra.mxu1 %v9777_v56  ;;  %8227 = vmatpush1.bf16.msra.mxu0 %v9780_v57  ;;  %v9861_v56 = vld [vmem:[%s11316_s23 + $0x520] ss:$8 sps:$4 sm:$0xff]  }
 0x231   : > { %7884 = vmatprep.subr.bf16.mxu1 %v9785_v58  ;;  %8228 = vmatprep.subr.bf16.mxu0 %v9788_v59  ;;  %v9864_v57 = vld [vmem:[%s11316_s23 + $0xd20] ss:$8 sps:$4 sm:$0xff]   ;;  %v9869_v58 = vld [vmem:[%s11316_s23 + $0x534] ss:$8 sps:$4 sm:$0xff]  }
 0x232   : > { %v9872_v59 = vld [vmem:[%s11316_s23 + $0xd34] ss:$8 sps:$4 sm:$0xff]  }
 0x234   : > { %7885 = vmatpush1.bf16.msra.mxu1 %v9783_v60  ;;  %8229 = vmatpush1.bf16.msra.mxu0 %v9786_v61  ;;  %v9867_v60 = vld [vmem:[%s11316_s23 + $0x530] ss:$8 sps:$4 sm:$0xff]  }
 0x235   : > { %7886 = vmatprep.subr.bf16.mxu1 %v9791_v62  ;;  %8230 = vmatprep.subr.bf16.mxu0 %v9794_v63  ;;  %v9870_v61 = vld [vmem:[%s11316_s23 + $0xd30] ss:$8 sps:$4 sm:$0xff]   ;;  %v9875_v62 = vld [vmem:[%s11316_s23 + $0x544] ss:$8 sps:$4 sm:$0xff]  }
 0x236   : > { %v9878_v63 = vld [vmem:[%s11316_s23 + $0xd44] ss:$8 sps:$4 sm:$0xff]  }
 0x238   : > { %7887 = vmatpush1.bf16.msra.mxu1 %v9789_v4  ;;  %8231 = vmatpush1.bf16.msra.mxu0 %v9792_v7  ;;  %v9873_v4 = vld [vmem:[%s11316_s23 + $0x540] ss:$8 sps:$4 sm:$0xff]  }
 0x239   : > { %7888 = vmatprep.subr.bf16.mxu1 %v9797_v8  ;;  %8232 = vmatprep.subr.bf16.mxu0 %v9800_v9  ;;  %v9876_v7 = vld [vmem:[%s11316_s23 + $0xd40] ss:$8 sps:$4 sm:$0xff]   ;;  %v9881_v8 = vld [vmem:[%s11316_s23 + $0x554] ss:$8 sps:$4 sm:$0xff]  }
 0x23a   : > { %v9884_v9 = vld [vmem:[%s11316_s23 + $0xd54] ss:$8 sps:$4 sm:$0xff]  }
 0x23c   : > { %7889 = vmatpush1.bf16.msra.mxu1 %v9795_v10  ;;  %8233 = vmatpush1.bf16.msra.mxu0 %v9798_v11  ;;  %v9879_v10 = vld [vmem:[%s11316_s23 + $0x550] ss:$8 sps:$4 sm:$0xff]  }
 0x23d   : > { %7890 = vmatprep.subr.bf16.mxu1 %v9803_v12  ;;  %8234 = vmatprep.subr.bf16.mxu0 %v9806_v13  ;;  %v9882_v11 = vld [vmem:[%s11316_s23 + $0xd50] ss:$8 sps:$4 sm:$0xff]   ;;  %v9887_v12 = vld [vmem:[%s11316_s23 + $0x564] ss:$8 sps:$4 sm:$0xff]  }
 0x23e   : > { %v9890_v13 = vld [vmem:[%s11316_s23 + $0xd64] ss:$8 sps:$4 sm:$0xff]  }
 0x240   : > { %7891 = vmatpush1.bf16.msra.mxu1 %v9801_v14  ;;  %8235 = vmatpush1.bf16.msra.mxu0 %v9804_v15  ;;  %v9885_v14 = vld [vmem:[%s11316_s23 + $0x560] ss:$8 sps:$4 sm:$0xff]  }
 0x241   : > { %7892 = vmatprep.subr.bf16.mxu1 %v9809_v16  ;;  %8236 = vmatprep.subr.bf16.mxu0 %v9812_v17  ;;  %v9888_v15 = vld [vmem:[%s11316_s23 + $0xd60] ss:$8 sps:$4 sm:$0xff]   ;;  %v9893_v16 = vld [vmem:[%s11316_s23 + $0x574] ss:$8 sps:$4 sm:$0xff]  }
 0x242   : > { %v9896_v17 = vld [vmem:[%s11316_s23 + $0xd74] ss:$8 sps:$4 sm:$0xff]  }
 0x244   : > { %7893 = vmatpush1.bf16.msra.mxu1 %v9807_v18  ;;  %8237 = vmatpush1.bf16.msra.mxu0 %v9810_v19  ;;  %v9891_v18 = vld [vmem:[%s11316_s23 + $0x570] ss:$8 sps:$4 sm:$0xff]  }
 0x245   : > { %7894 = vmatprep.subr.bf16.mxu1 %v9815_v20  ;;  %8238 = vmatprep.subr.bf16.mxu0 %v9818_v21  ;;  %v9894_v19 = vld [vmem:[%s11316_s23 + $0xd70] ss:$8 sps:$4 sm:$0xff]   ;;  %v9899_v20 = vld [vmem:[%s11316_s23 + $0x584] ss:$8 sps:$4 sm:$0xff]  }
 0x246   : > { %v9902_v21 = vld [vmem:[%s11316_s23 + $0xd84] ss:$8 sps:$4 sm:$0xff]  }
 0x248   : > { %7895 = vmatpush1.bf16.msra.mxu1 %v9813_v22  ;;  %8239 = vmatpush1.bf16.msra.mxu0 %v9816_v23  ;;  %v9897_v22 = vld [vmem:[%s11316_s23 + $0x580] ss:$8 sps:$4 sm:$0xff]  }
 0x249   : > { %7896 = vmatprep.subr.bf16.mxu1 %v9821_v24  ;;  %8240 = vmatprep.subr.bf16.mxu0 %v9824_v0  ;;  %v9900_v23 = vld [vmem:[%s11316_s23 + $0xd80] ss:$8 sps:$4 sm:$0xff]   ;;  %v9905_v24 = vld [vmem:[%s11316_s23 + $0x594] ss:$8 sps:$4 sm:$0xff]  }
 0x24a   : > { %v9908_v0 = vld [vmem:[%s11316_s23 + $0xd94] ss:$8 sps:$4 sm:$0xff]  }
 0x24c   : > { %7897 = vmatpush1.bf16.msra.mxu1 %v9819_v1  ;;  %8241 = vmatpush1.bf16.msra.mxu0 %v9822_v2  ;;  %v9903_v1 = vld [vmem:[%s11316_s23 + $0x590] ss:$8 sps:$4 sm:$0xff]  }
 0x24d   : > { %7898 = vmatprep.subr.bf16.mxu1 %v9827_v6  ;;  %8242 = vmatprep.subr.bf16.mxu0 %v9830_v25  ;;  %v9906_v2 = vld [vmem:[%s11316_s23 + $0xd90] ss:$8 sps:$4 sm:$0xff]   ;;  %v9911_v6 = vld [vmem:[%s11316_s23 + $0x5a4] ss:$8 sps:$4 sm:$0xff]  }
 0x24e   : > { %v9914_v25 = vld [vmem:[%s11316_s23 + $0xda4] ss:$8 sps:$4 sm:$0xff]  }
 0x250   : > { %7899 = vmatpush1.bf16.msra.mxu1 %v9825_v26  ;;  %8243 = vmatpush1.bf16.msra.mxu0 %v9828_v29  ;;  %v9909_v26 = vld [vmem:[%s11316_s23 + $0x5a0] ss:$8 sps:$4 sm:$0xff]  }
 0x251   : > { %7900 = vmatprep.subr.bf16.mxu1 %v9833_v32  ;;  %8244 = vmatprep.subr.bf16.mxu0 %v9836_v33  ;;  %v9912_v29 = vld [vmem:[%s11316_s23 + $0xda0] ss:$8 sps:$4 sm:$0xff]   ;;  %v9917_v32 = vld [vmem:[%s11316_s23 + $0x5b4] ss:$8 sps:$4 sm:$0xff]  }
 0x252   : > { %v9920_v33 = vld [vmem:[%s11316_s23 + $0xdb4] ss:$8 sps:$4 sm:$0xff]  }
 0x254   : > { %7901 = vmatpush1.bf16.msra.mxu1 %v9831_v36  ;;  %8245 = vmatpush1.bf16.msra.mxu0 %v9834_v3  ;;  %v9915_v36 = vld [vmem:[%s11316_s23 + $0x5b0] ss:$8 sps:$4 sm:$0xff]  }
 0x255   : > { %7902 = vmatprep.subr.bf16.mxu1 %v9839_v5  ;;  %8246 = vmatprep.subr.bf16.mxu0 %v9842_v27  ;;  %v9918_v3 = vld [vmem:[%s11316_s23 + $0xdb0] ss:$8 sps:$4 sm:$0xff]   ;;  %v9923_v5 = vld [vmem:[%s11316_s23 + $0x5c4] ss:$8 sps:$4 sm:$0xff]  }
 0x256   : > { %v9926_v27 = vld [vmem:[%s11316_s23 + $0xdc4] ss:$8 sps:$4 sm:$0xff]  }
 0x258   : > { %7903 = vmatpush1.bf16.msra.mxu1 %v9837_v28  ;;  %8247 = vmatpush1.bf16.msra.mxu0 %v9840_v37  ;;  %v9921_v28 = vld [vmem:[%s11316_s23 + $0x5c0] ss:$8 sps:$4 sm:$0xff]  }
 0x259   : > { %7904 = vmatprep.subr.bf16.mxu1 %v9845_v40  ;;  %8248 = vmatprep.subr.bf16.mxu0 %v9848_v41  ;;  %v9924_v37 = vld [vmem:[%s11316_s23 + $0xdc0] ss:$8 sps:$4 sm:$0xff]   ;;  %v9929_v40 = vld [vmem:[%s11316_s23 + $0x5d4] ss:$8 sps:$4 sm:$0xff]  }
 0x25a   : > { %v9932_v41 = vld [vmem:[%s11316_s23 + $0xdd4] ss:$8 sps:$4 sm:$0xff]  }
 0x25c   : > { %7905 = vmatpush1.bf16.msra.mxu1 %v9843_v44  ;;  %8249 = vmatpush1.bf16.msra.mxu0 %v9846_v30  ;;  %v9927_v44 = vld [vmem:[%s11316_s23 + $0x5d0] ss:$8 sps:$4 sm:$0xff]  }
 0x25d   : > { %7917 = vmatprep.subr.bf16.mxu1 %v9851_v31  ;;  %8261 = vmatprep.subr.bf16.mxu0 %v9854_v34  ;;  %v9930_v30 = vld [vmem:[%s11316_s23 + $0xdd0] ss:$8 sps:$4 sm:$0xff]   ;;  %v9935_v31 = vld [vmem:[%s11316_s23 + $0x5e4] ss:$8 sps:$4 sm:$0xff]  }
 0x25e   : > { %v9938_v34 = vld [vmem:[%s11316_s23 + $0xde4] ss:$8 sps:$4 sm:$0xff]  }
 0x25f   : > { %7907 = vmatmul.mubr.bf16.vlgmr.msra.gmra.mrb[0].mxu1 %v8721_v48  ;;  %8251 = vmatmul.mubr.bf16.vlgmr.msra.gmra.mrb[0].mxu0 %v8737_v49  ;;  %v9933_v48 = vld [vmem:[%s11316_s23 + $0x5e0] ss:$8 sps:$4 sm:$0xff]  }
 0x260   : > { %7918 = vmatpush1.bf16.msra.mxu1 %v9849_v50  ;;  %8262 = vmatpush1.bf16.msra.mxu0 %v9852_v51  ;;  %v9936_v49 = vld [vmem:[%s11316_s23 + $0xde0] ss:$8 sps:$4 sm:$0xff]   ;;  %v9941_v50 = vld [vmem:[%s11316_s23 + $0x5f4] ss:$8 sps:$4 sm:$0xff]  }
 0x261   : > { %7919 = vmatprep.subr.bf16.mxu1 %v9857_v52  ;;  %8263 = vmatprep.subr.bf16.mxu0 %v9860_v53  ;;  %v9944_v51 = vld [vmem:[%s11316_s23 + $0xdf4] ss:$8 sps:$4 sm:$0xff]   ;;  %v9939_v52 = vld [vmem:[%s11316_s23 + $0x5f0] ss:$8 sps:$4 sm:$0xff]  }
 0x262   : > { %7949 = vmatprep.mubr.bf16.mxu1 %v8724_v54  ;;  %8293 = vmatprep.mubr.bf16.mxu0 %v8740_v38  ;;  %v9942_v53 = vld [vmem:[%s11316_s23 + $0xdf0] ss:$8 sps:$4 sm:$0xff]   ;;  %v9947_v54 = vld [vmem:[%s11316_s23 + $0x604] ss:$8 sps:$4 sm:$0xff]  }
 0x263   : > { %v9950_v38 = vld [vmem:[%s11316_s23 + $0xe04] ss:$8 sps:$4 sm:$0xff]  }
 0x264   : > { %7920 = vmatpush1.bf16.msra.mxu1 %v9855_v39  ;;  %8264 = vmatpush1.bf16.msra.mxu0 %v9858_v42  ;;  %v11849_v39 = vld [vmem:[%s12080_s0 + $0x30] sm:$0xff]  ;;  %v8723_v42 = vcombine.low %v11757_v35, %v11762_v45  ;;  %v9945_v35 = vld [vmem:[%s11316_s23 + $0x600] ss:$8 sps:$4 sm:$0xff]  }
 0x265   : > { %7921 = vmatprep.subr.bf16.mxu1 %v9863_v43  ;;  %8265 = vmatprep.subr.bf16.mxu0 %v9866_v55  ;;  %v8739_v43 = vcombine.low %v11767_v46, %v11772_v47  ;;  %v11858_v55 = vld [vmem:[%s12080_s0 + $0xb0] sm:$0xff]  ;;  %v9948_v45 = vld [vmem:[%s11316_s23 + $0xe00] ss:$8 sps:$4 sm:$0xff]  }
 0x266   : > { %v9953_v46 = vld [vmem:[%s11316_s23 + $0x614] ss:$8 sps:$4 sm:$0xff]  }
 0x267   : > { %v9956_v47 = vld [vmem:[%s11316_s23 + $0xe14] ss:$8 sps:$4 sm:$0xff]  }
 0x268   : > { %7922 = vmatpush1.bf16.msra.mxu1 %v9861_v56  ;;  %8266 = vmatpush1.bf16.msra.mxu0 %v9864_v57  ;;  %v11863_v56 = vld [vmem:[%s12080_s0 + $0x70] sm:$0xff] }
 0x269   : > { %7923 = vmatprep.subr.bf16.mxu1 %v9869_v58  ;;  %8267 = vmatprep.subr.bf16.mxu0 %v9872_v59  ;;  %v11868_v57 = vld [vmem:[%s12080_s0 + $0xf0] sm:$0xff]  ;;  %v8726_v58 = vcombine.high %v11849_v39, %v11858_v55 }
 0x26a   : > { %v8742_v59 = vcombine.high %v11863_v56, %v11868_v57 }
 0x26c   : > { %7924 = vmatpush1.bf16.msra.mxu1 %v9867_v60  ;;  %8268 = vmatpush1.bf16.msra.mxu0 %v9870_v61  ;;  %v9951_v60 = vld [vmem:[%s11316_s23 + $0x610] ss:$8 sps:$4 sm:$0xff]  }
 0x26d   : > { %7925 = vmatprep.subr.bf16.mxu1 %v9875_v62  ;;  %8269 = vmatprep.subr.bf16.mxu0 %v9878_v63  ;;  %v9954_v61 = vld [vmem:[%s11316_s23 + $0xe10] ss:$8 sps:$4 sm:$0xff]   ;;  %v9959_v62 = vld [vmem:[%s11316_s23 + $0x624] ss:$8 sps:$4 sm:$0xff]  }
 0x26e   : > { %v9962_v63 = vld [vmem:[%s11316_s23 + $0xe24] ss:$8 sps:$4 sm:$0xff]  }
 0x270   : > { %7926 = vmatpush1.bf16.msra.mxu1 %v9873_v4  ;;  %8270 = vmatpush1.bf16.msra.mxu0 %v9876_v7  ;;  %v9957_v4 = vld [vmem:[%s11316_s23 + $0x620] ss:$8 sps:$4 sm:$0xff]  }
 0x271   : > { %7927 = vmatprep.subr.bf16.mxu1 %v9881_v8  ;;  %8271 = vmatprep.subr.bf16.mxu0 %v9884_v9  ;;  %v9960_v7 = vld [vmem:[%s11316_s23 + $0xe20] ss:$8 sps:$4 sm:$0xff]   ;;  %v9965_v8 = vld [vmem:[%s11316_s23 + $0x634] ss:$8 sps:$4 sm:$0xff]  }
 0x272   : > { %v9968_v9 = vld [vmem:[%s11316_s23 + $0xe34] ss:$8 sps:$4 sm:$0xff]  }
 0x274   : > { %7928 = vmatpush1.bf16.msra.mxu1 %v9879_v10  ;;  %8272 = vmatpush1.bf16.msra.mxu0 %v9882_v11  ;;  %v9963_v10 = vld [vmem:[%s11316_s23 + $0x630] ss:$8 sps:$4 sm:$0xff]  }
 0x275   : > { %7929 = vmatprep.subr.bf16.mxu1 %v9887_v12  ;;  %8273 = vmatprep.subr.bf16.mxu0 %v9890_v13  ;;  %v9966_v11 = vld [vmem:[%s11316_s23 + $0xe30] ss:$8 sps:$4 sm:$0xff]   ;;  %v9971_v12 = vld [vmem:[%s11316_s23 + $0x644] ss:$8 sps:$4 sm:$0xff]  }
 0x276   : > { %v9974_v13 = vld [vmem:[%s11316_s23 + $0xe44] ss:$8 sps:$4 sm:$0xff]  }
 0x278   : > { %7930 = vmatpush1.bf16.msra.mxu1 %v9885_v14  ;;  %8274 = vmatpush1.bf16.msra.mxu0 %v9888_v15  ;;  %v9969_v14 = vld [vmem:[%s11316_s23 + $0x640] ss:$8 sps:$4 sm:$0xff]  }
 0x279   : > { %7931 = vmatprep.subr.bf16.mxu1 %v9893_v16  ;;  %8275 = vmatprep.subr.bf16.mxu0 %v9896_v17  ;;  %v9972_v15 = vld [vmem:[%s11316_s23 + $0xe40] ss:$8 sps:$4 sm:$0xff]   ;;  %v9977_v16 = vld [vmem:[%s11316_s23 + $0x654] ss:$8 sps:$4 sm:$0xff]  }
 0x27a   : > { %v9980_v17 = vld [vmem:[%s11316_s23 + $0xe54] ss:$8 sps:$4 sm:$0xff]  }
 0x27c   : > { %7932 = vmatpush1.bf16.msra.mxu1 %v9891_v18  ;;  %8276 = vmatpush1.bf16.msra.mxu0 %v9894_v19  ;;  %v9975_v18 = vld [vmem:[%s11316_s23 + $0x650] ss:$8 sps:$4 sm:$0xff]  }
 0x27d   : > { %7933 = vmatprep.subr.bf16.mxu1 %v9899_v20  ;;  %8277 = vmatprep.subr.bf16.mxu0 %v9902_v21  ;;  %v9978_v19 = vld [vmem:[%s11316_s23 + $0xe50] ss:$8 sps:$4 sm:$0xff]   ;;  %v9983_v20 = vld [vmem:[%s11316_s23 + $0x664] ss:$8 sps:$4 sm:$0xff]  }
 0x27e   : > { %v9986_v21 = vld [vmem:[%s11316_s23 + $0xe64] ss:$8 sps:$4 sm:$0xff]  }
 0x280   : > { %7934 = vmatpush1.bf16.msra.mxu1 %v9897_v22  ;;  %8278 = vmatpush1.bf16.msra.mxu0 %v9900_v23  ;;  %v9981_v22 = vld [vmem:[%s11316_s23 + $0x660] ss:$8 sps:$4 sm:$0xff]  }
 0x281   : > { %7935 = vmatprep.subr.bf16.mxu1 %v9905_v24  ;;  %8279 = vmatprep.subr.bf16.mxu0 %v9908_v0  ;;  %v9984_v23 = vld [vmem:[%s11316_s23 + $0xe60] ss:$8 sps:$4 sm:$0xff]   ;;  %v9989_v24 = vld [vmem:[%s11316_s23 + $0x674] ss:$8 sps:$4 sm:$0xff]  }
 0x282   : > { %v9992_v0 = vld [vmem:[%s11316_s23 + $0xe74] ss:$8 sps:$4 sm:$0xff]  }
 0x284   : > { %7936 = vmatpush1.bf16.msra.mxu1 %v9903_v1  ;;  %8280 = vmatpush1.bf16.msra.mxu0 %v9906_v2  ;;  %v9987_v1 = vld [vmem:[%s11316_s23 + $0x670] ss:$8 sps:$4 sm:$0xff]  }
 0x285   : > { %7937 = vmatprep.subr.bf16.mxu1 %v9911_v6  ;;  %8281 = vmatprep.subr.bf16.mxu0 %v9914_v25  ;;  %v9990_v2 = vld [vmem:[%s11316_s23 + $0xe70] ss:$8 sps:$4 sm:$0xff]   ;;  %v9995_v6 = vld [vmem:[%s11316_s23 + $0x684] ss:$8 sps:$4 sm:$0xff]  }
 0x286   : > { %v9998_v25 = vld [vmem:[%s11316_s23 + $0xe84] ss:$8 sps:$4 sm:$0xff]  }
 0x288   : > { %7938 = vmatpush1.bf16.msra.mxu1 %v9909_v26  ;;  %8282 = vmatpush1.bf16.msra.mxu0 %v9912_v29  ;;  %v9993_v26 = vld [vmem:[%s11316_s23 + $0x680] ss:$8 sps:$4 sm:$0xff]  }
 0x289   : > { %7939 = vmatprep.subr.bf16.mxu1 %v9917_v32  ;;  %8283 = vmatprep.subr.bf16.mxu0 %v9920_v33  ;;  %v9996_v29 = vld [vmem:[%s11316_s23 + $0xe80] ss:$8 sps:$4 sm:$0xff]   ;;  %v10001_v32 = vld [vmem:[%s11316_s23 + $0x694] ss:$8 sps:$4 sm:$0xff]  }
 0x28a   : > { %v10004_v33 = vld [vmem:[%s11316_s23 + $0xe94] ss:$8 sps:$4 sm:$0xff]  }
 0x28c   : > { %7940 = vmatpush1.bf16.msra.mxu1 %v9915_v36  ;;  %8284 = vmatpush1.bf16.msra.mxu0 %v9918_v3  ;;  %v9999_v36 = vld [vmem:[%s11316_s23 + $0x690] ss:$8 sps:$4 sm:$0xff]  }
 0x28d   : > { %7941 = vmatprep.subr.bf16.mxu1 %v9923_v5  ;;  %8285 = vmatprep.subr.bf16.mxu0 %v9926_v27  ;;  %v10002_v3 = vld [vmem:[%s11316_s23 + $0xe90] ss:$8 sps:$4 sm:$0xff]   ;;  %v10007_v5 = vld [vmem:[%s11316_s23 + $0x6a4] ss:$8 sps:$4 sm:$0xff]  }
 0x28e   : > { %v10010_v27 = vld [vmem:[%s11316_s23 + $0xea4] ss:$8 sps:$4 sm:$0xff]  }
 0x290   : > { %7942 = vmatpush1.bf16.msra.mxu1 %v9921_v28  ;;  %8286 = vmatpush1.bf16.msra.mxu0 %v9924_v37  ;;  %v10005_v28 = vld [vmem:[%s11316_s23 + $0x6a0] ss:$8 sps:$4 sm:$0xff]  }
 0x291   : > { %7943 = vmatprep.subr.bf16.mxu1 %v9929_v40  ;;  %8287 = vmatprep.subr.bf16.mxu0 %v9932_v41  ;;  %v10008_v37 = vld [vmem:[%s11316_s23 + $0xea0] ss:$8 sps:$4 sm:$0xff]   ;;  %v10013_v40 = vld [vmem:[%s11316_s23 + $0x6b4] ss:$8 sps:$4 sm:$0xff]  }
 0x292   : > { %v10016_v41 = vld [vmem:[%s11316_s23 + $0xeb4] ss:$8 sps:$4 sm:$0xff]  }
 0x294   : > { %7944 = vmatpush1.bf16.msra.mxu1 %v9927_v44  ;;  %8288 = vmatpush1.bf16.msra.mxu0 %v9930_v30  ;;  %v10011_v44 = vld [vmem:[%s11316_s23 + $0x6b0] ss:$8 sps:$4 sm:$0xff]  }
 0x295   : > { %7945 = vmatprep.subr.bf16.mxu1 %v9935_v31  ;;  %8289 = vmatprep.subr.bf16.mxu0 %v9938_v34  ;;  %v10014_v30 = vld [vmem:[%s11316_s23 + $0xeb0] ss:$8 sps:$4 sm:$0xff]   ;;  %v10019_v31 = vld [vmem:[%s11316_s23 + $0x6c4] ss:$8 sps:$4 sm:$0xff]  }
 0x296   : > { %v10022_v34 = vld [vmem:[%s11316_s23 + $0xec4] ss:$8 sps:$4 sm:$0xff]  }
 0x298   : > { %7946 = vmatpush1.bf16.msra.mxu1 %v9933_v48  ;;  %8290 = vmatpush1.bf16.msra.mxu0 %v9936_v49  ;;  %v10017_v48 = vld [vmem:[%s11316_s23 + $0x6c0] ss:$8 sps:$4 sm:$0xff]  }
 0x299   : > { %7947 = vmatprep.subr.bf16.mxu1 %v9941_v50  ;;  %8291 = vmatprep.subr.bf16.mxu0 %v9944_v51  ;;  %v10020_v49 = vld [vmem:[%s11316_s23 + $0xec0] ss:$8 sps:$4 sm:$0xff]   ;;  %v10025_v50 = vld [vmem:[%s11316_s23 + $0x6d4] ss:$8 sps:$4 sm:$0xff]  }
 0x29a   : > { %v10028_v51 = vld [vmem:[%s11316_s23 + $0xed4] ss:$8 sps:$4 sm:$0xff]  }
 0x29c   : > { %7948 = vmatpush1.bf16.msra.mxu1 %v9939_v52  ;;  %8292 = vmatpush1.bf16.msra.mxu0 %v9942_v53  ;;  %v10023_v52 = vld [vmem:[%s11316_s23 + $0x6d0] ss:$8 sps:$4 sm:$0xff]  }
 0x29d   : > { %7960 = vmatprep.subr.bf16.mxu1 %v9947_v54  ;;  %8304 = vmatprep.subr.bf16.mxu0 %v9950_v38  ;;  %v10026_v53 = vld [vmem:[%s11316_s23 + $0xed0] ss:$8 sps:$4 sm:$0xff]   ;;  %v10031_v54 = vld [vmem:[%s11316_s23 + $0x6e4] ss:$8 sps:$4 sm:$0xff]  }
 0x29e   : > { %v10034_v38 = vld [vmem:[%s11316_s23 + $0xee4] ss:$8 sps:$4 sm:$0xff]  }
 0x29f   : > { %7950 = vmatmul.mubr.bf16.vlgmr.msra.gmra.mrb[0].mxu1 %v8723_v42  ;;  %8294 = vmatmul.mubr.bf16.vlgmr.msra.gmra.mrb[0].mxu0 %v8739_v43  ;;  %v10029_v42 = vld [vmem:[%s11316_s23 + $0x6e0] ss:$8 sps:$4 sm:$0xff]  }
 0x2a0   : > { %7961 = vmatpush1.bf16.msra.mxu1 %v9945_v35  ;;  %8305 = vmatpush1.bf16.msra.mxu0 %v9948_v45  ;;  %v10032_v43 = vld [vmem:[%s11316_s23 + $0xee0] ss:$8 sps:$4 sm:$0xff]   ;;  %v10037_v35 = vld [vmem:[%s11316_s23 + $0x6f4] ss:$8 sps:$4 sm:$0xff]  }
 0x2a1   : > { %7962 = vmatprep.subr.bf16.mxu1 %v9953_v46  ;;  %8306 = vmatprep.subr.bf16.mxu0 %v9956_v47  ;;  %v10040_v45 = vld [vmem:[%s11316_s23 + $0xef4] ss:$8 sps:$4 sm:$0xff]   ;;  %v10035_v46 = vld [vmem:[%s11316_s23 + $0x6f0] ss:$8 sps:$4 sm:$0xff]  }
 0x2a2   : > { %7992 = vmatprep.mubr.bf16.mxu1 %v8726_v58  ;;  %8336 = vmatprep.mubr.bf16.mxu0 %v8742_v59  ;;  %v10038_v47 = vld [vmem:[%s11316_s23 + $0xef0] ss:$8 sps:$4 sm:$0xff]   ;;  %v10043_v58 = vld [vmem:[%s11316_s23 + $0x704] ss:$8 sps:$4 sm:$0xff]  }
 0x2a3   : > { %v10046_v59 = vld [vmem:[%s11316_s23 + $0xf04] ss:$8 sps:$4 sm:$0xff]  }
 0x2a4   : > { %7963 = vmatpush1.bf16.msra.mxu1 %v9951_v60  ;;  %8307 = vmatpush1.bf16.msra.mxu0 %v9954_v61  ;;  %v11941_v60 = vld [vmem:[%s12080_s0 + $0x38] sm:$0xff]  ;;  %v8725_v61 = vcombine.low %v11849_v39, %v11858_v55  ;;  %v10041_v39 = vld [vmem:[%s11316_s23 + $0x700] ss:$8 sps:$4 sm:$0xff]  }
 0x2a5   : > { %7964 = vmatprep.subr.bf16.mxu1 %v9959_v62  ;;  %8308 = vmatprep.subr.bf16.mxu0 %v9962_v63  ;;  %v8741_v62 = vcombine.low %v11863_v56, %v11868_v57  ;;  %v11950_v63 = vld [vmem:[%s12080_s0 + $0xb8] sm:$0xff]  ;;  %v10044_v55 = vld [vmem:[%s11316_s23 + $0xf00] ss:$8 sps:$4 sm:$0xff]  }
 0x2a6   : > { %v10049_v56 = vld [vmem:[%s11316_s23 + $0x714] ss:$8 sps:$4 sm:$0xff]  }
 0x2a7   : > { %v10052_v57 = vld [vmem:[%s11316_s23 + $0xf14] ss:$8 sps:$4 sm:$0xff]  }
 0x2a8   : > { %7965 = vmatpush1.bf16.msra.mxu1 %v9957_v4  ;;  %8309 = vmatpush1.bf16.msra.mxu0 %v9960_v7  ;;  %v11955_v4 = vld [vmem:[%s12080_s0 + $0x78] sm:$0xff] }
 0x2a9   : > { %7966 = vmatprep.subr.bf16.mxu1 %v9965_v8  ;;  %8310 = vmatprep.subr.bf16.mxu0 %v9968_v9  ;;  %v11960_v7 = vld [vmem:[%s12080_s0 + $0xf8] sm:$0xff]  ;;  %v8728_v8 = vcombine.high %v11941_v60, %v11950_v63 }
 0x2aa   : > { %v8744_v9 = vcombine.high %v11955_v4, %v11960_v7 }
 0x2ac   : > { %7967 = vmatpush1.bf16.msra.mxu1 %v9963_v10  ;;  %8311 = vmatpush1.bf16.msra.mxu0 %v9966_v11  ;;  %v10047_v10 = vld [vmem:[%s11316_s23 + $0x710] ss:$8 sps:$4 sm:$0xff]  }
 0x2ad   : > { %7968 = vmatprep.subr.bf16.mxu1 %v9971_v12  ;;  %8312 = vmatprep.subr.bf16.mxu0 %v9974_v13  ;;  %v10050_v11 = vld [vmem:[%s11316_s23 + $0xf10] ss:$8 sps:$4 sm:$0xff]   ;;  %v10055_v12 = vld [vmem:[%s11316_s23 + $0x724] ss:$8 sps:$4 sm:$0xff]  }
 0x2ae   : > { %v10058_v13 = vld [vmem:[%s11316_s23 + $0xf24] ss:$8 sps:$4 sm:$0xff]  }
 0x2b0   : > { %7969 = vmatpush1.bf16.msra.mxu1 %v9969_v14  ;;  %8313 = vmatpush1.bf16.msra.mxu0 %v9972_v15  ;;  %v10053_v14 = vld [vmem:[%s11316_s23 + $0x720] ss:$8 sps:$4 sm:$0xff]  }
 0x2b1   : > { %7970 = vmatprep.subr.bf16.mxu1 %v9977_v16  ;;  %8314 = vmatprep.subr.bf16.mxu0 %v9980_v17  ;;  %v10056_v15 = vld [vmem:[%s11316_s23 + $0xf20] ss:$8 sps:$4 sm:$0xff]   ;;  %v10061_v16 = vld [vmem:[%s11316_s23 + $0x734] ss:$8 sps:$4 sm:$0xff]  }
 0x2b2   : > { %v10064_v17 = vld [vmem:[%s11316_s23 + $0xf34] ss:$8 sps:$4 sm:$0xff]  }
 0x2b4   : > { %7971 = vmatpush1.bf16.msra.mxu1 %v9975_v18  ;;  %8315 = vmatpush1.bf16.msra.mxu0 %v9978_v19  ;;  %v10059_v18 = vld [vmem:[%s11316_s23 + $0x730] ss:$8 sps:$4 sm:$0xff]  }
 0x2b5   : > { %7972 = vmatprep.subr.bf16.mxu1 %v9983_v20  ;;  %8316 = vmatprep.subr.bf16.mxu0 %v9986_v21  ;;  %v10062_v19 = vld [vmem:[%s11316_s23 + $0xf30] ss:$8 sps:$4 sm:$0xff]   ;;  %v10067_v20 = vld [vmem:[%s11316_s23 + $0x744] ss:$8 sps:$4 sm:$0xff]  }
 0x2b6   : > { %v10070_v21 = vld [vmem:[%s11316_s23 + $0xf44] ss:$8 sps:$4 sm:$0xff]  }
 0x2b8   : > { %7973 = vmatpush1.bf16.msra.mxu1 %v9981_v22  ;;  %8317 = vmatpush1.bf16.msra.mxu0 %v9984_v23  ;;  %v10065_v22 = vld [vmem:[%s11316_s23 + $0x740] ss:$8 sps:$4 sm:$0xff]  }
 0x2b9   : > { %7974 = vmatprep.subr.bf16.mxu1 %v9989_v24  ;;  %8318 = vmatprep.subr.bf16.mxu0 %v9992_v0  ;;  %v10068_v23 = vld [vmem:[%s11316_s23 + $0xf40] ss:$8 sps:$4 sm:$0xff]   ;;  %v10073_v24 = vld [vmem:[%s11316_s23 + $0x754] ss:$8 sps:$4 sm:$0xff]  }
 0x2ba   : > { %v10076_v0 = vld [vmem:[%s11316_s23 + $0xf54] ss:$8 sps:$4 sm:$0xff]  }
 0x2bc   : > { %7975 = vmatpush1.bf16.msra.mxu1 %v9987_v1  ;;  %8319 = vmatpush1.bf16.msra.mxu0 %v9990_v2  ;;  %v10071_v1 = vld [vmem:[%s11316_s23 + $0x750] ss:$8 sps:$4 sm:$0xff]  }
 0x2bd   : > { %7976 = vmatprep.subr.bf16.mxu1 %v9995_v6  ;;  %8320 = vmatprep.subr.bf16.mxu0 %v9998_v25  ;;  %v10074_v2 = vld [vmem:[%s11316_s23 + $0xf50] ss:$8 sps:$4 sm:$0xff]   ;;  %v10079_v6 = vld [vmem:[%s11316_s23 + $0x764] ss:$8 sps:$4 sm:$0xff]  }
 0x2be   : > { %v10082_v25 = vld [vmem:[%s11316_s23 + $0xf64] ss:$8 sps:$4 sm:$0xff]  }
 0x2c0   : > { %7977 = vmatpush1.bf16.msra.mxu1 %v9993_v26  ;;  %8321 = vmatpush1.bf16.msra.mxu0 %v9996_v29  ;;  %v10077_v26 = vld [vmem:[%s11316_s23 + $0x760] ss:$8 sps:$4 sm:$0xff]  }
 0x2c1   : > { %7978 = vmatprep.subr.bf16.mxu1 %v10001_v32  ;;  %8322 = vmatprep.subr.bf16.mxu0 %v10004_v33  ;;  %v10080_v29 = vld [vmem:[%s11316_s23 + $0xf60] ss:$8 sps:$4 sm:$0xff]   ;;  %v10085_v32 = vld [vmem:[%s11316_s23 + $0x774] ss:$8 sps:$4 sm:$0xff]  }
 0x2c2   : > { %v10088_v33 = vld [vmem:[%s11316_s23 + $0xf74] ss:$8 sps:$4 sm:$0xff]  }
 0x2c4   : > { %7979 = vmatpush1.bf16.msra.mxu1 %v9999_v36  ;;  %8323 = vmatpush1.bf16.msra.mxu0 %v10002_v3  ;;  %v10083_v36 = vld [vmem:[%s11316_s23 + $0x770] ss:$8 sps:$4 sm:$0xff]  }
 0x2c5   : > { %7980 = vmatprep.subr.bf16.mxu1 %v10007_v5  ;;  %8324 = vmatprep.subr.bf16.mxu0 %v10010_v27  ;;  %v10086_v3 = vld [vmem:[%s11316_s23 + $0xf70] ss:$8 sps:$4 sm:$0xff]   ;;  %v10091_v5 = vld [vmem:[%s11316_s23 + $0x784] ss:$8 sps:$4 sm:$0xff]  }
 0x2c6   : > { %v10094_v27 = vld [vmem:[%s11316_s23 + $0xf84] ss:$8 sps:$4 sm:$0xff]  }
 0x2c8   : > { %7981 = vmatpush1.bf16.msra.mxu1 %v10005_v28  ;;  %8325 = vmatpush1.bf16.msra.mxu0 %v10008_v37  ;;  %v10089_v28 = vld [vmem:[%s11316_s23 + $0x780] ss:$8 sps:$4 sm:$0xff]  }
 0x2c9   : > { %7982 = vmatprep.subr.bf16.mxu1 %v10013_v40  ;;  %8326 = vmatprep.subr.bf16.mxu0 %v10016_v41  ;;  %v10092_v37 = vld [vmem:[%s11316_s23 + $0xf80] ss:$8 sps:$4 sm:$0xff]   ;;  %v10097_v40 = vld [vmem:[%s11316_s23 + $0x794] ss:$8 sps:$4 sm:$0xff]  }
 0x2ca   : > { %v10100_v41 = vld [vmem:[%s11316_s23 + $0xf94] ss:$8 sps:$4 sm:$0xff]  }
 0x2cc   : > { %7983 = vmatpush1.bf16.msra.mxu1 %v10011_v44  ;;  %8327 = vmatpush1.bf16.msra.mxu0 %v10014_v30  ;;  %v10095_v44 = vld [vmem:[%s11316_s23 + $0x790] ss:$8 sps:$4 sm:$0xff]  }
 0x2cd   : > { %7984 = vmatprep.subr.bf16.mxu1 %v10019_v31  ;;  %8328 = vmatprep.subr.bf16.mxu0 %v10022_v34  ;;  %v10098_v30 = vld [vmem:[%s11316_s23 + $0xf90] ss:$8 sps:$4 sm:$0xff]   ;;  %v10103_v31 = vld [vmem:[%s11316_s23 + $0x7a4] ss:$8 sps:$4 sm:$0xff]  }
 0x2ce   : > { %v10106_v34 = vld [vmem:[%s11316_s23 + $0xfa4] ss:$8 sps:$4 sm:$0xff]  }
 0x2d0   : > { %7985 = vmatpush1.bf16.msra.mxu1 %v10017_v48  ;;  %8329 = vmatpush1.bf16.msra.mxu0 %v10020_v49  ;;  %v10101_v48 = vld [vmem:[%s11316_s23 + $0x7a0] ss:$8 sps:$4 sm:$0xff]  }
 0x2d1   : > { %7986 = vmatprep.subr.bf16.mxu1 %v10025_v50  ;;  %8330 = vmatprep.subr.bf16.mxu0 %v10028_v51  ;;  %v10104_v49 = vld [vmem:[%s11316_s23 + $0xfa0] ss:$8 sps:$4 sm:$0xff]   ;;  %v10109_v50 = vld [vmem:[%s11316_s23 + $0x7b4] ss:$8 sps:$4 sm:$0xff]  }
 0x2d2   : > { %v10112_v51 = vld [vmem:[%s11316_s23 + $0xfb4] ss:$8 sps:$4 sm:$0xff]  }
 0x2d4   : > { %7987 = vmatpush1.bf16.msra.mxu1 %v10023_v52  ;;  %8331 = vmatpush1.bf16.msra.mxu0 %v10026_v53  ;;  %v10107_v52 = vld [vmem:[%s11316_s23 + $0x7b0] ss:$8 sps:$4 sm:$0xff]  }
 0x2d5   : > { %7988 = vmatprep.subr.bf16.mxu1 %v10031_v54  ;;  %8332 = vmatprep.subr.bf16.mxu0 %v10034_v38  ;;  %v10110_v53 = vld [vmem:[%s11316_s23 + $0xfb0] ss:$8 sps:$4 sm:$0xff]   ;;  %v10115_v54 = vld [vmem:[%s11316_s23 + $0x7c4] ss:$8 sps:$4 sm:$0xff]  }
 0x2d6   : > { %v10118_v38 = vld [vmem:[%s11316_s23 + $0xfc4] ss:$8 sps:$4 sm:$0xff]  }
 0x2d8   : > { %7989 = vmatpush1.bf16.msra.mxu1 %v10029_v42  ;;  %8333 = vmatpush1.bf16.msra.mxu0 %v10032_v43  ;;  %v10113_v42 = vld [vmem:[%s11316_s23 + $0x7c0] ss:$8 sps:$4 sm:$0xff]  }
 0x2d9   : > { %7990 = vmatprep.subr.bf16.mxu1 %v10037_v35  ;;  %8334 = vmatprep.subr.bf16.mxu0 %v10040_v45  ;;  %v10116_v43 = vld [vmem:[%s11316_s23 + $0xfc0] ss:$8 sps:$4 sm:$0xff]   ;;  %v10121_v35 = vld [vmem:[%s11316_s23 + $0x7d4] ss:$8 sps:$4 sm:$0xff]  }
 0x2da   : > { %v10124_v45 = vld [vmem:[%s11316_s23 + $0xfd4] ss:$8 sps:$4 sm:$0xff]  }
 0x2dc   : > { %7991 = vmatpush1.bf16.msra.mxu1 %v10035_v46  ;;  %8335 = vmatpush1.bf16.msra.mxu0 %v10038_v47  ;;  %v10119_v46 = vld [vmem:[%s11316_s23 + $0x7d0] ss:$8 sps:$4 sm:$0xff]  }
 0x2dd   : > { %8003 = vmatprep.subr.bf16.mxu1 %v10043_v58  ;;  %8347 = vmatprep.subr.bf16.mxu0 %v10046_v59  ;;  %v10122_v47 = vld [vmem:[%s11316_s23 + $0xfd0] ss:$8 sps:$4 sm:$0xff]   ;;  %v10127_v58 = vld [vmem:[%s11316_s23 + $0x7e4] ss:$8 sps:$4 sm:$0xff]  }
 0x2de   : > { %v10130_v59 = vld [vmem:[%s11316_s23 + $0xfe4] ss:$8 sps:$4 sm:$0xff]  }
 0x2df   : > { %7993 = vmatmul.mubr.bf16.vlgmr.msra.gmra.mrb[0].mxu1 %v8725_v61  ;;  %8337 = vmatmul.mubr.bf16.vlgmr.msra.gmra.mrb[0].mxu0 %v8741_v62  ;;  %v10125_v61 = vld [vmem:[%s11316_s23 + $0x7e0] ss:$8 sps:$4 sm:$0xff]  }
 0x2e0   : > { %8004 = vmatpush1.bf16.msra.mxu1 %v10041_v39  ;;  %8348 = vmatpush1.bf16.msra.mxu0 %v10044_v55  ;;  %v10128_v62 = vld [vmem:[%s11316_s23 + $0xfe0] ss:$8 sps:$4 sm:$0xff]   ;;  %v10133_v39 = vld [vmem:[%s11316_s23 + $0x7f4] ss:$8 sps:$4 sm:$0xff]  }
 0x2e1   : > { %8005 = vmatprep.subr.bf16.mxu1 %v10049_v56  ;;  %8349 = vmatprep.subr.bf16.mxu0 %v10052_v57  ;;  %v10136_v55 = vld [vmem:[%s11316_s23 + $0xff4] ss:$8 sps:$4 sm:$0xff]   ;;  %v10131_v56 = vld [vmem:[%s11316_s23 + $0x7f0] ss:$8 sps:$4 sm:$0xff]  }
 0x2e2   : > { %8035 = vmatprep.mubr.bf16.mxu1 %v8728_v8  ;;  %8379 = vmatprep.mubr.bf16.mxu0 %v8744_v9  ;;  %v10134_v57 = vld [vmem:[%s11316_s23 + $0xff0] ss:$8 sps:$4 sm:$0xff]   ;;  %v8727_v8 = vcombine.low %v11941_v60, %v11950_v63  ;;  %v8743_v9 = vcombine.low %v11955_v4, %v11960_v7  ;;  %s8711_s23 = sshll.u32 %s10171_s17, 1 }
 0x2e3   : > { %p4427_p11 = scmp.lt.s32.totalorder %s8711_s23, 3 }
 0x2e4   : > { %8006 = vmatpush1.bf16.msra.mxu1 %v10047_v10  ;;  %8350 = vmatpush1.bf16.msra.mxu0 %v10050_v11 }
 0x2e5   : > { %8007 = vmatprep.subr.bf16.mxu1 %v10055_v12  ;;  %8351 = vmatprep.subr.bf16.mxu0 %v10058_v13  ;;  %s12093_s23 = smov (!%p4427_p11, %s8711_s23), 3 }
 0x2e6   : > { %s4429_s11 = scalar_lea.vmem %s12082_s2, %s12093_s23  ;;  %s4434_s14 = scalar_lea.vmem %s12083_s3, %s12093_s23 }
 0x2e8   : > { %8008 = vmatpush1.bf16.msra.mxu1 %v10053_v14  ;;  %8352 = vmatpush1.bf16.msra.mxu0 %v10056_v15 }
 0x2e9   : > { %8009 = vmatprep.subr.bf16.mxu1 %v10061_v16  ;;  %8353 = vmatprep.subr.bf16.mxu0 %v10064_v17 }
 0x2ec   : > { %8010 = vmatpush1.bf16.msra.mxu1 %v10059_v18  ;;  %8354 = vmatpush1.bf16.msra.mxu0 %v10062_v19 }
 0x2ed   : > { %8011 = vmatprep.subr.bf16.mxu1 %v10067_v20  ;;  %8355 = vmatprep.subr.bf16.mxu0 %v10070_v21 }
 0x2f0   : > { %8012 = vmatpush1.bf16.msra.mxu1 %v10065_v22  ;;  %8356 = vmatpush1.bf16.msra.mxu0 %v10068_v23 }
 0x2f1   : > { %8013 = vmatprep.subr.bf16.mxu1 %v10073_v24  ;;  %8357 = vmatprep.subr.bf16.mxu0 %v10076_v0 }
 0x2f4   : > { %8014 = vmatpush1.bf16.msra.mxu1 %v10071_v1  ;;  %8358 = vmatpush1.bf16.msra.mxu0 %v10074_v2 }
 0x2f5   : > { %8015 = vmatprep.subr.bf16.mxu1 %v10079_v6  ;;  %8359 = vmatprep.subr.bf16.mxu0 %v10082_v25 }
 0x2f8   : > { %8016 = vmatpush1.bf16.msra.mxu1 %v10077_v26  ;;  %8360 = vmatpush1.bf16.msra.mxu0 %v10080_v29 }
 0x2f9   : > { %8017 = vmatprep.subr.bf16.mxu1 %v10085_v32  ;;  %8361 = vmatprep.subr.bf16.mxu0 %v10088_v33 }
 0x2fc   : > { %8018 = vmatpush1.bf16.msra.mxu1 %v10083_v36  ;;  %8362 = vmatpush1.bf16.msra.mxu0 %v10086_v3 }
 0x2fd   : > { %8019 = vmatprep.subr.bf16.mxu1 %v10091_v5  ;;  %8363 = vmatprep.subr.bf16.mxu0 %v10094_v27 }
 0x300   : > { %8020 = vmatpush1.bf16.msra.mxu1 %v10089_v28  ;;  %8364 = vmatpush1.bf16.msra.mxu0 %v10092_v37 }
 0x301   : > { %8021 = vmatprep.subr.bf16.mxu1 %v10097_v40  ;;  %8365 = vmatprep.subr.bf16.mxu0 %v10100_v41 }
 0x304   : > { %8022 = vmatpush1.bf16.msra.mxu1 %v10095_v44  ;;  %8366 = vmatpush1.bf16.msra.mxu0 %v10098_v30 }
 0x305   : > { %8023 = vmatprep.subr.bf16.mxu1 %v10103_v31  ;;  %8367 = vmatprep.subr.bf16.mxu0 %v10106_v34 }
 0x308   : > { %8024 = vmatpush1.bf16.msra.mxu1 %v10101_v48  ;;  %8368 = vmatpush1.bf16.msra.mxu0 %v10104_v49 }
 0x309   : > { %8025 = vmatprep.subr.bf16.mxu1 %v10109_v50  ;;  %8369 = vmatprep.subr.bf16.mxu0 %v10112_v51 }
 0x30c   : > { %8026 = vmatpush1.bf16.msra.mxu1 %v10107_v52  ;;  %8370 = vmatpush1.bf16.msra.mxu0 %v10110_v53 }
 0x30d   : > { %8027 = vmatprep.subr.bf16.mxu1 %v10115_v54  ;;  %8371 = vmatprep.subr.bf16.mxu0 %v10118_v38 }
 0x310   : > { %8028 = vmatpush1.bf16.msra.mxu1 %v10113_v42  ;;  %8372 = vmatpush1.bf16.msra.mxu0 %v10116_v43  ;;  %v10181_v42 = vmov 1966171168  }
 0x311   : > { %8029 = vmatprep.subr.bf16.mxu1 %v10121_v35  ;;  %8373 = vmatprep.subr.bf16.mxu0 %v10124_v45  ;;  %v8448_v43 = vunpack.c.l.s4 %v10181_v42  ;;  %v8450_v35 = vlaneseq }
 0x313   : > { %v8449_v45 = vunpack.c.0.s8 %v8448_v43 }
 0x314   : > { %8030 = vmatpush1.bf16.msra.mxu1 %v10119_v46  ;;  %8374 = vmatpush1.bf16.msra.mxu0 %v10122_v47  ;;  %v8451_v46 = vshrl.u32 %v8450_v35, 7 }
 0x315   : > { %8031 = vmatprep.subr.bf16.mxu1 %v10127_v58  ;;  %8375 = vmatprep.subr.bf16.mxu0 %v10130_v59 }
 0x316   : > { %v8452_v58 = vsub.s32 %v8449_v45, %v8451_v46 }
 0x318   : > { %8032 = vmatpush1.bf16.msra.mxu1 %v10125_v61  ;;  %8376 = vmatpush1.bf16.msra.mxu0 %v10128_v62 }
 0x319   : > { %8033 = vmatprep.subr.bf16.mxu1 %v10133_v39  ;;  %8377 = vmatprep.subr.bf16.mxu0 %v10136_v55  ;;  %v8439_v39 = vld [vmem:[%s4429_s11] sm:$0x3] }
 0x31c   : > { %8034 = vmatpush1.bf16.msra.mxu1 %v10131_v56  ;;  %8378 = vmatpush1.bf16.msra.mxu0 %v10134_v57  ;;  %v8467_v56 = vsub.s32 0, %v8451_v46  ;;  %v8471_v57 = vsub.s32 1, %v8451_v46 }
 0x31f   : > { %8036 = vmatmul.mubr.bf16.vlgmr.msra.gmra.mrb[0].mxu1 %v8727_v8  ;;  %8380 = vmatmul.mubr.bf16.vlgmr.msra.gmra.mrb[0].mxu0 %v8743_v9 }
 0x3f2   : > { %v8037_v10 = vpop.f32.mrb[0].mxu1  ;;  %v8381_v11 = vpop.f32.mrb[0].mxu0 }
 0x3f3   : > { %v12032_v12 = vadd.f32 %v8381_v11, %v8037_v10  ;;  %v8039_v13 = vpop.f32.mrb[1].mxu1  ;;  %v8383_v14 = vpop.f32.mrb[1].mxu0 }
 0x3f4   : > { %v12034_v15 = vadd.f32 %v8383_v14, %v8039_v13  ;;  %v8041_v16 = vpop.f32.mrb[2].mxu1  ;;  %v8385_v17 = vpop.f32.mrb[2].mxu0 }
 0x3f5   : > { %v12036_v18 = vadd.f32 %v8385_v17, %v8041_v16  ;;  %v8043_v60 = vpop.f32.mrb[3].mxu1  ;;  %v8387_v63 = vpop.f32.mrb[3].mxu0 }
 0x3f6   : > { %v12038_v19 = vadd.f32 %v8387_v63, %v8043_v60 }
 0x3f7   : > { %v8390_v4 = vadd.f32 %v12036_v18, %v12032_v12 }
 0x3f8   : > { %v8397_v7 = vadd.f32 %v12038_v19, %v12034_v15 }
 0x3f9   : > { %v8391_v20 = vrot.slane %v8390_v4, 4 }
 0x3fa   : > { %v8398_v21 = vrot.slane %v8397_v7, 4 }
 0x3fb   : > { %v8392_v22 = vadd.f32 %v8391_v20, %v8390_v4 }
 0x3fc   : > { %v8399_v23 = vadd.f32 %v8398_v21, %v8397_v7  ;;  %v8463_v7 = vld [vmem:[%s4434_s14] sm:$0x3] }
 0x3fd   : > { %v8393_v24 = vrot.slane %v8392_v22, 2 }
 0x3fe   : > { %v8400_v0 = vrot.slane %v8399_v23, 2 }
 0x3ff   : > { %v8394_v1 = vadd.f32 %v8393_v24, %v8392_v22 }
 0x400   : > { %v8401_v2 = vadd.f32 %v8400_v0, %v8399_v23 }
 0x401   : > { %v8395_v6 = vrot.slane %v8394_v1, 1 }
 0x402   : > { %v8402_v25 = vrot.slane %v8401_v2, 1 }
 0x403   : > { %v8396_v26 = vadd.f32 %v8395_v6, %v8394_v1 }
 0x404   : > { %v8403_v29 = vadd.f32 %v8402_v25, %v8401_v2 }
 0x405   : > { %v8404_v32 = vmul.f32 0.125, %v8396_v26 }
 0x406   : > { %v8405_v33 = vmul.f32 0.125, %v8403_v29 }
 0x407   : > { %v8406_v36 = vsub.f32 %v12032_v12, %v8404_v32 }
 0x408   : > { %v8407_v3 = vsub.f32 %v12034_v15, %v8405_v33 }
 0x409   : > { %v8419_v5 = vmul.f32 %v8406_v36, %v8406_v36 }
 0x40a   : > { %v8420_v27 = vmul.f32 %v8407_v3, %v8407_v3 }
 0x40b   : > { %v8424_v28 = vrot.slane %v8419_v5, 4 }
 0x40c   : > { %v8431_v37 = vrot.slane %v8420_v27, 4 }
 0x40d   : > { %v8425_v40 = vadd.f32 %v8424_v28, %v8419_v5 }
 0x40e   : > { %v8432_v41 = vadd.f32 %v8431_v37, %v8420_v27 }
 0x40f   : > { %v8426_v44 = vrot.slane %v8425_v40, 2 }
 0x410   : > { %v8433_v30 = vrot.slane %v8432_v41, 2 }
 0x411   : > { %v8427_v31 = vadd.f32 %v8426_v44, %v8425_v40 }
 0x412   : > { %v8434_v34 = vadd.f32 %v8433_v30, %v8432_v41 }
 0x413   : > { %v8428_v48 = vrot.slane %v8427_v31, 1 }
 0x414   : > { %v8435_v49 = vrot.slane %v8434_v34, 1 }
 0x415   : > { %v8429_v50 = vadd.f32 %v8428_v48, %v8427_v31 }
 0x416   : > { %v8436_v51 = vadd.f32 %v8435_v49, %v8434_v34 }
 0x417   : > { %v8437_v52 = vmul.f32 0.125, %v8429_v50 }
 0x418   : > { %v8438_v53 = vmul.f32 0.125, %v8436_v51 }
 0x419   : > { %v8440_v54 = vadd.f32 1e-05, %v8437_v52 }
 0x41a   : > { %v8441_v38 = vadd.f32 1e-05, %v8438_v53 }
 0x41b   : > { %10137 = vrsqrt.f32 %v8440_v54 }
 0x41c   : > { %10139 = vrsqrt.f32 %v8441_v38 }
 0x425   : > { %v10138_v47 = vpop.eup %10137 }
 0x426   : > { %v10140_v59 = vpop.eup %10139 }
 0x427   : > { %v8446_v61 = vcombine.low %v10138_v47, %v10140_v59 }
 0x429   : > { %v8453_v62 = vrot.slane %v8446_v61, %v8452_v58 }
 0x42b   : > { %v8460_v55 = vrot.slane %v8453_v62, %v8452_v58 }
 0x42d   : > { %v8462_v8 = vmul.f32 %v8460_v55, %v8439_v39 }
 0x42f   : > { %v8468_v9 = vrot.slane %v8462_v8, %v8467_v56  ;;  %v8472_v10 = vrot.slane %v8462_v8, %v8471_v57 }
 0x431   : > { %v8475_v11 = vmul.f32 %v8468_v9, %v8404_v32  ;;  %v8476_v13 = vmul.f32 %v8472_v10, %v8405_v33  ;;  %v8496_v14 = vmul.f32 %v12032_v12, %v8468_v9  ;;  %v8497_v16 = vmul.f32 %v12034_v15, %v8472_v10 }
 0x432   : > { %v8498_v17 = vmul.f32 %v12036_v18, %v8468_v9  ;;  %v8499_v60 = vmul.f32 %v12038_v19, %v8472_v10 }
 0x433   : > { %v8479_v63 = vcombine.low %v8475_v11, %v8476_v13 }
 0x435   : > { %v8486_v4 = vrot.slane %v8479_v63, %v8452_v58 }
 0x437   : > { %v8493_v20 = vrot.slane %v8486_v4, %v8452_v58 }
 0x439   : > { %v8495_v21 = vsub.f32 %v8463_v7, %v8493_v20 }
 0x43b   : > { %v8504_v22 = vrot.slane %v8495_v21, %v8467_v56  ;;  %v8508_v23 = vrot.slane %v8495_v21, %v8471_v57 }
 0x43d   : > { %v8511_v24 = vadd.f32 %v8504_v22, %v8496_v14  ;;  %v8512_v12 = vadd.f32 %v8508_v23, %v8497_v16  ;;  %v8513_v0 = vadd.f32 %v8504_v22, %v8498_v17  ;;  %v8514_v1 = vadd.f32 %v8508_v23, %v8499_v60 }
 0x43f   : > { %vm8515_vm0 = vcmp.gt.f32.partialorder %v8511_v24, 0.0  ;;  %vm8516_vm1 = vcmp.gt.f32.partialorder %v8512_v12, 0.0  ;;  %vm8517_vm2 = vcmp.gt.f32.partialorder %v8513_v0, 0.0  ;;  %vm8518_vm3 = vcmp.gt.f32.partialorder %v8514_v1, 0.0 }
 0x440   : > { %v8519_v15 = vmul.f32 0.2, %v8511_v24  ;;  %v8520_v18 = vmul.f32 0.2, %v8512_v12  ;;  %v8521_v19 = vmul.f32 0.2, %v8513_v0 }
 0x441   : > { %v8522_v2 = vmul.f32 0.2, %v8514_v1  ;;  %8547 = sbr.rel (!%p10242_p6) target bundleno = 1103 (0x44f), region = 92 }
 0x442   : > { %v8523_v6 = vsel %vm8515_vm0, %v8511_v24, %v8519_v15  ;;  %v8524_v25 = vsel %vm8516_vm1, %v8512_v12, %v8520_v18  ;;  %v8525_v26 = vsel %vm8517_vm2, %v8513_v0, %v8521_v19 }
 0x443   : > { %v8526_v29 = vsel %vm8518_vm3, %v8514_v1, %v8522_v2  ;;  %v9265_v32 = vpack.c.bf16 %v8524_v25, %v8523_v6 }
 0x444   : > { %v9266_v33 = vpack.c.bf16 %v8526_v29, %v8525_v26 }
 0x445   : > { %8539 = vst [vmem:[%s4417_s22] sm:$0xff] %v9265_v32 }
 0x446   : > { %8540 = vst [vmem:[%s4417_s22 + $0x8] sm:$0xff] %v9266_v33 }
 0x44c   : > { %v8583_v36 = vld [vmem:[%s4417_s22] sm:$0xff] }
 0x44d   : > { %v8585_v3 = vld [vmem:[%s4417_s22 + $0x8] sm:$0xff]  ;;  %8584 = vst [vmem:[%s8553_s27] sm:$0xff] %v8583_v36 }
 0x44e   : > { %8586 = vst [vmem:[%s8553_s27 + $0x10] sm:$0xff] %v8585_v3 }
 0x44f PF: > { %s14_s19 = sadd.s32 1, %s10179_s19   ;;  %s12086_s15 = smov %s10167_s16 }
 0x450   : > { %p11_p12 = scmp.ge.s32.totalorder %s14_s19, 4   ;;  %s12087_s16 = smov %s10247_s25 }
 0x451   : > { %s12088_s17 = smov %s10175_s18  ;;  %s12089_s18 = smov %s12091_s20 }
 0x452   :  { %13 = sbr.rel (!%p11_p12) target bundleno = 3 (0x3), region = 176 }

</bundles_post_ra>
